<compile_context>
chip_gen: v5e
topology: v5e:2x2
jax: 0.10.0
libtpu: 0.0.40
codegen_flags: <defaults>
</compile_context>

<pallas_src>
import numpy as np
import jax
import jax.numpy as jnp
from jax.experimental import pallas as pl
from jax.experimental.pallas import tpu as pltpu

# ---------------------------- model dimensions -----------------------------
NUM_NUMERIC = 43
NUM_CLASSES = 9
STEM_CH = 32          # efficientnet_b0 stem out_channels
EFFNET_DIM = 1280     # efficientnet_b0 classifier in_features
FF_HID = 64
FF_OUT = 32
BN_EPS = 1e-3         # torchvision EfficientNet BatchNorm eps
CLS_PAD = 128         # classifier output padded to a full lane width


# ------------------------------- fused kernel -------------------------------
def fused_kernel(img_ref, num_ref,
                 band_ref, bnshift_ref, pool_ref,
                 wp_ref, bp_ref,
                 w1_ref, b1_ref, w2_ref, b2_ref,
                 wccnn_ref, wcff_ref, bc_ref,
                 out_ref):
    """Stem (3x3/s1/p1 conv 1->32 + BN + SiLU + GAP) -> head, all in one kernel.

    img_ref     : [1, bt, H*W]     bf16 flattened single-channel images (lane-dense)
    num_ref     : [1, bt, 43]      f32 numeric features
    band_ref    : [H*W, H*W*32]    bf16 full conv band matrix (BN scale folded in;
                                   zero padding = absent taps)
    bnshift_ref : [1, H*W*32]      f32 BN shift (beta - mean*scale) tiled over H*W
    pool_ref    : [H*W*32, 32]     bf16 average-pool matrix, 1/(H*W) folded in
    wp_ref      : [32, 1280]       bf16 stand-in backbone projection (see TODO above)
    w*_ref      : FF MLP + classifier weights (classifier padded 9 -> 128 lanes)
    out_ref     : [1, bt, 128]     lane-dense logits (first 9 lanes are real)
    """
    # ---- stem conv as ONE bf16 band matmul on the MXU (K = H*W) -------------
    img = img_ref[0]                                                  # [bt, HW] bf16
    acc = jnp.dot(img, band_ref[...],
                  preferred_element_type=jnp.float32)                 # [bt, HW*32] f32

    # BatchNorm shift (scale already folded into the band matrix) + SiLU.
    # SiLU via a single tanh EUP op: x * sigmoid(x) = 0.5 * x * (1 + tanh(x/2)).
    y = acc + bnshift_ref[...]
    y = (0.5 * y) * (jnp.tanh(0.5 * y) + 1.0)

    # Global average pool over H*W spatial positions, as one small matmul
    # (bf16 operands, f32 accumulation; 1/(H*W) folded into pool_ref).
    pooled = jnp.dot(y.astype(jnp.bfloat16), pool_ref[...],
                     preferred_element_type=jnp.float32)              # [bt, 32]

    # TODO(synk): fixed 32->1280 linear projection standing in for the
    # EfficientNet-B0 MBConv stack so downstream shapes match exactly.
    cnn_feat = jnp.dot(pooled.astype(jnp.bfloat16), wp_ref[...],
                       preferred_element_type=jnp.float32) + bp_ref[...]   # [bt, 1280]

    # ---- FF MLP on numeric features -----------------------------------------
    num = num_ref[0]                                                  # [bt, 43]
    h1 = jnp.maximum(jnp.dot(num, w1_ref[...],
                             preferred_element_type=jnp.float32) + b1_ref[...], 0.0)
    ff = jnp.maximum(jnp.dot(h1, w2_ref[...],
                             preferred_element_type=jnp.float32) + b2_ref[...], 0.0)

    # ---- classifier: concat+Linear as an exact split matmul, lane-dense -----
    logits = (jnp.dot(cnn_feat.astype(jnp.bfloat16), wccnn_ref[...],
                      preferred_element_type=jnp.float32)
              + jnp.dot(ff, wcff_ref[...], preferred_element_type=jnp.float32)
              + bc_ref[...])                                          # [bt, 128]
    out_ref[0] = logits


# ---------------------------- batch-tiling choice ----------------------------
def _batch_tiling(batch):
    """Small batches: one grid step (no MXU-starving splits, no grid overhead).
    Large batches: 128-row tiles, keeping the f32 activation slab ~4 MiB and
    giving multi-TensorCore chips several parallel steps."""
    if batch <= 128:
        return batch, 1
    bt = 128
    nb = -(-batch // bt)
    return bt, nb


# ------------------------------- forward wrapper -----------------------------
def multimodal_forward(image, numeric, kp):
    """image: [B, 1, H, W] (NCHW, single channel), numeric: [B, 43] -> [B, 9]."""
    B = image.shape[0]
    H, W = image.shape[2], image.shape[3]
    HW = H * W
    bt, nb = _batch_tiling(B)
    Bp = bt * nb

    x = image[:, 0, :, :].reshape(B, HW).astype(jnp.bfloat16)        # [B, H*W] lane-dense
    num = numeric.astype(jnp.float32)
    if Bp != B:
        x = jnp.pad(x, ((0, Bp - B), (0, 0)))
        num = jnp.pad(num, ((0, Bp - B), (0, 0)))
    x = x.reshape(nb, bt, HW)
    num = num.reshape(nb, bt, NUM_NUMERIC)

    wc = STEM_CH * HW
    full = lambda shape: pl.BlockSpec(shape, lambda b: (0,) * len(shape))

    out = pl.pallas_call(
        fused_kernel,
        out_shape=jax.ShapeDtypeStruct((nb, bt, CLS_PAD), jnp.float32),
        grid=(nb,),
        in_specs=[
            pl.BlockSpec((1, bt, HW), lambda b: (b, 0, 0)),
            pl.BlockSpec((1, bt, NUM_NUMERIC), lambda b: (b, 0, 0)),
            full((HW, wc)),
            full((1, wc)),
            full((wc, STEM_CH)),
            full((STEM_CH, EFFNET_DIM)),
            full((1, EFFNET_DIM)),
            full((NUM_NUMERIC, FF_HID)),
            full((1, FF_HID)),
            full((FF_HID, FF_OUT)),
            full((1, FF_OUT)),
            full((EFFNET_DIM, CLS_PAD)),
            full((FF_OUT, CLS_PAD)),
            full((1, CLS_PAD)),
        ],
        out_specs=pl.BlockSpec((1, bt, CLS_PAD), lambda b: (b, 0, 0)),
        compiler_params=pltpu.CompilerParams(
            dimension_semantics=("parallel",),
            vmem_limit_bytes=48 * 1024 * 1024),
    )(x, num,
      kp["band"], kp["bn_shift"], kp["pool"],
      kp["w_proj"], kp["b_proj"],
      kp["w_ff1"], kp["b_ff1"], kp["w_ff2"], kp["b_ff2"],
      kp["w_cls_cnn"], kp["w_cls_ff"], kp["b_cls"])

    return out.reshape(Bp, CLS_PAD)[:B, :NUM_CLASSES]


# ---------------------- parameter init & kernel-side prep --------------------
def init_params(key):
    ks = jax.random.split(key, 12)
    w_conv = 0.1 * jax.random.normal(ks[0], (3, 3, STEM_CH), jnp.float32)     # [kh, kw, C]
    # BatchNorm eval-mode statistics (nontrivial to exercise the full folding).
    bn_gamma = 1.0 + 0.1 * jax.random.normal(ks[1], (STEM_CH,), jnp.float32)
    bn_beta = 0.1 * jax.random.normal(ks[2], (STEM_CH,), jnp.float32)
    bn_mean = 0.05 * jax.random.normal(ks[3], (STEM_CH,), jnp.float32)
    bn_var = 1.0 + 0.1 * jax.random.uniform(ks[4], (STEM_CH,), jnp.float32)

    w_proj = 0.05 * jax.random.normal(ks[5], (STEM_CH, EFFNET_DIM), jnp.float32)
    b_proj = 0.01 * jax.random.normal(ks[6], (1, EFFNET_DIM), jnp.float32)

    w_ff1 = 0.1 * jax.random.normal(ks[7], (NUM_NUMERIC, FF_HID), jnp.float32)
    b_ff1 = jnp.zeros((1, FF_HID), jnp.float32)
    w_ff2 = 0.1 * jax.random.normal(ks[8], (FF_HID, FF_OUT), jnp.float32)
    b_ff2 = jnp.zeros((1, FF_OUT), jnp.float32)

    w_cls_cnn = 0.05 * jax.random.normal(ks[9], (EFFNET_DIM, NUM_CLASSES), jnp.float32)
    w_cls_ff = 0.05 * jax.random.normal(ks[10], (FF_OUT, NUM_CLASSES), jnp.float32)
    b_cls = 0.01 * jax.random.normal(ks[11], (1, NUM_CLASSES), jnp.float32)

    return dict(w_conv=w_conv,
                bn_gamma=bn_gamma, bn_beta=bn_beta, bn_mean=bn_mean, bn_var=bn_var,
                w_proj=w_proj, b_proj=b_proj,
                w_ff1=w_ff1, b_ff1=b_ff1, w_ff2=w_ff2, b_ff2=b_ff2,
                w_cls_cnn=w_cls_cnn, w_cls_ff=w_cls_ff, b_cls=b_cls)


def _conv_band_matrix(w_conv, H, W):
    """Full band matrix so the 3x3/s1/p1 conv (1 -> C channels) becomes one matmul
    [B, H*W] @ [H*W, H*W*C].  Rows index input pixel (hi, wi); columns index
    (ho, wo, c).  Out-of-range taps (the zero padding) are simply absent."""
    wcv = np.asarray(w_conv, np.float32)                # [3, 3, C]
    C = wcv.shape[-1]
    band = np.zeros((H, W, H, W, C), np.float32)        # [hi, wi, ho, wo, c]
    for kh in range(3):
        for kw in range(3):
            for ho in range(H):
                hi = ho + kh - 1
                if hi < 0 or hi >= H:
                    continue
                for wo in range(W):
                    wi = wo + kw - 1
                    if wi < 0 or wi >= W:
                        continue
                    band[hi, wi, ho, wo, :] = wcv[kh, kw, :]
    return band.reshape(H * W, H * W * C)


def prepare_params(params, H, W):
    """One-time weight preprocessing into the kernel-friendly layout."""
    HW = H * W
    gamma = np.asarray(params["bn_gamma"], np.float32)
    beta = np.asarray(params["bn_beta"], np.float32)
    mean = np.asarray(params["bn_mean"], np.float32)
    var = np.asarray(params["bn_var"], np.float32)
    scale = gamma / np.sqrt(var + BN_EPS)
    shift = beta - mean * scale

    band = _conv_band_matrix(params["w_conv"], H, W)
    band = band * np.tile(scale, HW)[None, :]            # fold BN scale into the conv
    pool = np.tile(np.eye(STEM_CH, dtype=np.float32), (HW, 1)) / float(HW)

    pad9 = lambda a: jnp.pad(a, ((0, 0), (0, CLS_PAD - NUM_CLASSES)))
    return dict(
        band=jnp.asarray(band, jnp.bfloat16),                          # [HW, HW*32]
        bn_shift=jnp.asarray(np.tile(shift, HW)[None, :], jnp.float32),  # [1, HW*32]
        pool=jnp.asarray(pool, jnp.bfloat16),                          # [HW*32, 32]
        w_proj=params["w_proj"].astype(jnp.bfloat16),
        b_proj=params["b_proj"].astype(jnp.float32),
        w_ff1=params["w_ff1"], b_ff1=params["b_ff1"],
        w_ff2=params["w_ff2"], b_ff2=params["b_ff2"],
        w_cls_cnn=pad9(params["w_cls_cnn"]).astype(jnp.bfloat16),
        w_cls_ff=pad9(params["w_cls_ff"]).astype(jnp.float32),
        b_cls=pad9(params["b_cls"]).astype(jnp.float32),
    )


# --------------------------- pure-JAX reference ------------------------------
def reference_forward(image, numeric, params):
    x = image.astype(jnp.float32)                                     # [B,1,H,W]
    w = jnp.transpose(params["w_conv"], (2, 0, 1))[:, None, :, :]     # OIHW
    conv = jax.lax.conv_general_dilated(
        x, w, window_strides=(1, 1), padding=((1, 1), (1, 1)),
        dimension_numbers=("NCHW", "OIHW", "NCHW"))
    scale = params["bn_gamma"] / jnp.sqrt(params["bn_var"] + BN_EPS)
    shift = params["bn_beta"] - params["bn_mean"] * scale
    y = conv * scale[None, :, None, None] + shift[None, :, None, None]
    y = y * jax.nn.sigmoid(y)                                         # SiLU
    pooled = jnp.mean(y, axis=(2, 3))                                 # [B, 32]
    cnn = pooled @ params["w_proj"] + params["b_proj"]
    h = jax.nn.relu(numeric @ params["w_ff1"] + params["b_ff1"])
    ff = jax.nn.relu(h @ params["w_ff2"] + params["b_ff2"])
    return cnn @ params["w_cls_cnn"] + ff @ params["w_cls_ff"] + params["b_cls"]


if __name__ == "__main__":
    key = jax.random.PRNGKey(0)
    k_img, k_num, k_param = jax.random.split(key, 3)

    B, H, W = 2, 16, 16
    image = jax.random.normal(k_img, (B, 1, H, W), jnp.float32)       # NCHW
    numeric = jax.random.normal(k_num, (B, NUM_NUMERIC), jnp.float32)
    params = init_params(k_param)
    kparams = prepare_params(params, H, W)

    logits = jax.jit(multimodal_forward)(image, numeric, kparams)
    logits = jax.block_until_ready(logits)

    assert logits.shape == (B, NUM_CLASSES), logits.shape
    assert bool(jnp.all(jnp.isfinite(logits)))

    # Correctness vs. pure-JAX f32 reference (loose tol: bf16 operands in the
    # conv/pool/head matmuls, f32 accumulation everywhere).
    ref = reference_forward(image, numeric, params)
    max_err = float(jnp.max(jnp.abs(logits - ref)))
    assert max_err < 2e-2, f"max abs error vs reference: {max_err}"

    print("KERNEL_OK")
</pallas_src>

<mosaic_0001>
module attributes {stable_mosaic.version = 11 : i64} {
  func.func @fused_kernel(%arg0: i32, %arg1: memref<1x2x256xbf16, #tpu.memory_space<vmem>>, %arg2: memref<1x2x43xf32, #tpu.memory_space<vmem>>, %arg3: memref<256x8192xbf16, #tpu.memory_space<vmem>>, %arg4: memref<1x8192xf32, #tpu.memory_space<vmem>>, %arg5: memref<8192x32xbf16, #tpu.memory_space<vmem>>, %arg6: memref<32x1280xbf16, #tpu.memory_space<vmem>>, %arg7: memref<1x1280xf32, #tpu.memory_space<vmem>>, %arg8: memref<43x64xf32, #tpu.memory_space<vmem>>, %arg9: memref<1x64xf32, #tpu.memory_space<vmem>>, %arg10: memref<64x32xf32, #tpu.memory_space<vmem>>, %arg11: memref<1x32xf32, #tpu.memory_space<vmem>>, %arg12: memref<1280x128xbf16, #tpu.memory_space<vmem>>, %arg13: memref<32x128xf32, #tpu.memory_space<vmem>>, %arg14: memref<1x128xf32, #tpu.memory_space<vmem>>, %arg15: memref<1x2x128xf32, #tpu.memory_space<vmem>>) attributes {dimension_semantics = [#tpu.dimension_semantics<parallel>], iteration_bounds = array<i64: 1>, scalar_prefetch = 0 : i64, scratch_operands = 0 : i64, tpu.core_type = #tpu.core_type<tc>, window_params = [{transform_indices = @transform_0, window_bounds = array<i64: 1, 2, 256>}, {transform_indices = @transform_1, window_bounds = array<i64: 1, 2, 43>}, {pipeline_mode = #tpu.pipeline_mode<synchronous>, transform_indices = @transform_2, window_bounds = array<i64: 256, 8192>}, {pipeline_mode = #tpu.pipeline_mode<synchronous>, transform_indices = @transform_3, window_bounds = array<i64: 1, 8192>}, {pipeline_mode = #tpu.pipeline_mode<synchronous>, transform_indices = @transform_4, window_bounds = array<i64: 8192, 32>}, {pipeline_mode = #tpu.pipeline_mode<synchronous>, transform_indices = @transform_5, window_bounds = array<i64: 32, 1280>}, {pipeline_mode = #tpu.pipeline_mode<synchronous>, transform_indices = @transform_6, window_bounds = array<i64: 1, 1280>}, {pipeline_mode = #tpu.pipeline_mode<synchronous>, transform_indices = @transform_7, window_bounds = array<i64: 43, 64>}, {pipeline_mode = #tpu.pipeline_mode<synchronous>, transform_indices = @transform_8, window_bounds = array<i64: 1, 64>}, {pipeline_mode = #tpu.pipeline_mode<synchronous>, transform_indices = @transform_9, window_bounds = array<i64: 64, 32>}, {pipeline_mode = #tpu.pipeline_mode<synchronous>, transform_indices = @transform_10, window_bounds = array<i64: 1, 32>}, {pipeline_mode = #tpu.pipeline_mode<synchronous>, transform_indices = @transform_11, window_bounds = array<i64: 1280, 128>}, {pipeline_mode = #tpu.pipeline_mode<synchronous>, transform_indices = @transform_12, window_bounds = array<i64: 32, 128>}, {pipeline_mode = #tpu.pipeline_mode<synchronous>, transform_indices = @transform_13, window_bounds = array<i64: 1, 128>}, {transform_indices = @transform_14, window_bounds = array<i64: 1, 2, 128>}]} {
    %c0 = arith.constant 0 : index
    %c0_0 = arith.constant 0 : index
    %c0_1 = arith.constant 0 : index
    %0 = vector.load %arg1[%c0, %c0_0, %c0_1] : memref<1x2x256xbf16, #tpu.memory_space<vmem>>, vector<1x2x256xbf16>
    %1 = vector.shape_cast %0 : vector<1x2x256xbf16> to vector<2x256xbf16>
    %c0_2 = arith.constant 0 : index
    %c0_3 = arith.constant 0 : index
    %2 = vector.load %arg3[%c0_2, %c0_3] : memref<256x8192xbf16, #tpu.memory_space<vmem>>, vector<256x8192xbf16>
    %cst = arith.constant dense<0.000000e+00> : vector<2x8192xf32>
    %3 = tpu.matmul %1, %2, %cst {dimension_numbers = #tpu.dot_dimension_numbers<[1], [0], [0], [1], [0, 0, 1, 1], [], []>} : vector<2x256xbf16>, vector<256x8192xbf16>, vector<2x8192xf32> -> vector<2x8192xf32>
    %c0_4 = arith.constant 0 : index
    %c0_5 = arith.constant 0 : index
    %4 = vector.load %arg4[%c0_4, %c0_5] : memref<1x8192xf32, #tpu.memory_space<vmem>>, vector<1x8192xf32>
    %5 = vector.broadcast %4 : vector<1x8192xf32> to vector<2x8192xf32>
    %6 = arith.addf %3, %5 : vector<2x8192xf32>
    %cst_6 = arith.constant 5.000000e-01 : f32
    %7 = vector.broadcast %cst_6 : f32 to vector<2x8192xf32>
    %8 = arith.mulf %7, %6 : vector<2x8192xf32>
    %cst_7 = arith.constant 5.000000e-01 : f32
    %9 = vector.broadcast %cst_7 : f32 to vector<2x8192xf32>
    %10 = arith.mulf %9, %6 : vector<2x8192xf32>
    %11 = math.tanh %10 : vector<2x8192xf32>
    %cst_8 = arith.constant 1.000000e+00 : f32
    %12 = vector.broadcast %cst_8 : f32 to vector<2x8192xf32>
    %13 = arith.addf %11, %12 : vector<2x8192xf32>
    %14 = arith.mulf %8, %13 : vector<2x8192xf32>
    %15 = arith.truncf %14 : vector<2x8192xf32> to vector<2x8192xbf16>
    %c0_9 = arith.constant 0 : index
    %c0_10 = arith.constant 0 : index
    %16 = vector.load %arg5[%c0_9, %c0_10] : memref<8192x32xbf16, #tpu.memory_space<vmem>>, vector<8192x32xbf16>
    %cst_11 = arith.constant dense<0.000000e+00> : vector<2x32xf32>
    %17 = tpu.matmul %15, %16, %cst_11 {dimension_numbers = #tpu.dot_dimension_numbers<[1], [0], [0], [1], [0, 0, 1, 1], [], []>} : vector<2x8192xbf16>, vector<8192x32xbf16>, vector<2x32xf32> -> vector<2x32xf32>
    %18 = arith.truncf %17 : vector<2x32xf32> to vector<2x32xbf16>
    %c0_12 = arith.constant 0 : index
    %c0_13 = arith.constant 0 : index
    %19 = vector.load %arg6[%c0_12, %c0_13] : memref<32x1280xbf16, #tpu.memory_space<vmem>>, vector<32x1280xbf16>
    %cst_14 = arith.constant dense<0.000000e+00> : vector<2x1280xf32>
    %20 = tpu.matmul %18, %19, %cst_14 {dimension_numbers = #tpu.dot_dimension_numbers<[1], [0], [0], [1], [0, 0, 1, 1], [], []>} : vector<2x32xbf16>, vector<32x1280xbf16>, vector<2x1280xf32> -> vector<2x1280xf32>
    %c0_15 = arith.constant 0 : index
    %c0_16 = arith.constant 0 : index
    %21 = vector.load %arg7[%c0_15, %c0_16] : memref<1x1280xf32, #tpu.memory_space<vmem>>, vector<1x1280xf32>
    %22 = vector.broadcast %21 : vector<1x1280xf32> to vector<2x1280xf32>
    %23 = arith.addf %20, %22 : vector<2x1280xf32>
    %c0_17 = arith.constant 0 : index
    %c0_18 = arith.constant 0 : index
    %c0_19 = arith.constant 0 : index
    %24 = vector.load %arg2[%c0_17, %c0_18, %c0_19] : memref<1x2x43xf32, #tpu.memory_space<vmem>>, vector<1x2x43xf32>
    %25 = vector.shape_cast %24 : vector<1x2x43xf32> to vector<2x43xf32>
    %c0_20 = arith.constant 0 : index
    %c0_21 = arith.constant 0 : index
    %26 = vector.load %arg8[%c0_20, %c0_21] : memref<43x64xf32, #tpu.memory_space<vmem>>, vector<43x64xf32>
    %cst_22 = arith.constant dense<0.000000e+00> : vector<2x64xf32>
    %27 = tpu.matmul %25, %26, %cst_22 {dimension_numbers = #tpu.dot_dimension_numbers<[1], [0], [0], [1], [0, 0, 1, 1], [], []>} : vector<2x43xf32>, vector<43x64xf32>, vector<2x64xf32> -> vector<2x64xf32>
    %c0_23 = arith.constant 0 : index
    %c0_24 = arith.constant 0 : index
    %28 = vector.load %arg9[%c0_23, %c0_24] : memref<1x64xf32, #tpu.memory_space<vmem>>, vector<1x64xf32>
    %29 = vector.broadcast %28 : vector<1x64xf32> to vector<2x64xf32>
    %30 = arith.addf %27, %29 : vector<2x64xf32>
    %cst_25 = arith.constant 0.000000e+00 : f32
    %31 = vector.broadcast %cst_25 : f32 to vector<2x64xf32>
    %32 = arith.maximumf %30, %31 : vector<2x64xf32>
    %c0_26 = arith.constant 0 : index
    %c0_27 = arith.constant 0 : index
    %33 = vector.load %arg10[%c0_26, %c0_27] : memref<64x32xf32, #tpu.memory_space<vmem>>, vector<64x32xf32>
    %cst_28 = arith.constant dense<0.000000e+00> : vector<2x32xf32>
    %34 = tpu.matmul %32, %33, %cst_28 {dimension_numbers = #tpu.dot_dimension_numbers<[1], [0], [0], [1], [0, 0, 1, 1], [], []>} : vector<2x64xf32>, vector<64x32xf32>, vector<2x32xf32> -> vector<2x32xf32>
    %c0_29 = arith.constant 0 : index
    %c0_30 = arith.constant 0 : index
    %35 = vector.load %arg11[%c0_29, %c0_30] : memref<1x32xf32, #tpu.memory_space<vmem>>, vector<1x32xf32>
    %36 = vector.broadcast %35 : vector<1x32xf32> to vector<2x32xf32>
    %37 = arith.addf %34, %36 : vector<2x32xf32>
    %cst_31 = arith.constant 0.000000e+00 : f32
    %38 = vector.broadcast %cst_31 : f32 to vector<2x32xf32>
    %39 = arith.maximumf %37, %38 : vector<2x32xf32>
    %40 = arith.truncf %23 : vector<2x1280xf32> to vector<2x1280xbf16>
    %c0_32 = arith.constant 0 : index
    %c0_33 = arith.constant 0 : index
    %41 = vector.load %arg12[%c0_32, %c0_33] : memref<1280x128xbf16, #tpu.memory_space<vmem>>, vector<1280x128xbf16>
    %cst_34 = arith.constant dense<0.000000e+00> : vector<2x128xf32>
    %42 = tpu.matmul %40, %41, %cst_34 {dimension_numbers = #tpu.dot_dimension_numbers<[1], [0], [0], [1], [0, 0, 1, 1], [], []>} : vector<2x1280xbf16>, vector<1280x128xbf16>, vector<2x128xf32> -> vector<2x128xf32>
    %c0_35 = arith.constant 0 : index
    %c0_36 = arith.constant 0 : index
    %43 = vector.load %arg13[%c0_35, %c0_36] : memref<32x128xf32, #tpu.memory_space<vmem>>, vector<32x128xf32>
    %cst_37 = arith.constant dense<0.000000e+00> : vector<2x128xf32>
    %44 = tpu.matmul %39, %43, %cst_37 {dimension_numbers = #tpu.dot_dimension_numbers<[1], [0], [0], [1], [0, 0, 1, 1], [], []>} : vector<2x32xf32>, vector<32x128xf32>, vector<2x128xf32> -> vector<2x128xf32>
    %45 = arith.addf %42, %44 : vector<2x128xf32>
    %c0_38 = arith.constant 0 : index
    %c0_39 = arith.constant 0 : index
    %46 = vector.load %arg14[%c0_38, %c0_39] : memref<1x128xf32, #tpu.memory_space<vmem>>, vector<1x128xf32>
    %47 = vector.broadcast %46 : vector<1x128xf32> to vector<2x128xf32>
    %48 = arith.addf %45, %47 : vector<2x128xf32>
    %c0_40 = arith.constant 0 : index
    %c0_41 = arith.constant 0 : index
    %c0_42 = arith.constant 0 : index
    %49 = vector.load %arg15[%c0_40, %c0_41, %c0_42] : memref<1x2x128xf32, #tpu.memory_space<vmem>>, vector<1x2x128xf32>
    %50 = vector.shape_cast %49 : vector<1x2x128xf32> to vector<2x128xf32>
    %51 = vector.shape_cast %48 : vector<2x128xf32> to vector<1x2x128xf32>
    tpu.vector_store %arg15[%c0_40, %c0_41, %c0_42], %51 {strides = array<i32>} : memref<1x2x128xf32, #tpu.memory_space<vmem>>, vector<1x2x128xf32>,
    return
  }
  func.func @transform_0(%arg0: i32) -> (i32, i32, i32) {
    %c0_i32 = arith.constant 0 : i32
    %c0_i32_0 = arith.constant 0 : i32
    %c0_i32_1 = arith.constant 0 : i32
    return %arg0, %c0_i32, %c0_i32_0 : i32, i32, i32
  }
  func.func @transform_1(%arg0: i32) -> (i32, i32, i32) {
    %c0_i32 = arith.constant 0 : i32
    %c0_i32_0 = arith.constant 0 : i32
    %c0_i32_1 = arith.constant 0 : i32
    return %arg0, %c0_i32, %c0_i32_0 : i32, i32, i32
  }
  func.func @transform_2(%arg0: i32) -> (i32, i32) {
    %c0_i32 = arith.constant 0 : i32
    %c0_i32_0 = arith.constant 0 : i32
    %c0_i32_1 = arith.constant 0 : i32
    return %c0_i32, %c0_i32_0 : i32, i32
  }
  func.func @transform_3(%arg0: i32) -> (i32, i32) {
    %c0_i32 = arith.constant 0 : i32
    %c0_i32_0 = arith.constant 0 : i32
    %c0_i32_1 = arith.constant 0 : i32
    return %c0_i32, %c0_i32_0 : i32, i32
  }
  func.func @transform_4(%arg0: i32) -> (i32, i32) {
    %c0_i32 = arith.constant 0 : i32
    %c0_i32_0 = arith.constant 0 : i32
    %c0_i32_1 = arith.constant 0 : i32
    return %c0_i32, %c0_i32_0 : i32, i32
  }
  func.func @transform_5(%arg0: i32) -> (i32, i32) {
    %c0_i32 = arith.constant 0 : i32
    %c0_i32_0 = arith.constant 0 : i32
    %c0_i32_1 = arith.constant 0 : i32
    return %c0_i32, %c0_i32_0 : i32, i32
  }
  func.func @transform_6(%arg0: i32) -> (i32, i32) {
    %c0_i32 = arith.constant 0 : i32
    %c0_i32_0 = arith.constant 0 : i32
    %c0_i32_1 = arith.constant 0 : i32
    return %c0_i32, %c0_i32_0 : i32, i32
  }
  func.func @transform_7(%arg0: i32) -> (i32, i32) {
    %c0_i32 = arith.constant 0 : i32
    %c0_i32_0 = arith.constant 0 : i32
    %c0_i32_1 = arith.constant 0 : i32
    return %c0_i32, %c0_i32_0 : i32, i32
  }
  func.func @transform_8(%arg0: i32) -> (i32, i32) {
    %c0_i32 = arith.constant 0 : i32
    %c0_i32_0 = arith.constant 0 : i32
    %c0_i32_1 = arith.constant 0 : i32
    return %c0_i32, %c0_i32_0 : i32, i32
  }
  func.func @transform_9(%arg0: i32) -> (i32, i32) {
    %c0_i32 = arith.constant 0 : i32
    %c0_i32_0 = arith.constant 0 : i32
    %c0_i32_1 = arith.constant 0 : i32
    return %c0_i32, %c0_i32_0 : i32, i32
  }
  func.func @transform_10(%arg0: i32) -> (i32, i32) {
    %c0_i32 = arith.constant 0 : i32
    %c0_i32_0 = arith.constant 0 : i32
    %c0_i32_1 = arith.constant 0 : i32
    return %c0_i32, %c0_i32_0 : i32, i32
  }
  func.func @transform_11(%arg0: i32) -> (i32, i32) {
    %c0_i32 = arith.constant 0 : i32
    %c0_i32_0 = arith.constant 0 : i32
    %c0_i32_1 = arith.constant 0 : i32
    return %c0_i32, %c0_i32_0 : i32, i32
  }
  func.func @transform_12(%arg0: i32) -> (i32, i32) {
    %c0_i32 = arith.constant 0 : i32
    %c0_i32_0 = arith.constant 0 : i32
    %c0_i32_1 = arith.constant 0 : i32
    return %c0_i32, %c0_i32_0 : i32, i32
  }
  func.func @transform_13(%arg0: i32) -> (i32, i32) {
    %c0_i32 = arith.constant 0 : i32
    %c0_i32_0 = arith.constant 0 : i32
    %c0_i32_1 = arith.constant 0 : i32
    return %c0_i32, %c0_i32_0 : i32, i32
  }
  func.func @transform_14(%arg0: i32) -> (i32, i32, i32) {
    %c0_i32 = arith.constant 0 : i32
    %c0_i32_0 = arith.constant 0 : i32
    %c0_i32_1 = arith.constant 0 : i32
    return %arg0, %c0_i32, %c0_i32_0 : i32, i32, i32
  }
}

</mosaic_0001>

<bundles_post_ra>
// kernel: multimodal_forward.1
= control target key start
LH: loop header
LB: loop body
LE: loop exit
PB: predicated region body
PF: predicated region fallthrough
CT: control target
= control target key end

     0   :  { %19 = vsyncpa [#allocation3], 0  ;;  %s25588_s0 = inlined_call_operand.vmem [shape: bf16[1,2,256], index: 0, kind: input, shape index: {}]   ;;  %s25589_s1 = inlined_call_operand.hbm [shape: f32[1,2,43], index: 1, kind: input, shape index: {}]   ;;  %s25590_s2 = inlined_call_operand.hbm [shape: bf16[256,8192], index: 2, kind: input, shape index: {}]   ;;  %s25591_s3 = inlined_call_operand.hbm [shape: f32[1,8192], index: 3, kind: input, shape index: {}]   ;;  %s25592_s4 = inlined_call_operand.vmem [shape: bf16[8192,32], index: 4, kind: input, shape index: {}]   ;;  %s25593_s5 = inlined_call_operand.hbm [shape: bf16[32,1280], index: 5, kind: input, shape index: {}]   ;;  %s25594_s6 = inlined_call_operand.hbm [shape: f32[1,1280], index: 6, kind: input, shape index: {}]   ;;  %s25595_s7 = inlined_call_operand.hbm [shape: f32[43,64], index: 7, kind: input, shape index: {}]   ;;  %s25596_s8 = inlined_call_operand.hbm [shape: f32[1,64], index: 8, kind: input, shape index: {}]   ;;  %s25597_s9 = inlined_call_operand.vmem [shape: f32[64,32], index: 9, kind: input, shape index: {}]   ;;  %s25598_s10 = inlined_call_operand.hbm [shape: f32[1,32], index: 10, kind: input, shape index: {}]   ;;  %s25599_s11 = inlined_call_operand.hbm [shape: bf16[1280,128], index: 11, kind: input, shape index: {}]   ;;  %s25600_s12 = inlined_call_operand.hbm [shape: f32[32,128], index: 12, kind: input, shape index: {}]   ;;  %s25601_s13 = inlined_call_operand.hbm [shape: f32[1,128], index: 13, kind: input, shape index: {}]   ;;  %s25602_s14 = inlined_call_operand.hbm [shape: f32[1,2,128], index: 14, kind: output, shape index: {}]  }
   0x1   :  { %20 = vsyncpa [#allocation6], 0 }
   0x2   :  { %21 = vsyncpa [#allocation9], 0 }
   0x3   :  { %22 = vsyncpa [#allocation12], 0 }
   0x4   :  { %23 = vsyncpa [#allocation15], 0 }
   0x5   :  { %24 = vsyncpa [#allocation18], 0  ;;  %s43_s15 = sshll.u32 %s25590_s2, 4  ;;  %s44_s15 = int_to_ptr.hbm [resolvable:$true] %s43_s15 }
   0x6   :  { %25 = vsyncpa [#allocation4], 0  ;;  %s23267_s16 = smov [#allocation5]   ;;  %s69_s20 = sshll.u32 %s25593_s5, 4  ;;  %s70_s20 = int_to_ptr.hbm [resolvable:$true] %s69_s20 }
   0x7   :  { %s45_s17 = sshll.u32 %s23267_s16, 4  ;;  %s23268_s21 = smov 4096   ;;  %s46_s17 = int_to_ptr.vmem [resolvable:$true] %s45_s17 }
   0x8   :  { %s23269_s22 = smov 256   ;;  %s23270_s23 = smov [#allocation8]  }
   0x9   :  { %51 = dma.hbm_to_vmem [thread:$0]  %s44_s15, 131072, %s46_s17, [#allocation6], %s23268_s21, %s23268_s21, %s23269_s22  }
   0xa   :  { %s71_s24 = sshll.u32 %s23270_s23, 4  ;;  %s23271_s25 = smov 640   ;;  %s72_s24 = int_to_ptr.vmem [resolvable:$true] %s71_s24 }
   0xb   :  { %s23272_s26 = smov 40   ;;  %s93_s28 = sshll.u32 %s25595_s7, 4  ;;  %s94_s28 = int_to_ptr.hbm [resolvable:$true] %s93_s28 }
   0xc   :  { %77 = dma.hbm_to_vmem [thread:$0]  %s70_s20, 2560, %s72_s24, [#allocation9], %s23271_s25, %s23271_s25, %s23272_s26  }
   0xd   :  { %s23273_s29 = smov [#allocation11]   ;;  %s120_s18 = sshll.u32 %s25598_s10, 4  ;;  %s121_s18 = int_to_ptr.hbm [resolvable:$true] %s120_s18 }
   0xe   :  { %s95_s30 = sshll.u32 %s23273_s29, 4  ;;  %s23274_s15 = smov 128   ;;  %s96_s30 = int_to_ptr.vmem [resolvable:$true] %s95_s30 }
   0xf   :  { %s23275_s17 = smov 8   ;;  %s23276_s19 = smov [#allocation14]  }
  0x10   :  { %101 = dma.hbm_to_vmem [thread:$0]  %s94_s28, 768, %s96_s30, [#allocation12], %s23274_s15, %s23274_s15, %s23275_s17  }
  0x11   :  { %s122_s21 = sshll.u32 %s23276_s19, 4  ;;  %s143_s23 = sshll.u32 %s25600_s12, 4  ;;  %s123_s21 = int_to_ptr.vmem [resolvable:$true] %s122_s21  ;;  %s144_s23 = int_to_ptr.hbm [resolvable:$true] %s143_s23 }
  0x12   :  { %125 = dma.hbm_to_vmem [thread:$0]  %s121_s18, 16, %s123_s21, [#allocation15]  }
  0x13   :  { %s33_s25 = sshll.u32 %s25589_s1, 4  ;;  %s23277_s26 = smov [#allocation17]   ;;  %s34_s25 = int_to_ptr.hbm [resolvable:$true] %s33_s25 }
  0x14   :  { %s145_s2 = sshll.u32 %s23277_s26, 4  ;;  %s23278_s10 = smov [#allocation2]   ;;  %s146_s2 = int_to_ptr.vmem [resolvable:$true] %s145_s2 }
  0x15   :  { %151 = dma.hbm_to_vmem [thread:$0]  %s144_s23, 512, %s146_s2, [#allocation18], %s23274_s15, %s23274_s15, %s23275_s17  }
  0x16   :  { %s35_s27 = sshll.u32 %s23278_s10, 4  ;;  %s57_s30 = sshll.u32 %s25591_s3, 4  ;;  %s36_s27 = int_to_ptr.vmem [resolvable:$true] %s35_s27  ;;  %s58_s30 = int_to_ptr.hbm [resolvable:$true] %s57_s30 }
  0x17   :  { %38 = dma.hbm_to_vmem [thread:$0]  %s34_s25, 32, %s36_s27, [#allocation3]  }
  0x18   :  { %s83_s5 = sshll.u32 %s25594_s6, 4  ;;  %s23279_s18 = smov [#allocation7]   ;;  %s84_s5 = int_to_ptr.hbm [resolvable:$true] %s83_s5 }
  0x19   :  { %s59_s1 = sshll.u32 %s23279_s18, 4  ;;  %s23280_s19 = smov [#allocation10]   ;;  %s60_s1 = int_to_ptr.vmem [resolvable:$true] %s59_s1 }
  0x1a   :  { %62 = dma.hbm_to_vmem [thread:$0]  %s58_s30, 1024, %s60_s1, [#allocation6]  }
  0x1b   :  { %s85_s15 = sshll.u32 %s23280_s19, 4  ;;  %s107_s22 = sshll.u32 %s25596_s8, 4  ;;  %s86_s15 = int_to_ptr.vmem [resolvable:$true] %s85_s15  ;;  %s108_s22 = int_to_ptr.hbm [resolvable:$true] %s107_s22 }
  0x1c   :  { %88 = dma.hbm_to_vmem [thread:$0]  %s84_s5, 160, %s86_s15, [#allocation9]  }
  0x1d   :  { %s130_s23 = sshll.u32 %s25599_s11, 4  ;;  %s23281_s7 = smov [#allocation13]   ;;  %s131_s23 = int_to_ptr.hbm [resolvable:$true] %s130_s23 }
  0x1e   :  { %s109_s6 = sshll.u32 %s23281_s7, 4  ;;  %s23282_s24 = smov [#allocation16]   ;;  %s110_s6 = int_to_ptr.vmem [resolvable:$true] %s109_s6 }
  0x1f   :  { %112 = dma.hbm_to_vmem [thread:$0]  %s108_s22, 16, %s110_s6, [#allocation12]  }
  0x20   :  { %s132_s25 = sshll.u32 %s23282_s24, 4  ;;  %s23283_s26 = smov 64   ;;  %s133_s25 = int_to_ptr.vmem [resolvable:$true] %s132_s25 }
  0x21   :  { %s23284_s2 = smov 4   ;;  %s157_s27 = sshll.u32 %s25601_s13, 4  ;;  %s158_s27 = int_to_ptr.hbm [resolvable:$true] %s157_s27 }
  0x22   :  { %138 = dma.hbm_to_vmem [thread:$0]  %s131_s23, 10240, %s133_s25, [#allocation15], %s23283_s26, %s23283_s26, %s23284_s2  }
  0x23   :  { %s23285_s28 = smov [#allocation19]  }
  0x24   :  { %s159_s29 = sshll.u32 %s23285_s28, 4  ;;  %s160_s29 = int_to_ptr.vmem [resolvable:$true] %s159_s29 }
  0x25   :  { %162 = dma.hbm_to_vmem [thread:$0]  %s158_s27, 16, %s160_s29, [#allocation18]  }
  0x26   :  { %23253 = dma.done.wait [#allocation3], 32  }
  0x27   :  { %23254 = vsyncadd [#allocation3], 4294967264 }
  0x28   :  { %23255 = dma.done.wait [#allocation6], 132096  }
  0x29   :  { %23256 = vsyncadd [#allocation6], 4294835200 }
  0x2a   :  { %23257 = dma.done.wait [#allocation9], 2720  }
  0x2b   :  { %23258 = vsyncadd [#allocation9], 4294964576 }
  0x2c   :  { %23259 = dma.done.wait [#allocation12], 784  }
  0x2d   :  { %23260 = vsyncadd [#allocation12], 4294966512 }
  0x2e   :  { %23261 = dma.done.wait [#allocation15], 10256  }
  0x2f   :  { %23262 = vsyncadd [#allocation15], 4294957040 }
  0x30   :  { %23263 = dma.done.wait [#allocation18], 528  }
  0x31   :  { %23264 = vsyncadd [#allocation18], 4294966768  ;;  %v16400_v0 = vld [vmem:[#allocation5 + $0xe00] sm:$0xf]  ;;  %v21612_v5 = vld [vmem:[#allocation5 + $0xe04] sm:$0xf] }
  0x32   :  { %v21644_v1 = vld [vmem:[#allocation5 + $0xefc] sm:$0xf0]  ;;  %v16402_v6 = vld [vmem:[#allocation5 + $0xf00] sm:$0xf0]  ;;  %vm13560_vm0 = vcmask 261120   ;;  %vm13709_vm1 = vcmask 1042432  }
  0x33   :  { %v18448_v2 = vld [vmem:[#allocation5 + $0x1e00] sm:$0xf]  ;;  %v16401_v3 = vor.u32 %v21644_v1, %v16400_v0  ;;  %v16405_v8 = vor.u32 %v21612_v5, %v16402_v6  ;;  %v22124_v9 = vld [vmem:[#allocation5 + $0x1e04] sm:$0xf]  ;;  %vm13705_vm2 = vcmask 351232   ;;  %vm13746_vm3 = vcmask 523264  }
  0x34   :  { %v22156_v4 = vld [vmem:[#allocation5 + $0x1efc] sm:$0xf0]  ;;  %v18450_v10 = vld [vmem:[#allocation5 + $0x1f00] sm:$0xf0]  ;;  %s14591_s1 = sshll.u32 %s25602_s14, 4  ;;  %s14592_s1 = int_to_ptr.hbm [resolvable:$true] %s14591_s1 }
  0x35   :  { %v18449_v7 = vor.u32 %v22156_v4, %v18448_v2  ;;  %v16144_v11 = vld [vmem:[#allocation5 + $0xc00] sm:$0xf]  ;;  %6503 = vmatpush.bf16.msra.mxu0 %v16401_v3  ;;  %v18453_v12 = vor.u32 %v22124_v9, %v18450_v10  ;;  %6529 = vmatpush.bf16.msra.mxu2 %v16405_v8  ;;  %v21548_v18 = vld [vmem:[#allocation5 + $0xc04] sm:$0xf] }
  0x36   :  { %v21580_v13 = vld [vmem:[#allocation5 + $0xcfc] sm:$0xf0]  ;;  %v16146_v19 = vld [vmem:[#allocation5 + $0xd00] sm:$0xf0] }
  0x37   :  { %v18192_v14 = vld [vmem:[#allocation5 + $0x1c00] sm:$0xf]  ;;  %6516 = vmatpush.bf16.msra.mxu1 %v18449_v7  ;;  %v16145_v16 = vor.u32 %v21580_v13, %v16144_v11  ;;  %v22060_v20 = vld [vmem:[#allocation5 + $0x1c04] sm:$0xf]  ;;  %6542 = vmatpush.bf16.msra.mxu3 %v18453_v12  ;;  %v16149_v21 = vor.u32 %v21548_v18, %v16146_v19 }
  0x38   :  { %v22092_v15 = vld [vmem:[#allocation5 + $0x1cfc] sm:$0xf0]  ;;  %v18194_v22 = vld [vmem:[#allocation5 + $0x1d00] sm:$0xf0] }
  0x39   :  { %v18193_v17 = vor.u32 %v22092_v15, %v18192_v14  ;;  %v15888_v23 = vld [vmem:[#allocation5 + $0xa00] sm:$0xf]  ;;  %v18197_v25 = vor.u32 %v22060_v20, %v18194_v22  ;;  %v21484_v28 = vld [vmem:[#allocation5 + $0xa04] sm:$0xf]  ;;  %6504 = vmatpush.bf16.msra.mxu0 %v16145_v16  ;;  %6530 = vmatpush.bf16.msra.mxu2 %v16149_v21 }
  0x3a   :  { %v21516_v24 = vld [vmem:[#allocation5 + $0xafc] sm:$0xf0]  ;;  %v15890_v30 = vld [vmem:[#allocation5 + $0xb00] sm:$0xf0] }
  0x3b   :  { %v17936_v26 = vld [vmem:[#allocation5 + $0x1a00] sm:$0xf]  ;;  %v15889_v29 = vor.u32 %v21516_v24, %v15888_v23  ;;  %v21996_v31 = vld [vmem:[#allocation5 + $0x1a04] sm:$0xf]  ;;  %6517 = vmatpush.bf16.msra.mxu1 %v18193_v17  ;;  %v15893_v34 = vor.u32 %v21484_v28, %v15890_v30  ;;  %6543 = vmatpush.bf16.msra.mxu3 %v18197_v25  ;;  %v16408_v28 = vld [vmem:[#allocation5 + $0xe08] sm:$0xf] }
  0x3c   :  { %v22028_v27 = vld [vmem:[#allocation5 + $0x1afc] sm:$0xf0]  ;;  %v17938_v32 = vld [vmem:[#allocation5 + $0x1b00] sm:$0xf0]  ;;  %v18456_v30 = vld [vmem:[#allocation5 + $0x1e08] sm:$0xf] }
  0x3d   :  { %v17937_v33 = vor.u32 %v22028_v27, %v17936_v26  ;;  %v15632_v35 = vld [vmem:[#allocation5 + $0x800] sm:$0xf]  ;;  %v17941_v38 = vor.u32 %v21996_v31, %v17938_v32  ;;  %v21420_v40 = vld [vmem:[#allocation5 + $0x804] sm:$0xf]  ;;  %6505 = vmatpush.bf16.msra.mxu0 %v15889_v29  ;;  %6531 = vmatpush.bf16.msra.mxu2 %v15893_v34  ;;  %v21645_v29 = vld [vmem:[#allocation5 + $0xf04] sm:$0xf0] }
  0x3e   :  { %v21452_v36 = vld [vmem:[#allocation5 + $0x8fc] sm:$0xf0]  ;;  %v15634_v41 = vld [vmem:[#allocation5 + $0x900] sm:$0xf0]  ;;  %v22157_v32 = vld [vmem:[#allocation5 + $0x1f04] sm:$0xf0] }
  0x3f   :  { %v17680_v37 = vld [vmem:[#allocation5 + $0x1800] sm:$0xf]  ;;  %v21932_v42 = vld [vmem:[#allocation5 + $0x1804] sm:$0xf]  ;;  %v15633_v44 = vor.u32 %v21452_v36, %v15632_v35  ;;  %6518 = vmatpush.bf16.msra.mxu1 %v17937_v33  ;;  %v15637_v46 = vor.u32 %v21420_v40, %v15634_v41  ;;  %6544 = vmatpush.bf16.msra.mxu3 %v17941_v38  ;;  %v21613_v33 = vld [vmem:[#allocation5 + $0xe0c] sm:$0xf]  ;;  %v16409_v40 = vor.u32 %v21645_v29, %v16408_v28 }
  0x40   :  { %v21964_v39 = vld [vmem:[#allocation5 + $0x18fc] sm:$0xf0]  ;;  %v17682_v43 = vld [vmem:[#allocation5 + $0x1900] sm:$0xf0]  ;;  %v16410_v34 = vld [vmem:[#allocation5 + $0xf08] sm:$0xf0]  ;;  %v18457_v41 = vor.u32 %v22157_v32, %v18456_v30 }
  0x41   :  { %v17681_v45 = vor.u32 %v21964_v39, %v17680_v37  ;;  %v15376_v47 = vld [vmem:[#allocation5 + $0x600] sm:$0xf]  ;;  %v17685_v50 = vor.u32 %v21932_v42, %v17682_v43  ;;  %v21356_v52 = vld [vmem:[#allocation5 + $0x604] sm:$0xf]  ;;  %6506 = vmatpush.bf16.msra.mxu0 %v15633_v44  ;;  %6532 = vmatpush.bf16.msra.mxu2 %v15637_v46  ;;  %v22125_v37 = vld [vmem:[#allocation5 + $0x1e0c] sm:$0xf]  ;;  %v16413_v42 = vor.u32 %v21613_v33, %v16410_v34 }
  0x42   :  { %v21388_v48 = vld [vmem:[#allocation5 + $0x6fc] sm:$0xf0]  ;;  %v15378_v53 = vld [vmem:[#allocation5 + $0x700] sm:$0xf0]  ;;  %v18458_v38 = vld [vmem:[#allocation5 + $0x1f08] sm:$0xf0] }
  0x43   :  { %v17424_v49 = vld [vmem:[#allocation5 + $0x1600] sm:$0xf]  ;;  %v21868_v54 = vld [vmem:[#allocation5 + $0x1604] sm:$0xf]  ;;  %v15377_v56 = vor.u32 %v21388_v48, %v15376_v47  ;;  %6519 = vmatpush.bf16.msra.mxu1 %v17681_v45  ;;  %v15381_v58 = vor.u32 %v21356_v52, %v15378_v53  ;;  %6545 = vmatpush.bf16.msra.mxu3 %v17685_v50  ;;  %v16152_v43 = vld [vmem:[#allocation5 + $0xc08] sm:$0xf]  ;;  %v18461_v46 = vor.u32 %v22125_v37, %v18458_v38 }
  0x44   :  { %v21900_v51 = vld [vmem:[#allocation5 + $0x16fc] sm:$0xf0]  ;;  %v17426_v55 = vld [vmem:[#allocation5 + $0x1700] sm:$0xf0]  ;;  %v21581_v44 = vld [vmem:[#allocation5 + $0xd04] sm:$0xf0] }
  0x45   :  { %v17425_v57 = vor.u32 %v21900_v51, %v17424_v49  ;;  %v15120_v59 = vld [vmem:[#allocation5 + $0x400] sm:$0xf]  ;;  %v17429_v62 = vor.u32 %v21868_v54, %v17426_v55  ;;  %v21292_v0 = vld [vmem:[#allocation5 + $0x404] sm:$0xf]  ;;  %6507 = vmatpush.bf16.msra.mxu0 %v15377_v56  ;;  %6533 = vmatpush.bf16.msra.mxu2 %v15381_v58  ;;  %v18200_v45 = vld [vmem:[#allocation5 + $0x1c08] sm:$0xf]  ;;  %v16153_v52 = vor.u32 %v21581_v44, %v16152_v43 }
  0x46   :  { %v21324_v60 = vld [vmem:[#allocation5 + $0x4fc] sm:$0xf0]  ;;  %v15122_v1 = vld [vmem:[#allocation5 + $0x500] sm:$0xf0]  ;;  %v22093_v47 = vld [vmem:[#allocation5 + $0x1d04] sm:$0xf0] }
  0x47   :  { %v17168_v61 = vld [vmem:[#allocation5 + $0x1400] sm:$0xf]  ;;  %v21804_v2 = vld [vmem:[#allocation5 + $0x1404] sm:$0xf]  ;;  %v15121_v4 = vor.u32 %v21324_v60, %v15120_v59  ;;  %6520 = vmatpush.bf16.msra.mxu1 %v17425_v57  ;;  %v15125_v6 = vor.u32 %v21292_v0, %v15122_v1  ;;  %6546 = vmatpush.bf16.msra.mxu3 %v17429_v62  ;;  %v21549_v48 = vld [vmem:[#allocation5 + $0xc0c] sm:$0xf]  ;;  %v18201_v55 = vor.u32 %v22093_v47, %v18200_v45 }
  0x48   :  { %v21836_v63 = vld [vmem:[#allocation5 + $0x14fc] sm:$0xf0]  ;;  %v17170_v3 = vld [vmem:[#allocation5 + $0x1500] sm:$0xf0]  ;;  %v16154_v49 = vld [vmem:[#allocation5 + $0xd08] sm:$0xf0] }
  0x49   :  { %v17169_v5 = vor.u32 %v21836_v63, %v17168_v61  ;;  %v14864_v7 = vld [vmem:[#allocation5 + $0x200] sm:$0xf]  ;;  %v17173_v10 = vor.u32 %v21804_v2, %v17170_v3  ;;  %v21228_v12 = vld [vmem:[#allocation5 + $0x204] sm:$0xf]  ;;  %6508 = vmatpush.bf16.msra.mxu0 %v15121_v4  ;;  %6534 = vmatpush.bf16.msra.mxu2 %v15125_v6  ;;  %v22061_v50 = vld [vmem:[#allocation5 + $0x1c0c] sm:$0xf]  ;;  %v16157_v56 = vor.u32 %v21549_v48, %v16154_v49 }
  0x4a   :  { %v21260_v8 = vld [vmem:[#allocation5 + $0x2fc] sm:$0xf0]  ;;  %v14866_v13 = vld [vmem:[#allocation5 + $0x300] sm:$0xf0]  ;;  %v18202_v51 = vld [vmem:[#allocation5 + $0x1d08] sm:$0xf0] }
  0x4b   :  { %v16912_v9 = vld [vmem:[#allocation5 + $0x1200] sm:$0xf]  ;;  %v21740_v14 = vld [vmem:[#allocation5 + $0x1204] sm:$0xf]  ;;  %v14865_v16 = vor.u32 %v21260_v8, %v14864_v7  ;;  %6521 = vmatpush.bf16.msra.mxu1 %v17169_v5  ;;  %v14869_v20 = vor.u32 %v21228_v12, %v14866_v13  ;;  %6547 = vmatpush.bf16.msra.mxu3 %v17173_v10  ;;  %v15896_v53 = vld [vmem:[#allocation5 + $0xa08] sm:$0xf]  ;;  %v18205_v60 = vor.u32 %v22061_v50, %v18202_v51 }
  0x4c   :  { %v21772_v11 = vld [vmem:[#allocation5 + $0x12fc] sm:$0xf0]  ;;  %v16914_v15 = vld [vmem:[#allocation5 + $0x1300] sm:$0xf0]  ;;  %v21517_v54 = vld [vmem:[#allocation5 + $0xb04] sm:$0xf0] }
  0x4d   :  { %v14608_v17 = vld [vmem:[#allocation5] sm:$0xf]  ;;  %v16913_v19 = vor.u32 %v21772_v11, %v16912_v9  ;;  %v21164_v23 = vld [vmem:[#allocation5 + $0x4] sm:$0xf]  ;;  %v16917_v24 = vor.u32 %v21740_v14, %v16914_v15  ;;  %6509 = vmatpush.bf16.msra.mxu0 %v14865_v16  ;;  %6535 = vmatpush.bf16.msra.mxu2 %v14869_v20  ;;  %v17944_v57 = vld [vmem:[#allocation5 + $0x1a08] sm:$0xf]  ;;  %v15897_v1 = vor.u32 %v21517_v54, %v15896_v53 }
  0x4e   :  { %v21196_v18 = vld [vmem:[#allocation5 + $0xfc] sm:$0xf0]  ;;  %v14610_v25 = vld [vmem:[#allocation5 + $0x100] sm:$0xf0]  ;;  %v22029_v58 = vld [vmem:[#allocation5 + $0x1b04] sm:$0xf0] }
  0x4f   :  { %v16656_v21 = vld [vmem:[#allocation5 + $0x1000] sm:$0xf]  ;;  %v21676_v26 = vld [vmem:[#allocation5 + $0x1004] sm:$0xf]  ;;  %v14609_v31 = vor.u32 %v21196_v18, %v14608_v17  ;;  %6522 = vmatpush.bf16.msra.mxu1 %v16913_v19  ;;  %v14613_v36 = vor.u32 %v21164_v23, %v14610_v25  ;;  %6548 = vmatpush.bf16.msra.mxu3 %v16917_v24  ;;  %v208_v59 = vld [vmem:[%s25588_s0] sm:$0x3]  ;;  %v17945_v2 = vor.u32 %v22029_v58, %v17944_v57 }
  0x50   :  { %v21708_v22 = vld [vmem:[#allocation5 + $0x10fc] sm:$0xf0]  ;;  %v16658_v27 = vld [vmem:[#allocation5 + $0x1100] sm:$0xf0]  ;;  %v21485_v61 = vld [vmem:[#allocation5 + $0xa0c] sm:$0xf] }
  0x51   :  { %v16657_v35 = vor.u32 %v21708_v22, %v16656_v21  ;;  %v16661_v39 = vor.u32 %v21676_v26, %v16658_v27  ;;  %6510 = vmatpush.bf16.msra.mxu0 %v14609_v31  ;;  %6536 = vmatpush.bf16.msra.mxu2 %v14613_v36  ;;  %v15898_v62 = vld [vmem:[#allocation5 + $0xb08] sm:$0xf0]  ;;  %1378 = vst [vmem:[#allocation1] ss:$9 sm:$0xff] %v208_v59  ;;  %v15640_v4 = vld [vmem:[#allocation5 + $0x808] sm:$0xf] }
  0x52   :  { %v21997_v63 = vld [vmem:[#allocation5 + $0x1a0c] sm:$0xf]  ;;  %v15901_v3 = vor.u32 %v21485_v61, %v15898_v62  ;;  %v21453_v5 = vld [vmem:[#allocation5 + $0x904] sm:$0xf0] }
  0x53   :  { %6523 = vmatpush.bf16.msra.mxu1 %v16657_v35  ;;  %6549 = vmatpush.bf16.msra.mxu3 %v16661_v39  ;;  %v17946_v0 = vld [vmem:[#allocation5 + $0x1b08] sm:$0xf0]  ;;  %v17688_v6 = vld [vmem:[#allocation5 + $0x1808] sm:$0xf]  ;;  %v15641_v13 = vor.u32 %v21453_v5, %v15640_v4  ;;  %v21614_v4 = vld [vmem:[#allocation5 + $0xe14] sm:$0xf] }
  0x54   :  { %v17949_v7 = vor.u32 %v21997_v63, %v17946_v0  ;;  %v21965_v8 = vld [vmem:[#allocation5 + $0x1904] sm:$0xf0]  ;;  %v21421_v9 = vld [vmem:[#allocation5 + $0x80c] sm:$0xf]  ;;  %v16416_v63 = vld [vmem:[#allocation5 + $0xe10] sm:$0xf] }
  0x55   :  { %6555 = vmatpush.bf16.msrb.mxu0 %v16409_v40  ;;  %6581 = vmatpush.bf16.msrb.mxu2 %v16413_v42  ;;  %v15642_v10 = vld [vmem:[#allocation5 + $0x908] sm:$0xf0]  ;;  %v15384_v14 = vld [vmem:[#allocation5 + $0x608] sm:$0xf]  ;;  %v17689_v16 = vor.u32 %v21965_v8, %v17688_v6  ;;  %v21646_v0 = vld [vmem:[#allocation5 + $0xf0c] sm:$0xf0] }
  0x56   :  { %v21933_v11 = vld [vmem:[#allocation5 + $0x180c] sm:$0xf]  ;;  %v21389_v15 = vld [vmem:[#allocation5 + $0x704] sm:$0xf0]  ;;  %v15645_v17 = vor.u32 %v21421_v9, %v15642_v10  ;;  %v16418_v5 = vld [vmem:[#allocation5 + $0xf10] sm:$0xf0] }
  0x57   :  { %6568 = vmatpush.bf16.msrb.mxu1 %v18457_v41  ;;  %6594 = vmatpush.bf16.msrb.mxu3 %v18461_v46  ;;  %v17690_v12 = vld [vmem:[#allocation5 + $0x1908] sm:$0xf0]  ;;  %v17432_v18 = vld [vmem:[#allocation5 + $0x1608] sm:$0xf]  ;;  %v15385_v27 = vor.u32 %v21389_v15, %v15384_v14  ;;  %v22126_v8 = vld [vmem:[#allocation5 + $0x1e14] sm:$0xf] }
  0x58   :  { %v23398_v19 = vld [vmem:[#allocation1] sm:$0xff]  ;;  %v23400_v20 = vld [vmem:[#allocation1 + $0x9] sm:$0xff]  ;;  %v17693_v21 = vor.u32 %v21933_v11, %v17690_v12  ;;  %v21901_v22 = vld [vmem:[#allocation5 + $0x1704] sm:$0xf0]  ;;  %v16417_v11 = vor.u32 %v21646_v0, %v16416_v63 }
  0x59   :  { %6556 = vmatpush.bf16.msrb.mxu0 %v16153_v52  ;;  %6582 = vmatpush.bf16.msrb.mxu2 %v16157_v56  ;;  %v21357_v23 = vld [vmem:[#allocation5 + $0x60c] sm:$0xf]  ;;  %v17433_v28 = vor.u32 %v21901_v22, %v17432_v18  ;;  %v15128_v30 = vld [vmem:[#allocation5 + $0x408] sm:$0xf]  ;;  %v18466_v9 = vld [vmem:[#allocation5 + $0x1f10] sm:$0xf0] }
  0x5a   :  { %v15386_v24 = vld [vmem:[#allocation5 + $0x708] sm:$0xf0]  ;;  %6537 = vmatmul.bf16.vlgmr.msra.gmra.mxu2 %v23398_v19  ;;  %6511 = vmatmul.bf16.vlgmr.msra.gmra.mxu0 %v23398_v19  ;;  %v21325_v31 = vld [vmem:[#allocation5 + $0x504] sm:$0xf0]  ;;  %v16160_v14 = vld [vmem:[#allocation5 + $0xc10] sm:$0xf] }
  0x5b   :  { %6569 = vmatpush.bf16.msrb.mxu1 %v18201_v55  ;;  %6595 = vmatpush.bf16.msrb.mxu3 %v18205_v60  ;;  %v21869_v25 = vld [vmem:[#allocation5 + $0x160c] sm:$0xf]  ;;  %v15389_v29 = vor.u32 %v21357_v23, %v15386_v24  ;;  %v17176_v32 = vld [vmem:[#allocation5 + $0x1408] sm:$0xf]  ;;  %v15129_v39 = vor.u32 %v21325_v31, %v15128_v30  ;;  %v21582_v15 = vld [vmem:[#allocation5 + $0xd0c] sm:$0xf0] }
  0x5c   :  { %v17434_v26 = vld [vmem:[#allocation5 + $0x1708] sm:$0xf0]  ;;  %6550 = vmatmul.bf16.vlgmr.msra.gmra.mxu3 %v23400_v20  ;;  %6524 = vmatmul.bf16.vlgmr.msra.gmra.mxu1 %v23400_v20  ;;  %v21837_v34 = vld [vmem:[#allocation5 + $0x1504] sm:$0xf0]  ;;  %v22094_v18 = vld [vmem:[#allocation5 + $0x1d0c] sm:$0xf0] }
  0x5d   :  { %6557 = vmatpush.bf16.msrb.mxu0 %v15897_v1  ;;  %6583 = vmatpush.bf16.msrb.mxu2 %v15901_v3  ;;  %v17437_v33 = vor.u32 %v21869_v25, %v17434_v26  ;;  %v21293_v35 = vld [vmem:[#allocation5 + $0x40c] sm:$0xf]  ;;  %v17177_v40 = vor.u32 %v21837_v34, %v17176_v32  ;;  %v14872_v42 = vld [vmem:[#allocation5 + $0x208] sm:$0xf]  ;;  %v18464_v1 = vld [vmem:[#allocation5 + $0x1e10] sm:$0xf]  ;;  %v16161_v25 = vor.u32 %v21582_v15, %v16160_v14 }
  0x5e   :  { %v15130_v36 = vld [vmem:[#allocation5 + $0x508] sm:$0xf0]  ;;  %v21261_v43 = vld [vmem:[#allocation5 + $0x304] sm:$0xf0]  ;;  %v22158_v3 = vld [vmem:[#allocation5 + $0x1f0c] sm:$0xf0] }
  0x5f   :  { %6570 = vmatpush.bf16.msrb.mxu1 %v17945_v2  ;;  %6596 = vmatpush.bf16.msrb.mxu3 %v17949_v7  ;;  %v21805_v37 = vld [vmem:[#allocation5 + $0x140c] sm:$0xf]  ;;  %v15133_v41 = vor.u32 %v21293_v35, %v15130_v36  ;;  %v16920_v44 = vld [vmem:[#allocation5 + $0x1208] sm:$0xf]  ;;  %v14873_v51 = vor.u32 %v21261_v43, %v14872_v42  ;;  %v18465_v12 = vor.u32 %v22158_v3, %v18464_v1  ;;  %v16162_v22 = vld [vmem:[#allocation5 + $0xd10] sm:$0xf0] }
  0x60   :  { %v17178_v38 = vld [vmem:[#allocation5 + $0x1508] sm:$0xf0]  ;;  %v21773_v46 = vld [vmem:[#allocation5 + $0x1304] sm:$0xf0]  ;;  %v22062_v23 = vld [vmem:[#allocation5 + $0x1c14] sm:$0xf] }
  0x61   :  { %6558 = vmatpush.bf16.msrb.mxu0 %v15641_v13  ;;  %6584 = vmatpush.bf16.msrb.mxu2 %v15645_v17  ;;  %v17181_v45 = vor.u32 %v21805_v37, %v17178_v38  ;;  %v21229_v47 = vld [vmem:[#allocation5 + $0x20c] sm:$0xf]  ;;  %v14616_v52 = vld [vmem:[#allocation5 + $0x8] sm:$0xf]  ;;  %v16921_v54 = vor.u32 %v21773_v46, %v16920_v44  ;;  %v16421_v13 = vor.u32 %v21614_v4, %v16418_v5  ;;  %v18210_v24 = vld [vmem:[#allocation5 + $0x1d10] sm:$0xf0] }
  0x62   :  { %v14874_v48 = vld [vmem:[#allocation5 + $0x308] sm:$0xf0]  ;;  %v21197_v53 = vld [vmem:[#allocation5 + $0x104] sm:$0xf0]  ;;  %v18469_v17 = vor.u32 %v22126_v8, %v18466_v9  ;;  %v17952_v30 = vld [vmem:[#allocation5 + $0x1a10] sm:$0xf]  ;;  %v18213_v31 = vor.u32 %v22062_v23, %v18210_v24 }
  0x63   :  { %6571 = vmatpush.bf16.msrb.mxu1 %v17689_v16  ;;  %6597 = vmatpush.bf16.msrb.mxu3 %v17693_v21  ;;  %v21741_v49 = vld [vmem:[#allocation5 + $0x120c] sm:$0xf]  ;;  %v14877_v55 = vor.u32 %v21229_v47, %v14874_v48  ;;  %v16664_v56 = vld [vmem:[#allocation5 + $0x1008] sm:$0xf]  ;;  %v14617_v2 = vor.u32 %v21197_v53, %v14616_v52  ;;  %v18208_v16 = vld [vmem:[#allocation5 + $0x1c10] sm:$0xf] }
  0x64   :  { %v16922_v50 = vld [vmem:[#allocation5 + $0x1308] sm:$0xf0]  ;;  %v21709_v57 = vld [vmem:[#allocation5 + $0x1104] sm:$0xf0]  ;;  %v21550_v21 = vld [vmem:[#allocation5 + $0xc14] sm:$0xf]  ;;  %v18209_v26 = vor.u32 %v22094_v18, %v18208_v16 }
  0x65   :  { %6559 = vmatpush.bf16.msrb.mxu0 %v15385_v27  ;;  %6585 = vmatpush.bf16.msrb.mxu2 %v15389_v29  ;;  %v21165_v58 = vld [vmem:[#allocation5 + $0xc] sm:$0xf]  ;;  %v16925_v59 = vor.u32 %v21741_v49, %v16922_v50  ;;  %v16665_v6 = vor.u32 %v21709_v57, %v16664_v56  ;;  %v16165_v27 = vor.u32 %v21550_v21, %v16162_v22  ;;  %v21518_v29 = vld [vmem:[#allocation5 + $0xb0c] sm:$0xf0]  ;;  %v15906_v34 = vld [vmem:[#allocation5 + $0xb10] sm:$0xf0] }
  0x66   :  { %v14618_v60 = vld [vmem:[#allocation5 + $0x108] sm:$0xf0]  ;;  %v22030_v32 = vld [vmem:[#allocation5 + $0x1b0c] sm:$0xf0]  ;;  %v21998_v35 = vld [vmem:[#allocation5 + $0x1a14] sm:$0xf] }
  0x67   :  { %6572 = vmatpush.bf16.msrb.mxu1 %v17433_v28  ;;  %6598 = vmatpush.bf16.msrb.mxu3 %v17437_v33  ;;  %v21677_v61 = vld [vmem:[#allocation5 + $0x100c] sm:$0xf]  ;;  %v14621_v7 = vor.u32 %v21165_v58, %v14618_v60  ;;  %v15904_v28 = vld [vmem:[#allocation5 + $0xa10] sm:$0xf]  ;;  %v21486_v33 = vld [vmem:[#allocation5 + $0xa14] sm:$0xf]  ;;  %v17953_v38 = vor.u32 %v22030_v32, %v17952_v30 }
  0x68   :  { %v16666_v62 = vld [vmem:[#allocation5 + $0x1108] sm:$0xf0]  ;;  %v17954_v36 = vld [vmem:[#allocation5 + $0x1b10] sm:$0xf0]  ;;  %v15905_v37 = vor.u32 %v21518_v29, %v15904_v28  ;;  %v17696_v42 = vld [vmem:[#allocation5 + $0x1810] sm:$0xf] }
  0x69   :  { %6560 = vmatpush.bf16.msrb.mxu0 %v15129_v39  ;;  %6586 = vmatpush.bf16.msrb.mxu2 %v15133_v41  ;;  %v16669_v10 = vor.u32 %v21677_v61, %v16666_v62  ;;  %v15909_v39 = vor.u32 %v21486_v33, %v15906_v34  ;;  %v21454_v41 = vld [vmem:[#allocation5 + $0x90c] sm:$0xf0]  ;;  %v17957_v43 = vor.u32 %v21998_v35, %v17954_v36  ;;  %v15650_v46 = vld [vmem:[#allocation5 + $0x910] sm:$0xf0]  ;;  %v16424_v35 = vld [vmem:[#allocation5 + $0xe18] sm:$0xf] }
  0x6a   :  { %v21966_v44 = vld [vmem:[#allocation5 + $0x190c] sm:$0xf0]  ;;  %v21934_v47 = vld [vmem:[#allocation5 + $0x1814] sm:$0xf]  ;;  %v21647_v36 = vld [vmem:[#allocation5 + $0xf14] sm:$0xf0] }
  0x6b   :  { %6573 = vmatpush.bf16.msrb.mxu1 %v17177_v40  ;;  %6599 = vmatpush.bf16.msrb.mxu3 %v17181_v45  ;;  %v15648_v40 = vld [vmem:[#allocation5 + $0x810] sm:$0xf]  ;;  %v21422_v45 = vld [vmem:[#allocation5 + $0x814] sm:$0xf]  ;;  %v17697_v50 = vor.u32 %v21966_v44, %v17696_v42  ;;  %v22127_v44 = vld [vmem:[#allocation5 + $0x1e1c] sm:$0xf] }
  0x6c   :  { %v17698_v48 = vld [vmem:[#allocation5 + $0x1910] sm:$0xf0]  ;;  %v15649_v49 = vor.u32 %v21454_v41, %v15648_v40  ;;  %v15392_v52 = vld [vmem:[#allocation5 + $0x610] sm:$0xf]  ;;  %v21615_v40 = vld [vmem:[#allocation5 + $0xe1c] sm:$0xf] }
  0x6d   :  { %6561 = vmatpush.bf16.msrb.mxu0 %v14873_v51  ;;  %6587 = vmatpush.bf16.msrb.mxu2 %v14877_v55  ;;  %v15653_v51 = vor.u32 %v21422_v45, %v15650_v46  ;;  %v21390_v53 = vld [vmem:[#allocation5 + $0x70c] sm:$0xf0]  ;;  %v17701_v55 = vor.u32 %v21934_v47, %v17698_v48  ;;  %v21358_v57 = vld [vmem:[#allocation5 + $0x614] sm:$0xf]  ;;  %v16426_v41 = vld [vmem:[#allocation5 + $0xf18] sm:$0xf0]  ;;  %v16425_v47 = vor.u32 %v21647_v36, %v16424_v35 }
  0x6e   :  { %v21902_v56 = vld [vmem:[#allocation5 + $0x170c] sm:$0xf0]  ;;  %v15394_v58 = vld [vmem:[#allocation5 + $0x710] sm:$0xf0]  ;;  %v15393_v61 = vor.u32 %v21390_v53, %v15392_v52  ;;  %v18474_v45 = vld [vmem:[#allocation5 + $0x1f18] sm:$0xf0] }
  0x6f   :  { %6574 = vmatpush.bf16.msrb.mxu1 %v16921_v54  ;;  %6600 = vmatpush.bf16.msrb.mxu3 %v16925_v59  ;;  %v17440_v54 = vld [vmem:[#allocation5 + $0x1610] sm:$0xf]  ;;  %v21870_v59 = vld [vmem:[#allocation5 + $0x1614] sm:$0xf]  ;;  %v15397_v63 = vor.u32 %v21358_v57, %v15394_v58  ;;  %v18216_v52 = vld [vmem:[#allocation5 + $0x1c18] sm:$0xf]  ;;  %v18477_v53 = vor.u32 %v22127_v44, %v18474_v45 }
  0x70   :  { %v17442_v60 = vld [vmem:[#allocation5 + $0x1710] sm:$0xf0]  ;;  %v17441_v62 = vor.u32 %v21902_v56, %v17440_v54  ;;  %v15136_v0 = vld [vmem:[#allocation5 + $0x410] sm:$0xf]  ;;  %v22095_v54 = vld [vmem:[#allocation5 + $0x1d14] sm:$0xf0] }
  0x71   :  { %6562 = vmatpush.bf16.msrb.mxu0 %v14617_v2  ;;  %6588 = vmatpush.bf16.msrb.mxu2 %v14621_v7  ;;  %v21326_v1 = vld [vmem:[#allocation5 + $0x50c] sm:$0xf0]  ;;  %v17445_v3 = vor.u32 %v21870_v59, %v17442_v60  ;;  %v21294_v5 = vld [vmem:[#allocation5 + $0x414] sm:$0xf]  ;;  %v16170_v56 = vld [vmem:[#allocation5 + $0xd18] sm:$0xf0]  ;;  %v18217_v60 = vor.u32 %v22095_v54, %v18216_v52 }
  0x72   :  { %v17184_v2 = vld [vmem:[#allocation5 + $0x1410] sm:$0xf]  ;;  %v21806_v7 = vld [vmem:[#allocation5 + $0x1414] sm:$0xf]  ;;  %v15137_v9 = vor.u32 %v21326_v1, %v15136_v0  ;;  %v22063_v57 = vld [vmem:[#allocation5 + $0x1c1c] sm:$0xf] }
  0x73   :  { %6575 = vmatpush.bf16.msrb.mxu1 %v16665_v6  ;;  %6601 = vmatpush.bf16.msrb.mxu3 %v16669_v10  ;;  %v21838_v4 = vld [vmem:[#allocation5 + $0x150c] sm:$0xf0]  ;;  %v15138_v6 = vld [vmem:[#allocation5 + $0x510] sm:$0xf0]  ;;  %v18218_v58 = vld [vmem:[#allocation5 + $0x1d18] sm:$0xf0] }
  0x74   :  { %6589 = vmatmul.bf16.vlgmr.msrb.gmra.mxu2 %v23398_v19  ;;  %6563 = vmatmul.bf16.vlgmr.msrb.gmra.mxu0 %v23398_v19  ;;  %v17186_v8 = vld [vmem:[#allocation5 + $0x1510] sm:$0xf0]  ;;  %v17185_v10 = vor.u32 %v21838_v4, %v17184_v2  ;;  %v16928_v14 = vld [vmem:[#allocation5 + $0x1210] sm:$0xf]  ;;  %v17960_v0 = vld [vmem:[#allocation5 + $0x1a18] sm:$0xf]  ;;  %v18221_v1 = vor.u32 %v22063_v57, %v18218_v58 }
  0x75   :  { %6607 = vmatpush.bf16.msra.mxu0 %v16417_v11  ;;  %6633 = vmatpush.bf16.msra.mxu2 %v16421_v13  ;;  %v15141_v11 = vor.u32 %v21294_v5, %v15138_v6  ;;  %v21262_v13 = vld [vmem:[#allocation5 + $0x30c] sm:$0xf0]  ;;  %v17189_v15 = vor.u32 %v21806_v7, %v17186_v8  ;;  %v14882_v18 = vld [vmem:[#allocation5 + $0x310] sm:$0xf0]  ;;  %v22031_v2 = vld [vmem:[#allocation5 + $0x1b14] sm:$0xf0] }
  0x76   :  { %6602 = vmatmul.bf16.vlgmr.msrb.gmra.mxu3 %v23400_v20  ;;  %6576 = vmatmul.bf16.vlgmr.msrb.gmra.mxu1 %v23400_v20  ;;  %v21774_v16 = vld [vmem:[#allocation5 + $0x130c] sm:$0xf0]  ;;  %v21742_v21 = vld [vmem:[#allocation5 + $0x1214] sm:$0xf]  ;;  %v15914_v4 = vld [vmem:[#allocation5 + $0xb18] sm:$0xf0]  ;;  %v17961_v8 = vor.u32 %v22031_v2, %v17960_v0 }
  0x77   :  { %6620 = vmatpush.bf16.msra.mxu1 %v18465_v12  ;;  %6646 = vmatpush.bf16.msra.mxu3 %v18469_v17  ;;  %v14880_v12 = vld [vmem:[#allocation5 + $0x210] sm:$0xf]  ;;  %v21230_v17 = vld [vmem:[#allocation5 + $0x214] sm:$0xf]  ;;  %v21999_v5 = vld [vmem:[#allocation5 + $0x1a1c] sm:$0xf] }
  0x78   :  { %v16930_v22 = vld [vmem:[#allocation5 + $0x1310] sm:$0xf0]  ;;  %v14881_v23 = vor.u32 %v21262_v13, %v14880_v12  ;;  %v14624_v24 = vld [vmem:[#allocation5 + $0x10] sm:$0xf]  ;;  %v17962_v6 = vld [vmem:[#allocation5 + $0x1b18] sm:$0xf0] }
  0x79   :  { %6608 = vmatpush.bf16.msra.mxu0 %v16161_v25  ;;  %6634 = vmatpush.bf16.msra.mxu2 %v16165_v27  ;;  %v21198_v25 = vld [vmem:[#allocation5 + $0x10c] sm:$0xf0]  ;;  %v14885_v27 = vor.u32 %v21230_v17, %v14882_v18  ;;  %v21166_v30 = vld [vmem:[#allocation5 + $0x14] sm:$0xf]  ;;  %v17704_v12 = vld [vmem:[#allocation5 + $0x1818] sm:$0xf]  ;;  %v17965_v13 = vor.u32 %v21999_v5, %v17962_v6 }
  0x7a   :  { %v16672_v28 = vld [vmem:[#allocation5 + $0x1010] sm:$0xf]  ;;  %v14626_v32 = vld [vmem:[#allocation5 + $0x110] sm:$0xf0]  ;;  %v21935_v17 = vld [vmem:[#allocation5 + $0x181c] sm:$0xf] }
  0x7b   :  { %6621 = vmatpush.bf16.msra.mxu1 %v18209_v26  ;;  %6647 = vmatpush.bf16.msra.mxu3 %v18213_v31  ;;  %v16929_v26 = vor.u32 %v21774_v16, %v16928_v14  ;;  %v21710_v29 = vld [vmem:[#allocation5 + $0x110c] sm:$0xf0]  ;;  %v16933_v31 = vor.u32 %v21742_v21, %v16930_v22  ;;  %v21678_v33 = vld [vmem:[#allocation5 + $0x1014] sm:$0xf]  ;;  %v21967_v14 = vld [vmem:[#allocation5 + $0x1914] sm:$0xf0] }
  0x7c   :  { %v16674_v34 = vld [vmem:[#allocation5 + $0x1110] sm:$0xf0]  ;;  %v16673_v42 = vor.u32 %v21710_v29, %v16672_v28  ;;  %v15658_v16 = vld [vmem:[#allocation5 + $0x918] sm:$0xf0]  ;;  %v17705_v22 = vor.u32 %v21967_v14, %v17704_v12  ;;  %v21903_v28 = vld [vmem:[#allocation5 + $0x1714] sm:$0xf0] }
  0x7d   :  { %6609 = vmatpush.bf16.msra.mxu0 %v15905_v37  ;;  %6635 = vmatpush.bf16.msra.mxu2 %v15909_v39  ;;  %v18472_v37 = vld [vmem:[#allocation5 + $0x1e18] sm:$0xf]  ;;  %v16677_v46 = vor.u32 %v21678_v33, %v16674_v34  ;;  %v17706_v18 = vld [vmem:[#allocation5 + $0x1918] sm:$0xf0]  ;;  %v16432_v5 = vld [vmem:[#allocation5 + $0xe20] sm:$0xf] }
  0x7e   :  { %v22159_v39 = vld [vmem:[#allocation5 + $0x1f14] sm:$0xf0]  ;;  %v21359_v29 = vld [vmem:[#allocation5 + $0x61c] sm:$0xf]  ;;  %v21648_v6 = vld [vmem:[#allocation5 + $0xf1c] sm:$0xf0] }
  0x7f   :  { %6622 = vmatpush.bf16.msra.mxu1 %v17953_v38  ;;  %6648 = vmatpush.bf16.msra.mxu3 %v17957_v43  ;;  %v14625_v38 = vor.u32 %v21198_v25, %v14624_v24  ;;  %v14629_v43 = vor.u32 %v21166_v30, %v14626_v32  ;;  %v18473_v48 = vor.u32 %v22159_v39, %v18472_v37  ;;  %v15400_v24 = vld [vmem:[#allocation5 + $0x618] sm:$0xf]  ;;  %v15402_v30 = vld [vmem:[#allocation5 + $0x718] sm:$0xf0]  ;;  %v22128_v14 = vld [vmem:[#allocation5 + $0x1e24] sm:$0xf] }
  0x80   :  { %v21391_v25 = vld [vmem:[#allocation5 + $0x714] sm:$0xf0]  ;;  %v17450_v32 = vld [vmem:[#allocation5 + $0x1718] sm:$0xf0]  ;;  %v15405_v35 = vor.u32 %v21359_v29, %v15402_v30  ;;  %v22064_v29 = vld [vmem:[#allocation5 + $0x1c24] sm:$0xf] }
  0x81   :  { %6610 = vmatpush.bf16.msra.mxu0 %v15649_v49  ;;  %6636 = vmatpush.bf16.msra.mxu2 %v15653_v51  ;;  %v16429_v49 = vor.u32 %v21615_v40, %v16426_v41  ;;  %v21583_v51 = vld [vmem:[#allocation5 + $0xd14] sm:$0xf0]  ;;  %v15401_v33 = vor.u32 %v21391_v25, %v15400_v24  ;;  %v21295_v41 = vld [vmem:[#allocation5 + $0x41c] sm:$0xf]  ;;  %v18224_v24 = vld [vmem:[#allocation5 + $0x1c20] sm:$0xf] }
  0x82   :  { %v15144_v36 = vld [vmem:[#allocation5 + $0x418] sm:$0xf]  ;;  %v17194_v44 = vld [vmem:[#allocation5 + $0x1518] sm:$0xf0]  ;;  %v18226_v30 = vld [vmem:[#allocation5 + $0x1d20] sm:$0xf0] }
  0x83   :  { %6623 = vmatpush.bf16.msra.mxu1 %v17697_v50  ;;  %6649 = vmatpush.bf16.msra.mxu3 %v17701_v55  ;;  %v16168_v50 = vld [vmem:[#allocation5 + $0xc18] sm:$0xf]  ;;  %v21551_v55 = vld [vmem:[#allocation5 + $0xc1c] sm:$0xf] }
  0x84   :  { %v16169_v59 = vor.u32 %v21583_v51, %v16168_v50  ;;  %v21327_v37 = vld [vmem:[#allocation5 + $0x514] sm:$0xf0]  ;;  %v14890_v54 = vld [vmem:[#allocation5 + $0x318] sm:$0xf0] }
  0x85   :  { %6611 = vmatpush.bf16.msra.mxu0 %v15393_v61  ;;  %6637 = vmatpush.bf16.msra.mxu2 %v15397_v63  ;;  %v16173_v61 = vor.u32 %v21551_v55, %v16170_v56  ;;  %v21519_v63 = vld [vmem:[#allocation5 + $0xb14] sm:$0xf0]  ;;  %v15145_v45 = vor.u32 %v21327_v37, %v15144_v36  ;;  %v21743_v55 = vld [vmem:[#allocation5 + $0x121c] sm:$0xf]  ;;  %v17968_v36 = vld [vmem:[#allocation5 + $0x1a20] sm:$0xf]  ;;  %v18229_v37 = vor.u32 %v22064_v29, %v18226_v30 }
  0x86   :  { %v21839_v40 = vld [vmem:[#allocation5 + $0x1514] sm:$0xf0]  ;;  %v16938_v56 = vld [vmem:[#allocation5 + $0x1318] sm:$0xf0]  ;;  %v14640_v30 = vld [vmem:[#allocation5 + $0x20] sm:$0xf] }
  0x87   :  { %6624 = vmatpush.bf16.msra.mxu1 %v17441_v62  ;;  %6650 = vmatpush.bf16.msra.mxu3 %v17445_v3  ;;  %v15912_v62 = vld [vmem:[#allocation5 + $0xa18] sm:$0xf]  ;;  %v21487_v3 = vld [vmem:[#allocation5 + $0xa1c] sm:$0xf] }
  0x88   :  { %v15913_v7 = vor.u32 %v21519_v63, %v15912_v62  ;;  %v16936_v50 = vld [vmem:[#allocation5 + $0x1218] sm:$0xf]  ;;  %v21167_v0 = vld [vmem:[#allocation5 + $0x1c] sm:$0xf] }
  0x89   :  { %6612 = vmatpush.bf16.msra.mxu0 %v15137_v9  ;;  %6638 = vmatpush.bf16.msra.mxu2 %v15141_v11  ;;  %v15917_v9 = vor.u32 %v21487_v3, %v15914_v4  ;;  %v21455_v11 = vld [vmem:[#allocation5 + $0x914] sm:$0xf0]  ;;  %v14634_v2 = vld [vmem:[#allocation5 + $0x118] sm:$0xf0] }
  0x8a   :  { %v21775_v52 = vld [vmem:[#allocation5 + $0x1314] sm:$0xf0]  ;;  %v21679_v3 = vld [vmem:[#allocation5 + $0x101c] sm:$0xf] }
  0x8b   :  { %6625 = vmatpush.bf16.msra.mxu1 %v17185_v10  ;;  %6651 = vmatpush.bf16.msra.mxu3 %v17189_v15  ;;  %v15656_v10 = vld [vmem:[#allocation5 + $0x818] sm:$0xf]  ;;  %v21423_v15 = vld [vmem:[#allocation5 + $0x81c] sm:$0xf] }
  0x8c   :  { %v15657_v21 = vor.u32 %v21455_v11, %v15656_v10  ;;  %v14632_v58 = vld [vmem:[#allocation5 + $0x18] sm:$0xf]  ;;  %v16682_v4 = vld [vmem:[#allocation5 + $0x1118] sm:$0xf0]  ;;  %v21616_v10 = vld [vmem:[#allocation5 + $0xe24] sm:$0xf] }
  0x8d   :  { %6613 = vmatpush.bf16.msra.mxu0 %v14881_v23  ;;  %6639 = vmatpush.bf16.msra.mxu2 %v14885_v27  ;;  %v15661_v23 = vor.u32 %v21423_v15, %v15658_v16  ;;  %v17709_v27 = vor.u32 %v21935_v17, %v17706_v18  ;;  %v16680_v62 = vld [vmem:[#allocation5 + $0x1018] sm:$0xf]  ;;  %v16434_v11 = vld [vmem:[#allocation5 + $0xf20] sm:$0xf0]  ;;  %v16685_v16 = vor.u32 %v21679_v3, %v16682_v4 }
  0x8e   :  { %v21711_v63 = vld [vmem:[#allocation5 + $0x1114] sm:$0xf0]  ;;  %v18482_v15 = vld [vmem:[#allocation5 + $0x1f20] sm:$0xf0]  ;;  %v16433_v17 = vor.u32 %v21648_v6, %v16432_v5  ;;  %v15152_v6 = vld [vmem:[#allocation5 + $0x420] sm:$0xf] }
  0x8f   :  { %6626 = vmatpush.bf16.msra.mxu1 %v16929_v26  ;;  %6652 = vmatpush.bf16.msra.mxu3 %v16933_v31  ;;  %v17448_v26 = vld [vmem:[#allocation5 + $0x1618] sm:$0xf]  ;;  %v21871_v31 = vld [vmem:[#allocation5 + $0x161c] sm:$0xf]  ;;  %v16681_v12 = vor.u32 %v21711_v63, %v16680_v62  ;;  %v18485_v25 = vor.u32 %v22128_v14, %v18482_v15  ;;  %v21904_v62 = vld [vmem:[#allocation5 + $0x171c] sm:$0xf0] }
  0x90   :  { %v17449_v34 = vor.u32 %v21903_v28, %v17448_v26  ;;  %v17453_v39 = vor.u32 %v21871_v31, %v17450_v32  ;;  %v22096_v26 = vld [vmem:[#allocation5 + $0x1d1c] sm:$0xf0]  ;;  %v16178_v28 = vld [vmem:[#allocation5 + $0xd20] sm:$0xf0] }
  0x91   :  { %6614 = vmatpush.bf16.msra.mxu0 %v14625_v38  ;;  %6640 = vmatpush.bf16.msra.mxu2 %v14629_v43  ;;  %v17192_v38 = vld [vmem:[#allocation5 + $0x1418] sm:$0xf]  ;;  %v21807_v43 = vld [vmem:[#allocation5 + $0x141c] sm:$0xf]  ;;  %v18225_v32 = vor.u32 %v22096_v26, %v18224_v24  ;;  %v21360_v63 = vld [vmem:[#allocation5 + $0x624] sm:$0xf] }
  0x92   :  { %v17197_v51 = vor.u32 %v21807_v43, %v17194_v44  ;;  %v17202_v14 = vld [vmem:[#allocation5 + $0x1520] sm:$0xf0]  ;;  %v21776_v24 = vld [vmem:[#allocation5 + $0x131c] sm:$0xf0] }
  0x93   :  { %6627 = vmatpush.bf16.msra.mxu1 %v16673_v42  ;;  %6653 = vmatpush.bf16.msra.mxu3 %v16677_v46  ;;  %v15146_v42 = vld [vmem:[#allocation5 + $0x518] sm:$0xf0]  ;;  %v17193_v46 = vor.u32 %v21839_v40, %v17192_v38  ;;  %v22032_v38 = vld [vmem:[#allocation5 + $0x1b1c] sm:$0xf0]  ;;  %v15922_v40 = vld [vmem:[#allocation5 + $0xb20] sm:$0xf0] }
  0x94   :  { %6641 = vmatmul.bf16.vlgmr.msra.gmra.mxu2 %v23398_v19  ;;  %6615 = vmatmul.bf16.vlgmr.msra.gmra.mxu0 %v23398_v19  ;;  %v17969_v44 = vor.u32 %v22032_v38, %v17968_v36  ;;  %v14898_v26 = vld [vmem:[#allocation5 + $0x320] sm:$0xf0] }
  0x95   :  { %6659 = vmatpush.bf16.msrb.mxu0 %v16425_v47  ;;  %6685 = vmatpush.bf16.msrb.mxu2 %v16429_v49  ;;  %v15149_v47 = vor.u32 %v21295_v41, %v15146_v42  ;;  %v21263_v49 = vld [vmem:[#allocation5 + $0x314] sm:$0xf0]  ;;  %v22000_v41 = vld [vmem:[#allocation5 + $0x1a24] sm:$0xf] }
  0x96   :  { %6654 = vmatmul.bf16.vlgmr.msra.gmra.mxu3 %v23400_v20  ;;  %6628 = vmatmul.bf16.vlgmr.msra.gmra.mxu1 %v23400_v20  ;;  %v17970_v42 = vld [vmem:[#allocation5 + $0x1b20] sm:$0xf0] }
  0x97   :  { %6672 = vmatpush.bf16.msrb.mxu1 %v18473_v48  ;;  %6698 = vmatpush.bf16.msrb.mxu3 %v18477_v53  ;;  %v14888_v48 = vld [vmem:[#allocation5 + $0x218] sm:$0xf]  ;;  %v21231_v53 = vld [vmem:[#allocation5 + $0x21c] sm:$0xf]  ;;  %v21168_v36 = vld [vmem:[#allocation5 + $0x24] sm:$0xf] }
  0x98   :  { %v14889_v57 = vor.u32 %v21263_v49, %v14888_v48  ;;  %v17712_v48 = vld [vmem:[#allocation5 + $0x1820] sm:$0xf]  ;;  %v17973_v49 = vor.u32 %v22000_v41, %v17970_v42  ;;  %v14642_v38 = vld [vmem:[#allocation5 + $0x120] sm:$0xf0]  ;;  %v16440_v41 = vld [vmem:[#allocation5 + $0xe28] sm:$0xf] }
  0x99   :  { %6660 = vmatpush.bf16.msrb.mxu0 %v16169_v59  ;;  %6686 = vmatpush.bf16.msrb.mxu2 %v16173_v61  ;;  %v21199_v59 = vld [vmem:[#allocation5 + $0x114] sm:$0xf0]  ;;  %v14893_v61 = vor.u32 %v21231_v53, %v14890_v54  ;;  %v21936_v53 = vld [vmem:[#allocation5 + $0x1824] sm:$0xf]  ;;  %v21649_v42 = vld [vmem:[#allocation5 + $0xf24] sm:$0xf0] }
  0x9a   :  { %v17714_v54 = vld [vmem:[#allocation5 + $0x1920] sm:$0xf0] }
  0x9b   :  { %6673 = vmatpush.bf16.msrb.mxu1 %v18217_v60  ;;  %6699 = vmatpush.bf16.msrb.mxu3 %v18221_v1  ;;  %v16937_v60 = vor.u32 %v21775_v52, %v16936_v50  ;;  %v16941_v1 = vor.u32 %v21743_v55, %v16938_v56  ;;  %v21968_v50 = vld [vmem:[#allocation5 + $0x191c] sm:$0xf0]  ;;  %v15666_v52 = vld [vmem:[#allocation5 + $0x920] sm:$0xf0] }
  0x9c   :  { %v17713_v56 = vor.u32 %v21968_v50, %v17712_v48  ;;  %v22129_v50 = vld [vmem:[#allocation5 + $0x1e2c] sm:$0xf] }
  0x9d   :  { %6661 = vmatpush.bf16.msrb.mxu0 %v15913_v7  ;;  %6687 = vmatpush.bf16.msrb.mxu2 %v15917_v9  ;;  %v18480_v7 = vld [vmem:[#allocation5 + $0x1e20] sm:$0xf] }
  0x9e   :  { %v22160_v9 = vld [vmem:[#allocation5 + $0x1f1c] sm:$0xf0] }
  0x9f   :  { %6674 = vmatpush.bf16.msrb.mxu1 %v17961_v8  ;;  %6700 = vmatpush.bf16.msrb.mxu3 %v17965_v13  ;;  %v14633_v8 = vor.u32 %v21199_v59, %v14632_v58  ;;  %v14637_v13 = vor.u32 %v21167_v0, %v14634_v2  ;;  %v18481_v18 = vor.u32 %v22160_v9, %v18480_v7  ;;  %v15408_v58 = vld [vmem:[#allocation5 + $0x620] sm:$0xf]  ;;  %v15410_v0 = vld [vmem:[#allocation5 + $0x720] sm:$0xf0] }
  0xa0   :  { %v21392_v59 = vld [vmem:[#allocation5 + $0x71c] sm:$0xf0]  ;;  %v17458_v2 = vld [vmem:[#allocation5 + $0x1720] sm:$0xf0]  ;;  %v15413_v5 = vor.u32 %v21360_v63, %v15410_v0  ;;  %v22065_v63 = vld [vmem:[#allocation5 + $0x1c2c] sm:$0xf] }
  0xa1   :  { %6662 = vmatpush.bf16.msrb.mxu0 %v15657_v21  ;;  %6688 = vmatpush.bf16.msrb.mxu2 %v15661_v23  ;;  %v16437_v21 = vor.u32 %v21616_v10, %v16434_v11  ;;  %v21584_v23 = vld [vmem:[#allocation5 + $0xd1c] sm:$0xf0]  ;;  %v15409_v3 = vor.u32 %v21392_v59, %v15408_v58  ;;  %v21296_v11 = vld [vmem:[#allocation5 + $0x424] sm:$0xf]  ;;  %v18232_v58 = vld [vmem:[#allocation5 + $0x1c28] sm:$0xf] }
  0xa2   :  { %v21328_v7 = vld [vmem:[#allocation5 + $0x51c] sm:$0xf0]  ;;  %v18234_v0 = vld [vmem:[#allocation5 + $0x1d28] sm:$0xf0] }
  0xa3   :  { %6675 = vmatpush.bf16.msrb.mxu1 %v17705_v22  ;;  %6701 = vmatpush.bf16.msrb.mxu3 %v17709_v27  ;;  %v16176_v22 = vld [vmem:[#allocation5 + $0xc20] sm:$0xf]  ;;  %v21552_v27 = vld [vmem:[#allocation5 + $0xc24] sm:$0xf]  ;;  %v15153_v15 = vor.u32 %v21328_v7, %v15152_v6  ;;  %v17976_v6 = vld [vmem:[#allocation5 + $0x1a28] sm:$0xf]  ;;  %v18237_v7 = vor.u32 %v22065_v63, %v18234_v0 }
  0xa4   :  { %v16177_v31 = vor.u32 %v21584_v23, %v16176_v22  ;;  %v21840_v10 = vld [vmem:[#allocation5 + $0x151c] sm:$0xf0]  ;;  %v21233_v63 = vld [vmem:[#allocation5 + $0x22c] sm:$0xf] }
  0xa5   :  { %6663 = vmatpush.bf16.msrb.mxu0 %v15401_v33  ;;  %6689 = vmatpush.bf16.msrb.mxu2 %v15405_v35  ;;  %v16181_v33 = vor.u32 %v21552_v27, %v16178_v28  ;;  %v21520_v35 = vld [vmem:[#allocation5 + $0xb1c] sm:$0xf0]  ;;  %v21744_v27 = vld [vmem:[#allocation5 + $0x1224] sm:$0xf]  ;;  %v14906_v0 = vld [vmem:[#allocation5 + $0x328] sm:$0xf0] }
  0xa6   :  { %v16944_v22 = vld [vmem:[#allocation5 + $0x1220] sm:$0xf]  ;;  %v16946_v28 = vld [vmem:[#allocation5 + $0x1320] sm:$0xf0] }
  0xa7   :  { %6676 = vmatpush.bf16.msrb.mxu1 %v17449_v34  ;;  %6702 = vmatpush.bf16.msrb.mxu3 %v17453_v39  ;;  %v15920_v34 = vld [vmem:[#allocation5 + $0xa20] sm:$0xf]  ;;  %v21488_v39 = vld [vmem:[#allocation5 + $0xa24] sm:$0xf] }
  0xa8   :  { %v15921_v43 = vor.u32 %v21520_v35, %v15920_v34  ;;  %v16688_v34 = vld [vmem:[#allocation5 + $0x1020] sm:$0xf] }
  0xa9   :  { %6664 = vmatpush.bf16.msrb.mxu0 %v15145_v45  ;;  %6690 = vmatpush.bf16.msrb.mxu2 %v15149_v47  ;;  %v15925_v45 = vor.u32 %v21488_v39, %v15922_v40  ;;  %v21456_v47 = vld [vmem:[#allocation5 + $0x91c] sm:$0xf0]  ;;  %v21680_v39 = vld [vmem:[#allocation5 + $0x1024] sm:$0xf] }
  0xaa   :  { %v21712_v35 = vld [vmem:[#allocation5 + $0x111c] sm:$0xf0]  ;;  %v16690_v40 = vld [vmem:[#allocation5 + $0x1120] sm:$0xf0] }
  0xab   :  { %6677 = vmatpush.bf16.msrb.mxu1 %v17193_v46  ;;  %6703 = vmatpush.bf16.msrb.mxu3 %v17197_v51  ;;  %v15664_v46 = vld [vmem:[#allocation5 + $0x820] sm:$0xf]  ;;  %v21424_v51 = vld [vmem:[#allocation5 + $0x824] sm:$0xf]  ;;  %v16689_v48 = vor.u32 %v21712_v35, %v16688_v34  ;;  %v21361_v34 = vld [vmem:[#allocation5 + $0x62c] sm:$0xf] }
  0xac   :  { %v15665_v55 = vor.u32 %v21456_v47, %v15664_v46  ;;  %v21617_v46 = vld [vmem:[#allocation5 + $0xe2c] sm:$0xf] }
  0xad   :  { %6665 = vmatpush.bf16.msrb.mxu0 %v14889_v57  ;;  %6691 = vmatpush.bf16.msrb.mxu2 %v14893_v61  ;;  %v15669_v57 = vor.u32 %v21424_v51, %v15666_v52  ;;  %v17717_v61 = vor.u32 %v21936_v53, %v17714_v54  ;;  %v16442_v47 = vld [vmem:[#allocation5 + $0xf28] sm:$0xf0]  ;;  %v16693_v52 = vor.u32 %v21680_v39, %v16690_v40  ;;  %v15160_v40 = vld [vmem:[#allocation5 + $0x428] sm:$0xf] }
  0xae   :  { %v18490_v51 = vld [vmem:[#allocation5 + $0x1f28] sm:$0xf0]  ;;  %v16441_v53 = vor.u32 %v21649_v42, %v16440_v41 }
  0xaf   :  { %6678 = vmatpush.bf16.msrb.mxu1 %v16937_v60  ;;  %6704 = vmatpush.bf16.msrb.mxu3 %v16941_v1  ;;  %v17456_v60 = vld [vmem:[#allocation5 + $0x1620] sm:$0xf]  ;;  %v21872_v1 = vld [vmem:[#allocation5 + $0x1624] sm:$0xf]  ;;  %v18493_v59 = vor.u32 %v22129_v50, %v18490_v51  ;;  %v15418_v35 = vld [vmem:[#allocation5 + $0x728] sm:$0xf0] }
  0xb0   :  { %v17457_v4 = vor.u32 %v21904_v62, %v17456_v60  ;;  %v17461_v9 = vor.u32 %v21872_v1, %v17458_v2  ;;  %v22097_v60 = vld [vmem:[#allocation5 + $0x1d24] sm:$0xf0]  ;;  %v16186_v62 = vld [vmem:[#allocation5 + $0xd28] sm:$0xf0]  ;;  %v15421_v42 = vor.u32 %v21361_v34, %v15418_v35 }
  0xb1   :  { %6666 = vmatpush.bf16.msrb.mxu0 %v14633_v8  ;;  %6692 = vmatpush.bf16.msrb.mxu2 %v14637_v13  ;;  %v17200_v8 = vld [vmem:[#allocation5 + $0x1420] sm:$0xf]  ;;  %v21808_v13 = vld [vmem:[#allocation5 + $0x1424] sm:$0xf]  ;;  %v18233_v2 = vor.u32 %v22097_v60, %v18232_v58  ;;  %v21809_v50 = vld [vmem:[#allocation5 + $0x142c] sm:$0xf] }
  0xb2   :  { %v17205_v23 = vor.u32 %v21808_v13, %v17202_v14  ;;  %v23421_v14 = vld [vmem:[#allocation1 + $0x9] sm:$0xff]  ;;  %v17210_v51 = vld [vmem:[#allocation5 + $0x1528] sm:$0xf0]  ;;  %v16952_v58 = vld [vmem:[#allocation5 + $0x1228] sm:$0xf] }
  0xb3   :  { %6679 = vmatpush.bf16.msrb.mxu1 %v16681_v12  ;;  %6705 = vmatpush.bf16.msrb.mxu3 %v16685_v16  ;;  %v15154_v12 = vld [vmem:[#allocation5 + $0x520] sm:$0xf0]  ;;  %v17201_v16 = vor.u32 %v21840_v10, %v17200_v8  ;;  %v22033_v8 = vld [vmem:[#allocation5 + $0x1b24] sm:$0xf0]  ;;  %v15930_v10 = vld [vmem:[#allocation5 + $0xb28] sm:$0xf0] }
  0xb4   :  { %6693 = vmatmul.bf16.vlgmr.msrb.gmra.mxu2 %v23398_v19  ;;  %6667 = vmatmul.bf16.vlgmr.msrb.gmra.mxu0 %v23398_v19 }
  0xb5   :  { %6711 = vmatpush.bf16.msra.mxu0 %v16433_v17  ;;  %6737 = vmatpush.bf16.msra.mxu2 %v16437_v21  ;;  %v15157_v17 = vor.u32 %v21296_v11, %v15154_v12  ;;  %v21264_v21 = vld [vmem:[#allocation5 + $0x31c] sm:$0xf0]  ;;  %v22001_v11 = vld [vmem:[#allocation5 + $0x1a2c] sm:$0xf] }
  0xb6   :  { %6706 = vmatmul.bf16.vlgmr.msrb.gmra.mxu3 %v23400_v20  ;;  %6680 = vmatmul.bf16.vlgmr.msrb.gmra.mxu1 %v23400_v20  ;;  %v17978_v12 = vld [vmem:[#allocation5 + $0x1b28] sm:$0xf0] }
  0xb7   :  { %6724 = vmatpush.bf16.msra.mxu1 %v18481_v18  ;;  %6750 = vmatpush.bf16.msra.mxu3 %v18485_v25  ;;  %v14896_v18 = vld [vmem:[#allocation5 + $0x220] sm:$0xf]  ;;  %v21232_v25 = vld [vmem:[#allocation5 + $0x224] sm:$0xf] }
  0xb8   :  { %v14897_v29 = vor.u32 %v21264_v21, %v14896_v18  ;;  %v21457_v18 = vld [vmem:[#allocation5 + $0x924] sm:$0xf0] }
  0xb9   :  { %6712 = vmatpush.bf16.msra.mxu0 %v16177_v31  ;;  %6738 = vmatpush.bf16.msra.mxu2 %v16181_v33  ;;  %v21200_v31 = vld [vmem:[#allocation5 + $0x11c] sm:$0xf0]  ;;  %v14901_v33 = vor.u32 %v21232_v25, %v14898_v26  ;;  %v17720_v21 = vld [vmem:[#allocation5 + $0x1828] sm:$0xf]  ;;  %v21937_v25 = vld [vmem:[#allocation5 + $0x182c] sm:$0xf] }
  0xbb   :  { %6725 = vmatpush.bf16.msra.mxu1 %v18225_v32  ;;  %6751 = vmatpush.bf16.msra.mxu3 %v18229_v37  ;;  %v16945_v32 = vor.u32 %v21776_v24, %v16944_v22  ;;  %v16949_v37 = vor.u32 %v21744_v27, %v16946_v28  ;;  %v17981_v22 = vor.u32 %v22001_v11, %v17978_v12  ;;  %v21425_v24 = vld [vmem:[#allocation5 + $0x82c] sm:$0xf]  ;;  %v15416_v27 = vld [vmem:[#allocation5 + $0x628] sm:$0xf] }
  0xbc   :  { %v21713_v11 = vld [vmem:[#allocation5 + $0x1124] sm:$0xf0]  ;;  %v21169_v12 = vld [vmem:[#allocation5 + $0x2c] sm:$0xf] }
  0xbd   :  { %6713 = vmatpush.bf16.msra.mxu0 %v15921_v43  ;;  %6739 = vmatpush.bf16.msra.mxu2 %v15925_v45  ;;  %v18488_v43 = vld [vmem:[#allocation5 + $0x1e28] sm:$0xf] }
  0xbe   :  { %v22161_v45 = vld [vmem:[#allocation5 + $0x1f24] sm:$0xf0] }
  0xbf   :  { %6726 = vmatpush.bf16.msra.mxu1 %v17969_v44  ;;  %6752 = vmatpush.bf16.msra.mxu3 %v17973_v49  ;;  %v14641_v44 = vor.u32 %v21200_v31, %v14640_v30  ;;  %v14645_v49 = vor.u32 %v21168_v36, %v14642_v38  ;;  %v18489_v54 = vor.u32 %v22161_v45, %v18488_v43  ;;  %v21393_v30 = vld [vmem:[#allocation5 + $0x724] sm:$0xf0]  ;;  %v23424_v36 = vld [vmem:[#allocation7] sm:$0xff]  ;;  %v17466_v38 = vld [vmem:[#allocation5 + $0x1728] sm:$0xf0] }
  0xc0   :  { %v17464_v31 = vld [vmem:[#allocation5 + $0x1628] sm:$0xf]  ;;  %v15417_v39 = vor.u32 %v21393_v30, %v15416_v27  ;;  %v1249_v45 = vperm.slane %v23424_v36, 0  ;;  %v16450_v27 = vld [vmem:[#allocation5 + $0xf30] sm:$0xf0] }
  0xc1   :  { %6714 = vmatpush.bf16.msra.mxu0 %v15665_v55  ;;  %6740 = vmatpush.bf16.msra.mxu2 %v15669_v57  ;;  %v16445_v55 = vor.u32 %v21617_v46, %v16442_v47  ;;  %v21585_v57 = vld [vmem:[#allocation5 + $0xd24] sm:$0xf0] }
  0xc2   :  { %v21329_v43 = vld [vmem:[#allocation5 + $0x524] sm:$0xf0] }
  0xc3   :  { %6727 = vmatpush.bf16.msra.mxu1 %v17713_v56  ;;  %6753 = vmatpush.bf16.msra.mxu3 %v17717_v61  ;;  %v16184_v56 = vld [vmem:[#allocation5 + $0xc28] sm:$0xf]  ;;  %v21553_v61 = vld [vmem:[#allocation5 + $0xc2c] sm:$0xf] }
  0xc4   :  { %v16185_v1 = vor.u32 %v21585_v57, %v16184_v56  ;;  %v21841_v47 = vld [vmem:[#allocation5 + $0x1524] sm:$0xf0] }
  0xc5   :  { %6715 = vmatpush.bf16.msra.mxu0 %v15409_v3  ;;  %6741 = vmatpush.bf16.msra.mxu2 %v15413_v5  ;;  %v16189_v3 = vor.u32 %v21553_v61, %v16186_v62  ;;  %v21521_v5 = vld [vmem:[#allocation5 + $0xb24] sm:$0xf0]  ;;  %v17213_v62 = vor.u32 %v21809_v50, %v17210_v51 }
  0xc6   :  { %v21265_v57 = vld [vmem:[#allocation5 + $0x324] sm:$0xf0] }
  0xc7   :  { %6728 = vmatpush.bf16.msra.mxu1 %v17457_v4  ;;  %6754 = vmatpush.bf16.msra.mxu3 %v17461_v9  ;;  %v15928_v4 = vld [vmem:[#allocation5 + $0xa28] sm:$0xf]  ;;  %v21489_v9 = vld [vmem:[#allocation5 + $0xa2c] sm:$0xf] }
  0xc8   :  { %v15929_v13 = vor.u32 %v21521_v5, %v15928_v4 }
  0xc9   :  { %6716 = vmatpush.bf16.msra.mxu0 %v15153_v15  ;;  %6742 = vmatpush.bf16.msra.mxu2 %v15157_v17  ;;  %v17977_v15 = vor.u32 %v22033_v8, %v17976_v6  ;;  %v15672_v17 = vld [vmem:[#allocation5 + $0x828] sm:$0xf] }
  0xca   :  { %v15673_v26 = vor.u32 %v21457_v18, %v15672_v17  ;;  %v14648_v6 = vld [vmem:[#allocation5 + $0x28] sm:$0xf]  ;;  %v21681_v17 = vld [vmem:[#allocation5 + $0x102c] sm:$0xf] }
  0xcb   :  { %6729 = vmatpush.bf16.msra.mxu1 %v17201_v16  ;;  %6755 = vmatpush.bf16.msra.mxu3 %v17205_v23  ;;  %v15933_v16 = vor.u32 %v21489_v9, %v15930_v10  ;;  %v21969_v23 = vld [vmem:[#allocation5 + $0x1924] sm:$0xf0]  ;;  %v14909_v9 = vor.u32 %v21233_v63, %v14906_v0  ;;  %v16698_v18 = vld [vmem:[#allocation5 + $0x1128] sm:$0xf0]  ;;  %v17986_v63 = vld [vmem:[#allocation5 + $0x1b30] sm:$0xf0] }
  0xcc   :  { %v17721_v28 = vor.u32 %v21969_v23, %v17720_v21  ;;  %v16696_v10 = vld [vmem:[#allocation5 + $0x1028] sm:$0xf]  ;;  %v16448_v23 = vld [vmem:[#allocation5 + $0xe30] sm:$0xf]  ;;  %v16701_v35 = vor.u32 %v21681_v17, %v16698_v18 }
  0xcd   :  { %6717 = vmatpush.bf16.msra.mxu0 %v14897_v29  ;;  %6743 = vmatpush.bf16.msra.mxu2 %v14901_v33  ;;  %v16697_v30 = vor.u32 %v21713_v11, %v16696_v10  ;;  %v21426_v10 = vld [vmem:[#allocation5 + $0x834] sm:$0xf] }
  0xce   :  { %v15682_v11 = vld [vmem:[#allocation5 + $0x930] sm:$0xf0] }
  0xcf   :  { %6730 = vmatpush.bf16.msra.mxu1 %v16945_v32  ;;  %6756 = vmatpush.bf16.msra.mxu3 %v16949_v37  ;;  %v21905_v32 = vld [vmem:[#allocation5 + $0x1724] sm:$0xf0]  ;;  %v21873_v37 = vld [vmem:[#allocation5 + $0x162c] sm:$0xf] }
  0xd0   :  { %v17465_v41 = vor.u32 %v21905_v32, %v17464_v31  ;;  %v17469_v46 = vor.u32 %v21873_v37, %v17466_v38  ;;  %v22130_v32 = vld [vmem:[#allocation5 + $0x1e34] sm:$0xf] }
  0xd1   :  { %6718 = vmatpush.bf16.msra.mxu0 %v14641_v44  ;;  %6744 = vmatpush.bf16.msra.mxu2 %v14645_v49  ;;  %v17208_v44 = vld [vmem:[#allocation5 + $0x1428] sm:$0xf]  ;;  %v15162_v49 = vld [vmem:[#allocation5 + $0x528] sm:$0xf0] }
  0xd3   :  { %6731 = vmatpush.bf16.msra.mxu1 %v16689_v48  ;;  %6757 = vmatpush.bf16.msra.mxu3 %v16693_v52  ;;  %v21297_v48 = vld [vmem:[#allocation5 + $0x42c] sm:$0xf]  ;;  %v15161_v52 = vor.u32 %v21329_v43, %v15160_v40  ;;  %v16192_v40 = vld [vmem:[#allocation5 + $0xc30] sm:$0xf] }
  0xd4   :  { %6745 = vmatmul.bf16.vlgmr.msra.gmra.mxu2 %v23398_v19  ;;  %6719 = vmatmul.bf16.vlgmr.msra.gmra.mxu0 %v23398_v19  ;;  %v15674_v19 = vld [vmem:[#allocation5 + $0x928] sm:$0xf0]  ;;  %v15165_v56 = vor.u32 %v21297_v48, %v15162_v49  ;;  %v18242_v48 = vld [vmem:[#allocation5 + $0x1d30] sm:$0xf0] }
  0xd5   :  { %6763 = vmatpush.bf16.msrb.mxu0 %v16441_v53  ;;  %6789 = vmatpush.bf16.msrb.mxu2 %v16445_v55  ;;  %v15677_v29 = vor.u32 %v21425_v24, %v15674_v19  ;;  %v14904_v53 = vld [vmem:[#allocation5 + $0x228] sm:$0xf]  ;;  %v17209_v55 = vor.u32 %v21841_v47, %v17208_v44  ;;  %v21650_v24 = vld [vmem:[#allocation5 + $0xf2c] sm:$0xf0]  ;;  %v22066_v47 = vld [vmem:[#allocation5 + $0x1c34] sm:$0xf] }
  0xd6   :  { %6758 = vmatmul.bf16.vlgmr.msra.gmra.mxu3 %v23400_v20  ;;  %6732 = vmatmul.bf16.vlgmr.msra.gmra.mxu1 %v23421_v14  ;;  %v17722_v20 = vld [vmem:[#allocation5 + $0x1928] sm:$0xf0]  ;;  %v14905_v5 = vor.u32 %v21265_v57, %v14904_v53  ;;  %v18496_v19 = vld [vmem:[#allocation5 + $0x1e30] sm:$0xf]  ;;  %v16449_v37 = vor.u32 %v21650_v24, %v16448_v23  ;;  %v18245_v57 = vor.u32 %v22066_v47, %v18242_v48  ;;  %v21810_v47 = vld [vmem:[#allocation5 + $0x1434] sm:$0xf] }
  0xd7   :  { %6776 = vmatpush.bf16.msrb.mxu1 %v18489_v54  ;;  %6802 = vmatpush.bf16.msrb.mxu3 %v18493_v59  ;;  %v17725_v33 = vor.u32 %v21937_v25, %v17722_v20  ;;  %v6512_v54 = vpop.f32.mrf.mxu0  ;;  %v21777_v59 = vld [vmem:[#allocation5 + $0x1324] sm:$0xf0]  ;;  %v22162_v20 = vld [vmem:[#allocation5 + $0x1f2c] sm:$0xf0]  ;;  %v17218_v48 = vld [vmem:[#allocation5 + $0x1530] sm:$0xf0] }
  0xd8   :  { %v6513_v60 = vadd.f32 %v6512_v54, %v1249_v45  ;;  %v16953_v8 = vor.u32 %v21777_v59, %v16952_v58  ;;  %v18497_v38 = vor.u32 %v22162_v20, %v18496_v19  ;;  %v22098_v44 = vld [vmem:[#allocation5 + $0x1d2c] sm:$0xf0]  ;;  %v21554_v45 = vld [vmem:[#allocation5 + $0xc34] sm:$0xf] }
  0xd9   :  { %6764 = vmatpush.bf16.msrb.mxu0 %v16185_v1  ;;  %6790 = vmatpush.bf16.msrb.mxu2 %v16189_v3  ;;  %v6525_v61 = vpop.f32.mrf.mxu1  ;;  %v1250_v1 = vperm.slane %v23424_v36, 1  ;;  %v16954_v3 = vld [vmem:[#allocation5 + $0x1328] sm:$0xf0]  ;;  %v15936_v54 = vld [vmem:[#allocation5 + $0xa30] sm:$0xf] }
  0xda   :  { %v23428_v4 = vadd.f32 %v6525_v61, %v6513_v60  ;;  %v22034_v58 = vld [vmem:[#allocation5 + $0x1b2c] sm:$0xf0]  ;;  %v21490_v59 = vld [vmem:[#allocation5 + $0xa34] sm:$0xf] }
  0xdb   :  { %6777 = vmatpush.bf16.msrb.mxu1 %v18233_v2  ;;  %6803 = vmatpush.bf16.msrb.mxu3 %v18237_v7  ;;  %v21745_v2 = vld [vmem:[#allocation5 + $0x122c] sm:$0xf]  ;;  %v21201_v7 = vld [vmem:[#allocation5 + $0x124] sm:$0xf0]  ;;  %v15938_v60 = vld [vmem:[#allocation5 + $0xb30] sm:$0xf0] }
  0xdc   :  { %v14649_v25 = vor.u32 %v21201_v7, %v14648_v6  ;;  %v23432_v61 = vld [vmem:[#allocation1] sm:$0xff]  ;;  %v17728_v6 = vld [vmem:[#allocation5 + $0x1830] sm:$0xf]  ;;  %v1251_v7 = vperm.slane %v23424_v36, 2 }
  0xdd   :  { %6765 = vmatpush.bf16.msrb.mxu0 %v15929_v13  ;;  %6791 = vmatpush.bf16.msrb.mxu2 %v15933_v16  ;;  %v6538_v13 = vpop.f32.mrf.mxu2  ;;  %v14650_v16 = vld [vmem:[#allocation5 + $0x128] sm:$0xf0]  ;;  %v17472_v23 = vld [vmem:[#allocation5 + $0x1630] sm:$0xf] }
  0xde   :  { %v6539_v21 = vadd.f32 %v6538_v13, %v1250_v1  ;;  %v14653_v31 = vor.u32 %v21169_v12, %v14650_v16  ;;  %v15680_v1 = vld [vmem:[#allocation5 + $0x830] sm:$0xf]  ;;  %v21938_v12 = vld [vmem:[#allocation5 + $0x1834] sm:$0xf] }
  0xdf   :  { %6778 = vmatpush.bf16.msrb.mxu1 %v17977_v15  ;;  %6804 = vmatpush.bf16.msrb.mxu3 %v17981_v22  ;;  %v16957_v15 = vor.u32 %v21745_v2, %v16954_v3  ;;  %v6551_v22 = vpop.f32.mrf.mxu3  ;;  %v15941_v3 = vor.u32 %v21490_v59, %v15938_v60  ;;  %v17730_v13 = vld [vmem:[#allocation5 + $0x1930] sm:$0xf0]  ;;  %v15424_v16 = vld [vmem:[#allocation5 + $0x630] sm:$0xf] }
  0xe0   :  { %v21906_v24 = vld [vmem:[#allocation5 + $0x172c] sm:$0xf0]  ;;  %v17733_v20 = vor.u32 %v21938_v12, %v17730_v13  ;;  %v21234_v60 = vld [vmem:[#allocation5 + $0x234] sm:$0xf] }
  0xe1   :  { %6766 = vmatpush.bf16.msrb.mxu0 %v15673_v26  ;;  %6792 = vmatpush.bf16.msrb.mxu2 %v15677_v29  ;;  %v21618_v26 = vld [vmem:[#allocation5 + $0xe34] sm:$0xf]  ;;  %v6514_v29 = vpop.f32.mrf.mxu0  ;;  %v6527_v34 = vpop.f32.mrf.mxu1  ;;  %v21778_v59 = vld [vmem:[#allocation5 + $0x132c] sm:$0xf0] }
  0xe2   :  { %v1252_v29 = vperm.slane %v23424_v36, 3  ;;  %v17473_v34 = vor.u32 %v21906_v24, %v17472_v23  ;;  %v14658_v12 = vld [vmem:[#allocation5 + $0x130] sm:$0xf0]  ;;  %v22163_v23 = vld [vmem:[#allocation5 + $0x1f34] sm:$0xf0] }
  0xe3   :  { %6779 = vmatpush.bf16.msrb.mxu1 %v17721_v28  ;;  %6805 = vmatpush.bf16.msrb.mxu3 %v17725_v33  ;;  %v23430_v28 = vadd.f32 %v6551_v22, %v6539_v21  ;;  %v18498_v33 = vld [vmem:[#allocation5 + $0x1f30] sm:$0xf0]  ;;  %v15685_v21 = vor.u32 %v21426_v10, %v15682_v11  ;;  %v21394_v22 = vld [vmem:[#allocation5 + $0x72c] sm:$0xf0]  ;;  %v21619_v24 = vld [vmem:[#allocation5 + $0xe3c] sm:$0xf] }
  0xe4   :  { %v18501_v43 = vor.u32 %v22130_v32, %v18498_v33  ;;  %v15425_v33 = vor.u32 %v21394_v22, %v15424_v16  ;;  %v21682_v13 = vld [vmem:[#allocation5 + $0x1034] sm:$0xf] }
  0xe5   :  { %6767 = vmatpush.bf16.msrb.mxu0 %v15417_v39  ;;  %6793 = vmatpush.bf16.msrb.mxu2 %v15421_v42  ;;  %v16453_v39 = vor.u32 %v21618_v26, %v16450_v27  ;;  %v18240_v42 = vld [vmem:[#allocation5 + $0x1c30] sm:$0xf]  ;;  %v6540_v49 = vpop.f32.mrf.mxu2  ;;  %v21362_v26 = vld [vmem:[#allocation5 + $0x634] sm:$0xf] }
  0xe6   :  { %v15426_v27 = vld [vmem:[#allocation5 + $0x730] sm:$0xf0] }
  0xe7   :  { %6780 = vmatpush.bf16.msrb.mxu1 %v17465_v41  ;;  %6806 = vmatpush.bf16.msrb.mxu3 %v17469_v46  ;;  %v21586_v41 = vld [vmem:[#allocation5 + $0xd2c] sm:$0xf0]  ;;  %v16194_v46 = vld [vmem:[#allocation5 + $0xd30] sm:$0xf0]  ;;  %v6553_v51 = vpop.f32.mrf.mxu3 }
  0xe8   :  { %v16193_v50 = vor.u32 %v21586_v41, %v16192_v40  ;;  %v16197_v53 = vor.u32 %v21554_v45, %v16194_v46 }
  0xe9   :  { %6768 = vmatpush.bf16.msrb.mxu0 %v15161_v52  ;;  %6794 = vmatpush.bf16.msrb.mxu2 %v15165_v56  ;;  %v18241_v52 = vor.u32 %v22098_v44, %v18240_v42  ;;  %v17984_v56 = vld [vmem:[#allocation5 + $0x1a30] sm:$0xf]  ;;  %v15170_v44 = vld [vmem:[#allocation5 + $0x530] sm:$0xf0] }
  0xea   :  { %v17985_v2 = vor.u32 %v22034_v58, %v17984_v56  ;;  %v21842_v42 = vld [vmem:[#allocation5 + $0x152c] sm:$0xf0]  ;;  %v17221_v58 = vor.u32 %v21810_v47, %v17218_v48  ;;  %v15944_v47 = vld [vmem:[#allocation5 + $0xa38] sm:$0xf] }
  0xeb   :  { %6781 = vmatpush.bf16.msrb.mxu1 %v17209_v55  ;;  %6807 = vmatpush.bf16.msrb.mxu3 %v17213_v62  ;;  %v21522_v55 = vld [vmem:[#allocation5 + $0xb2c] sm:$0xf0]  ;;  %v22002_v62 = vld [vmem:[#allocation5 + $0x1a34] sm:$0xf]  ;;  %v21523_v48 = vld [vmem:[#allocation5 + $0xb34] sm:$0xf0] }
  0xec   :  { %v15937_v0 = vor.u32 %v21522_v55, %v15936_v54  ;;  %v14912_v54 = vld [vmem:[#allocation5 + $0x230] sm:$0xf] }
  0xed   :  { %6769 = vmatpush.bf16.msrb.mxu0 %v14905_v5  ;;  %6795 = vmatpush.bf16.msrb.mxu2 %v14909_v9  ;;  %v21458_v5 = vld [vmem:[#allocation5 + $0x92c] sm:$0xf0] }
  0xee   :  { %v21970_v9 = vld [vmem:[#allocation5 + $0x192c] sm:$0xf0] }
  0xef   :  { %6782 = vmatpush.bf16.msrb.mxu1 %v16953_v8  ;;  %6808 = vmatpush.bf16.msrb.mxu3 %v16957_v15  ;;  %v17989_v8 = vor.u32 %v22002_v62, %v17986_v63  ;;  %v15681_v15 = vor.u32 %v21458_v5, %v15680_v1  ;;  %v17729_v18 = vor.u32 %v21970_v9, %v17728_v6  ;;  %v21266_v55 = vld [vmem:[#allocation5 + $0x32c] sm:$0xf0]  ;;  %v14914_v62 = vld [vmem:[#allocation5 + $0x330] sm:$0xf0] }
  0xf0   :  { %v16960_v56 = vld [vmem:[#allocation5 + $0x1230] sm:$0xf]  ;;  %v21746_v63 = vld [vmem:[#allocation5 + $0x1234] sm:$0xf]  ;;  %v14913_v1 = vor.u32 %v21266_v55, %v14912_v54  ;;  %v14917_v6 = vor.u32 %v21234_v60, %v14914_v62  ;;  %v15946_v54 = vld [vmem:[#allocation5 + $0xb38] sm:$0xf0] }
  0xf1   :  { %6770 = vmatpush.bf16.msrb.mxu0 %v14649_v25  ;;  %6796 = vmatpush.bf16.msrb.mxu2 %v14653_v31  ;;  %v6564_v17 = vpop.f32.mrf.mxu0  ;;  %v17474_v31 = vld [vmem:[#allocation5 + $0x1730] sm:$0xf0]  ;;  %v16961_v5 = vor.u32 %v21778_v59, %v16960_v56  ;;  %v22003_v55 = vld [vmem:[#allocation5 + $0x1a3c] sm:$0xf]  ;;  %v21459_v62 = vld [vmem:[#allocation5 + $0x934] sm:$0xf0] }
  0xf2   :  { %v6565_v19 = vadd.f32 %v6564_v17, %v1251_v7  ;;  %v16704_v7 = vld [vmem:[#allocation5 + $0x1030] sm:$0xf]  ;;  %v21170_v9 = vld [vmem:[#allocation5 + $0x34] sm:$0xf]  ;;  %v16456_v17 = vld [vmem:[#allocation5 + $0xe38] sm:$0xf] }
  0xf3   :  { %6783 = vmatpush.bf16.msrb.mxu1 %v16697_v30  ;;  %6809 = vmatpush.bf16.msrb.mxu3 %v16701_v35  ;;  %v6577_v25 = vpop.f32.mrf.mxu1  ;;  %v21874_v30 = vld [vmem:[#allocation5 + $0x1634] sm:$0xf]  ;;  %v15429_v35 = vor.u32 %v21362_v26, %v15426_v27  ;;  %v22131_v26 = vld [vmem:[#allocation5 + $0x1e3c] sm:$0xf] }
  0xf4   :  { %6797 = vmatmul.bf16.vlgmr.msrb.gmra.mxu2 %v23432_v61  ;;  %6771 = vmatmul.bf16.vlgmr.msrb.gmra.mxu0 %v23432_v61  ;;  %v23440_v32 = vadd.f32 %v6577_v25, %v6565_v19  ;;  %v17477_v41 = vor.u32 %v21874_v30, %v17474_v31  ;;  %v16458_v19 = vld [vmem:[#allocation5 + $0xf38] sm:$0xf0] }
  0xf5   :  { %6815 = vmatpush.bf16.msra.mxu0 %v16449_v37  ;;  %6841 = vmatpush.bf16.msra.mxu2 %v16453_v39  ;;  %v15168_v37 = vld [vmem:[#allocation5 + $0x430] sm:$0xf]  ;;  %v18506_v27 = vld [vmem:[#allocation5 + $0x1f38] sm:$0xf0] }
  0xf6   :  { %6810 = vmatmul.bf16.vlgmr.msrb.gmra.mxu3 %v23421_v14  ;;  %6784 = vmatmul.bf16.vlgmr.msrb.gmra.mxu1 %v23421_v14  ;;  %v17216_v39 = vld [vmem:[#allocation5 + $0x1430] sm:$0xf]  ;;  %v17994_v56 = vld [vmem:[#allocation5 + $0x1b38] sm:$0xf0] }
  0xf7   :  { %6828 = vmatpush.bf16.msra.mxu1 %v18497_v38  ;;  %6854 = vmatpush.bf16.msra.mxu3 %v18501_v43  ;;  %v21330_v38 = vld [vmem:[#allocation5 + $0x52c] sm:$0xf0]  ;;  %v6590_v40 = vpop.f32.mrf.mxu2  ;;  %v21298_v43 = vld [vmem:[#allocation5 + $0x434] sm:$0xf] }
  0xf8   :  { %v6591_v45 = vadd.f32 %v6590_v40, %v1252_v29  ;;  %v15169_v49 = vor.u32 %v21330_v38, %v15168_v37  ;;  %v18248_v37 = vld [vmem:[#allocation5 + $0x1c38] sm:$0xf]  ;;  %v18509_v38 = vor.u32 %v22131_v26, %v18506_v27  ;;  %v21555_v40 = vld [vmem:[#allocation5 + $0xc3c] sm:$0xf] }
  0xf9   :  { %6816 = vmatpush.bf16.msra.mxu0 %v16193_v50  ;;  %6842 = vmatpush.bf16.msra.mxu2 %v16197_v53  ;;  %v6603_v46 = vpop.f32.mrf.mxu3  ;;  %v6566_v51 = vpop.f32.mrf.mxu0  ;;  %v15173_v53 = vor.u32 %v21298_v43, %v15170_v44  ;;  %v18250_v43 = vld [vmem:[#allocation5 + $0x1d38] sm:$0xf0] }
  0xfa   :  { %v23442_v50 = vadd.f32 %v6603_v46, %v6591_v45 }
  0xfb   :  { %6829 = vmatpush.bf16.msra.mxu1 %v18241_v52  ;;  %6855 = vmatpush.bf16.msra.mxu3 %v18245_v57  ;;  %v17217_v52 = vor.u32 %v21842_v42, %v17216_v39  ;;  %v6579_v57 = vpop.f32.mrf.mxu1  ;;  %v22099_v39 = vld [vmem:[#allocation5 + $0x1d34] sm:$0xf0]  ;;  %v22067_v42 = vld [vmem:[#allocation5 + $0x1c3c] sm:$0xf] }
  0xfc   :  { %v18249_v45 = vor.u32 %v22099_v39, %v18248_v37  ;;  %v18253_v51 = vor.u32 %v22067_v42, %v18250_v43  ;;  %v15945_v57 = vor.u32 %v21523_v48, %v15944_v47  ;;  %v21843_v37 = vld [vmem:[#allocation5 + $0x1534] sm:$0xf0]  ;;  %v15178_v39 = vld [vmem:[#allocation5 + $0x538] sm:$0xf0] }
  0xfd   :  { %6817 = vmatpush.bf16.msra.mxu0 %v15937_v0  ;;  %6843 = vmatpush.bf16.msra.mxu2 %v15941_v3  ;;  %v16962_v0 = vld [vmem:[#allocation5 + $0x1330] sm:$0xf0]  ;;  %v21202_v3 = vld [vmem:[#allocation5 + $0x12c] sm:$0xf0]  ;;  %v21811_v42 = vld [vmem:[#allocation5 + $0x143c] sm:$0xf] }
  0xfe   :  { %v16965_v11 = vor.u32 %v21746_v63, %v16962_v0  ;;  %v17736_v63 = vld [vmem:[#allocation5 + $0x1838] sm:$0xf]  ;;  %v1253_v0 = vperm.slane %v23424_v36, 4  ;;  %v17226_v43 = vld [vmem:[#allocation5 + $0x1538] sm:$0xf0] }
  0xff   :  { %6830 = vmatpush.bf16.msra.mxu1 %v17985_v2  ;;  %6856 = vmatpush.bf16.msra.mxu3 %v17989_v8  ;;  %v14656_v2 = vld [vmem:[#allocation5 + $0x30] sm:$0xf]  ;;  %v6592_v10 = vpop.f32.mrf.mxu2 }
 0x100   :  { %v21714_v8 = vld [vmem:[#allocation5 + $0x112c] sm:$0xf0]  ;;  %v14657_v22 = vor.u32 %v21202_v3, %v14656_v2  ;;  %v21971_v2 = vld [vmem:[#allocation5 + $0x1934] sm:$0xf0]  ;;  %v21427_v3 = vld [vmem:[#allocation5 + $0x83c] sm:$0xf] }
 0x101   :  { %6818 = vmatpush.bf16.msra.mxu0 %v15681_v15  ;;  %6844 = vmatpush.bf16.msra.mxu2 %v15685_v21  ;;  %v16706_v15 = vld [vmem:[#allocation5 + $0x1130] sm:$0xf0]  ;;  %v6605_v16 = vpop.f32.mrf.mxu3  ;;  %v18504_v21 = vld [vmem:[#allocation5 + $0x1e38] sm:$0xf]  ;;  %v16705_v25 = vor.u32 %v21714_v8, %v16704_v7  ;;  %v17738_v7 = vld [vmem:[#allocation5 + $0x1938] sm:$0xf0] }
 0x102   :  { %v16709_v29 = vor.u32 %v21682_v13, %v16706_v15  ;;  %v18505_v31 = vor.u32 %v22163_v23, %v18504_v21  ;;  %v21395_v13 = vld [vmem:[#allocation5 + $0x734] sm:$0xf0]  ;;  %v15434_v23 = vld [vmem:[#allocation5 + $0x738] sm:$0xf0] }
 0x103   :  { %6831 = vmatpush.bf16.msra.mxu1 %v17729_v18  ;;  %6857 = vmatpush.bf16.msra.mxu3 %v17733_v20  ;;  %v21651_v18 = vld [vmem:[#allocation5 + $0xf34] sm:$0xf0]  ;;  %v14661_v20 = vor.u32 %v21170_v9, %v14658_v12 }
 0x104   :  { %v16457_v30 = vor.u32 %v21651_v18, %v16456_v17  ;;  %v15432_v9 = vld [vmem:[#allocation5 + $0x638] sm:$0xf] }
 0x105   :  { %6819 = vmatpush.bf16.msra.mxu0 %v15425_v33  ;;  %6845 = vmatpush.bf16.msra.mxu2 %v15429_v35  ;;  %v16461_v33 = vor.u32 %v21619_v24, %v16458_v19  ;;  %v21587_v35 = vld [vmem:[#allocation5 + $0xd34] sm:$0xf0]  ;;  %v1254_v24 = vperm.slane %v23424_v36, 5  ;;  %v21875_v19 = vld [vmem:[#allocation5 + $0x163c] sm:$0xf]  ;;  %v15433_v26 = vor.u32 %v21395_v13, %v15432_v9 }
 0x106   :  { %v17480_v15 = vld [vmem:[#allocation5 + $0x1638] sm:$0xf]  ;;  %v21683_v9 = vld [vmem:[#allocation5 + $0x103c] sm:$0xf]  ;;  %v21652_v13 = vld [vmem:[#allocation5 + $0xf3c] sm:$0xf0] }
 0x107   :  { %6832 = vmatpush.bf16.msra.mxu1 %v17473_v34  ;;  %6858 = vmatpush.bf16.msra.mxu3 %v17477_v41  ;;  %v16200_v34 = vld [vmem:[#allocation5 + $0xc38] sm:$0xf]  ;;  %v16202_v41 = vld [vmem:[#allocation5 + $0xd38] sm:$0xf0] }
 0x108   :  { %v16201_v44 = vor.u32 %v21587_v35, %v16200_v34  ;;  %v16205_v46 = vor.u32 %v21555_v40, %v16202_v41  ;;  %v21907_v16 = vld [vmem:[#allocation5 + $0x1734] sm:$0xf0] }
 0x109   :  { %6820 = vmatpush.bf16.msra.mxu0 %v15169_v49  ;;  %6846 = vmatpush.bf16.msra.mxu2 %v15173_v53  ;;  %v17992_v49 = vld [vmem:[#allocation5 + $0x1a38] sm:$0xf]  ;;  %v21491_v53 = vld [vmem:[#allocation5 + $0xa3c] sm:$0xf]  ;;  %v17481_v27 = vor.u32 %v21907_v16, %v17480_v15  ;;  %v18512_v15 = vld [vmem:[#allocation5 + $0x1e40] sm:$0xf] }
 0x10a   :  { %v15949_v60 = vor.u32 %v21491_v53, %v15946_v54  ;;  %v17229_v54 = vor.u32 %v21811_v42, %v17226_v43 }
 0x10b   :  { %6833 = vmatpush.bf16.msra.mxu1 %v17217_v52  ;;  %6859 = vmatpush.bf16.msra.mxu3 %v17221_v58  ;;  %v22035_v52 = vld [vmem:[#allocation5 + $0x1b34] sm:$0xf0] }
 0x10c   :  { %v15688_v58 = vld [vmem:[#allocation5 + $0x838] sm:$0xf]  ;;  %v17993_v59 = vor.u32 %v22035_v52, %v17992_v49 }
 0x10d   :  { %6821 = vmatpush.bf16.msra.mxu0 %v14913_v1  ;;  %6847 = vmatpush.bf16.msra.mxu2 %v14917_v6  ;;  %v17997_v1 = vor.u32 %v22003_v55, %v17994_v56  ;;  %v21939_v6 = vld [vmem:[#allocation5 + $0x183c] sm:$0xf]  ;;  %v15689_v8 = vor.u32 %v21459_v62, %v15688_v58  ;;  %v14920_v49 = vld [vmem:[#allocation5 + $0x238] sm:$0xf] }
 0x10e   :  { %v17741_v21 = vor.u32 %v21939_v6, %v17738_v7  ;;  %v16968_v52 = vld [vmem:[#allocation5 + $0x1238] sm:$0xf]  ;;  %v21235_v56 = vld [vmem:[#allocation5 + $0x23c] sm:$0xf] }
 0x10f   :  { %6834 = vmatpush.bf16.msra.mxu1 %v16961_v5  ;;  %6860 = vmatpush.bf16.msra.mxu3 %v16965_v11  ;;  %v15690_v5 = vld [vmem:[#allocation5 + $0x938] sm:$0xf0]  ;;  %v17737_v11 = vor.u32 %v21971_v2, %v17736_v63  ;;  %v21779_v55 = vld [vmem:[#allocation5 + $0x1334] sm:$0xf0] }
 0x110   :  { %v15693_v12 = vor.u32 %v21427_v3, %v15690_v5  ;;  %v21747_v58 = vld [vmem:[#allocation5 + $0x123c] sm:$0xf]  ;;  %v14664_v62 = vld [vmem:[#allocation5 + $0x38] sm:$0xf] }
 0x111   :  { %6822 = vmatpush.bf16.msra.mxu0 %v14657_v22  ;;  %6848 = vmatpush.bf16.msra.mxu2 %v14661_v20  ;;  %v6616_v10 = vpop.f32.mrf.mxu0  ;;  %v21363_v22 = vld [vmem:[#allocation5 + $0x63c] sm:$0xf]  ;;  %v21203_v63 = vld [vmem:[#allocation5 + $0x134] sm:$0xf0] }
 0x112   :  { %v6617_v17 = vadd.f32 %v6616_v10, %v1253_v0  ;;  %v16969_v0 = vor.u32 %v21779_v55, %v16968_v52  ;;  %v16712_v2 = vld [vmem:[#allocation5 + $0x1038] sm:$0xf]  ;;  %v21171_v5 = vld [vmem:[#allocation5 + $0x3c] sm:$0xf]  ;;  %v14665_v16 = vor.u32 %v21203_v63, %v14664_v62  ;;  %v15954_v52 = vld [vmem:[#allocation5 + $0xb40] sm:$0xf0] }
 0x113   :  { %6835 = vmatpush.bf16.msra.mxu1 %v16705_v25  ;;  %6861 = vmatpush.bf16.msra.mxu3 %v16709_v29  ;;  %v6629_v18 = vpop.f32.mrf.mxu1  ;;  %v17482_v25 = vld [vmem:[#allocation5 + $0x1738] sm:$0xf0]  ;;  %v15437_v29 = vor.u32 %v21363_v22, %v15434_v23  ;;  %v21715_v3 = vld [vmem:[#allocation5 + $0x1134] sm:$0xf0]  ;;  %v1255_v62 = vperm.slane %v23424_v36, 6 }
 0x114   :  { %6849 = vmatmul.bf16.vlgmr.msra.gmra.mxu2 %v23432_v61  ;;  %6823 = vmatmul.bf16.vlgmr.msra.gmra.mxu0 %v23432_v61  ;;  %v23450_v20 = vadd.f32 %v6629_v18, %v6617_v17  ;;  %v17485_v35 = vor.u32 %v21875_v19, %v17482_v25  ;;  %v16714_v10 = vld [vmem:[#allocation5 + $0x1138] sm:$0xf0]  ;;  %v22164_v17 = vld [vmem:[#allocation5 + $0x1f3c] sm:$0xf0]  ;;  %v21620_v18 = vld [vmem:[#allocation5 + $0xe44] sm:$0xf]  ;;  %v16713_v22 = vor.u32 %v21715_v3, %v16712_v2 }
 0x115   :  { %6867 = vmatpush.bf16.msrb.mxu0 %v16457_v30  ;;  %6893 = vmatpush.bf16.msrb.mxu2 %v16461_v33  ;;  %v15176_v30 = vld [vmem:[#allocation5 + $0x438] sm:$0xf]  ;;  %v18514_v19 = vld [vmem:[#allocation5 + $0x1f40] sm:$0xf0]  ;;  %v16717_v25 = vor.u32 %v21683_v9, %v16714_v10  ;;  %v21396_v10 = vld [vmem:[#allocation5 + $0x73c] sm:$0xf0] }
 0x116   :  { %6862 = vmatmul.bf16.vlgmr.msra.gmra.mxu3 %v23421_v14  ;;  %6836 = vmatmul.bf16.vlgmr.msra.gmra.mxu1 %v23421_v14  ;;  %v17224_v33 = vld [vmem:[#allocation5 + $0x1438] sm:$0xf]  ;;  %v15698_v2 = vld [vmem:[#allocation5 + $0x940] sm:$0xf0] }
 0x117   :  { %6880 = vmatpush.bf16.msrb.mxu1 %v18505_v31  ;;  %6906 = vmatpush.bf16.msrb.mxu3 %v18509_v38  ;;  %v21331_v31 = vld [vmem:[#allocation5 + $0x534] sm:$0xf0]  ;;  %v6642_v34 = vpop.f32.mrf.mxu2  ;;  %v21299_v38 = vld [vmem:[#allocation5 + $0x43c] sm:$0xf]  ;;  %v17225_v47 = vor.u32 %v21843_v37, %v17224_v33  ;;  %v18256_v33 = vld [vmem:[#allocation5 + $0x1c40] sm:$0xf] }
 0x118   :  { %v6643_v40 = vadd.f32 %v6642_v34, %v1254_v24  ;;  %v15181_v48 = vor.u32 %v21299_v38, %v15178_v39  ;;  %v22132_v24 = vld [vmem:[#allocation5 + $0x1e44] sm:$0xf] }
 0x119   :  { %6868 = vmatpush.bf16.msrb.mxu0 %v16201_v44  ;;  %6894 = vmatpush.bf16.msrb.mxu2 %v16205_v46  ;;  %v6655_v41 = vpop.f32.mrf.mxu3  ;;  %v15177_v44 = vor.u32 %v21331_v31, %v15176_v30  ;;  %v6618_v46 = vpop.f32.mrf.mxu0  ;;  %v16208_v30 = vld [vmem:[#allocation5 + $0xc40] sm:$0xf]  ;;  %v18517_v34 = vor.u32 %v22132_v24, %v18514_v19  ;;  %v21556_v37 = vld [vmem:[#allocation5 + $0xc44] sm:$0xf] }
 0x11a   :  { %v21588_v31 = vld [vmem:[#allocation5 + $0xd3c] sm:$0xf0]  ;;  %v16210_v38 = vld [vmem:[#allocation5 + $0xd40] sm:$0xf0] }
 0x11b   :  { %6881 = vmatpush.bf16.msrb.mxu1 %v18249_v45  ;;  %6907 = vmatpush.bf16.msrb.mxu3 %v18253_v51  ;;  %v23452_v45 = vadd.f32 %v6655_v41, %v6643_v40  ;;  %v21267_v51 = vld [vmem:[#allocation5 + $0x334] sm:$0xf0]  ;;  %v6631_v53 = vpop.f32.mrf.mxu1  ;;  %v22068_v39 = vld [vmem:[#allocation5 + $0x1c44] sm:$0xf]  ;;  %v16209_v41 = vor.u32 %v21588_v31, %v16208_v30  ;;  %v16213_v43 = vor.u32 %v21556_v37, %v16210_v38  ;;  %v21524_v46 = vld [vmem:[#allocation5 + $0xb3c] sm:$0xf0] }
 0x11c   :  { %v18258_v40 = vld [vmem:[#allocation5 + $0x1d40] sm:$0xf0]  ;;  %v17232_v30 = vld [vmem:[#allocation5 + $0x1440] sm:$0xf] }
 0x11d   :  { %6869 = vmatpush.bf16.msrb.mxu0 %v15945_v57  ;;  %6895 = vmatpush.bf16.msrb.mxu2 %v15949_v60  ;;  %v14922_v57 = vld [vmem:[#allocation5 + $0x338] sm:$0xf0]  ;;  %v14921_v60 = vor.u32 %v21267_v51, %v14920_v49  ;;  %v22036_v49 = vld [vmem:[#allocation5 + $0x1b3c] sm:$0xf0]  ;;  %v21492_v51 = vld [vmem:[#allocation5 + $0xa44] sm:$0xf] }
 0x11e   :  { %v22004_v53 = vld [vmem:[#allocation5 + $0x1a44] sm:$0xf] }
 0x11f   :  { %6882 = vmatpush.bf16.msrb.mxu1 %v17993_v59  ;;  %6908 = vmatpush.bf16.msrb.mxu3 %v17997_v1  ;;  %v16970_v59 = vld [vmem:[#allocation5 + $0x1338] sm:$0xf0]  ;;  %v14925_v1 = vor.u32 %v21235_v56, %v14922_v57  ;;  %v6644_v6 = vpop.f32.mrf.mxu2  ;;  %v15696_v56 = vld [vmem:[#allocation5 + $0x840] sm:$0xf]  ;;  %v21940_v3 = vld [vmem:[#allocation5 + $0x1844] sm:$0xf] }
 0x120   :  { %v16973_v7 = vor.u32 %v21747_v58, %v16970_v59  ;;  %v15957_v58 = vor.u32 %v21492_v51, %v15954_v52  ;;  %v21460_v59 = vld [vmem:[#allocation5 + $0x93c] sm:$0xf0]  ;;  %v15186_v37 = vld [vmem:[#allocation5 + $0x540] sm:$0xf0] }
 0x121   :  { %6870 = vmatpush.bf16.msrb.mxu0 %v15689_v8  ;;  %6896 = vmatpush.bf16.msrb.mxu2 %v15693_v12  ;;  %v14666_v8 = vld [vmem:[#allocation5 + $0x138] sm:$0xf0]  ;;  %v16464_v12 = vld [vmem:[#allocation5 + $0xe40] sm:$0xf]  ;;  %v15697_v6 = vor.u32 %v21460_v59, %v15696_v56  ;;  %v21748_v56 = vld [vmem:[#allocation5 + $0x1244] sm:$0xf] }
 0x122   :  { %v14669_v23 = vor.u32 %v21171_v5, %v14666_v8  ;;  %v17746_v5 = vld [vmem:[#allocation5 + $0x1940] sm:$0xf0]  ;;  %v14672_v59 = vld [vmem:[#allocation5 + $0x40] sm:$0xf] }
 0x123   :  { %6883 = vmatpush.bf16.msrb.mxu1 %v17737_v11  ;;  %6909 = vmatpush.bf16.msrb.mxu3 %v17741_v21  ;;  %v6657_v11 = vpop.f32.mrf.mxu3  ;;  %v16466_v21 = vld [vmem:[#allocation5 + $0xf40] sm:$0xf0] }
 0x124   :  { %v17488_v11 = vld [vmem:[#allocation5 + $0x1640] sm:$0xf] }
 0x125   :  { %6871 = vmatpush.bf16.msrb.mxu0 %v15433_v26  ;;  %6897 = vmatpush.bf16.msrb.mxu2 %v15437_v29  ;;  %v16465_v26 = vor.u32 %v21652_v13, %v16464_v12  ;;  %v16469_v29 = vor.u32 %v21620_v18, %v16466_v21  ;;  %v21908_v12 = vld [vmem:[#allocation5 + $0x173c] sm:$0xf0]  ;;  %v15442_v18 = vld [vmem:[#allocation5 + $0x740] sm:$0xf0]  ;;  %v1256_v21 = vperm.slane %v23424_v36, 7 }
 0x127   :  { %6884 = vmatpush.bf16.msrb.mxu1 %v17481_v27  ;;  %6910 = vmatpush.bf16.msrb.mxu3 %v17485_v35  ;;  %v18513_v27 = vor.u32 %v22164_v17, %v18512_v15  ;;  %v22100_v35 = vld [vmem:[#allocation5 + $0x1d3c] sm:$0xf0]  ;;  %v21364_v17 = vld [vmem:[#allocation5 + $0x644] sm:$0xf] }
 0x128   :  { %v18257_v42 = vor.u32 %v22100_v35, %v18256_v33  ;;  %v21300_v35 = vld [vmem:[#allocation5 + $0x444] sm:$0xf] }
 0x129   :  { %6872 = vmatpush.bf16.msrb.mxu0 %v15177_v44  ;;  %6898 = vmatpush.bf16.msrb.mxu2 %v15181_v48  ;;  %v15952_v44 = vld [vmem:[#allocation5 + $0xa40] sm:$0xf]  ;;  %v18261_v48 = vor.u32 %v22068_v39, %v18258_v40  ;;  %v21812_v39 = vld [vmem:[#allocation5 + $0x1444] sm:$0xf] }
 0x12a   :  { %v15953_v55 = vor.u32 %v21524_v46, %v15952_v44  ;;  %v17234_v40 = vld [vmem:[#allocation5 + $0x1540] sm:$0xf0]  ;;  %v15189_v46 = vor.u32 %v21300_v35, %v15186_v37  ;;  %v16218_v35 = vld [vmem:[#allocation5 + $0xd48] sm:$0xf0] }
 0x12b   :  { %6885 = vmatpush.bf16.msrb.mxu1 %v17225_v47  ;;  %6911 = vmatpush.bf16.msrb.mxu3 %v17229_v54  ;;  %v18000_v47 = vld [vmem:[#allocation5 + $0x1a40] sm:$0xf]  ;;  %v18002_v54 = vld [vmem:[#allocation5 + $0x1b40] sm:$0xf0]  ;;  %v17237_v52 = vor.u32 %v21812_v39, %v17234_v40  ;;  %v22069_v37 = vld [vmem:[#allocation5 + $0x1c4c] sm:$0xf] }
 0x12c   :  { %v18001_v57 = vor.u32 %v22036_v49, %v18000_v47  ;;  %v18005_v63 = vor.u32 %v22004_v53, %v18002_v54  ;;  %v14928_v47 = vld [vmem:[#allocation5 + $0x240] sm:$0xf]  ;;  %v21236_v54 = vld [vmem:[#allocation5 + $0x244] sm:$0xf]  ;;  %v15960_v39 = vld [vmem:[#allocation5 + $0xa48] sm:$0xf] }
 0x12d   :  { %6873 = vmatpush.bf16.msrb.mxu0 %v14921_v60  ;;  %6899 = vmatpush.bf16.msrb.mxu2 %v14925_v1  ;;  %v17744_v60 = vld [vmem:[#allocation5 + $0x1840] sm:$0xf]  ;;  %v21428_v1 = vld [vmem:[#allocation5 + $0x844] sm:$0xf] }
 0x12e   :  { %v15701_v9 = vor.u32 %v21428_v1, %v15698_v2  ;;  %v16976_v49 = vld [vmem:[#allocation5 + $0x1240] sm:$0xf]  ;;  %v21172_v2 = vld [vmem:[#allocation5 + $0x44] sm:$0xf] }
 0x12f   :  { %6886 = vmatpush.bf16.msrb.mxu1 %v16969_v0  ;;  %6912 = vmatpush.bf16.msrb.mxu3 %v16973_v7  ;;  %v21972_v0 = vld [vmem:[#allocation5 + $0x193c] sm:$0xf0] }
 0x130   :  { %v15440_v7 = vld [vmem:[#allocation5 + $0x640] sm:$0xf] }
 0x131   :  { %6874 = vmatpush.bf16.msrb.mxu0 %v14665_v16  ;;  %6900 = vmatpush.bf16.msrb.mxu2 %v14669_v23  ;;  %v6668_v8 = vpop.f32.mrf.mxu0  ;;  %v17749_v16 = vor.u32 %v21940_v3, %v17746_v5  ;;  %v17490_v23 = vld [vmem:[#allocation5 + $0x1740] sm:$0xf0]  ;;  %v15441_v19 = vor.u32 %v21396_v10, %v15440_v7  ;;  %v21780_v53 = vld [vmem:[#allocation5 + $0x133c] sm:$0xf0]  ;;  %v21653_v10 = vld [vmem:[#allocation5 + $0xf44] sm:$0xf0] }
 0x132   :  { %v6669_v13 = vadd.f32 %v6668_v8, %v1255_v62  ;;  %v16977_v62 = vor.u32 %v21780_v53, %v16976_v49  ;;  %v21716_v1 = vld [vmem:[#allocation5 + $0x113c] sm:$0xf0]  ;;  %v21684_v7 = vld [vmem:[#allocation5 + $0x1044] sm:$0xf]  ;;  %v15962_v49 = vld [vmem:[#allocation5 + $0xb48] sm:$0xf0] }
 0x133   :  { %6887 = vmatpush.bf16.msrb.mxu1 %v16713_v22  ;;  %6913 = vmatpush.bf16.msrb.mxu3 %v16717_v25  ;;  %v6681_v15 = vpop.f32.mrf.mxu1  ;;  %v21876_v22 = vld [vmem:[#allocation5 + $0x1644] sm:$0xf]  ;;  %v17489_v25 = vor.u32 %v21908_v12, %v17488_v11  ;;  %v18520_v11 = vld [vmem:[#allocation5 + $0x1e48] sm:$0xf]  ;;  %v18010_v53 = vld [vmem:[#allocation5 + $0x1b48] sm:$0xf0] }
 0x134   :  { %6901 = vmatmul.bf16.vlgmr.msrb.gmra.mxu2 %v23432_v61  ;;  %6875 = vmatmul.bf16.vlgmr.msrb.gmra.mxu0 %v23432_v61  ;;  %v23460_v24 = vadd.f32 %v6681_v15, %v6669_v13  ;;  %v17493_v33 = vor.u32 %v21876_v22, %v17490_v23  ;;  %v16722_v8 = vld [vmem:[#allocation5 + $0x1140] sm:$0xf0]  ;;  %v22165_v13 = vld [vmem:[#allocation5 + $0x1f44] sm:$0xf0]  ;;  %v21621_v15 = vld [vmem:[#allocation5 + $0xe4c] sm:$0xf] }
 0x135   :  { %6919 = vmatpush.bf16.msra.mxu0 %v16465_v26  ;;  %6945 = vmatpush.bf16.msra.mxu2 %v16469_v29  ;;  %v15445_v26 = vor.u32 %v21364_v17, %v15442_v18  ;;  %v21332_v29 = vld [vmem:[#allocation5 + $0x53c] sm:$0xf0]  ;;  %v18522_v22 = vld [vmem:[#allocation5 + $0x1f48] sm:$0xf0]  ;;  %v16725_v23 = vor.u32 %v21684_v7, %v16722_v8 }
 0x136   :  { %6914 = vmatmul.bf16.vlgmr.msrb.gmra.mxu3 %v23421_v14  ;;  %6888 = vmatmul.bf16.vlgmr.msrb.gmra.mxu1 %v23421_v14  ;;  %v17745_v14 = vor.u32 %v21972_v0, %v17744_v60  ;;  %v21204_v60 = vld [vmem:[#allocation5 + $0x13c] sm:$0xf0] }
 0x137   :  { %6932 = vmatpush.bf16.msra.mxu1 %v18513_v27  ;;  %6958 = vmatpush.bf16.msra.mxu3 %v18517_v34  ;;  %v15184_v27 = vld [vmem:[#allocation5 + $0x440] sm:$0xf]  ;;  %v6694_v31 = vpop.f32.mrf.mxu2  ;;  %v14673_v12 = vor.u32 %v21204_v60, %v14672_v59  ;;  %v21461_v59 = vld [vmem:[#allocation5 + $0x944] sm:$0xf0] }
 0x138   :  { %v21844_v34 = vld [vmem:[#allocation5 + $0x153c] sm:$0xf0]  ;;  %v6695_v36 = vadd.f32 %v6694_v31, %v1256_v21  ;;  %v22133_v21 = vld [vmem:[#allocation5 + $0x1e4c] sm:$0xf]  ;;  %v17752_v60 = vld [vmem:[#allocation5 + $0x1848] sm:$0xf] }
 0x139   :  { %6920 = vmatpush.bf16.msra.mxu0 %v16209_v41  ;;  %6946 = vmatpush.bf16.msra.mxu2 %v16213_v43  ;;  %v6707_v38 = vpop.f32.mrf.mxu3  ;;  %v15185_v41 = vor.u32 %v21332_v29, %v15184_v27  ;;  %v6670_v43 = vpop.f32.mrf.mxu0  ;;  %v17233_v44 = vor.u32 %v21844_v34, %v17232_v30  ;;  %v16720_v0 = vld [vmem:[#allocation5 + $0x1040] sm:$0xf]  ;;  %v16216_v27 = vld [vmem:[#allocation5 + $0xc48] sm:$0xf]  ;;  %v18525_v31 = vor.u32 %v22133_v21, %v18522_v22  ;;  %v21557_v34 = vld [vmem:[#allocation5 + $0xc4c] sm:$0xf] }
 0x13a   :  { %v16721_v17 = vor.u32 %v21716_v1, %v16720_v0  ;;  %v21589_v29 = vld [vmem:[#allocation5 + $0xd44] sm:$0xf0]  ;;  %v21429_v0 = vld [vmem:[#allocation5 + $0x84c] sm:$0xf] }
 0x13b   :  { %6933 = vmatpush.bf16.msra.mxu1 %v18257_v42  ;;  %6959 = vmatpush.bf16.msra.mxu3 %v18261_v48  ;;  %v23462_v42 = vadd.f32 %v6707_v38, %v6695_v36  ;;  %v21268_v48 = vld [vmem:[#allocation5 + $0x33c] sm:$0xf0]  ;;  %v6683_v51 = vpop.f32.mrf.mxu1  ;;  %v18264_v30 = vld [vmem:[#allocation5 + $0x1c48] sm:$0xf]  ;;  %v18266_v36 = vld [vmem:[#allocation5 + $0x1d48] sm:$0xf0]  ;;  %v16217_v38 = vor.u32 %v21589_v29, %v16216_v27 }
 0x13c   :  { %v21525_v43 = vld [vmem:[#allocation5 + $0xb44] sm:$0xf0]  ;;  %v15706_v1 = vld [vmem:[#allocation5 + $0x948] sm:$0xf0] }
 0x13d   :  { %6921 = vmatpush.bf16.msra.mxu0 %v15953_v55  ;;  %6947 = vmatpush.bf16.msra.mxu2 %v15957_v58  ;;  %v14930_v55 = vld [vmem:[#allocation5 + $0x340] sm:$0xf0]  ;;  %v14929_v58 = vor.u32 %v21268_v48, %v14928_v47  ;;  %v18269_v47 = vor.u32 %v22069_v37, %v18266_v36  ;;  %v21493_v48 = vld [vmem:[#allocation5 + $0xa4c] sm:$0xf]  ;;  %v15192_v27 = vld [vmem:[#allocation5 + $0x448] sm:$0xf] }
 0x13e   :  { %v23465_v51 = vld [vmem:[#allocation7 + $0x8] sm:$0xff] }
 0x13f   :  { %6934 = vmatpush.bf16.msra.mxu1 %v18001_v57  ;;  %6960 = vmatpush.bf16.msra.mxu3 %v18005_v63  ;;  %v16978_v57 = vld [vmem:[#allocation5 + $0x1340] sm:$0xf0]  ;;  %v14933_v63 = vor.u32 %v21236_v54, %v14930_v55  ;;  %v6696_v3 = vpop.f32.mrf.mxu2  ;;  %v15961_v55 = vor.u32 %v21525_v43, %v15960_v39  ;;  %v21877_v21 = vld [vmem:[#allocation5 + $0x164c] sm:$0xf]  ;;  %v21333_v29 = vld [vmem:[#allocation5 + $0x544] sm:$0xf0] }
 0x140   :  { %v16981_v5 = vor.u32 %v21748_v56, %v16978_v57  ;;  %v23468_v54 = vld [vmem:[#allocation1 + $0x9] sm:$0xff]  ;;  %v15704_v56 = vld [vmem:[#allocation5 + $0x848] sm:$0xf]  ;;  %v17754_v3 = vld [vmem:[#allocation5 + $0x1948] sm:$0xf0] }
 0x141   :  { %6922 = vmatpush.bf16.msra.mxu0 %v15697_v6  ;;  %6948 = vmatpush.bf16.msra.mxu2 %v15701_v9  ;;  %v14674_v6 = vld [vmem:[#allocation5 + $0x140] sm:$0xf0]  ;;  %v16472_v9 = vld [vmem:[#allocation5 + $0xe48] sm:$0xf]  ;;  %v17498_v22 = vld [vmem:[#allocation5 + $0x1748] sm:$0xf0] }
 0x142   :  { %v14677_v18 = vor.u32 %v21172_v2, %v14674_v6  ;;  %v21941_v2 = vld [vmem:[#allocation5 + $0x184c] sm:$0xf]  ;;  %v15448_v6 = vld [vmem:[#allocation5 + $0x648] sm:$0xf] }
 0x143   :  { %6935 = vmatpush.bf16.msra.mxu1 %v17745_v14  ;;  %6961 = vmatpush.bf16.msra.mxu3 %v17749_v16  ;;  %v6709_v14 = vpop.f32.mrf.mxu3  ;;  %v16474_v16 = vld [vmem:[#allocation5 + $0xf48] sm:$0xf0] }
 0x144   :  { %v15709_v14 = vor.u32 %v21429_v0, %v15706_v1  ;;  %v15194_v37 = vld [vmem:[#allocation5 + $0x548] sm:$0xf0] }
 0x145   :  { %6923 = vmatpush.bf16.msra.mxu0 %v15441_v19  ;;  %6949 = vmatpush.bf16.msra.mxu2 %v15445_v26  ;;  %v16473_v19 = vor.u32 %v21653_v10, %v16472_v9  ;;  %v16477_v26 = vor.u32 %v21621_v15, %v16474_v16  ;;  %v21397_v9 = vld [vmem:[#allocation5 + $0x744] sm:$0xf0]  ;;  %v17757_v15 = vor.u32 %v21941_v2, %v17754_v3  ;;  %v21365_v16 = vld [vmem:[#allocation5 + $0x64c] sm:$0xf] }
 0x146   :  { %v17496_v10 = vld [vmem:[#allocation5 + $0x1648] sm:$0xf]  ;;  %v21813_v39 = vld [vmem:[#allocation5 + $0x144c] sm:$0xf] }
 0x147   :  { %6936 = vmatpush.bf16.msra.mxu1 %v17489_v25  ;;  %6962 = vmatpush.bf16.msra.mxu3 %v17493_v33  ;;  %v18521_v25 = vor.u32 %v22165_v13, %v18520_v11  ;;  %v22101_v33 = vld [vmem:[#allocation5 + $0x1d44] sm:$0xf0] }
 0x148   :  { %v18265_v40 = vor.u32 %v22101_v33, %v18264_v30  ;;  %v21909_v11 = vld [vmem:[#allocation5 + $0x1744] sm:$0xf0]  ;;  %v17501_v33 = vor.u32 %v21877_v21, %v17498_v22 }
 0x149   :  { %6924 = vmatpush.bf16.msra.mxu0 %v15185_v41  ;;  %6950 = vmatpush.bf16.msra.mxu2 %v15189_v46  ;;  %v16221_v41 = vor.u32 %v21557_v34, %v16218_v35  ;;  %v22037_v46 = vld [vmem:[#allocation5 + $0x1b44] sm:$0xf0]  ;;  %v21301_v35 = vld [vmem:[#allocation5 + $0x44c] sm:$0xf] }
 0x14a   :  { %v17240_v30 = vld [vmem:[#allocation5 + $0x1448] sm:$0xf] }
 0x14b   :  { %6937 = vmatpush.bf16.msra.mxu1 %v17233_v44  ;;  %6963 = vmatpush.bf16.msra.mxu3 %v17237_v52  ;;  %v18008_v44 = vld [vmem:[#allocation5 + $0x1a48] sm:$0xf]  ;;  %v22005_v52 = vld [vmem:[#allocation5 + $0x1a4c] sm:$0xf] }
 0x14c   :  { %v18009_v57 = vor.u32 %v22037_v46, %v18008_v44  ;;  %v21845_v34 = vld [vmem:[#allocation5 + $0x1544] sm:$0xf0] }
 0x14d   :  { %6925 = vmatpush.bf16.msra.mxu0 %v14929_v58  ;;  %6951 = vmatpush.bf16.msra.mxu2 %v14933_v63  ;;  %v15965_v58 = vor.u32 %v21493_v48, %v15962_v49  ;;  %v18013_v63 = vor.u32 %v22005_v52, %v18010_v53  ;;  %v17241_v46 = vor.u32 %v21845_v34, %v17240_v30  ;;  %v14936_v48 = vld [vmem:[#allocation5 + $0x248] sm:$0xf]  ;;  %v18272_v34 = vld [vmem:[#allocation5 + $0x1c50] sm:$0xf] }
 0x14e   :  { %v21269_v49 = vld [vmem:[#allocation5 + $0x344] sm:$0xf0] }
 0x14f   :  { %6938 = vmatpush.bf16.msra.mxu1 %v16977_v62  ;;  %6964 = vmatpush.bf16.msra.mxu3 %v16981_v5  ;;  %v1257_v62 = vperm.slane %v23465_v51, 0  ;;  %v15705_v5 = vor.u32 %v21461_v59, %v15704_v56  ;;  %v16984_v52 = vld [vmem:[#allocation5 + $0x1248] sm:$0xf]  ;;  %v21749_v59 = vld [vmem:[#allocation5 + $0x124c] sm:$0xf] }
 0x150   :  { %v21781_v56 = vld [vmem:[#allocation5 + $0x1344] sm:$0xf0] }
 0x151   :  { %6926 = vmatpush.bf16.msra.mxu0 %v14673_v12  ;;  %6952 = vmatpush.bf16.msra.mxu2 %v14677_v18  ;;  %v6720_v7 = vpop.f32.mrf.mxu0  ;;  %v1258_v18 = vperm.slane %v23465_v51, 1  ;;  %v16985_v0 = vor.u32 %v21781_v56, %v16984_v52  ;;  %v16728_v2 = vld [vmem:[#allocation5 + $0x1048] sm:$0xf]  ;;  %v15970_v56 = vld [vmem:[#allocation5 + $0xb50] sm:$0xf0] }
 0x152   :  { %v6721_v12 = vadd.f32 %v6720_v7, %v1257_v62  ;;  %v14937_v62 = vor.u32 %v21269_v49, %v14936_v48  ;;  %v21717_v3 = vld [vmem:[#allocation5 + $0x1144] sm:$0xf0]  ;;  %v21526_v48 = vld [vmem:[#allocation5 + $0xb4c] sm:$0xf0] }
 0x153   :  { %6939 = vmatpush.bf16.msra.mxu1 %v16721_v17  ;;  %6965 = vmatpush.bf16.msra.mxu3 %v16725_v23  ;;  %v6733_v13 = vpop.f32.mrf.mxu1  ;;  %v15450_v17 = vld [vmem:[#allocation5 + $0x748] sm:$0xf0]  ;;  %v16729_v21 = vor.u32 %v21717_v3, %v16728_v2  ;;  %v18016_v49 = vld [vmem:[#allocation5 + $0x1a50] sm:$0xf]  ;;  %v1259_v2 = vperm.slane %v23465_v51, 2 }
 0x154   :  { %6953 = vmatmul.bf16.vlgmr.msra.gmra.mxu2 %v23432_v61  ;;  %6927 = vmatmul.bf16.vlgmr.msra.gmra.mxu0 %v23432_v61  ;;  %v21973_v61 = vld [vmem:[#allocation5 + $0x1944] sm:$0xf0]  ;;  %v23474_v23 = vadd.f32 %v6733_v13, %v6721_v12  ;;  %v21654_v12 = vld [vmem:[#allocation5 + $0xf4c] sm:$0xf0] }
 0x155   :  { %6971 = vmatpush.bf16.msrb.mxu0 %v16473_v19  ;;  %6997 = vmatpush.bf16.msrb.mxu2 %v16477_v26  ;;  %v17753_v8 = vor.u32 %v21973_v61, %v17752_v60  ;;  %v15449_v19 = vor.u32 %v21397_v9, %v15448_v6  ;;  %v15453_v26 = vor.u32 %v21365_v16, %v15450_v17  ;;  %v16986_v60 = vld [vmem:[#allocation5 + $0x1348] sm:$0xf0]  ;;  %v21205_v61 = vld [vmem:[#allocation5 + $0x144] sm:$0xf0]  ;;  %v18528_v13 = vld [vmem:[#allocation5 + $0x1e50] sm:$0xf] }
 0x156   :  { %6966 = vmatmul.bf16.vlgmr.msra.gmra.mxu3 %v23468_v54  ;;  %6940 = vmatmul.bf16.vlgmr.msra.gmra.mxu1 %v23468_v54  ;;  %v16989_v7 = vor.u32 %v21749_v59, %v16986_v60  ;;  %v16730_v9 = vld [vmem:[#allocation5 + $0x1148] sm:$0xf0]  ;;  %v22166_v16 = vld [vmem:[#allocation5 + $0x1f4c] sm:$0xf0]  ;;  %v21622_v17 = vld [vmem:[#allocation5 + $0xe54] sm:$0xf] }
 0x157   :  { %6984 = vmatpush.bf16.msrb.mxu1 %v18521_v25  ;;  %7010 = vmatpush.bf16.msrb.mxu3 %v18525_v31  ;;  %v17497_v25 = vor.u32 %v21909_v11, %v17496_v10  ;;  %v6746_v31 = vpop.f32.mrf.mxu2  ;;  %v16480_v11 = vld [vmem:[#allocation5 + $0xe50] sm:$0xf]  ;;  %v18018_v59 = vld [vmem:[#allocation5 + $0x1b50] sm:$0xf0] }
 0x158   :  { %v6747_v36 = vadd.f32 %v6746_v31, %v1258_v18  ;;  %v16482_v18 = vld [vmem:[#allocation5 + $0xf50] sm:$0xf0]  ;;  %v16224_v31 = vld [vmem:[#allocation5 + $0xc50] sm:$0xf] }
 0x159   :  { %6972 = vmatpush.bf16.msrb.mxu0 %v16217_v38  ;;  %6998 = vmatpush.bf16.msrb.mxu2 %v16221_v41  ;;  %v6759_v38 = vpop.f32.mrf.mxu3  ;;  %v15193_v41 = vor.u32 %v21333_v29, %v15192_v27  ;;  %v6722_v44 = vpop.f32.mrf.mxu0  ;;  %v16481_v27 = vor.u32 %v21654_v12, %v16480_v11  ;;  %v18529_v29 = vor.u32 %v22166_v16, %v18528_v13  ;;  %v17504_v16 = vld [vmem:[#allocation5 + $0x1650] sm:$0xf] }
 0x15a   :  { %v23476_v43 = vadd.f32 %v6759_v38, %v6747_v36  ;;  %v16485_v30 = vor.u32 %v21622_v17, %v16482_v18  ;;  %v21558_v36 = vld [vmem:[#allocation5 + $0xc54] sm:$0xf]  ;;  %v21910_v17 = vld [vmem:[#allocation5 + $0x174c] sm:$0xf0] }
 0x15b   :  { %6985 = vmatpush.bf16.msrb.mxu1 %v18265_v40  ;;  %7011 = vmatpush.bf16.msrb.mxu3 %v18269_v47  ;;  %v17242_v40 = vld [vmem:[#allocation5 + $0x1548] sm:$0xf0]  ;;  %v15197_v47 = vor.u32 %v21301_v35, %v15194_v37  ;;  %v6735_v53 = vpop.f32.mrf.mxu1  ;;  %v22102_v37 = vld [vmem:[#allocation5 + $0x1d4c] sm:$0xf0]  ;;  %v16226_v38 = vld [vmem:[#allocation5 + $0xd50] sm:$0xf0] }
 0x15c   :  { %v18273_v44 = vor.u32 %v22102_v37, %v18272_v34  ;;  %v22038_v53 = vld [vmem:[#allocation5 + $0x1b4c] sm:$0xf0] }
 0x15d   :  { %6973 = vmatpush.bf16.msrb.mxu0 %v15961_v55  ;;  %6999 = vmatpush.bf16.msrb.mxu2 %v15965_v58  ;;  %v17245_v55 = vor.u32 %v21813_v39, %v17242_v40  ;;  %v14938_v58 = vld [vmem:[#allocation5 + $0x348] sm:$0xf0]  ;;  %v22070_v39 = vld [vmem:[#allocation5 + $0x1c54] sm:$0xf]  ;;  %v21334_v37 = vld [vmem:[#allocation5 + $0x54c] sm:$0xf0] }
 0x15e   :  { %v18274_v40 = vld [vmem:[#allocation5 + $0x1d50] sm:$0xf0] }
 0x15f   :  { %6986 = vmatpush.bf16.msrb.mxu1 %v18009_v57  ;;  %7012 = vmatpush.bf16.msrb.mxu3 %v18013_v63  ;;  %v21237_v57 = vld [vmem:[#allocation5 + $0x24c] sm:$0xf]  ;;  %v14680_v63 = vld [vmem:[#allocation5 + $0x48] sm:$0xf]  ;;  %v6748_v6 = vpop.f32.mrf.mxu2  ;;  %v18277_v52 = vor.u32 %v22070_v39, %v18274_v40  ;;  %v21846_v40 = vld [vmem:[#allocation5 + $0x154c] sm:$0xf0] }
 0x160   :  { %v14941_v1 = vor.u32 %v21237_v57, %v14938_v58  ;;  %v23478_v57 = vld [vmem:[#allocation1] sm:$0xff] }
 0x161   :  { %6974 = vmatpush.bf16.msrb.mxu0 %v15705_v5  ;;  %7000 = vmatpush.bf16.msrb.mxu2 %v15709_v14  ;;  %v21173_v5 = vld [vmem:[#allocation5 + $0x4c] sm:$0xf]  ;;  %v6761_v10 = vpop.f32.mrf.mxu3  ;;  %v22006_v58 = vld [vmem:[#allocation5 + $0x1a54] sm:$0xf] }
 0x162   :  { %v21685_v14 = vld [vmem:[#allocation5 + $0x104c] sm:$0xf]  ;;  %v18021_v3 = vor.u32 %v22006_v58, %v18018_v59  ;;  %v21430_v6 = vld [vmem:[#allocation5 + $0x854] sm:$0xf]  ;;  %v15456_v10 = vld [vmem:[#allocation5 + $0x650] sm:$0xf] }
 0x163   :  { %6987 = vmatpush.bf16.msrb.mxu1 %v17753_v8  ;;  %7013 = vmatpush.bf16.msrb.mxu3 %v17757_v15  ;;  %v14682_v8 = vld [vmem:[#allocation5 + $0x148] sm:$0xf0]  ;;  %v14681_v15 = vor.u32 %v21205_v61, %v14680_v63  ;;  %v18017_v63 = vor.u32 %v22038_v53, %v18016_v49  ;;  %v17250_v49 = vld [vmem:[#allocation5 + $0x1550] sm:$0xf0]  ;;  %v14944_v59 = vld [vmem:[#allocation5 + $0x250] sm:$0xf] }
 0x164   :  { %v14685_v22 = vor.u32 %v21173_v5, %v14682_v8  ;;  %v21974_v5 = vld [vmem:[#allocation5 + $0x194c] sm:$0xf0]  ;;  %v21942_v8 = vld [vmem:[#allocation5 + $0x1854] sm:$0xf] }
 0x165   :  { %6975 = vmatpush.bf16.msrb.mxu0 %v15449_v19  ;;  %7001 = vmatpush.bf16.msrb.mxu2 %v15453_v26  ;;  %v22134_v19 = vld [vmem:[#allocation5 + $0x1e54] sm:$0xf]  ;;  %v16733_v26 = vor.u32 %v21685_v14, %v16730_v9 }
 0x166   :  { %v17762_v14 = vld [vmem:[#allocation5 + $0x1950] sm:$0xf0] }
 0x167   :  { %6988 = vmatpush.bf16.msrb.mxu1 %v17497_v25  ;;  %7014 = vmatpush.bf16.msrb.mxu3 %v17501_v33  ;;  %v18530_v25 = vld [vmem:[#allocation5 + $0x1f50] sm:$0xf0]  ;;  %v21590_v33 = vld [vmem:[#allocation5 + $0xd4c] sm:$0xf0] }
 0x168   :  { %v18533_v35 = vor.u32 %v22134_v19, %v18530_v25  ;;  %v21366_v19 = vld [vmem:[#allocation5 + $0x654] sm:$0xf] }
 0x169   :  { %6976 = vmatpush.bf16.msrb.mxu0 %v15193_v41  ;;  %7002 = vmatpush.bf16.msrb.mxu2 %v15197_v47  ;;  %v16225_v41 = vor.u32 %v21590_v33, %v16224_v31  ;;  %v15968_v47 = vld [vmem:[#allocation5 + $0xa50] sm:$0xf]  ;;  %v15458_v25 = vld [vmem:[#allocation5 + $0x750] sm:$0xf0]  ;;  %v17505_v33 = vor.u32 %v21910_v17, %v17504_v16 }
 0x16a   :  { %v15969_v60 = vor.u32 %v21526_v48, %v15968_v47  ;;  %v15461_v34 = vor.u32 %v21366_v19, %v15458_v25  ;;  %v21814_v48 = vld [vmem:[#allocation5 + $0x1454] sm:$0xf]  ;;  %v21655_v19 = vld [vmem:[#allocation5 + $0xf54] sm:$0xf0] }
 0x16b   :  { %6989 = vmatpush.bf16.msrb.mxu1 %v17241_v46  ;;  %7015 = vmatpush.bf16.msrb.mxu3 %v17245_v55  ;;  %v16229_v46 = vor.u32 %v21558_v36, %v16226_v38  ;;  %v21494_v55 = vld [vmem:[#allocation5 + $0xa54] sm:$0xf]  ;;  %v17248_v36 = vld [vmem:[#allocation5 + $0x1450] sm:$0xf]  ;;  %v18536_v25 = vld [vmem:[#allocation5 + $0x1e58] sm:$0xf] }
 0x16c   :  { %v15973_v61 = vor.u32 %v21494_v55, %v15970_v56  ;;  %v17249_v56 = vor.u32 %v21846_v40, %v17248_v36  ;;  %v14690_v16 = vld [vmem:[#allocation5 + $0x150] sm:$0xf0] }
 0x16d   :  { %6977 = vmatpush.bf16.msrb.mxu0 %v14937_v62  ;;  %7003 = vmatpush.bf16.msrb.mxu2 %v14941_v1  ;;  %v15712_v62 = vld [vmem:[#allocation5 + $0x850] sm:$0xf]  ;;  %v21686_v17 = vld [vmem:[#allocation5 + $0x1054] sm:$0xf] }
 0x16e   :  { %v17760_v1 = vld [vmem:[#allocation5 + $0x1850] sm:$0xf] }
 0x16f   :  { %6990 = vmatpush.bf16.msrb.mxu1 %v16985_v0  ;;  %7016 = vmatpush.bf16.msrb.mxu3 %v16989_v7  ;;  %v21462_v0 = vld [vmem:[#allocation5 + $0x94c] sm:$0xf0]  ;;  %v15714_v7 = vld [vmem:[#allocation5 + $0x950] sm:$0xf0]  ;;  %v17761_v12 = vor.u32 %v21974_v5, %v17760_v1 }
 0x170   :  { %v15713_v9 = vor.u32 %v21462_v0, %v15712_v62  ;;  %v15717_v13 = vor.u32 %v21430_v6, %v15714_v7  ;;  %v16992_v62 = vld [vmem:[#allocation5 + $0x1250] sm:$0xf]  ;;  %v21238_v1 = vld [vmem:[#allocation5 + $0x254] sm:$0xf] }
 0x171   :  { %6978 = vmatpush.bf16.msrb.mxu0 %v14681_v15  ;;  %7004 = vmatpush.bf16.msrb.mxu2 %v14685_v22  ;;  %v6772_v11 = vpop.f32.mrf.mxu0  ;;  %v21398_v15 = vld [vmem:[#allocation5 + $0x74c] sm:$0xf0]  ;;  %v17765_v22 = vor.u32 %v21942_v8, %v17762_v14  ;;  %v16994_v5 = vld [vmem:[#allocation5 + $0x1350] sm:$0xf0] }
 0x172   :  { %v6773_v18 = vadd.f32 %v6772_v11, %v1259_v2  ;;  %v15457_v31 = vor.u32 %v21398_v15, %v15456_v10  ;;  %v21782_v0 = vld [vmem:[#allocation5 + $0x134c] sm:$0xf0]  ;;  %v14946_v2 = vld [vmem:[#allocation5 + $0x350] sm:$0xf0] }
 0x173   :  { %6991 = vmatpush.bf16.msrb.mxu1 %v16729_v21  ;;  %7017 = vmatpush.bf16.msrb.mxu3 %v16733_v26  ;;  %v6785_v21 = vpop.f32.mrf.mxu1  ;;  %v1260_v26 = vperm.slane %v23465_v51, 3  ;;  %v14688_v7 = vld [vmem:[#allocation5 + $0x50] sm:$0xf]  ;;  %v16993_v14 = vor.u32 %v21782_v0, %v16992_v62  ;;  %v15976_v62 = vld [vmem:[#allocation5 + $0xa58] sm:$0xf] }
 0x174   :  { %7005 = vmatmul.bf16.vlgmr.msrb.gmra.mxu2 %v23478_v57  ;;  %6979 = vmatmul.bf16.vlgmr.msrb.gmra.mxu0 %v23478_v57  ;;  %v21206_v8 = vld [vmem:[#allocation5 + $0x14c] sm:$0xf0] }
 0x175   :  { %7023 = vmatpush.bf16.msra.mxu0 %v16481_v27  ;;  %7049 = vmatpush.bf16.msra.mxu2 %v16485_v30  ;;  %v21878_v27 = vld [vmem:[#allocation5 + $0x1654] sm:$0xf]  ;;  %v23486_v30 = vadd.f32 %v6785_v21, %v6773_v18  ;;  %v16736_v10 = vld [vmem:[#allocation5 + $0x1050] sm:$0xf] }
 0x176   :  { %7018 = vmatmul.bf16.vlgmr.msrb.gmra.mxu3 %v23468_v54  ;;  %6992 = vmatmul.bf16.vlgmr.msrb.gmra.mxu1 %v23468_v54  ;;  %v21718_v11 = vld [vmem:[#allocation5 + $0x114c] sm:$0xf0]  ;;  %v16738_v18 = vld [vmem:[#allocation5 + $0x1150] sm:$0xf0] }
 0x177   :  { %7036 = vmatpush.bf16.msra.mxu1 %v18529_v29  ;;  %7062 = vmatpush.bf16.msra.mxu3 %v18533_v35  ;;  %v17506_v29 = vld [vmem:[#allocation5 + $0x1750] sm:$0xf0]  ;;  %v15200_v35 = vld [vmem:[#allocation5 + $0x450] sm:$0xf]  ;;  %v6798_v38 = vpop.f32.mrf.mxu2  ;;  %v16741_v36 = vor.u32 %v21686_v17, %v16738_v18  ;;  %v15722_v17 = vld [vmem:[#allocation5 + $0x958] sm:$0xf0] }
 0x178   :  { %v17509_v39 = vor.u32 %v21878_v27, %v17506_v29  ;;  %v22167_v27 = vld [vmem:[#allocation5 + $0x1f54] sm:$0xf0]  ;;  %v21623_v29 = vld [vmem:[#allocation5 + $0xe5c] sm:$0xf] }
 0x179   :  { %7024 = vmatpush.bf16.msra.mxu0 %v16225_v41  ;;  %7050 = vmatpush.bf16.msra.mxu2 %v16229_v46  ;;  %v21302_v41 = vld [vmem:[#allocation5 + $0x454] sm:$0xf]  ;;  %v6799_v46 = vadd.f32 %v6798_v38, %v1260_v26  ;;  %v6811_v47 = vpop.f32.mrf.mxu3  ;;  %v6774_v55 = vpop.f32.mrf.mxu0  ;;  %v14689_v26 = vor.u32 %v21206_v8, %v14688_v7  ;;  %v15720_v8 = vld [vmem:[#allocation5 + $0x858] sm:$0xf]  ;;  %v21943_v18 = vld [vmem:[#allocation5 + $0x185c] sm:$0xf] }
 0x17a   :  { %v22071_v55 = vld [vmem:[#allocation5 + $0x1c5c] sm:$0xf] }
 0x17b   :  { %7037 = vmatpush.bf16.msra.mxu1 %v18273_v44  ;;  %7063 = vmatpush.bf16.msra.mxu3 %v18277_v52  ;;  %v15202_v44 = vld [vmem:[#allocation5 + $0x550] sm:$0xf0]  ;;  %v15201_v52 = vor.u32 %v21334_v37, %v15200_v35  ;;  %v23488_v53 = vadd.f32 %v6811_v47, %v6799_v46  ;;  %v22135_v35 = vld [vmem:[#allocation5 + $0x1e5c] sm:$0xf]  ;;  %v18280_v46 = vld [vmem:[#allocation5 + $0x1c58] sm:$0xf] }
 0x17c   :  { %v15205_v58 = vor.u32 %v21302_v41, %v15202_v44  ;;  %v18538_v37 = vld [vmem:[#allocation5 + $0x1f58] sm:$0xf0]  ;;  %v16232_v41 = vld [vmem:[#allocation5 + $0xc58] sm:$0xf] }
 0x17d   :  { %7025 = vmatpush.bf16.msra.mxu0 %v15969_v60  ;;  %7051 = vmatpush.bf16.msra.mxu2 %v15973_v61  ;;  %v21270_v60 = vld [vmem:[#allocation5 + $0x34c] sm:$0xf0]  ;;  %v17253_v61 = vor.u32 %v21814_v48, %v17250_v49  ;;  %v21591_v44 = vld [vmem:[#allocation5 + $0xd54] sm:$0xf0]  ;;  %v18541_v47 = vor.u32 %v22135_v35, %v18538_v37  ;;  %v21559_v49 = vld [vmem:[#allocation5 + $0xc5c] sm:$0xf] }
 0x17e   :  { %v14945_v6 = vor.u32 %v21270_v60, %v14944_v59  ;;  %v22103_v48 = vld [vmem:[#allocation5 + $0x1d54] sm:$0xf0] }
 0x17f   :  { %7038 = vmatpush.bf16.msra.mxu1 %v18017_v63  ;;  %7064 = vmatpush.bf16.msra.mxu3 %v18021_v3  ;;  %v6787_v63 = vpop.f32.mrf.mxu1  ;;  %v21750_v3 = vld [vmem:[#allocation5 + $0x1254] sm:$0xf]  ;;  %v18281_v59 = vor.u32 %v22103_v48, %v18280_v46 }
 0x180   :  { %v16997_v15 = vor.u32 %v21750_v3, %v16994_v5  ;;  %v21527_v63 = vld [vmem:[#allocation5 + $0xb54] sm:$0xf0]  ;;  %v15978_v3 = vld [vmem:[#allocation5 + $0xb58] sm:$0xf0] }
 0x181   :  { %7026 = vmatpush.bf16.msra.mxu0 %v15713_v9  ;;  %7052 = vmatpush.bf16.msra.mxu2 %v15717_v13  ;;  %v14949_v9 = vor.u32 %v21238_v1, %v14946_v2  ;;  %v6800_v13 = vpop.f32.mrf.mxu2  ;;  %v6813_v21 = vpop.f32.mrf.mxu3  ;;  %v22039_v1 = vld [vmem:[#allocation5 + $0x1b54] sm:$0xf0]  ;;  %v21495_v2 = vld [vmem:[#allocation5 + $0xa5c] sm:$0xf]  ;;  %v15977_v7 = vor.u32 %v21527_v63, %v15976_v62 }
 0x182   :  { %v22007_v5 = vld [vmem:[#allocation5 + $0x1a5c] sm:$0xf] }
 0x183   :  { %7039 = vmatpush.bf16.msra.mxu1 %v17761_v12  ;;  %7065 = vmatpush.bf16.msra.mxu3 %v17765_v22  ;;  %v21174_v12 = vld [vmem:[#allocation5 + $0x54] sm:$0xf]  ;;  %v16488_v22 = vld [vmem:[#allocation5 + $0xe58] sm:$0xf]  ;;  %v17770_v21 = vld [vmem:[#allocation5 + $0x1958] sm:$0xf0] }
 0x184   :  { %v16489_v38 = vor.u32 %v21655_v19, %v16488_v22  ;;  %v15464_v19 = vld [vmem:[#allocation5 + $0x658] sm:$0xf]  ;;  %v17773_v37 = vor.u32 %v21943_v18, %v17770_v21  ;;  %v15210_v62 = vld [vmem:[#allocation5 + $0x558] sm:$0xf0] }
 0x185   :  { %7027 = vmatpush.bf16.msra.mxu0 %v15457_v31  ;;  %7053 = vmatpush.bf16.msra.mxu2 %v15461_v34  ;;  %v16490_v31 = vld [vmem:[#allocation5 + $0xf58] sm:$0xf0]  ;;  %v14693_v34 = vor.u32 %v21174_v12, %v14690_v16  ;;  %v1261_v12 = vperm.slane %v23465_v51, 4  ;;  %v14696_v21 = vld [vmem:[#allocation5 + $0x58] sm:$0xf] }
 0x186   :  { %v16493_v40 = vor.u32 %v21623_v29, %v16490_v31  ;;  %v21431_v16 = vld [vmem:[#allocation5 + $0x85c] sm:$0xf]  ;;  %v21399_v29 = vld [vmem:[#allocation5 + $0x754] sm:$0xf0] }
 0x187   :  { %7040 = vmatpush.bf16.msra.mxu1 %v17505_v33  ;;  %7066 = vmatpush.bf16.msra.mxu3 %v17509_v39  ;;  %v16737_v33 = vor.u32 %v21718_v11, %v16736_v10  ;;  %v18537_v39 = vor.u32 %v22167_v27, %v18536_v25  ;;  %v21463_v10 = vld [vmem:[#allocation5 + $0x954] sm:$0xf0]  ;;  %v15725_v27 = vor.u32 %v21431_v16, %v15722_v17  ;;  %v21751_v16 = vld [vmem:[#allocation5 + $0x125c] sm:$0xf] }
 0x188   :  { %v17768_v11 = vld [vmem:[#allocation5 + $0x1858] sm:$0xf]  ;;  %v15721_v22 = vor.u32 %v21463_v10, %v15720_v8  ;;  %v15465_v46 = vor.u32 %v21399_v29, %v15464_v19  ;;  %v17002_v17 = vld [vmem:[#allocation5 + $0x1358] sm:$0xf0] }
 0x189   :  { %7028 = vmatpush.bf16.msra.mxu0 %v15201_v52  ;;  %7054 = vmatpush.bf16.msra.mxu2 %v15205_v58  ;;  %v16234_v52 = vld [vmem:[#allocation5 + $0xd58] sm:$0xf0]  ;;  %v16233_v58 = vor.u32 %v21591_v44, %v16232_v41  ;;  %v17512_v31 = vld [vmem:[#allocation5 + $0x1658] sm:$0xf] }
 0x18a   :  { %v16237_v60 = vor.u32 %v21559_v49, %v16234_v52  ;;  %v17514_v41 = vld [vmem:[#allocation5 + $0x1758] sm:$0xf0]  ;;  %v15208_v49 = vld [vmem:[#allocation5 + $0x458] sm:$0xf] }
 0x18b   :  { %7041 = vmatpush.bf16.msra.mxu1 %v17249_v56  ;;  %7067 = vmatpush.bf16.msra.mxu3 %v17253_v61  ;;  %v18282_v56 = vld [vmem:[#allocation5 + $0x1d58] sm:$0xf0]  ;;  %v18024_v61 = vld [vmem:[#allocation5 + $0x1a58] sm:$0xf] }
 0x18c   :  { %v18285_v0 = vor.u32 %v22071_v55, %v18282_v56  ;;  %v21335_v52 = vld [vmem:[#allocation5 + $0x554] sm:$0xf0]  ;;  %v21175_v29 = vld [vmem:[#allocation5 + $0x5c] sm:$0xf] }
 0x18d   :  { %7029 = vmatpush.bf16.msra.mxu0 %v14945_v6  ;;  %7055 = vmatpush.bf16.msra.mxu2 %v14949_v9  ;;  %v18026_v6 = vld [vmem:[#allocation5 + $0x1b58] sm:$0xf0]  ;;  %v15981_v9 = vor.u32 %v21495_v2, %v15978_v3  ;;  %v17256_v55 = vld [vmem:[#allocation5 + $0x1458] sm:$0xf]  ;;  %v15209_v2 = vor.u32 %v21335_v52, %v15208_v49 }
 0x18e   :  { %v18029_v13 = vor.u32 %v22007_v5, %v18026_v6  ;;  %v14952_v8 = vld [vmem:[#allocation5 + $0x258] sm:$0xf] }
 0x18f   :  { %7042 = vmatpush.bf16.msra.mxu1 %v16993_v14  ;;  %7068 = vmatpush.bf16.msra.mxu3 %v16997_v15  ;;  %v18025_v14 = vor.u32 %v22039_v1, %v18024_v61  ;;  %v21975_v15 = vld [vmem:[#allocation5 + $0x1954] sm:$0xf0]  ;;  %v17258_v1 = vld [vmem:[#allocation5 + $0x1558] sm:$0xf0] }
 0x191   :  { %7030 = vmatpush.bf16.msra.mxu0 %v14689_v26  ;;  %7056 = vmatpush.bf16.msra.mxu2 %v14693_v34  ;;  %v6824_v25 = vpop.f32.mrf.mxu0  ;;  %v17769_v26 = vor.u32 %v21975_v15, %v17768_v11  ;;  %v14954_v15 = vld [vmem:[#allocation5 + $0x358] sm:$0xf0] }
 0x192   :  { %v6825_v34 = vadd.f32 %v6824_v25, %v1261_v12  ;;  %v21783_v12 = vld [vmem:[#allocation5 + $0x1354] sm:$0xf0] }
 0x193   :  { %7043 = vmatpush.bf16.msra.mxu1 %v16737_v33  ;;  %7069 = vmatpush.bf16.msra.mxu3 %v16741_v36  ;;  %v21911_v33 = vld [vmem:[#allocation5 + $0x1754] sm:$0xf0]  ;;  %v6837_v35 = vpop.f32.mrf.mxu1  ;;  %v21367_v36 = vld [vmem:[#allocation5 + $0x65c] sm:$0xf] }
 0x194   :  { %7057 = vmatmul.bf16.vlgmr.msra.gmra.mxu2 %v23478_v57  ;;  %7031 = vmatmul.bf16.vlgmr.msra.gmra.mxu0 %v23478_v57  ;;  %v23496_v44 = vadd.f32 %v6837_v35, %v6825_v34  ;;  %v14698_v34 = vld [vmem:[#allocation5 + $0x158] sm:$0xf0] }
 0x195   :  { %7075 = vmatpush.bf16.msrb.mxu0 %v16489_v38  ;;  %7101 = vmatpush.bf16.msrb.mxu2 %v16493_v40  ;;  %v15466_v38 = vld [vmem:[#allocation5 + $0x758] sm:$0xf0]  ;;  %v14701_v52 = vor.u32 %v21175_v29, %v14698_v34  ;;  %v21464_v29 = vld [vmem:[#allocation5 + $0x95c] sm:$0xf0] }
 0x196   :  { %7070 = vmatmul.bf16.vlgmr.msra.gmra.mxu3 %v23468_v54  ;;  %7044 = vmatmul.bf16.vlgmr.msra.gmra.mxu1 %v23468_v54  ;;  %v21879_v40 = vld [vmem:[#allocation5 + $0x165c] sm:$0xf]  ;;  %v15469_v48 = vor.u32 %v21367_v36, %v15466_v38  ;;  %v16496_v38 = vld [vmem:[#allocation5 + $0xe60] sm:$0xf] }
 0x197   :  { %7088 = vmatpush.bf16.msrb.mxu1 %v18537_v39  ;;  %7114 = vmatpush.bf16.msrb.mxu3 %v18541_v47  ;;  %v1262_v39 = vperm.slane %v23465_v51, 5  ;;  %v17513_v47 = vor.u32 %v21911_v33, %v17512_v31  ;;  %v6850_v56 = vpop.f32.mrf.mxu2  ;;  %v17005_v33 = vor.u32 %v21751_v16, %v17002_v17  ;;  %v21687_v35 = vld [vmem:[#allocation5 + $0x105c] sm:$0xf]  ;;  %v22040_v16 = vld [vmem:[#allocation5 + $0x1b5c] sm:$0xf0] }
 0x198   :  { %v21496_v17 = vld [vmem:[#allocation5 + $0xa64] sm:$0xf] }
 0x199   :  { %7076 = vmatpush.bf16.msrb.mxu0 %v16233_v58  ;;  %7102 = vmatpush.bf16.msrb.mxu2 %v16237_v60  ;;  %v17517_v58 = vor.u32 %v21879_v40, %v17514_v41  ;;  %v21303_v60 = vld [vmem:[#allocation5 + $0x45c] sm:$0xf]  ;;  %v6851_v63 = vadd.f32 %v6850_v56, %v1262_v39  ;;  %v6863_v61 = vpop.f32.mrf.mxu3  ;;  %v6826_v5 = vpop.f32.mrf.mxu0  ;;  %v21656_v39 = vld [vmem:[#allocation5 + $0xf5c] sm:$0xf0]  ;;  %v18546_v56 = vld [vmem:[#allocation5 + $0x1f60] sm:$0xf0] }
 0x19a   :  { %v18544_v40 = vld [vmem:[#allocation5 + $0x1e60] sm:$0xf]  ;;  %v21560_v5 = vld [vmem:[#allocation5 + $0xc64] sm:$0xf] }
 0x19b   :  { %7089 = vmatpush.bf16.msrb.mxu1 %v18281_v59  ;;  %7115 = vmatpush.bf16.msrb.mxu3 %v18285_v0  ;;  %v21847_v59 = vld [vmem:[#allocation5 + $0x1554] sm:$0xf0]  ;;  %v21815_v0 = vld [vmem:[#allocation5 + $0x145c] sm:$0xf]  ;;  %v23498_v3 = vadd.f32 %v6863_v61, %v6851_v63  ;;  %v6839_v10 = vpop.f32.mrf.mxu1  ;;  %v16240_v63 = vld [vmem:[#allocation5 + $0xc60] sm:$0xf] }
 0x19c   :  { %v17257_v6 = vor.u32 %v21847_v59, %v17256_v55  ;;  %v17261_v11 = vor.u32 %v21815_v0, %v17258_v1  ;;  %v22136_v55 = vld [vmem:[#allocation5 + $0x1e64] sm:$0xf]  ;;  %v16497_v59 = vor.u32 %v21656_v39, %v16496_v38  ;;  %v21592_v61 = vld [vmem:[#allocation5 + $0xd5c] sm:$0xf0] }
 0x19d   :  { %7077 = vmatpush.bf16.msrb.mxu0 %v15977_v7  ;;  %7103 = vmatpush.bf16.msrb.mxu2 %v15981_v9  ;;  %v15213_v7 = vor.u32 %v21303_v60, %v15210_v62  ;;  %v17000_v9 = vld [vmem:[#allocation5 + $0x1258] sm:$0xf]  ;;  %v18288_v0 = vld [vmem:[#allocation5 + $0x1c60] sm:$0xf]  ;;  %v18549_v1 = vor.u32 %v22136_v55, %v18546_v56  ;;  %v21944_v38 = vld [vmem:[#allocation5 + $0x1864] sm:$0xf] }
 0x19e   :  { %v17001_v19 = vor.u32 %v21783_v12, %v17000_v9  ;;  %v21528_v12 = vld [vmem:[#allocation5 + $0xb5c] sm:$0xf0]  ;;  %v17778_v39 = vld [vmem:[#allocation5 + $0x1960] sm:$0xf0] }
 0x19f   :  { %7090 = vmatpush.bf16.msrb.mxu1 %v18025_v14  ;;  %7116 = vmatpush.bf16.msrb.mxu3 %v18029_v13  ;;  %v21271_v14 = vld [vmem:[#allocation5 + $0x354] sm:$0xf0]  ;;  %v21239_v13 = vld [vmem:[#allocation5 + $0x25c] sm:$0xf]  ;;  %v6852_v31 = vpop.f32.mrf.mxu2 }
 0x1a0   :  { %v14953_v18 = vor.u32 %v21271_v14, %v14952_v8  ;;  %v14957_v25 = vor.u32 %v21239_v13, %v14954_v15  ;;  %v18290_v8 = vld [vmem:[#allocation5 + $0x1d60] sm:$0xf0]  ;;  %v16241_v14 = vor.u32 %v21592_v61, %v16240_v63  ;;  %v18032_v13 = vld [vmem:[#allocation5 + $0x1a60] sm:$0xf] }
 0x1a1   :  { %7078 = vmatpush.bf16.msrb.mxu0 %v15721_v22  ;;  %7104 = vmatpush.bf16.msrb.mxu2 %v15725_v27  ;;  %v21207_v22 = vld [vmem:[#allocation5 + $0x154] sm:$0xf0]  ;;  %v6865_v36 = vpop.f32.mrf.mxu3  ;;  %v17776_v31 = vld [vmem:[#allocation5 + $0x1860] sm:$0xf]  ;;  %v21880_v63 = vld [vmem:[#allocation5 + $0x1664] sm:$0xf] }
 0x1a2   :  { %v21719_v27 = vld [vmem:[#allocation5 + $0x1154] sm:$0xf0]  ;;  %v14697_v41 = vor.u32 %v21207_v22, %v14696_v21  ;;  %v22008_v21 = vld [vmem:[#allocation5 + $0x1a64] sm:$0xf] }
 0x1a3   :  { %7091 = vmatpush.bf16.msrb.mxu1 %v17769_v26  ;;  %7117 = vmatpush.bf16.msrb.mxu3 %v17773_v37  ;;  %v16744_v26 = vld [vmem:[#allocation5 + $0x1058] sm:$0xf]  ;;  %v16746_v37 = vld [vmem:[#allocation5 + $0x1158] sm:$0xf0]  ;;  %v18034_v22 = vld [vmem:[#allocation5 + $0x1b60] sm:$0xf0] }
 0x1a4   :  { %v16745_v49 = vor.u32 %v21719_v27, %v16744_v26  ;;  %v18033_v26 = vor.u32 %v22040_v16, %v18032_v13  ;;  %v18037_v34 = vor.u32 %v22008_v21, %v18034_v22  ;;  %v15730_v36 = vld [vmem:[#allocation5 + $0x960] sm:$0xf0] }
 0x1a5   :  { %7079 = vmatpush.bf16.msrb.mxu0 %v15465_v46  ;;  %7105 = vmatpush.bf16.msrb.mxu2 %v15469_v48  ;;  %v22168_v46 = vld [vmem:[#allocation5 + $0x1f5c] sm:$0xf0]  ;;  %v16498_v48 = vld [vmem:[#allocation5 + $0xf60] sm:$0xf0] }
 0x1a6   :  { %v18545_v60 = vor.u32 %v22168_v46, %v18544_v40  ;;  %v17522_v61 = vld [vmem:[#allocation5 + $0x1760] sm:$0xf0] }
 0x1a7   :  { %7092 = vmatpush.bf16.msrb.mxu1 %v17513_v47  ;;  %7118 = vmatpush.bf16.msrb.mxu3 %v17517_v58  ;;  %v21624_v47 = vld [vmem:[#allocation5 + $0xe64] sm:$0xf]  ;;  %v16749_v58 = vor.u32 %v21687_v35, %v16746_v37  ;;  %v21976_v35 = vld [vmem:[#allocation5 + $0x195c] sm:$0xf0] }
 0x1a8   :  { %v16501_v62 = vor.u32 %v21624_v47, %v16498_v48  ;;  %v21432_v37 = vld [vmem:[#allocation5 + $0x864] sm:$0xf]  ;;  %v21400_v48 = vld [vmem:[#allocation5 + $0x75c] sm:$0xf0] }
 0x1a9   :  { %7080 = vmatpush.bf16.msrb.mxu0 %v15209_v2  ;;  %7106 = vmatpush.bf16.msrb.mxu2 %v15213_v7  ;;  %v22104_v2 = vld [vmem:[#allocation5 + $0x1d5c] sm:$0xf0]  ;;  %v22072_v7 = vld [vmem:[#allocation5 + $0x1c64] sm:$0xf]  ;;  %v15733_v47 = vor.u32 %v21432_v37, %v15730_v36 }
 0x1aa   :  { %v18289_v9 = vor.u32 %v22104_v2, %v18288_v0  ;;  %v18293_v15 = vor.u32 %v22072_v7, %v18290_v8  ;;  %v21336_v7 = vld [vmem:[#allocation5 + $0x55c] sm:$0xf0]  ;;  %v17266_v16 = vld [vmem:[#allocation5 + $0x1560] sm:$0xf0] }
 0x1ab   :  { %7093 = vmatpush.bf16.msrb.mxu1 %v17257_v6  ;;  %7119 = vmatpush.bf16.msrb.mxu3 %v17261_v11  ;;  %v16242_v6 = vld [vmem:[#allocation5 + $0xd60] sm:$0xf0]  ;;  %v15984_v11 = vld [vmem:[#allocation5 + $0xa60] sm:$0xf] }
 0x1ac   :  { %v16245_v10 = vor.u32 %v21560_v5, %v16242_v6  ;;  %v15216_v6 = vld [vmem:[#allocation5 + $0x460] sm:$0xf]  ;;  %v21752_v37 = vld [vmem:[#allocation5 + $0x1264] sm:$0xf] }
 0x1ad   :  { %7081 = vmatpush.bf16.msrb.mxu0 %v14953_v18  ;;  %7107 = vmatpush.bf16.msrb.mxu2 %v14957_v25  ;;  %v15986_v18 = vld [vmem:[#allocation5 + $0xb60] sm:$0xf0]  ;;  %v15728_v25 = vld [vmem:[#allocation5 + $0x860] sm:$0xf] }
 0x1ae   :  { %v15989_v27 = vor.u32 %v21496_v17, %v15986_v18  ;;  %v15729_v40 = vor.u32 %v21464_v29, %v15728_v25  ;;  %v17264_v8 = vld [vmem:[#allocation5 + $0x1460] sm:$0xf]  ;;  %v15217_v17 = vor.u32 %v21336_v7, %v15216_v6  ;;  %v17010_v36 = vld [vmem:[#allocation5 + $0x1360] sm:$0xf0] }
 0x1af   :  { %7094 = vmatpush.bf16.msrb.mxu1 %v17001_v19  ;;  %7120 = vmatpush.bf16.msrb.mxu3 %v17005_v33  ;;  %v15985_v19 = vor.u32 %v21528_v12, %v15984_v11  ;;  %v1263_v33 = vperm.slane %v23465_v51, 6  ;;  %v21304_v11 = vld [vmem:[#allocation5 + $0x464] sm:$0xf]  ;;  %v14960_v25 = vld [vmem:[#allocation5 + $0x260] sm:$0xf] }
 0x1b0   :  { %v15218_v12 = vld [vmem:[#allocation5 + $0x560] sm:$0xf0] }
 0x1b1   :  { %7082 = vmatpush.bf16.msrb.mxu0 %v14697_v41  ;;  %7108 = vmatpush.bf16.msrb.mxu2 %v14701_v52  ;;  %v15472_v41 = vld [vmem:[#allocation5 + $0x660] sm:$0xf]  ;;  %v6876_v46 = vpop.f32.mrf.mxu0 }
 0x1b2   :  { %v21912_v52 = vld [vmem:[#allocation5 + $0x175c] sm:$0xf0]  ;;  %v6877_v55 = vadd.f32 %v6876_v46, %v1263_v33 }
 0x1b3   :  { %7095 = vmatpush.bf16.msrb.mxu1 %v16745_v49  ;;  %7121 = vmatpush.bf16.msrb.mxu3 %v16749_v58  ;;  %v17520_v49 = vld [vmem:[#allocation5 + $0x1660] sm:$0xf]  ;;  %v6889_v56 = vpop.f32.mrf.mxu1  ;;  %v17781_v58 = vor.u32 %v21944_v38, %v17778_v39 }
 0x1b4   :  { %7109 = vmatmul.bf16.vlgmr.msrb.gmra.mxu2 %v23478_v57  ;;  %7083 = vmatmul.bf16.vlgmr.msrb.gmra.mxu0 %v23478_v57  ;;  %v23506_v0 = vadd.f32 %v6889_v56, %v6877_v55  ;;  %v17521_v2 = vor.u32 %v21912_v52, %v17520_v49  ;;  %v21784_v33 = vld [vmem:[#allocation5 + $0x135c] sm:$0xf0]  ;;  %v17013_v52 = vor.u32 %v21752_v37, %v17010_v36  ;;  %v14706_v55 = vld [vmem:[#allocation5 + $0x160] sm:$0xf0]  ;;  %v21497_v36 = vld [vmem:[#allocation5 + $0xa6c] sm:$0xf] }
 0x1b5   :  { %7127 = vmatpush.bf16.msra.mxu0 %v16497_v59  ;;  %7153 = vmatpush.bf16.msra.mxu2 %v16501_v62  ;;  %v21368_v59 = vld [vmem:[#allocation5 + $0x664] sm:$0xf]  ;;  %v1264_v62 = vperm.slane %v23465_v51, 7  ;;  %v14704_v39 = vld [vmem:[#allocation5 + $0x60] sm:$0xf] }
 0x1b6   :  { %7122 = vmatmul.bf16.vlgmr.msrb.gmra.mxu3 %v23468_v54  ;;  %7096 = vmatmul.bf16.vlgmr.msrb.gmra.mxu1 %v23468_v54  ;;  %v17777_v54 = vor.u32 %v21976_v35, %v17776_v31  ;;  %v14962_v35 = vld [vmem:[#allocation5 + $0x360] sm:$0xf0] }
 0x1b7   :  { %7140 = vmatpush.bf16.msra.mxu1 %v18545_v60  ;;  %7166 = vmatpush.bf16.msra.mxu3 %v18549_v1  ;;  %v15474_v60 = vld [vmem:[#allocation5 + $0x760] sm:$0xf0]  ;;  %v15473_v1 = vor.u32 %v21400_v48, %v15472_v41 }
 0x1b8   :  { %v15477_v5 = vor.u32 %v21368_v59, %v15474_v60  ;;  %v21176_v48 = vld [vmem:[#allocation5 + $0x64] sm:$0xf]  ;;  %v16504_v60 = vld [vmem:[#allocation5 + $0xe68] sm:$0xf] }
 0x1b9   :  { %7128 = vmatpush.bf16.msra.mxu0 %v16241_v14  ;;  %7154 = vmatpush.bf16.msra.mxu2 %v16245_v10  ;;  %v6902_v14 = vpop.f32.mrf.mxu2  ;;  %v21848_v10 = vld [vmem:[#allocation5 + $0x155c] sm:$0xf0]  ;;  %v6915_v13 = vpop.f32.mrf.mxu3  ;;  %v21688_v56 = vld [vmem:[#allocation5 + $0x1064] sm:$0xf]  ;;  %v14709_v7 = vor.u32 %v21176_v48, %v14706_v55  ;;  %v17784_v55 = vld [vmem:[#allocation5 + $0x1868] sm:$0xf] }
 0x1ba   :  { %v6903_v51 = vadd.f32 %v6902_v14, %v1264_v62  ;;  %v6878_v21 = vpop.f32.mrf.mxu0  ;;  %v17265_v22 = vor.u32 %v21848_v10, %v17264_v8  ;;  %v21657_v62 = vld [vmem:[#allocation5 + $0xf64] sm:$0xf0]  ;;  %v22137_v8 = vld [vmem:[#allocation5 + $0x1e6c] sm:$0xf] }
 0x1bb   :  { %7141 = vmatpush.bf16.msra.mxu1 %v18289_v9  ;;  %7167 = vmatpush.bf16.msra.mxu3 %v18293_v15  ;;  %v17525_v9 = vor.u32 %v21880_v63, %v17522_v61  ;;  %v21816_v15 = vld [vmem:[#allocation5 + $0x1464] sm:$0xf]  ;;  %v6891_v29 = vpop.f32.mrf.mxu1  ;;  %v18552_v63 = vld [vmem:[#allocation5 + $0x1e68] sm:$0xf]  ;;  %v18554_v14 = vld [vmem:[#allocation5 + $0x1f68] sm:$0xf0]  ;;  %v16505_v10 = vor.u32 %v21657_v62, %v16504_v60 }
 0x1bc   :  { %v23508_v18 = vadd.f32 %v6915_v13, %v6903_v51  ;;  %v17269_v31 = vor.u32 %v21816_v15, %v17266_v16  ;;  %v16248_v51 = vld [vmem:[#allocation5 + $0xc68] sm:$0xf]  ;;  %v18557_v16 = vor.u32 %v22137_v8, %v18554_v14  ;;  %v21561_v21 = vld [vmem:[#allocation5 + $0xc6c] sm:$0xf] }
 0x1bd   :  { %7129 = vmatpush.bf16.msra.mxu0 %v15985_v19  ;;  %7155 = vmatpush.bf16.msra.mxu2 %v15989_v27  ;;  %v15221_v19 = vor.u32 %v21304_v11, %v15218_v12  ;;  %v17008_v27 = vld [vmem:[#allocation5 + $0x1260] sm:$0xf]  ;;  %v21593_v13 = vld [vmem:[#allocation5 + $0xd64] sm:$0xf0]  ;;  %v15738_v60 = vld [vmem:[#allocation5 + $0x968] sm:$0xf0] }
 0x1be   :  { %v17009_v41 = vor.u32 %v21784_v33, %v17008_v27  ;;  %v18296_v15 = vld [vmem:[#allocation5 + $0x1c68] sm:$0xf]  ;;  %v21945_v62 = vld [vmem:[#allocation5 + $0x186c] sm:$0xf] }
 0x1bf   :  { %7142 = vmatpush.bf16.msra.mxu1 %v18033_v26  ;;  %7168 = vmatpush.bf16.msra.mxu3 %v18037_v34  ;;  %v21272_v26 = vld [vmem:[#allocation5 + $0x35c] sm:$0xf0]  ;;  %v21240_v34 = vld [vmem:[#allocation5 + $0x264] sm:$0xf]  ;;  %v15992_v27 = vld [vmem:[#allocation5 + $0xa68] sm:$0xf] }
 0x1c0   :  { %v14961_v38 = vor.u32 %v21272_v26, %v14960_v25  ;;  %v14965_v46 = vor.u32 %v21240_v34, %v14962_v35  ;;  %v18298_v25 = vld [vmem:[#allocation5 + $0x1d68] sm:$0xf0]  ;;  %v16249_v26 = vor.u32 %v21593_v13, %v16248_v51  ;;  %v21529_v33 = vld [vmem:[#allocation5 + $0xb64] sm:$0xf0] }
 0x1c1   :  { %7130 = vmatpush.bf16.msra.mxu0 %v15729_v40  ;;  %7156 = vmatpush.bf16.msra.mxu2 %v15733_v47  ;;  %v21208_v40 = vld [vmem:[#allocation5 + $0x15c] sm:$0xf0]  ;;  %v6904_v49 = vpop.f32.mrf.mxu2  ;;  %v6917_v59 = vpop.f32.mrf.mxu3  ;;  %v18040_v34 = vld [vmem:[#allocation5 + $0x1a68] sm:$0xf]  ;;  %v15482_v51 = vld [vmem:[#allocation5 + $0x768] sm:$0xf0] }
 0x1c2   :  { %v21720_v47 = vld [vmem:[#allocation5 + $0x115c] sm:$0xf0]  ;;  %v14705_v61 = vor.u32 %v21208_v40, %v14704_v39  ;;  %v22041_v35 = vld [vmem:[#allocation5 + $0x1b64] sm:$0xf0]  ;;  %v23511_v39 = vld [vmem:[#allocation7 + $0x10] sm:$0xff] }
 0x1c3   :  { %7143 = vmatpush.bf16.msra.mxu1 %v17777_v54  ;;  %7169 = vmatpush.bf16.msra.mxu3 %v17781_v58  ;;  %v16752_v54 = vld [vmem:[#allocation5 + $0x1060] sm:$0xf]  ;;  %v16754_v58 = vld [vmem:[#allocation5 + $0x1160] sm:$0xf0]  ;;  %v22009_v40 = vld [vmem:[#allocation5 + $0x1a6c] sm:$0xf]  ;;  %v18041_v48 = vor.u32 %v22041_v35, %v18040_v34 }
 0x1c4   :  { %v16753_v6 = vor.u32 %v21720_v47, %v16752_v54  ;;  %v15993_v54 = vor.u32 %v21529_v33, %v15992_v27  ;;  %v15736_v47 = vld [vmem:[#allocation5 + $0x868] sm:$0xf]  ;;  %v21433_v59 = vld [vmem:[#allocation5 + $0x86c] sm:$0xf]  ;;  %v1266_v13 = vperm.slane %v23511_v39, 1 }
 0x1c5   :  { %7131 = vmatpush.bf16.msra.mxu0 %v15473_v1  ;;  %7157 = vmatpush.bf16.msra.mxu2 %v15477_v5  ;;  %v22169_v1 = vld [vmem:[#allocation5 + $0x1f64] sm:$0xf0]  ;;  %v16506_v5 = vld [vmem:[#allocation5 + $0xf68] sm:$0xf0] }
 0x1c6   :  { %v18553_v11 = vor.u32 %v22169_v1, %v18552_v63  ;;  %v17786_v63 = vld [vmem:[#allocation5 + $0x1968] sm:$0xf0]  ;;  %v15480_v1 = vld [vmem:[#allocation5 + $0x668] sm:$0xf] }
 0x1c7   :  { %7144 = vmatpush.bf16.msra.mxu1 %v17521_v2  ;;  %7170 = vmatpush.bf16.msra.mxu3 %v17525_v9  ;;  %v21625_v2 = vld [vmem:[#allocation5 + $0xe6c] sm:$0xf]  ;;  %v16757_v9 = vor.u32 %v21688_v56, %v16754_v58  ;;  %v1265_v56 = vperm.slane %v23511_v39, 0  ;;  %v17528_v8 = vld [vmem:[#allocation5 + $0x1668] sm:$0xf] }
 0x1c8   :  { %v16509_v12 = vor.u32 %v21625_v2, %v16506_v5  ;;  %v21913_v14 = vld [vmem:[#allocation5 + $0x1764] sm:$0xf0]  ;;  %v21305_v34 = vld [vmem:[#allocation5 + $0x46c] sm:$0xf] }
 0x1c9   :  { %7132 = vmatpush.bf16.msra.mxu0 %v15217_v17  ;;  %7158 = vmatpush.bf16.msra.mxu2 %v15221_v19  ;;  %v22105_v17 = vld [vmem:[#allocation5 + $0x1d64] sm:$0xf0]  ;;  %v22073_v19 = vld [vmem:[#allocation5 + $0x1c6c] sm:$0xf] }
 0x1ca   :  { %v18297_v29 = vor.u32 %v22105_v17, %v18296_v15  ;;  %v18301_v37 = vor.u32 %v22073_v19, %v18298_v25  ;;  %v21881_v15 = vld [vmem:[#allocation5 + $0x166c] sm:$0xf]  ;;  %v15224_v25 = vld [vmem:[#allocation5 + $0x468] sm:$0xf] }
 0x1cb   :  { %7145 = vmatpush.bf16.msra.mxu1 %v17265_v22  ;;  %7171 = vmatpush.bf16.msra.mxu3 %v17269_v31  ;;  %v16250_v22 = vld [vmem:[#allocation5 + $0xd68] sm:$0xf0]  ;;  %v17272_v27 = vld [vmem:[#allocation5 + $0x1468] sm:$0xf] }
 0x1cc   :  { %v16253_v31 = vor.u32 %v21561_v21, %v16250_v22  ;;  %v17529_v22 = vor.u32 %v21913_v14, %v17528_v8  ;;  %v21849_v33 = vld [vmem:[#allocation5 + $0x1564] sm:$0xf0]  ;;  %v15226_v35 = vld [vmem:[#allocation5 + $0x568] sm:$0xf0] }
 0x1cd   :  { %7133 = vmatpush.bf16.msra.mxu0 %v14961_v38  ;;  %7159 = vmatpush.bf16.msra.mxu2 %v14965_v46  ;;  %v15994_v38 = vld [vmem:[#allocation5 + $0xb68] sm:$0xf0]  ;;  %v23514_v46 = vld [vmem:[#allocation1 + $0x9] sm:$0xff]  ;;  %v16760_v8 = vld [vmem:[#allocation5 + $0x1068] sm:$0xf] }
 0x1ce   :  { %v15997_v49 = vor.u32 %v21497_v36, %v15994_v38  ;;  %v21817_v38 = vld [vmem:[#allocation5 + $0x146c] sm:$0xf]  ;;  %v21721_v14 = vld [vmem:[#allocation5 + $0x1164] sm:$0xf0] }
 0x1cf   :  { %7146 = vmatpush.bf16.msra.mxu1 %v17009_v41  ;;  %7172 = vmatpush.bf16.msra.mxu3 %v17013_v52  ;;  %v18042_v41 = vld [vmem:[#allocation5 + $0x1b68] sm:$0xf0]  ;;  %v21465_v52 = vld [vmem:[#allocation5 + $0x964] sm:$0xf0] }
 0x1d0   :  { %v18045_v58 = vor.u32 %v22009_v40, %v18042_v41  ;;  %v17274_v40 = vld [vmem:[#allocation5 + $0x1568] sm:$0xf0] }
 0x1d1   :  { %7134 = vmatpush.bf16.msra.mxu0 %v14705_v61  ;;  %7160 = vmatpush.bf16.msra.mxu2 %v14709_v7  ;;  %v15737_v61 = vor.u32 %v21465_v52, %v15736_v47  ;;  %v6928_v2 = vpop.f32.mrf.mxu0  ;;  %v21401_v7 = vld [vmem:[#allocation5 + $0x764] sm:$0xf0] }
 0x1d2   :  { %v15481_v21 = vor.u32 %v21401_v7, %v15480_v1  ;;  %v14968_v52 = vld [vmem:[#allocation5 + $0x268] sm:$0xf] }
 0x1d3   :  { %7147 = vmatpush.bf16.msra.mxu1 %v16753_v6  ;;  %7173 = vmatpush.bf16.msra.mxu3 %v16757_v9  ;;  %v15741_v6 = vor.u32 %v21433_v59, %v15738_v60  ;;  %v6929_v9 = vadd.f32 %v6928_v2, %v1265_v56  ;;  %v17016_v56 = vld [vmem:[#allocation5 + $0x1268] sm:$0xf]  ;;  %v21241_v60 = vld [vmem:[#allocation5 + $0x26c] sm:$0xf] }
 0x1d4   :  { %7161 = vmatmul.bf16.vlgmr.msra.gmra.mxu2 %v23478_v57  ;;  %7135 = vmatmul.bf16.vlgmr.msra.gmra.mxu0 %v23478_v57  ;;  %v21977_v57 = vld [vmem:[#allocation5 + $0x1964] sm:$0xf0] }
 0x1d5   :  { %7179 = vmatpush.bf16.msrb.mxu0 %v16505_v10  ;;  %7205 = vmatpush.bf16.msrb.mxu2 %v16509_v12  ;;  %v17785_v5 = vor.u32 %v21977_v57, %v17784_v55  ;;  %v6941_v10 = vpop.f32.mrf.mxu1  ;;  %v21369_v12 = vld [vmem:[#allocation5 + $0x66c] sm:$0xf]  ;;  %v21273_v55 = vld [vmem:[#allocation5 + $0x364] sm:$0xf0]  ;;  %v17277_v57 = vor.u32 %v21817_v38, %v17274_v40  ;;  %v16256_v40 = vld [vmem:[#allocation5 + $0xc70] sm:$0xf] }
 0x1d6   :  { %7174 = vmatmul.bf16.vlgmr.msra.gmra.mxu3 %v23514_v46  ;;  %7148 = vmatmul.bf16.vlgmr.msra.gmra.mxu1 %v23514_v46  ;;  %v23520_v17 = vadd.f32 %v6941_v10, %v6929_v9  ;;  %v15485_v19 = vor.u32 %v21369_v12, %v15482_v51  ;;  %v21785_v59 = vld [vmem:[#allocation5 + $0x1364] sm:$0xf0]  ;;  %v14969_v1 = vor.u32 %v21273_v55, %v14968_v52  ;;  %v21177_v9 = vld [vmem:[#allocation5 + $0x6c] sm:$0xf]  ;;  %v21562_v52 = vld [vmem:[#allocation5 + $0xc74] sm:$0xf] }
 0x1d7   :  { %7192 = vmatpush.bf16.msrb.mxu1 %v18553_v11  ;;  %7218 = vmatpush.bf16.msrb.mxu3 %v18557_v16  ;;  %v17789_v11 = vor.u32 %v21945_v62, %v17786_v63  ;;  %v17530_v16 = vld [vmem:[#allocation5 + $0x1768] sm:$0xf0]  ;;  %v14712_v2 = vld [vmem:[#allocation5 + $0x68] sm:$0xf]  ;;  %v16258_v55 = vld [vmem:[#allocation5 + $0xd70] sm:$0xf0] }
 0x1d8   :  { %v14970_v62 = vld [vmem:[#allocation5 + $0x368] sm:$0xf0] }
 0x1d9   :  { %7180 = vmatpush.bf16.msrb.mxu0 %v16249_v26  ;;  %7206 = vmatpush.bf16.msrb.mxu2 %v16253_v31  ;;  %v21337_v26 = vld [vmem:[#allocation5 + $0x564] sm:$0xf0]  ;;  %v17533_v31 = vor.u32 %v21881_v15, %v17530_v16  ;;  %v6967_v36 = vpop.f32.mrf.mxu3  ;;  %v6930_v47 = vpop.f32.mrf.mxu0  ;;  %v21753_v63 = vld [vmem:[#allocation5 + $0x126c] sm:$0xf]  ;;  %v14973_v7 = vor.u32 %v21241_v60, %v14970_v62  ;;  %v16512_v16 = vld [vmem:[#allocation5 + $0xe70] sm:$0xf]  ;;  %v16261_v60 = vor.u32 %v21562_v52, %v16258_v55 }
 0x1da   :  { %v15225_v41 = vor.u32 %v21337_v26, %v15224_v25  ;;  %v14714_v12 = vld [vmem:[#allocation5 + $0x168] sm:$0xf0]  ;;  %v22170_v25 = vld [vmem:[#allocation5 + $0x1f6c] sm:$0xf0]  ;;  %v21626_v26 = vld [vmem:[#allocation5 + $0xe74] sm:$0xf] }
 0x1db   :  { %7193 = vmatpush.bf16.msrb.mxu1 %v18297_v29  ;;  %7219 = vmatpush.bf16.msrb.mxu3 %v18301_v37  ;;  %v6954_v29 = vpop.f32.mrf.mxu2  ;;  %v21689_v51 = vld [vmem:[#allocation5 + $0x106c] sm:$0xf]  ;;  %v18304_v47 = vld [vmem:[#allocation5 + $0x1c70] sm:$0xf]  ;;  %v21882_v52 = vld [vmem:[#allocation5 + $0x1674] sm:$0xf] }
 0x1dc   :  { %v6955_v37 = vadd.f32 %v6954_v29, %v1266_v13  ;;  %v16762_v13 = vld [vmem:[#allocation5 + $0x1168] sm:$0xf0]  ;;  %v16761_v29 = vor.u32 %v21721_v14, %v16760_v8  ;;  %v16000_v62 = vld [vmem:[#allocation5 + $0xa70] sm:$0xf]  ;;  %v22010_v8 = vld [vmem:[#allocation5 + $0x1a74] sm:$0xf] }
 0x1dd   :  { %7181 = vmatpush.bf16.msrb.mxu0 %v15993_v54  ;;  %7207 = vmatpush.bf16.msrb.mxu2 %v15997_v49  ;;  %v15229_v49 = vor.u32 %v21305_v34, %v15226_v35  ;;  %v18562_v34 = vld [vmem:[#allocation5 + $0x1f70] sm:$0xf0]  ;;  %v16765_v35 = vor.u32 %v21689_v51, %v16762_v13  ;;  %v21466_v51 = vld [vmem:[#allocation5 + $0x96c] sm:$0xf0] }
 0x1de   :  { %v23522_v54 = vadd.f32 %v6967_v36, %v6955_v37  ;;  %v18050_v14 = vld [vmem:[#allocation5 + $0x1b70] sm:$0xf0]  ;;  %v17792_v13 = vld [vmem:[#allocation5 + $0x1870] sm:$0xf] }
 0x1df   :  { %7194 = vmatpush.bf16.msrb.mxu1 %v18041_v48  ;;  %7220 = vmatpush.bf16.msrb.mxu3 %v18045_v58  ;;  %v17273_v48 = vor.u32 %v21849_v33, %v17272_v27  ;;  %v6943_v58 = vpop.f32.mrf.mxu1  ;;  %v16514_v27 = vld [vmem:[#allocation5 + $0xf70] sm:$0xf0] }
 0x1e0   :  { %v22138_v33 = vld [vmem:[#allocation5 + $0x1e74] sm:$0xf]  ;;  %v16517_v38 = vor.u32 %v21626_v26, %v16514_v27 }
 0x1e1   :  { %7182 = vmatpush.bf16.msrb.mxu0 %v15737_v61  ;;  %7208 = vmatpush.bf16.msrb.mxu2 %v15741_v6  ;;  %v17018_v61 = vld [vmem:[#allocation5 + $0x1368] sm:$0xf0]  ;;  %v17017_v6 = vor.u32 %v21785_v59, %v17016_v56  ;;  %v6969_v15 = vpop.f32.mrf.mxu3  ;;  %v22074_v56 = vld [vmem:[#allocation5 + $0x1c74] sm:$0xf] }
 0x1e2   :  { %v18306_v58 = vld [vmem:[#allocation5 + $0x1d70] sm:$0xf0]  ;;  %v1267_v15 = vperm.slane %v23511_v39, 2 }
 0x1e3   :  { %7195 = vmatpush.bf16.msrb.mxu1 %v17785_v5  ;;  %7221 = vmatpush.bf16.msrb.mxu3 %v17789_v11  ;;  %v21209_v5 = vld [vmem:[#allocation5 + $0x164] sm:$0xf0]  ;;  %v6956_v10 = vpop.f32.mrf.mxu2  ;;  %v17021_v11 = vor.u32 %v21753_v63, %v17018_v61  ;;  %v21530_v63 = vld [vmem:[#allocation5 + $0xb6c] sm:$0xf0]  ;;  %v17794_v26 = vld [vmem:[#allocation5 + $0x1970] sm:$0xf0] }
 0x1e4   :  { %v18048_v61 = vld [vmem:[#allocation5 + $0x1a70] sm:$0xf]  ;;  %v17538_v55 = vld [vmem:[#allocation5 + $0x1770] sm:$0xf0] }
 0x1e5   :  { %7183 = vmatpush.bf16.msrb.mxu0 %v15481_v21  ;;  %7209 = vmatpush.bf16.msrb.mxu2 %v15485_v19  ;;  %v21658_v21 = vld [vmem:[#allocation5 + $0xf6c] sm:$0xf0]  ;;  %v14713_v19 = vor.u32 %v21209_v5, %v14712_v2  ;;  %v21498_v5 = vld [vmem:[#allocation5 + $0xa74] sm:$0xf] }
 0x1e6   :  { %v16513_v37 = vor.u32 %v21658_v21, %v16512_v16  ;;  %v22042_v2 = vld [vmem:[#allocation5 + $0x1b6c] sm:$0xf0]  ;;  %v18053_v16 = vor.u32 %v22010_v8, %v18050_v14 }
 0x1e7   :  { %7196 = vmatpush.bf16.msrb.mxu1 %v17529_v22  ;;  %7222 = vmatpush.bf16.msrb.mxu3 %v17533_v31  ;;  %v18560_v22 = vld [vmem:[#allocation5 + $0x1e70] sm:$0xf]  ;;  %v14717_v31 = vor.u32 %v21177_v9, %v14714_v12  ;;  %v16001_v9 = vor.u32 %v21530_v63, %v16000_v62 }
 0x1e8   :  { %v18561_v36 = vor.u32 %v22170_v25, %v18560_v22  ;;  %v15744_v10 = vld [vmem:[#allocation5 + $0x870] sm:$0xf]  ;;  %v21434_v22 = vld [vmem:[#allocation5 + $0x874] sm:$0xf] }
 0x1e9   :  { %7184 = vmatpush.bf16.msrb.mxu0 %v15225_v41  ;;  %7210 = vmatpush.bf16.msrb.mxu2 %v15229_v49  ;;  %v21594_v41 = vld [vmem:[#allocation5 + $0xd6c] sm:$0xf0]  ;;  %v21946_v25 = vld [vmem:[#allocation5 + $0x1874] sm:$0xf]  ;;  %v15745_v27 = vor.u32 %v21466_v51, %v15744_v10 }
 0x1ea   :  { %v22106_v49 = vld [vmem:[#allocation5 + $0x1d6c] sm:$0xf0]  ;;  %v17282_v10 = vld [vmem:[#allocation5 + $0x1570] sm:$0xf0] }
 0x1eb   :  { %7197 = vmatpush.bf16.msrb.mxu1 %v17273_v48  ;;  %7223 = vmatpush.bf16.msrb.mxu3 %v17277_v57  ;;  %v18565_v48 = vor.u32 %v22138_v33, %v18562_v34  ;;  %v16257_v57 = vor.u32 %v21594_v41, %v16256_v40  ;;  %v18305_v59 = vor.u32 %v22106_v49, %v18304_v47  ;;  %v21978_v21 = vld [vmem:[#allocation5 + $0x196c] sm:$0xf0]  ;;  %v21370_v47 = vld [vmem:[#allocation5 + $0x674] sm:$0xf]  ;;  %v1268_v49 = vperm.slane %v23511_v39, 3 }
 0x1ec   :  { %v17793_v33 = vor.u32 %v21978_v21, %v17792_v13  ;;  %v17797_v41 = vor.u32 %v21946_v25, %v17794_v26  ;;  %v21338_v62 = vld [vmem:[#allocation5 + $0x56c] sm:$0xf0] }
 0x1ed   :  { %7185 = vmatpush.bf16.msrb.mxu0 %v14969_v1  ;;  %7211 = vmatpush.bf16.msrb.mxu2 %v14973_v7  ;;  %v18309_v1 = vor.u32 %v22074_v56, %v18306_v58  ;;  %v23524_v7 = vld [vmem:[#allocation1] sm:$0xff]  ;;  %v17280_v63 = vld [vmem:[#allocation5 + $0x1470] sm:$0xf] }
 0x1ee   :  { %v21274_v21 = vld [vmem:[#allocation5 + $0x36c] sm:$0xf0] }
 0x1ef   :  { %7198 = vmatpush.bf16.msrb.mxu1 %v17017_v6  ;;  %7224 = vmatpush.bf16.msrb.mxu3 %v17021_v11  ;;  %v16002_v6 = vld [vmem:[#allocation5 + $0xb70] sm:$0xf0]  ;;  %v18049_v11 = vor.u32 %v22042_v2, %v18048_v61  ;;  %v21850_v2 = vld [vmem:[#allocation5 + $0x156c] sm:$0xf0] }
 0x1f0   :  { %v16005_v12 = vor.u32 %v21498_v5, %v16002_v6  ;;  %v21306_v5 = vld [vmem:[#allocation5 + $0x474] sm:$0xf]  ;;  %v17281_v13 = vor.u32 %v21850_v2, %v17280_v63  ;;  %v21786_v26 = vld [vmem:[#allocation5 + $0x136c] sm:$0xf0]  ;;  %v16522_v2 = vld [vmem:[#allocation5 + $0xf78] sm:$0xf0] }
 0x1f1   :  { %7186 = vmatpush.bf16.msrb.mxu0 %v14713_v19  ;;  %7212 = vmatpush.bf16.msrb.mxu2 %v14717_v31  ;;  %v15746_v19 = vld [vmem:[#allocation5 + $0x970] sm:$0xf0]  ;;  %v6980_v31 = vpop.f32.mrf.mxu0 }
 0x1f2   :  { %v15749_v34 = vor.u32 %v21434_v22, %v15746_v19  ;;  %v15234_v6 = vld [vmem:[#allocation5 + $0x570] sm:$0xf0]  ;;  %v17024_v22 = vld [vmem:[#allocation5 + $0x1270] sm:$0xf] }
 0x1f3   :  { %7199 = vmatpush.bf16.msrb.mxu1 %v16761_v29  ;;  %7225 = vmatpush.bf16.msrb.mxu3 %v16765_v35  ;;  %v15488_v29 = vld [vmem:[#allocation5 + $0x670] sm:$0xf]  ;;  %v6993_v40 = vpop.f32.mrf.mxu1 }
 0x1f4   :  { %7213 = vmatmul.bf16.vlgmr.msrb.gmra.mxu2 %v23524_v7  ;;  %7187 = vmatmul.bf16.vlgmr.msrb.gmra.mxu0 %v23524_v7  ;;  %v21402_v35 = vld [vmem:[#allocation5 + $0x76c] sm:$0xf0] }
 0x1f5   :  { %7231 = vmatpush.bf16.msra.mxu0 %v16513_v37  ;;  %7257 = vmatpush.bf16.msra.mxu2 %v16517_v38  ;;  %v17536_v37 = vld [vmem:[#allocation5 + $0x1670] sm:$0xf]  ;;  %v6981_v38 = vadd.f32 %v6980_v31, %v1267_v15  ;;  %v15489_v58 = vor.u32 %v21402_v35, %v15488_v29  ;;  %v15237_v15 = vor.u32 %v21306_v5, %v15234_v6  ;;  %v14978_v29 = vld [vmem:[#allocation5 + $0x370] sm:$0xf0] }
 0x1f6   :  { %7226 = vmatmul.bf16.vlgmr.msrb.gmra.mxu3 %v23514_v46  ;;  %7200 = vmatmul.bf16.vlgmr.msrb.gmra.mxu1 %v23514_v46  ;;  %v21754_v31 = vld [vmem:[#allocation5 + $0x1274] sm:$0xf]  ;;  %v14720_v35 = vld [vmem:[#allocation5 + $0x70] sm:$0xf] }
 0x1f7   :  { %7244 = vmatpush.bf16.msra.mxu1 %v18561_v36  ;;  %7270 = vmatpush.bf16.msra.mxu3 %v18565_v48  ;;  %v21914_v36 = vld [vmem:[#allocation5 + $0x176c] sm:$0xf0]  ;;  %v15490_v48 = vld [vmem:[#allocation5 + $0x770] sm:$0xf0]  ;;  %v23532_v56 = vadd.f32 %v6993_v40, %v6981_v38  ;;  %v7006_v61 = vpop.f32.mrf.mxu2 }
 0x1f8   :  { %v7007_v8 = vadd.f32 %v7006_v61, %v1268_v49  ;;  %v16768_v40 = vld [vmem:[#allocation5 + $0x1070] sm:$0xf]  ;;  %v22171_v61 = vld [vmem:[#allocation5 + $0x1f74] sm:$0xf0] }
 0x1f9   :  { %7232 = vmatpush.bf16.msra.mxu0 %v16257_v57  ;;  %7258 = vmatpush.bf16.msra.mxu2 %v16261_v60  ;;  %v17537_v57 = vor.u32 %v21914_v36, %v17536_v37  ;;  %v15232_v60 = vld [vmem:[#allocation5 + $0x470] sm:$0xf]  ;;  %v7019_v14 = vpop.f32.mrf.mxu3  ;;  %v6982_v51 = vpop.f32.mrf.mxu0  ;;  %v17025_v36 = vor.u32 %v21786_v26, %v17024_v22  ;;  %v22107_v22 = vld [vmem:[#allocation5 + $0x1d74] sm:$0xf0]  ;;  %v22075_v26 = vld [vmem:[#allocation5 + $0x1c7c] sm:$0xf] }
 0x1fa   :  { %v21210_v37 = vld [vmem:[#allocation5 + $0x16c] sm:$0xf0] }
 0x1fb   :  { %7245 = vmatpush.bf16.msra.mxu1 %v18305_v59  ;;  %7271 = vmatpush.bf16.msra.mxu3 %v18309_v1  ;;  %v15493_v59 = vor.u32 %v21370_v47, %v15490_v48  ;;  %v17541_v1 = vor.u32 %v21882_v52, %v17538_v55  ;;  %v6995_v19 = vpop.f32.mrf.mxu1  ;;  %v21178_v47 = vld [vmem:[#allocation5 + $0x74] sm:$0xf]  ;;  %v14721_v63 = vor.u32 %v21210_v37, %v14720_v35  ;;  %v21531_v35 = vld [vmem:[#allocation5 + $0xb74] sm:$0xf0] }
 0x1fc   :  { %v14722_v52 = vld [vmem:[#allocation5 + $0x170] sm:$0xf0]  ;;  %v21563_v19 = vld [vmem:[#allocation5 + $0xc7c] sm:$0xf]  ;;  %v18056_v37 = vld [vmem:[#allocation5 + $0x1a78] sm:$0xf] }
 0x1fd   :  { %7233 = vmatpush.bf16.msra.mxu0 %v16001_v9  ;;  %7259 = vmatpush.bf16.msra.mxu2 %v16005_v12  ;;  %v21818_v9 = vld [vmem:[#allocation5 + $0x1474] sm:$0xf]  ;;  %v23534_v12 = vadd.f32 %v7019_v14, %v7007_v8  ;;  %v14725_v6 = vor.u32 %v21178_v47, %v14722_v52  ;;  %v22139_v8 = vld [vmem:[#allocation5 + $0x1e7c] sm:$0xf]  ;;  %v15752_v52 = vld [vmem:[#allocation5 + $0x878] sm:$0xf] }
 0x1fe   :  { %v17285_v25 = vor.u32 %v21818_v9, %v17282_v10  ;;  %v21690_v55 = vld [vmem:[#allocation5 + $0x1074] sm:$0xf]  ;;  %v18570_v14 = vld [vmem:[#allocation5 + $0x1f78] sm:$0xf0] }
 0x1ff   :  { %7246 = vmatpush.bf16.msra.mxu1 %v18049_v11  ;;  %7272 = vmatpush.bf16.msra.mxu3 %v18053_v16  ;;  %v15233_v11 = vor.u32 %v21338_v62, %v15232_v60  ;;  %v14976_v16 = vld [vmem:[#allocation5 + $0x270] sm:$0xf]  ;;  %v7008_v48 = vpop.f32.mrf.mxu2  ;;  %v21659_v60 = vld [vmem:[#allocation5 + $0xf74] sm:$0xf0]  ;;  %v22011_v47 = vld [vmem:[#allocation5 + $0x1a7c] sm:$0xf] }
 0x200   :  { %v18568_v62 = vld [vmem:[#allocation5 + $0x1e78] sm:$0xf]  ;;  %v18058_v48 = vld [vmem:[#allocation5 + $0x1b78] sm:$0xf0] }
 0x201   :  { %7234 = vmatpush.bf16.msra.mxu0 %v15745_v27  ;;  %7260 = vmatpush.bf16.msra.mxu2 %v15749_v34  ;;  %v21242_v27 = vld [vmem:[#allocation5 + $0x274] sm:$0xf]  ;;  %v14977_v34 = vor.u32 %v21274_v21, %v14976_v16  ;;  %v18312_v16 = vld [vmem:[#allocation5 + $0x1c78] sm:$0xf]  ;;  %v18573_v21 = vor.u32 %v22139_v8, %v18570_v14 }
 0x202   :  { %v14981_v38 = vor.u32 %v21242_v27, %v14978_v29  ;;  %v18314_v27 = vld [vmem:[#allocation5 + $0x1d78] sm:$0xf0]  ;;  %v15496_v8 = vld [vmem:[#allocation5 + $0x678] sm:$0xf] }
 0x203   :  { %7247 = vmatpush.bf16.msra.mxu1 %v17793_v33  ;;  %7273 = vmatpush.bf16.msra.mxu3 %v17797_v41  ;;  %v17026_v33 = vld [vmem:[#allocation5 + $0x1370] sm:$0xf0]  ;;  %v21722_v41 = vld [vmem:[#allocation5 + $0x116c] sm:$0xf0] }
 0x204   :  { %v17029_v49 = vor.u32 %v21754_v31, %v17026_v33  ;;  %v16769_v5 = vor.u32 %v21722_v41, %v16768_v40  ;;  %v18313_v31 = vor.u32 %v22107_v22, %v18312_v16  ;;  %v21499_v40 = vld [vmem:[#allocation5 + $0xa7c] sm:$0xf] }
 0x205   :  { %7235 = vmatpush.bf16.msra.mxu0 %v15489_v58  ;;  %7261 = vmatpush.bf16.msra.mxu2 %v15493_v59  ;;  %v16770_v58 = vld [vmem:[#allocation5 + $0x1170] sm:$0xf0]  ;;  %v16520_v59 = vld [vmem:[#allocation5 + $0xe78] sm:$0xf]  ;;  %v16010_v41 = vld [vmem:[#allocation5 + $0xb78] sm:$0xf0] }
 0x206   :  { %v16773_v9 = vor.u32 %v21690_v55, %v16770_v58  ;;  %v16521_v10 = vor.u32 %v21659_v60, %v16520_v59  ;;  %v16013_v58 = vor.u32 %v21499_v40, %v16010_v41  ;;  %v17800_v59 = vld [vmem:[#allocation5 + $0x1878] sm:$0xf]  ;;  %v1269_v60 = vperm.slane %v23511_v39, 4  ;;  %v21371_v22 = vld [vmem:[#allocation5 + $0x67c] sm:$0xf] }
 0x207   :  { %7248 = vmatpush.bf16.msra.mxu1 %v17537_v57  ;;  %7274 = vmatpush.bf16.msra.mxu3 %v17541_v1  ;;  %v7021_v57 = vpop.f32.mrf.mxu3  ;;  %v21627_v1 = vld [vmem:[#allocation5 + $0xe7c] sm:$0xf]  ;;  %v21851_v41 = vld [vmem:[#allocation5 + $0x1574] sm:$0xf0] }
 0x208   :  { %v16525_v51 = vor.u32 %v21627_v1, %v16522_v2  ;;  %v21467_v57 = vld [vmem:[#allocation5 + $0x974] sm:$0xf0]  ;;  %v15754_v1 = vld [vmem:[#allocation5 + $0x978] sm:$0xf0] }
 0x209   :  { %7236 = vmatpush.bf16.msra.mxu0 %v15233_v11  ;;  %7262 = vmatpush.bf16.msra.mxu2 %v15237_v15  ;;  %v18569_v11 = vor.u32 %v22171_v61, %v18568_v62  ;;  %v21595_v15 = vld [vmem:[#allocation5 + $0xd74] sm:$0xf0]  ;;  %v18061_v62 = vor.u32 %v22011_v47, %v18058_v48  ;;  %v21435_v61 = vld [vmem:[#allocation5 + $0x87c] sm:$0xf] }
 0x20a   :  { %v21947_v2 = vld [vmem:[#allocation5 + $0x187c] sm:$0xf] }
 0x20b   :  { %7249 = vmatpush.bf16.msra.mxu1 %v17281_v13  ;;  %7275 = vmatpush.bf16.msra.mxu3 %v17285_v25  ;;  %v16264_v13 = vld [vmem:[#allocation5 + $0xc78] sm:$0xf]  ;;  %v16266_v25 = vld [vmem:[#allocation5 + $0xd78] sm:$0xf0] }
 0x20c   :  { %v16265_v29 = vor.u32 %v21595_v15, %v16264_v13  ;;  %v16269_v33 = vor.u32 %v21563_v19, %v16266_v25  ;;  %v21915_v13 = vld [vmem:[#allocation5 + $0x1774] sm:$0xf0]  ;;  %v15498_v19 = vld [vmem:[#allocation5 + $0x778] sm:$0xf0]  ;;  %v1270_v25 = vperm.slane %v23511_v39, 5 }
 0x20d   :  { %7237 = vmatpush.bf16.msra.mxu0 %v14977_v34  ;;  %7263 = vmatpush.bf16.msra.mxu2 %v14981_v38  ;;  %v16008_v34 = vld [vmem:[#allocation5 + $0xa78] sm:$0xf]  ;;  %v21307_v47 = vld [vmem:[#allocation5 + $0x47c] sm:$0xf] }
 0x20e   :  { %v22043_v38 = vld [vmem:[#allocation5 + $0x1b74] sm:$0xf0]  ;;  %v15242_v48 = vld [vmem:[#allocation5 + $0x578] sm:$0xf0] }
 0x20f   :  { %7250 = vmatpush.bf16.msra.mxu1 %v17025_v36  ;;  %7276 = vmatpush.bf16.msra.mxu3 %v17029_v49  ;;  %v18317_v36 = vor.u32 %v22075_v26, %v18314_v27  ;;  %v16009_v49 = vor.u32 %v21531_v35, %v16008_v34  ;;  %v18057_v55 = vor.u32 %v22043_v38, %v18056_v37  ;;  %v21883_v26 = vld [vmem:[#allocation5 + $0x167c] sm:$0xf]  ;;  %v15240_v35 = vld [vmem:[#allocation5 + $0x478] sm:$0xf] }
 0x210   :  { %v17546_v27 = vld [vmem:[#allocation5 + $0x1778] sm:$0xf0]  ;;  %v15501_v34 = vor.u32 %v21371_v22, %v15498_v19  ;;  %v21339_v37 = vld [vmem:[#allocation5 + $0x574] sm:$0xf0] }
 0x211   :  { %7238 = vmatpush.bf16.msra.mxu0 %v14721_v63  ;;  %7264 = vmatpush.bf16.msra.mxu2 %v14725_v6  ;;  %v21979_v63 = vld [vmem:[#allocation5 + $0x1974] sm:$0xf0]  ;;  %v15753_v6 = vor.u32 %v21467_v57, %v15752_v52  ;;  %v7032_v14 = vpop.f32.mrf.mxu0  ;;  %v17549_v40 = vor.u32 %v21883_v26, %v17546_v27  ;;  %v15241_v57 = vor.u32 %v21339_v37, %v15240_v35  ;;  %v16528_v37 = vld [vmem:[#allocation5 + $0xe80] sm:$0xf] }
 0x212   :  { %v7033_v15 = vadd.f32 %v7032_v14, %v1269_v60  ;;  %v21243_v14 = vld [vmem:[#allocation5 + $0x27c] sm:$0xf]  ;;  %v16776_v22 = vld [vmem:[#allocation5 + $0x1078] sm:$0xf] }
 0x213   :  { %7251 = vmatpush.bf16.msra.mxu1 %v16769_v5  ;;  %7277 = vmatpush.bf16.msra.mxu3 %v16773_v9  ;;  %v17802_v5 = vld [vmem:[#allocation5 + $0x1978] sm:$0xf0]  ;;  %v17801_v9 = vor.u32 %v21979_v63, %v17800_v59  ;;  %v7045_v16 = vpop.f32.mrf.mxu1  ;;  %v15245_v63 = vor.u32 %v21307_v47, %v15242_v48  ;;  %v21723_v19 = vld [vmem:[#allocation5 + $0x1174] sm:$0xf0]  ;;  %v21628_v47 = vld [vmem:[#allocation5 + $0xe84] sm:$0xf] }
 0x214   :  { %7265 = vmatmul.bf16.vlgmr.msra.gmra.mxu2 %v23524_v7  ;;  %7239 = vmatmul.bf16.vlgmr.msra.gmra.mxu0 %v23524_v7  ;;  %v16530_v48 = vld [vmem:[#allocation5 + $0xf80] sm:$0xf0] }
 0x215   :  { %7283 = vmatpush.bf16.msrb.mxu0 %v16521_v10  ;;  %7309 = vmatpush.bf16.msrb.mxu2 %v16525_v51  ;;  %v15757_v10 = vor.u32 %v21435_v61, %v15754_v1  ;;  %v17544_v51 = vld [vmem:[#allocation5 + $0x1678] sm:$0xf] }
 0x216   :  { %7278 = vmatmul.bf16.vlgmr.msra.gmra.mxu3 %v23514_v46  ;;  %7252 = vmatmul.bf16.vlgmr.msra.gmra.mxu1 %v23514_v46  ;;  %v14984_v61 = vld [vmem:[#allocation5 + $0x278] sm:$0xf] }
 0x217   :  { %7296 = vmatpush.bf16.msrb.mxu1 %v18569_v11  ;;  %7322 = vmatpush.bf16.msrb.mxu3 %v18573_v21  ;;  %v21403_v11 = vld [vmem:[#allocation5 + $0x774] sm:$0xf0]  ;;  %v17805_v21 = vor.u32 %v21947_v2, %v17802_v5  ;;  %v7058_v38 = vpop.f32.mrf.mxu2 }
 0x218   :  { %v21275_v1 = vld [vmem:[#allocation5 + $0x374] sm:$0xf0] }
 0x219   :  { %7284 = vmatpush.bf16.msrb.mxu0 %v16265_v29  ;;  %7310 = vmatpush.bf16.msrb.mxu2 %v16269_v33  ;;  %v23542_v29 = vadd.f32 %v7045_v16, %v7033_v15  ;;  %v17545_v33 = vor.u32 %v21915_v13, %v17544_v51  ;;  %v7071_v52 = vpop.f32.mrf.mxu3  ;;  %v7034_v60 = vpop.f32.mrf.mxu0  ;;  %v17032_v2 = vld [vmem:[#allocation5 + $0x1278] sm:$0xf]  ;;  %v14985_v51 = vor.u32 %v21275_v1, %v14984_v61  ;;  %v16272_v61 = vld [vmem:[#allocation5 + $0xc80] sm:$0xf] }
 0x21a   :  { %v14728_v13 = vld [vmem:[#allocation5 + $0x78] sm:$0xf]  ;;  %v21596_v1 = vld [vmem:[#allocation5 + $0xd7c] sm:$0xf0] }
 0x21b   :  { %7297 = vmatpush.bf16.msrb.mxu1 %v18313_v31  ;;  %7323 = vmatpush.bf16.msrb.mxu3 %v18317_v36  ;;  %v15497_v31 = vor.u32 %v21403_v11, %v15496_v8  ;;  %v17288_v36 = vld [vmem:[#allocation5 + $0x1478] sm:$0xf]  ;;  %v7047_v5 = vpop.f32.mrf.mxu1  ;;  %v17034_v11 = vld [vmem:[#allocation5 + $0x1378] sm:$0xf0] }
 0x21c   :  { %v21787_v8 = vld [vmem:[#allocation5 + $0x1374] sm:$0xf0] }
 0x21d   :  { %7285 = vmatpush.bf16.msrb.mxu0 %v16009_v49  ;;  %7311 = vmatpush.bf16.msrb.mxu2 %v16013_v58  ;;  %v7059_v49 = vadd.f32 %v7058_v38, %v1270_v25  ;;  %v17290_v58 = vld [vmem:[#allocation5 + $0x1578] sm:$0xf0]  ;;  %v21211_v15 = vld [vmem:[#allocation5 + $0x174] sm:$0xf0]  ;;  %v17033_v16 = vor.u32 %v21787_v8, %v17032_v2  ;;  %v18576_v38 = vld [vmem:[#allocation5 + $0x1e80] sm:$0xf] }
 0x21e   :  { %v21179_v25 = vld [vmem:[#allocation5 + $0x7c] sm:$0xf]  ;;  %v18320_v2 = vld [vmem:[#allocation5 + $0x1c80] sm:$0xf]  ;;  %v21564_v8 = vld [vmem:[#allocation5 + $0xc84] sm:$0xf] }
 0x21f   :  { %7298 = vmatpush.bf16.msrb.mxu1 %v18057_v55  ;;  %7324 = vmatpush.bf16.msrb.mxu3 %v18061_v62  ;;  %v21819_v55 = vld [vmem:[#allocation5 + $0x147c] sm:$0xf]  ;;  %v23544_v59 = vadd.f32 %v7071_v52, %v7059_v49  ;;  %v17289_v62 = vor.u32 %v21851_v41, %v17288_v36  ;;  %v7060_v26 = vpop.f32.mrf.mxu2  ;;  %v21660_v36 = vld [vmem:[#allocation5 + $0xf7c] sm:$0xf0]  ;;  %v16777_v49 = vor.u32 %v21723_v19, %v16776_v22 }
 0x220   :  { %v22172_v41 = vld [vmem:[#allocation5 + $0x1f7c] sm:$0xf0]  ;;  %v16529_v60 = vor.u32 %v21660_v36, %v16528_v37  ;;  %v16018_v26 = vld [vmem:[#allocation5 + $0xb80] sm:$0xf0] }
 0x221   :  { %7286 = vmatpush.bf16.msrb.mxu0 %v15753_v6  ;;  %7312 = vmatpush.bf16.msrb.mxu2 %v15757_v10  ;;  %v17293_v6 = vor.u32 %v21819_v55, %v17290_v58  ;;  %v21755_v10 = vld [vmem:[#allocation5 + $0x127c] sm:$0xf]  ;;  %v7073_v35 = vpop.f32.mrf.mxu3  ;;  %v22140_v55 = vld [vmem:[#allocation5 + $0x1e84] sm:$0xf]  ;;  %v22044_v19 = vld [vmem:[#allocation5 + $0x1b7c] sm:$0xf0] }
 0x222   :  { %v17037_v27 = vor.u32 %v21755_v10, %v17034_v11  ;;  %v18578_v58 = vld [vmem:[#allocation5 + $0x1f80] sm:$0xf0]  ;;  %v16273_v11 = vor.u32 %v21596_v1, %v16272_v61  ;;  %v21468_v36 = vld [vmem:[#allocation5 + $0x97c] sm:$0xf0] }
 0x223   :  { %7299 = vmatpush.bf16.msrb.mxu1 %v17801_v9  ;;  %7325 = vmatpush.bf16.msrb.mxu3 %v17805_v21  ;;  %v14986_v9 = vld [vmem:[#allocation5 + $0x378] sm:$0xf0]  ;;  %v18581_v5 = vor.u32 %v22140_v55, %v18578_v58  ;;  %v18322_v10 = vld [vmem:[#allocation5 + $0x1d80] sm:$0xf0]  ;;  %v17552_v61 = vld [vmem:[#allocation5 + $0x1680] sm:$0xf] }
 0x224   :  { %v14989_v21 = vor.u32 %v21243_v14, %v14986_v9  ;;  %v16274_v14 = vld [vmem:[#allocation5 + $0xd80] sm:$0xf0]  ;;  %v21916_v1 = vld [vmem:[#allocation5 + $0x177c] sm:$0xf0] }
 0x225   :  { %7287 = vmatpush.bf16.msrb.mxu0 %v15497_v31  ;;  %7313 = vmatpush.bf16.msrb.mxu2 %v15501_v34  ;;  %v14730_v31 = vld [vmem:[#allocation5 + $0x178] sm:$0xf0]  ;;  %v22076_v9 = vld [vmem:[#allocation5 + $0x1c84] sm:$0xf] }
 0x226   :  { %v16778_v34 = vld [vmem:[#allocation5 + $0x1178] sm:$0xf0]  ;;  %v14733_v52 = vor.u32 %v21179_v25, %v14730_v31  ;;  %v18325_v22 = vor.u32 %v22076_v9, %v18322_v10  ;;  %v21500_v25 = vld [vmem:[#allocation5 + $0xa84] sm:$0xf]  ;;  %v1272_v9 = vperm.slane %v23511_v39, 7 }
 0x227   :  { %7300 = vmatpush.bf16.msrb.mxu1 %v17545_v33  ;;  %7326 = vmatpush.bf16.msrb.mxu3 %v17549_v40  ;;  %v21691_v33 = vld [vmem:[#allocation5 + $0x107c] sm:$0xf]  ;;  %v14729_v40 = vor.u32 %v21211_v15, %v14728_v13  ;;  %v16277_v13 = vor.u32 %v21564_v8, %v16274_v14  ;;  %v16016_v15 = vld [vmem:[#allocation5 + $0xa80] sm:$0xf]  ;;  %v18066_v31 = vld [vmem:[#allocation5 + $0x1b80] sm:$0xf0]  ;;  %v16021_v37 = vor.u32 %v21500_v25, %v16018_v26 }
 0x228   :  { %v17810_v55 = vld [vmem:[#allocation5 + $0x1980] sm:$0xf0] }
 0x229   :  { %7288 = vmatpush.bf16.msrb.mxu0 %v15241_v57  ;;  %7314 = vmatpush.bf16.msrb.mxu2 %v15245_v63  ;;  %v16781_v57 = vor.u32 %v21691_v33, %v16778_v34  ;;  %v16533_v63 = vor.u32 %v21628_v47, %v16530_v48  ;;  %v15760_v34 = vld [vmem:[#allocation5 + $0x880] sm:$0xf]  ;;  %v21436_v48 = vld [vmem:[#allocation5 + $0x884] sm:$0xf] }
 0x22a   :  { %v21980_v47 = vld [vmem:[#allocation5 + $0x197c] sm:$0xf0]  ;;  %v15761_v58 = vor.u32 %v21468_v36, %v15760_v34  ;;  %v21372_v8 = vld [vmem:[#allocation5 + $0x684] sm:$0xf] }
 0x22b   :  { %7301 = vmatpush.bf16.msrb.mxu1 %v17289_v62  ;;  %7327 = vmatpush.bf16.msrb.mxu3 %v17293_v6  ;;  %v18577_v62 = vor.u32 %v22172_v41, %v18576_v38  ;;  %v22108_v6 = vld [vmem:[#allocation5 + $0x1d7c] sm:$0xf0]  ;;  %v15506_v14 = vld [vmem:[#allocation5 + $0x780] sm:$0xf0] }
 0x22c   :  { %v17808_v38 = vld [vmem:[#allocation5 + $0x1880] sm:$0xf]  ;;  %v21884_v10 = vld [vmem:[#allocation5 + $0x1684] sm:$0xf] }
 0x22d   :  { %7289 = vmatpush.bf16.msrb.mxu0 %v14985_v51  ;;  %7315 = vmatpush.bf16.msrb.mxu2 %v14989_v21  ;;  %v18321_v51 = vor.u32 %v22108_v6, %v18320_v2  ;;  %v18064_v21 = vld [vmem:[#allocation5 + $0x1a80] sm:$0xf] }
 0x22e   :  { %v18065_v35 = vor.u32 %v22044_v19, %v18064_v21  ;;  %v15248_v21 = vld [vmem:[#allocation5 + $0x480] sm:$0xf] }
 0x22f   :  { %7302 = vmatpush.bf16.msrb.mxu1 %v17033_v16  ;;  %7328 = vmatpush.bf16.msrb.mxu3 %v17037_v27  ;;  %v21532_v16 = vld [vmem:[#allocation5 + $0xb7c] sm:$0xf0]  ;;  %v22012_v27 = vld [vmem:[#allocation5 + $0x1a84] sm:$0xf] }
 0x230   :  { %v16017_v33 = vor.u32 %v21532_v16, %v16016_v15  ;;  %v18069_v41 = vor.u32 %v22012_v27, %v18066_v31  ;;  %v17553_v15 = vor.u32 %v21916_v1, %v17552_v61  ;;  %v15509_v16 = vor.u32 %v21372_v8, %v15506_v14  ;;  %v17296_v19 = vld [vmem:[#allocation5 + $0x1480] sm:$0xf]  ;;  %v21308_v31 = vld [vmem:[#allocation5 + $0x484] sm:$0xf] }
 0x231   :  { %7290 = vmatpush.bf16.msrb.mxu0 %v14729_v40  ;;  %7316 = vmatpush.bf16.msrb.mxu2 %v14733_v52  ;;  %v1271_v40 = vperm.slane %v23511_v39, 6  ;;  %v21948_v52 = vld [vmem:[#allocation5 + $0x1884] sm:$0xf]  ;;  %v21852_v27 = vld [vmem:[#allocation5 + $0x157c] sm:$0xf0] }
 0x232   :  { %v17813_v6 = vor.u32 %v21948_v52, %v17810_v55  ;;  %v17040_v52 = vld [vmem:[#allocation5 + $0x1280] sm:$0xf] }
 0x233   :  { %7303 = vmatpush.bf16.msrb.mxu1 %v16777_v49  ;;  %7329 = vmatpush.bf16.msrb.mxu3 %v16781_v57  ;;  %v15762_v49 = vld [vmem:[#allocation5 + $0x980] sm:$0xf0]  ;;  %v15504_v57 = vld [vmem:[#allocation5 + $0x680] sm:$0xf] }
 0x234   :  { %7317 = vmatmul.bf16.vlgmr.msrb.gmra.mxu2 %v23524_v7  ;;  %7291 = vmatmul.bf16.vlgmr.msrb.gmra.mxu0 %v23524_v7  ;;  %v14736_v1 = vld [vmem:[#allocation5 + $0x80] sm:$0xf] }
 0x235   :  { %7335 = vmatpush.bf16.msra.mxu0 %v16529_v60  ;;  %7361 = vmatpush.bf16.msra.mxu2 %v16533_v63  ;;  %v7084_v60 = vpop.f32.mrf.mxu0  ;;  %v21404_v63 = vld [vmem:[#allocation5 + $0x77c] sm:$0xf0] }
 0x236   :  { %7330 = vmatmul.bf16.vlgmr.msrb.gmra.mxu3 %v23514_v46  ;;  %7304 = vmatmul.bf16.vlgmr.msrb.gmra.mxu1 %v23514_v46  ;;  %v17809_v46 = vor.u32 %v21980_v47, %v17808_v38  ;;  %v7085_v2 = vadd.f32 %v7084_v60, %v1271_v40  ;;  %v21244_v60 = vld [vmem:[#allocation5 + $0x284] sm:$0xf]  ;;  %v16784_v8 = vld [vmem:[#allocation5 + $0x1080] sm:$0xf] }
 0x237   :  { %7348 = vmatpush.bf16.msra.mxu1 %v18577_v62  ;;  %7374 = vmatpush.bf16.msra.mxu3 %v18581_v5  ;;  %v15765_v62 = vor.u32 %v21436_v48, %v15762_v49  ;;  %v7097_v5 = vpop.f32.mrf.mxu1  ;;  %v7110_v25 = vpop.f32.mrf.mxu2  ;;  %v14992_v48 = vld [vmem:[#allocation5 + $0x280] sm:$0xf] }
 0x238   :  { %v7111_v39 = vadd.f32 %v7110_v25, %v1272_v9  ;;  %v21276_v49 = vld [vmem:[#allocation5 + $0x37c] sm:$0xf0]  ;;  %v21180_v9 = vld [vmem:[#allocation5 + $0x84] sm:$0xf]  ;;  %v18584_v25 = vld [vmem:[#allocation5 + $0x1e88] sm:$0xf] }
 0x239   :  { %7336 = vmatpush.bf16.msra.mxu0 %v16273_v11  ;;  %7362 = vmatpush.bf16.msra.mxu2 %v16277_v13  ;;  %v17554_v11 = vld [vmem:[#allocation5 + $0x1780] sm:$0xf0]  ;;  %v15505_v13 = vor.u32 %v21404_v63, %v15504_v57  ;;  %v7123_v34 = vpop.f32.mrf.mxu3  ;;  %v21788_v57 = vld [vmem:[#allocation5 + $0x137c] sm:$0xf0]  ;;  %v14993_v61 = vor.u32 %v21276_v49, %v14992_v48  ;;  %v16280_v48 = vld [vmem:[#allocation5 + $0xc88] sm:$0xf] }
 0x23a   :  { %v17557_v26 = vor.u32 %v21884_v10, %v17554_v11  ;;  %v23554_v38 = vadd.f32 %v7123_v34, %v7111_v39  ;;  %v17042_v63 = vld [vmem:[#allocation5 + $0x1380] sm:$0xf0]  ;;  %v21724_v14 = vld [vmem:[#allocation5 + $0x117c] sm:$0xf0]  ;;  %v21597_v49 = vld [vmem:[#allocation5 + $0xd84] sm:$0xf0] }
 0x23b   :  { %7349 = vmatpush.bf16.msra.mxu1 %v18321_v51  ;;  %7375 = vmatpush.bf16.msra.mxu3 %v18325_v22  ;;  %v23552_v51 = vadd.f32 %v7097_v5, %v7085_v2  ;;  %v21340_v22 = vld [vmem:[#allocation5 + $0x57c] sm:$0xf0]  ;;  %v17041_v5 = vor.u32 %v21788_v57, %v17040_v52  ;;  %v16785_v39 = vor.u32 %v21724_v14, %v16784_v8  ;;  %v18328_v52 = vld [vmem:[#allocation5 + $0x1c88] sm:$0xf]  ;;  %v21565_v57 = vld [vmem:[#allocation5 + $0xc8c] sm:$0xf] }
 0x23c   :  { %v15249_v36 = vor.u32 %v21340_v22, %v15248_v21  ;;  %v21212_v2 = vld [vmem:[#allocation5 + $0x17c] sm:$0xf0]  ;;  %v16536_v22 = vld [vmem:[#allocation5 + $0xe88] sm:$0xf] }
 0x23d   :  { %7337 = vmatpush.bf16.msra.mxu0 %v16017_v33  ;;  %7363 = vmatpush.bf16.msra.mxu2 %v16021_v37  ;;  %v15250_v33 = vld [vmem:[#allocation5 + $0x580] sm:$0xf0]  ;;  %v7086_v40 = vpop.f32.mrf.mxu0  ;;  %v22045_v8 = vld [vmem:[#allocation5 + $0x1b84] sm:$0xf0] }
 0x23e   :  { %v17298_v37 = vld [vmem:[#allocation5 + $0x1580] sm:$0xf0]  ;;  %v15253_v47 = vor.u32 %v21308_v31, %v15250_v33  ;;  %v21629_v31 = vld [vmem:[#allocation5 + $0xe8c] sm:$0xf] }
 0x23f   :  { %7350 = vmatpush.bf16.msra.mxu1 %v18065_v35  ;;  %7376 = vmatpush.bf16.msra.mxu3 %v18069_v41  ;;  %v21820_v35 = vld [vmem:[#allocation5 + $0x1484] sm:$0xf]  ;;  %v17297_v41 = vor.u32 %v21852_v27, %v17296_v19  ;;  %v7099_v55 = vpop.f32.mrf.mxu1  ;;  %v7112_v10 = vpop.f32.mrf.mxu2  ;;  %v21661_v19 = vld [vmem:[#allocation5 + $0xf84] sm:$0xf0]  ;;  %v16538_v33 = vld [vmem:[#allocation5 + $0xf88] sm:$0xf0] }
 0x240   :  { %v22173_v27 = vld [vmem:[#allocation5 + $0x1f84] sm:$0xf0]  ;;  %v16537_v40 = vor.u32 %v21661_v19, %v16536_v22  ;;  %v16026_v10 = vld [vmem:[#allocation5 + $0xb88] sm:$0xf0] }
 0x241   :  { %7338 = vmatpush.bf16.msra.mxu0 %v15761_v58  ;;  %7364 = vmatpush.bf16.msra.mxu2 %v15765_v62  ;;  %v17301_v58 = vor.u32 %v21820_v35, %v17298_v37  ;;  %v21756_v62 = vld [vmem:[#allocation5 + $0x1284] sm:$0xf]  ;;  %v7125_v21 = vpop.f32.mrf.mxu3  ;;  %v22141_v35 = vld [vmem:[#allocation5 + $0x1e8c] sm:$0xf]  ;;  %v15768_v22 = vld [vmem:[#allocation5 + $0x888] sm:$0xf] }
 0x242   :  { %v17045_v11 = vor.u32 %v21756_v62, %v17042_v63  ;;  %v18586_v37 = vld [vmem:[#allocation5 + $0x1f88] sm:$0xf0]  ;;  %v16281_v63 = vor.u32 %v21597_v49, %v16280_v48  ;;  %v21405_v49 = vld [vmem:[#allocation5 + $0x784] sm:$0xf0] }
 0x243   :  { %7351 = vmatpush.bf16.msra.mxu1 %v17809_v46  ;;  %7377 = vmatpush.bf16.msra.mxu3 %v17813_v6  ;;  %v14994_v46 = vld [vmem:[#allocation5 + $0x380] sm:$0xf0]  ;;  %v18589_v55 = vor.u32 %v22141_v35, %v18586_v37  ;;  %v18330_v62 = vld [vmem:[#allocation5 + $0x1d88] sm:$0xf0] }
 0x244   :  { %v14997_v6 = vor.u32 %v21244_v60, %v14994_v46  ;;  %v16282_v60 = vld [vmem:[#allocation5 + $0xd88] sm:$0xf0] }
 0x245   :  { %7339 = vmatpush.bf16.msra.mxu0 %v15505_v13  ;;  %7365 = vmatpush.bf16.msra.mxu2 %v15509_v16  ;;  %v14738_v13 = vld [vmem:[#allocation5 + $0x180] sm:$0xf0]  ;;  %v22077_v46 = vld [vmem:[#allocation5 + $0x1c8c] sm:$0xf] }
 0x246   :  { %v16786_v16 = vld [vmem:[#allocation5 + $0x1180] sm:$0xf0]  ;;  %v14741_v34 = vor.u32 %v21180_v9, %v14738_v13  ;;  %v18333_v14 = vor.u32 %v22077_v46, %v18330_v62  ;;  %v21501_v9 = vld [vmem:[#allocation5 + $0xa8c] sm:$0xf] }
 0x247   :  { %7352 = vmatpush.bf16.msra.mxu1 %v17553_v15  ;;  %7378 = vmatpush.bf16.msra.mxu3 %v17557_v26  ;;  %v21692_v15 = vld [vmem:[#allocation5 + $0x1084] sm:$0xf]  ;;  %v14737_v26 = vor.u32 %v21212_v2, %v14736_v1  ;;  %v16285_v2 = vor.u32 %v21565_v57, %v16282_v60  ;;  %v22013_v13 = vld [vmem:[#allocation5 + $0x1a8c] sm:$0xf] }
 0x248   :  { %v21949_v35 = vld [vmem:[#allocation5 + $0x188c] sm:$0xf] }
 0x249   :  { %7340 = vmatpush.bf16.msra.mxu0 %v15249_v36  ;;  %7366 = vmatpush.bf16.msra.mxu2 %v15253_v47  ;;  %v16789_v36 = vor.u32 %v21692_v15, %v16786_v16  ;;  %v16541_v47 = vor.u32 %v21629_v31, %v16538_v33  ;;  %v18074_v15 = vld [vmem:[#allocation5 + $0x1b88] sm:$0xf0]  ;;  %v23560_v16 = vld [vmem:[#allocation1 + $0x9] sm:$0xff] }
 0x24a   :  { %v18077_v33 = vor.u32 %v22013_v13, %v18074_v15  ;;  %v17818_v37 = vld [vmem:[#allocation5 + $0x1988] sm:$0xf0] }
 0x24b   :  { %7353 = vmatpush.bf16.msra.mxu1 %v17297_v41  ;;  %7379 = vmatpush.bf16.msra.mxu3 %v17301_v58  ;;  %v18585_v41 = vor.u32 %v22173_v27, %v18584_v25  ;;  %v22109_v58 = vld [vmem:[#allocation5 + $0x1d84] sm:$0xf0]  ;;  %v16029_v25 = vor.u32 %v21501_v9, %v16026_v10  ;;  %v17821_v60 = vor.u32 %v21949_v35, %v17818_v37  ;;  %v21373_v46 = vld [vmem:[#allocation5 + $0x68c] sm:$0xf] }
 0x24c   :  { %v18329_v1 = vor.u32 %v22109_v58, %v18328_v52  ;;  %v17816_v27 = vld [vmem:[#allocation5 + $0x1888] sm:$0xf]  ;;  %v15514_v62 = vld [vmem:[#allocation5 + $0x788] sm:$0xf0] }
 0x24d   :  { %7341 = vmatpush.bf16.msra.mxu0 %v14993_v61  ;;  %7367 = vmatpush.bf16.msra.mxu2 %v14997_v6  ;;  %v16024_v61 = vld [vmem:[#allocation5 + $0xa88] sm:$0xf] }
 0x24e   :  { %v18072_v6 = vld [vmem:[#allocation5 + $0x1a88] sm:$0xf] }
 0x24f   :  { %7354 = vmatpush.bf16.msra.mxu1 %v17041_v5  ;;  %7380 = vmatpush.bf16.msra.mxu3 %v17045_v11  ;;  %v21533_v5 = vld [vmem:[#allocation5 + $0xb84] sm:$0xf0]  ;;  %v23557_v11 = vld [vmem:[#allocation7 + $0x18] sm:$0xff]  ;;  %v18073_v19 = vor.u32 %v22045_v8, %v18072_v6  ;;  %v15517_v8 = vor.u32 %v21373_v46, %v15514_v62 }
 0x250   :  { %v16025_v21 = vor.u32 %v21533_v5, %v16024_v61  ;;  %v1273_v31 = vperm.slane %v23557_v11, 0  ;;  %v17560_v52 = vld [vmem:[#allocation5 + $0x1688] sm:$0xf]  ;;  %v21885_v61 = vld [vmem:[#allocation5 + $0x168c] sm:$0xf] }
 0x251   :  { %7342 = vmatpush.bf16.msra.mxu0 %v14737_v26  ;;  %7368 = vmatpush.bf16.msra.mxu2 %v14741_v34  ;;  %v21469_v26 = vld [vmem:[#allocation5 + $0x984] sm:$0xf0]  ;;  %v15770_v34 = vld [vmem:[#allocation5 + $0x988] sm:$0xf0] }
 0x252   :  { %v21341_v9 = vld [vmem:[#allocation5 + $0x584] sm:$0xf0] }
 0x253   :  { %7355 = vmatpush.bf16.msra.mxu1 %v16785_v39  ;;  %7381 = vmatpush.bf16.msra.mxu3 %v16789_v36  ;;  %v21437_v39 = vld [vmem:[#allocation5 + $0x88c] sm:$0xf]  ;;  %v15769_v36 = vor.u32 %v21469_v26, %v15768_v22  ;;  %v7149_v57 = vpop.f32.mrf.mxu1  ;;  %v17304_v10 = vld [vmem:[#allocation5 + $0x1488] sm:$0xf] }
 0x254   :  { %7369 = vmatmul.bf16.vlgmr.msra.gmra.mxu2 %v23524_v7  ;;  %7343 = vmatmul.bf16.vlgmr.msra.gmra.mxu0 %v23524_v7  ;;  %v21981_v7 = vld [vmem:[#allocation5 + $0x1984] sm:$0xf0]  ;;  %v15773_v48 = vor.u32 %v21437_v39, %v15770_v34  ;;  %v21309_v22 = vld [vmem:[#allocation5 + $0x48c] sm:$0xf] }
 0x255   :  { %7387 = vmatpush.bf16.msrb.mxu0 %v16537_v40  ;;  %7413 = vmatpush.bf16.msrb.mxu2 %v16541_v47  ;;  %v15512_v40 = vld [vmem:[#allocation5 + $0x688] sm:$0xf]  ;;  %v17817_v47 = vor.u32 %v21981_v7, %v17816_v27  ;;  %v21821_v27 = vld [vmem:[#allocation5 + $0x148c] sm:$0xf] }
 0x256   :  { %7382 = vmatmul.bf16.vlgmr.msra.gmra.mxu3 %v23560_v16  ;;  %7356 = vmatmul.bf16.vlgmr.msra.gmra.mxu1 %v23560_v16  ;;  %v15513_v5 = vor.u32 %v21405_v49, %v15512_v40  ;;  %v15000_v37 = vld [vmem:[#allocation5 + $0x288] sm:$0xf]  ;;  %v21245_v49 = vld [vmem:[#allocation5 + $0x28c] sm:$0xf] }
 0x257   :  { %7400 = vmatpush.bf16.msrb.mxu1 %v18585_v41  ;;  %7426 = vmatpush.bf16.msrb.mxu3 %v18589_v55  ;;  %v7136_v41 = vpop.f32.mrf.mxu0  ;;  %v21917_v55 = vld [vmem:[#allocation5 + $0x1784] sm:$0xf0]  ;;  %v7162_v13 = vpop.f32.mrf.mxu2 }
 0x258   :  { %v7137_v58 = vadd.f32 %v7136_v41, %v1273_v31  ;;  %v17561_v6 = vor.u32 %v21917_v55, %v17560_v52  ;;  %v17306_v31 = vld [vmem:[#allocation5 + $0x1588] sm:$0xf0]  ;;  %v17048_v40 = vld [vmem:[#allocation5 + $0x1288] sm:$0xf] }
 0x259   :  { %7388 = vmatpush.bf16.msrb.mxu0 %v16281_v63  ;;  %7414 = vmatpush.bf16.msrb.mxu2 %v16285_v2  ;;  %v1274_v63 = vperm.slane %v23557_v11, 1  ;;  %v7175_v26 = vpop.f32.mrf.mxu3  ;;  %v15002_v52 = vld [vmem:[#allocation5 + $0x388] sm:$0xf0]  ;;  %v21213_v46 = vld [vmem:[#allocation5 + $0x184] sm:$0xf0] }
 0x25a   :  { %v23566_v2 = vadd.f32 %v7149_v57, %v7137_v58  ;;  %v21757_v55 = vld [vmem:[#allocation5 + $0x128c] sm:$0xf] }
 0x25b   :  { %7401 = vmatpush.bf16.msrb.mxu1 %v18329_v1  ;;  %7427 = vmatpush.bf16.msrb.mxu3 %v18333_v14  ;;  %v17562_v1 = vld [vmem:[#allocation5 + $0x1788] sm:$0xf0]  ;;  %v15256_v14 = vld [vmem:[#allocation5 + $0x488] sm:$0xf]  ;;  %v7151_v41 = vpop.f32.mrf.mxu1 }
 0x25c   :  { %v17565_v15 = vor.u32 %v21885_v61, %v17562_v1  ;;  %v17050_v58 = vld [vmem:[#allocation5 + $0x1388] sm:$0xf0]  ;;  %v16792_v61 = vld [vmem:[#allocation5 + $0x1088] sm:$0xf]  ;;  %v16288_v41 = vld [vmem:[#allocation5 + $0xc90] sm:$0xf] }
 0x25d   :  { %7389 = vmatpush.bf16.msrb.mxu0 %v16025_v21  ;;  %7415 = vmatpush.bf16.msrb.mxu2 %v16029_v25  ;;  %v21853_v21 = vld [vmem:[#allocation5 + $0x1584] sm:$0xf0]  ;;  %v7163_v25 = vadd.f32 %v7162_v13, %v1274_v63  ;;  %v15005_v63 = vor.u32 %v21245_v49, %v15002_v52  ;;  %v22110_v52 = vld [vmem:[#allocation5 + $0x1d8c] sm:$0xf0] }
 0x25e   :  { %v17305_v34 = vor.u32 %v21853_v21, %v17304_v10  ;;  %v21725_v1 = vld [vmem:[#allocation5 + $0x1184] sm:$0xf0]  ;;  %v16794_v10 = vld [vmem:[#allocation5 + $0x1188] sm:$0xf0]  ;;  %v21662_v21 = vld [vmem:[#allocation5 + $0xf8c] sm:$0xf0] }
 0x25f   :  { %7402 = vmatpush.bf16.msrb.mxu1 %v18073_v19  ;;  %7428 = vmatpush.bf16.msrb.mxu3 %v18077_v33  ;;  %v15258_v19 = vld [vmem:[#allocation5 + $0x588] sm:$0xf0]  ;;  %v15257_v33 = vor.u32 %v21341_v9, %v15256_v14  ;;  %v23568_v7 = vadd.f32 %v7175_v26, %v7163_v25  ;;  %v7138_v39 = vpop.f32.mrf.mxu0  ;;  %v22174_v25 = vld [vmem:[#allocation5 + $0x1f8c] sm:$0xf0]  ;;  %v21630_v26 = vld [vmem:[#allocation5 + $0xe94] sm:$0xf] }
 0x260   :  { %v15261_v35 = vor.u32 %v21309_v22, %v15258_v19  ;;  %v14746_v14 = vld [vmem:[#allocation5 + $0x188] sm:$0xf0]  ;;  %v18592_v22 = vld [vmem:[#allocation5 + $0x1e90] sm:$0xf]  ;;  %v22142_v39 = vld [vmem:[#allocation5 + $0x1e94] sm:$0xf] }
 0x261   :  { %7390 = vmatpush.bf16.msrb.mxu0 %v15769_v36  ;;  %7416 = vmatpush.bf16.msrb.mxu2 %v15773_v48  ;;  %v21277_v36 = vld [vmem:[#allocation5 + $0x384] sm:$0xf0]  ;;  %v21693_v9 = vld [vmem:[#allocation5 + $0x108c] sm:$0xf]  ;;  %v7177_v13 = vpop.f32.mrf.mxu3 }
 0x262   :  { %v21789_v48 = vld [vmem:[#allocation5 + $0x1384] sm:$0xf0]  ;;  %v15001_v57 = vor.u32 %v21277_v36, %v15000_v37  ;;  %v18593_v36 = vor.u32 %v22174_v25, %v18592_v22  ;;  %v22014_v13 = vld [vmem:[#allocation5 + $0x1a94] sm:$0xf]  ;;  %v15776_v22 = vld [vmem:[#allocation5 + $0x890] sm:$0xf] }
 0x263   :  { %7403 = vmatpush.bf16.msrb.mxu1 %v17817_v47  ;;  %7429 = vmatpush.bf16.msrb.mxu3 %v17821_v60  ;;  %v17309_v47 = vor.u32 %v21821_v27, %v17306_v31  ;;  %v14744_v60 = vld [vmem:[#allocation5 + $0x88] sm:$0xf]  ;;  %v17049_v62 = vor.u32 %v21789_v48, %v17048_v40  ;;  %v16546_v27 = vld [vmem:[#allocation5 + $0xf90] sm:$0xf0]  ;;  %v16793_v31 = vor.u32 %v21725_v1, %v16792_v61  ;;  %v18336_v48 = vld [vmem:[#allocation5 + $0x1c90] sm:$0xf] }
 0x264   :  { %v14745_v19 = vor.u32 %v21213_v46, %v14744_v60  ;;  %v16549_v40 = vor.u32 %v21630_v26, %v16546_v27  ;;  %v18338_v60 = vld [vmem:[#allocation5 + $0x1d90] sm:$0xf0]  ;;  %v16032_v61 = vld [vmem:[#allocation5 + $0xa90] sm:$0xf] }
 0x265   :  { %7391 = vmatpush.bf16.msrb.mxu0 %v15513_v5  ;;  %7417 = vmatpush.bf16.msrb.mxu2 %v15517_v8  ;;  %v21181_v5 = vld [vmem:[#allocation5 + $0x8c] sm:$0xf]  ;;  %v17053_v8 = vor.u32 %v21757_v55, %v17050_v58  ;;  %v21566_v55 = vld [vmem:[#allocation5 + $0xc94] sm:$0xf]  ;;  %v21534_v1 = vld [vmem:[#allocation5 + $0xb8c] sm:$0xf0] }
 0x266   :  { %v16290_v58 = vld [vmem:[#allocation5 + $0xd90] sm:$0xf0]  ;;  %v21470_v26 = vld [vmem:[#allocation5 + $0x98c] sm:$0xf0] }
 0x267   :  { %7404 = vmatpush.bf16.msrb.mxu1 %v17561_v6  ;;  %7430 = vmatpush.bf16.msrb.mxu3 %v17565_v15  ;;  %v7164_v6 = vpop.f32.mrf.mxu2  ;;  %v16544_v15 = vld [vmem:[#allocation5 + $0xe90] sm:$0xf] }
 0x268   :  { %v16545_v37 = vor.u32 %v21662_v21, %v16544_v15  ;;  %v18082_v15 = vld [vmem:[#allocation5 + $0x1b90] sm:$0xf0]  ;;  %v16033_v21 = vor.u32 %v21534_v1, %v16032_v61  ;;  %v17824_v27 = vld [vmem:[#allocation5 + $0x1890] sm:$0xf]  ;;  %v1276_v61 = vperm.slane %v23557_v11, 3 }
 0x269   :  { %7392 = vmatpush.bf16.msrb.mxu0 %v15257_v33  ;;  %7418 = vmatpush.bf16.msrb.mxu2 %v15261_v35  ;;  %v14749_v33 = vor.u32 %v21181_v5, %v14746_v14  ;;  %v16797_v35 = vor.u32 %v21693_v9, %v16794_v10  ;;  %v18080_v5 = vld [vmem:[#allocation5 + $0x1a90] sm:$0xf]  ;;  %v21502_v14 = vld [vmem:[#allocation5 + $0xa94] sm:$0xf] }
 0x26a   :  { %v16034_v9 = vld [vmem:[#allocation5 + $0xb90] sm:$0xf0] }
 0x26b   :  { %7405 = vmatpush.bf16.msrb.mxu1 %v17305_v34  ;;  %7431 = vmatpush.bf16.msrb.mxu3 %v17309_v47  ;;  %v18594_v34 = vld [vmem:[#allocation5 + $0x1f90] sm:$0xf0]  ;;  %v21598_v47 = vld [vmem:[#allocation5 + $0xd8c] sm:$0xf0]  ;;  %v16037_v25 = vor.u32 %v21502_v14, %v16034_v9 }
 0x26c   :  { %v18597_v49 = vor.u32 %v22142_v39, %v18594_v34  ;;  %v16289_v46 = vor.u32 %v21598_v47, %v16288_v41  ;;  %v23570_v10 = vld [vmem:[#allocation1] sm:$0xff]  ;;  %v21982_v39 = vld [vmem:[#allocation5 + $0x198c] sm:$0xf0] }
 0x26d   :  { %7393 = vmatpush.bf16.msrb.mxu0 %v15001_v57  ;;  %7419 = vmatpush.bf16.msrb.mxu2 %v15005_v63  ;;  %v22078_v57 = vld [vmem:[#allocation5 + $0x1c94] sm:$0xf]  ;;  %v16293_v63 = vor.u32 %v21566_v55, %v16290_v58  ;;  %v15520_v41 = vld [vmem:[#allocation5 + $0x690] sm:$0xf] }
 0x26e   :  { %v18341_v6 = vor.u32 %v22078_v57, %v18338_v60  ;;  %v21438_v34 = vld [vmem:[#allocation5 + $0x894] sm:$0xf]  ;;  %v17568_v55 = vld [vmem:[#allocation5 + $0x1690] sm:$0xf] }
 0x26f   :  { %7406 = vmatpush.bf16.msrb.mxu1 %v17049_v62  ;;  %7432 = vmatpush.bf16.msrb.mxu3 %v17053_v8  ;;  %v18337_v62 = vor.u32 %v22110_v52, %v18336_v48  ;;  %v22046_v8 = vld [vmem:[#allocation5 + $0x1b8c] sm:$0xf0]  ;;  %v17825_v48 = vor.u32 %v21982_v39, %v17824_v27  ;;  %v21886_v1 = vld [vmem:[#allocation5 + $0x1694] sm:$0xf] }
 0x270   :  { %v21406_v52 = vld [vmem:[#allocation5 + $0x78c] sm:$0xf0]  ;;  %v15266_v27 = vld [vmem:[#allocation5 + $0x590] sm:$0xf0] }
 0x271   :  { %7394 = vmatpush.bf16.msrb.mxu0 %v14745_v19  ;;  %7420 = vmatpush.bf16.msrb.mxu2 %v14749_v33  ;;  %v18081_v19 = vor.u32 %v22046_v8, %v18080_v5  ;;  %v18085_v33 = vor.u32 %v22014_v13, %v18082_v15  ;;  %v7188_v47 = vpop.f32.mrf.mxu0  ;;  %v21918_v58 = vld [vmem:[#allocation5 + $0x178c] sm:$0xf0]  ;;  %v17570_v5 = vld [vmem:[#allocation5 + $0x1790] sm:$0xf0]  ;;  %v15521_v8 = vor.u32 %v21406_v52, %v15520_v41 }
 0x272   :  { %v17569_v14 = vor.u32 %v21918_v58, %v17568_v55  ;;  %v15264_v13 = vld [vmem:[#allocation5 + $0x490] sm:$0xf]  ;;  %v21822_v39 = vld [vmem:[#allocation5 + $0x1494] sm:$0xf] }
 0x273   :  { %7407 = vmatpush.bf16.msrb.mxu1 %v16793_v31  ;;  %7433 = vmatpush.bf16.msrb.mxu3 %v16797_v35  ;;  %v1275_v31 = vperm.slane %v23557_v11, 2  ;;  %v15778_v35 = vld [vmem:[#allocation5 + $0x990] sm:$0xf0]  ;;  %v7201_v60 = vpop.f32.mrf.mxu1  ;;  %v21342_v15 = vld [vmem:[#allocation5 + $0x58c] sm:$0xf0] }
 0x274   :  { %7421 = vmatmul.bf16.vlgmr.msrb.gmra.mxu2 %v23570_v10  ;;  %7395 = vmatmul.bf16.vlgmr.msrb.gmra.mxu0 %v23570_v10  ;;  %v21790_v58 = vld [vmem:[#allocation5 + $0x138c] sm:$0xf0] }
 0x275   :  { %7439 = vmatpush.bf16.msra.mxu0 %v16545_v37  ;;  %7465 = vmatpush.bf16.msra.mxu2 %v16549_v40  ;;  %v21950_v37 = vld [vmem:[#allocation5 + $0x1894] sm:$0xf]  ;;  %v15777_v40 = vor.u32 %v21470_v26, %v15776_v22  ;;  %v7189_v57 = vadd.f32 %v7188_v47, %v1275_v31  ;;  %v15008_v47 = vld [vmem:[#allocation5 + $0x290] sm:$0xf] }
 0x276   :  { %7434 = vmatmul.bf16.vlgmr.msrb.gmra.mxu3 %v23560_v16  ;;  %7408 = vmatmul.bf16.vlgmr.msrb.gmra.mxu1 %v23560_v16  ;;  %v21310_v26 = vld [vmem:[#allocation5 + $0x494] sm:$0xf] }
 0x277   :  { %7452 = vmatpush.bf16.msra.mxu1 %v18593_v36  ;;  %7478 = vmatpush.bf16.msra.mxu3 %v18597_v49  ;;  %v17826_v36 = vld [vmem:[#allocation5 + $0x1990] sm:$0xf0]  ;;  %v15781_v49 = vor.u32 %v21438_v34, %v15778_v35  ;;  %v7214_v22 = vpop.f32.mrf.mxu2  ;;  %v15265_v35 = vor.u32 %v21342_v15, %v15264_v13  ;;  %v15269_v41 = vor.u32 %v21310_v26, %v15266_v27  ;;  %v16552_v27 = vld [vmem:[#allocation5 + $0xe98] sm:$0xf] }
 0x278   :  { %v7215_v31 = vadd.f32 %v7214_v22, %v1276_v61  ;;  %v17314_v34 = vld [vmem:[#allocation5 + $0x1590] sm:$0xf0]  ;;  %v14752_v61 = vld [vmem:[#allocation5 + $0x90] sm:$0xf] }
 0x279   :  { %7440 = vmatpush.bf16.msra.mxu0 %v16289_v46  ;;  %7466 = vmatpush.bf16.msra.mxu2 %v16293_v63  ;;  %v17829_v46 = vor.u32 %v21950_v37, %v17826_v36  ;;  %v15522_v63 = vld [vmem:[#allocation5 + $0x790] sm:$0xf0]  ;;  %v7190_v36 = vpop.f32.mrf.mxu0  ;;  %v17317_v55 = vor.u32 %v21822_v39, %v17314_v34  ;;  %v22175_v34 = vld [vmem:[#allocation5 + $0x1f94] sm:$0xf0] }
 0x27a   :  { %v21182_v13 = vld [vmem:[#allocation5 + $0x94] sm:$0xf]  ;;  %v16554_v36 = vld [vmem:[#allocation5 + $0xf98] sm:$0xf0] }
 0x27b   :  { %7453 = vmatpush.bf16.msra.mxu1 %v18337_v62  ;;  %7479 = vmatpush.bf16.msra.mxu3 %v18341_v6  ;;  %v21374_v62 = vld [vmem:[#allocation5 + $0x694] sm:$0xf]  ;;  %v23578_v6 = vadd.f32 %v7201_v60, %v7189_v57  ;;  %v7203_v52 = vpop.f32.mrf.mxu1 }
 0x27c   :  { %v15525_v9 = vor.u32 %v21374_v62, %v15522_v63  ;;  %v21246_v57 = vld [vmem:[#allocation5 + $0x294] sm:$0xf] }
 0x27d   :  { %7441 = vmatpush.bf16.msra.mxu0 %v16033_v21  ;;  %7467 = vmatpush.bf16.msra.mxu2 %v16037_v25  ;;  %v17312_v21 = vld [vmem:[#allocation5 + $0x1490] sm:$0xf]  ;;  %v15010_v60 = vld [vmem:[#allocation5 + $0x390] sm:$0xf0] }
 0x27e   :  { %v21854_v25 = vld [vmem:[#allocation5 + $0x158c] sm:$0xf0]  ;;  %v17058_v62 = vld [vmem:[#allocation5 + $0x1390] sm:$0xf0] }
 0x27f   :  { %7454 = vmatpush.bf16.msra.mxu1 %v18081_v19  ;;  %7480 = vmatpush.bf16.msra.mxu3 %v18085_v33  ;;  %v17573_v19 = vor.u32 %v21886_v1, %v17570_v5  ;;  %v7227_v33 = vpop.f32.mrf.mxu3  ;;  %v21214_v1 = vld [vmem:[#allocation5 + $0x18c] sm:$0xf0]  ;;  %v7216_v15 = vpop.f32.mrf.mxu2  ;;  %v14754_v22 = vld [vmem:[#allocation5 + $0x190] sm:$0xf0] }
 0x280   :  { %v23580_v37 = vadd.f32 %v7227_v33, %v7215_v31  ;;  %v21663_v31 = vld [vmem:[#allocation5 + $0xf94] sm:$0xf0]  ;;  %v14753_v39 = vor.u32 %v21214_v1, %v14752_v61  ;;  %v21567_v61 = vld [vmem:[#allocation5 + $0xc9c] sm:$0xf] }
 0x281   :  { %7442 = vmatpush.bf16.msra.mxu0 %v15777_v40  ;;  %7468 = vmatpush.bf16.msra.mxu2 %v15781_v49  ;;  %v17313_v40 = vor.u32 %v21854_v25, %v17312_v21  ;;  %v17056_v49 = vld [vmem:[#allocation5 + $0x1290] sm:$0xf]  ;;  %v16802_v25 = vld [vmem:[#allocation5 + $0x1190] sm:$0xf0]  ;;  %v18600_v33 = vld [vmem:[#allocation5 + $0x1e98] sm:$0xf]  ;;  %v16553_v52 = vor.u32 %v21663_v31, %v16552_v27 }
 0x282   :  { %v17057_v5 = vor.u32 %v21790_v58, %v17056_v49  ;;  %v16298_v1 = vld [vmem:[#allocation5 + $0xd98] sm:$0xf0]  ;;  %v16040_v15 = vld [vmem:[#allocation5 + $0xa98] sm:$0xf] }
 0x283   :  { %7455 = vmatpush.bf16.msra.mxu1 %v17825_v48  ;;  %7481 = vmatpush.bf16.msra.mxu3 %v17829_v46  ;;  %v21278_v48 = vld [vmem:[#allocation5 + $0x38c] sm:$0xf0]  ;;  %v21758_v46 = vld [vmem:[#allocation5 + $0x1294] sm:$0xf]  ;;  %v16042_v27 = vld [vmem:[#allocation5 + $0xb98] sm:$0xf0] }
 0x284   :  { %v15009_v63 = vor.u32 %v21278_v48, %v15008_v47  ;;  %v17061_v21 = vor.u32 %v21758_v46, %v17058_v62  ;;  %v22143_v47 = vld [vmem:[#allocation5 + $0x1e9c] sm:$0xf]  ;;  %v18344_v46 = vld [vmem:[#allocation5 + $0x1c98] sm:$0xf] }
 0x285   :  { %7443 = vmatpush.bf16.msra.mxu0 %v15521_v8  ;;  %7469 = vmatpush.bf16.msra.mxu2 %v15525_v9  ;;  %v15013_v8 = vor.u32 %v21246_v57, %v15010_v60  ;;  %v21726_v9 = vld [vmem:[#allocation5 + $0x118c] sm:$0xf0]  ;;  %v18602_v48 = vld [vmem:[#allocation5 + $0x1f98] sm:$0xf0]  ;;  %v16296_v57 = vld [vmem:[#allocation5 + $0xc98] sm:$0xf] }
 0x286   :  { %v21599_v60 = vld [vmem:[#allocation5 + $0xd94] sm:$0xf0]  ;;  %v18605_v62 = vor.u32 %v22143_v47, %v18602_v48  ;;  %v22015_v31 = vld [vmem:[#allocation5 + $0x1a9c] sm:$0xf]  ;;  %v1277_v47 = vperm.slane %v23557_v11, 4 }
 0x287   :  { %7456 = vmatpush.bf16.msra.mxu1 %v17569_v14  ;;  %7482 = vmatpush.bf16.msra.mxu3 %v17573_v19  ;;  %v16800_v14 = vld [vmem:[#allocation5 + $0x1090] sm:$0xf]  ;;  %v21694_v19 = vld [vmem:[#allocation5 + $0x1094] sm:$0xf]  ;;  %v7229_v26 = vpop.f32.mrf.mxu3 }
 0x288   :  { %v16805_v49 = vor.u32 %v21694_v19, %v16802_v25  ;;  %v22047_v25 = vld [vmem:[#allocation5 + $0x1b94] sm:$0xf0]  ;;  %v21503_v26 = vld [vmem:[#allocation5 + $0xa9c] sm:$0xf] }
 0x289   :  { %7444 = vmatpush.bf16.msra.mxu0 %v15265_v35  ;;  %7470 = vmatpush.bf16.msra.mxu2 %v15269_v41  ;;  %v21631_v35 = vld [vmem:[#allocation5 + $0xe9c] sm:$0xf]  ;;  %v14757_v41 = vor.u32 %v21182_v13, %v14754_v22  ;;  %v16301_v13 = vor.u32 %v21567_v61, %v16298_v1  ;;  %v18088_v22 = vld [vmem:[#allocation5 + $0x1a98] sm:$0xf] }
 0x28a   :  { %v16557_v58 = vor.u32 %v21631_v35, %v16554_v36  ;;  %v18089_v35 = vor.u32 %v22047_v25, %v18088_v22  ;;  %v16045_v36 = vor.u32 %v21503_v26, %v16042_v27  ;;  %v21407_v1 = vld [vmem:[#allocation5 + $0x794] sm:$0xf0]  ;;  %v1278_v22 = vperm.slane %v23557_v11, 5  ;;  %v17578_v25 = vld [vmem:[#allocation5 + $0x1798] sm:$0xf0] }
 0x28b   :  { %7457 = vmatpush.bf16.msra.mxu1 %v17313_v40  ;;  %7483 = vmatpush.bf16.msra.mxu3 %v17317_v55  ;;  %v16801_v40 = vor.u32 %v21726_v9, %v16800_v14  ;;  %v18601_v55 = vor.u32 %v22175_v34, %v18600_v33  ;;  %v16297_v14 = vor.u32 %v21599_v60, %v16296_v57  ;;  %v18090_v33 = vld [vmem:[#allocation5 + $0x1b98] sm:$0xf0]  ;;  %v15784_v34 = vld [vmem:[#allocation5 + $0x898] sm:$0xf] }
 0x28c   :  { %v18093_v48 = vor.u32 %v22015_v31, %v18090_v33  ;;  %v17834_v57 = vld [vmem:[#allocation5 + $0x1998] sm:$0xf0] }
 0x28d   :  { %7445 = vmatpush.bf16.msra.mxu0 %v15009_v63  ;;  %7471 = vmatpush.bf16.msra.mxu2 %v15013_v8  ;;  %v22111_v63 = vld [vmem:[#allocation5 + $0x1d94] sm:$0xf0]  ;;  %v18346_v8 = vld [vmem:[#allocation5 + $0x1d98] sm:$0xf0] }
 0x28e   :  { %v18345_v9 = vor.u32 %v22111_v63, %v18344_v46  ;;  %v15528_v46 = vld [vmem:[#allocation5 + $0x698] sm:$0xf] }
 0x28f   :  { %7458 = vmatpush.bf16.msra.mxu1 %v17057_v5  ;;  %7484 = vmatpush.bf16.msra.mxu3 %v17061_v21  ;;  %v22079_v5 = vld [vmem:[#allocation5 + $0x1c9c] sm:$0xf]  ;;  %v21535_v21 = vld [vmem:[#allocation5 + $0xb94] sm:$0xf0]  ;;  %v15529_v27 = vor.u32 %v21407_v1, %v15528_v46 }
 0x290   :  { %v18349_v19 = vor.u32 %v22079_v5, %v18346_v8  ;;  %v17576_v5 = vld [vmem:[#allocation5 + $0x1698] sm:$0xf] }
 0x291   :  { %7446 = vmatpush.bf16.msra.mxu0 %v14753_v39  ;;  %7472 = vmatpush.bf16.msra.mxu2 %v14757_v41  ;;  %v16041_v39 = vor.u32 %v21535_v21, %v16040_v15  ;;  %v17832_v41 = vld [vmem:[#allocation5 + $0x1898] sm:$0xf]  ;;  %v21375_v15 = vld [vmem:[#allocation5 + $0x69c] sm:$0xf] }
 0x292   :  { %v21919_v8 = vld [vmem:[#allocation5 + $0x1794] sm:$0xf0]  ;;  %v15530_v21 = vld [vmem:[#allocation5 + $0x798] sm:$0xf0] }
 0x293   :  { %7459 = vmatpush.bf16.msra.mxu1 %v16801_v40  ;;  %7485 = vmatpush.bf16.msra.mxu3 %v16805_v49  ;;  %v21471_v40 = vld [vmem:[#allocation5 + $0x994] sm:$0xf0]  ;;  %v17577_v31 = vor.u32 %v21919_v8, %v17576_v5  ;;  %v15533_v33 = vor.u32 %v21375_v15, %v15530_v21  ;;  %v15018_v15 = vld [vmem:[#allocation5 + $0x398] sm:$0xf0] }
 0x294   :  { %7473 = vmatmul.bf16.vlgmr.msra.gmra.mxu2 %v23570_v10  ;;  %7447 = vmatmul.bf16.vlgmr.msra.gmra.mxu0 %v23570_v10  ;;  %v21983_v49 = vld [vmem:[#allocation5 + $0x1994] sm:$0xf0]  ;;  %v15785_v60 = vor.u32 %v21471_v40, %v15784_v34  ;;  %v21759_v21 = vld [vmem:[#allocation5 + $0x129c] sm:$0xf] }
 0x295   :  { %7491 = vmatpush.bf16.msrb.mxu0 %v16553_v52  ;;  %7517 = vmatpush.bf16.msrb.mxu2 %v16557_v58  ;;  %v21439_v52 = vld [vmem:[#allocation5 + $0x89c] sm:$0xf]  ;;  %v17833_v63 = vor.u32 %v21983_v49, %v17832_v41  ;;  %v21343_v34 = vld [vmem:[#allocation5 + $0x594] sm:$0xf0] }
 0x296   :  { %7486 = vmatmul.bf16.vlgmr.msra.gmra.mxu3 %v23560_v16  ;;  %7460 = vmatmul.bf16.vlgmr.msra.gmra.mxu1 %v23560_v16  ;;  %v21951_v58 = vld [vmem:[#allocation5 + $0x189c] sm:$0xf]  ;;  %v21855_v41 = vld [vmem:[#allocation5 + $0x1594] sm:$0xf0] }
 0x297   :  { %7504 = vmatpush.bf16.msrb.mxu1 %v18601_v55  ;;  %7530 = vmatpush.bf16.msrb.mxu3 %v18605_v62  ;;  %v15786_v55 = vld [vmem:[#allocation5 + $0x998] sm:$0xf0]  ;;  %v7240_v62 = vpop.f32.mrf.mxu0  ;;  %v21279_v1 = vld [vmem:[#allocation5 + $0x394] sm:$0xf0] }
 0x298   :  { %v15789_v61 = vor.u32 %v21439_v52, %v15786_v55  ;;  %v21823_v55 = vld [vmem:[#allocation5 + $0x149c] sm:$0xf]  ;;  %v17064_v5 = vld [vmem:[#allocation5 + $0x1298] sm:$0xf] }
 0x299   :  { %7492 = vmatpush.bf16.msrb.mxu0 %v16297_v14  ;;  %7518 = vmatpush.bf16.msrb.mxu2 %v16301_v13  ;;  %v7241_v14 = vadd.f32 %v7240_v62, %v1277_v47  ;;  %v17837_v13 = vor.u32 %v21951_v58, %v17834_v57  ;;  %v21311_v47 = vld [vmem:[#allocation5 + $0x49c] sm:$0xf]  ;;  %v7279_v52 = vpop.f32.mrf.mxu3 }
 0x29a   :  { %v17322_v58 = vld [vmem:[#allocation5 + $0x1598] sm:$0xf0] }
 0x29b   :  { %7505 = vmatpush.bf16.msrb.mxu1 %v18345_v9  ;;  %7531 = vmatpush.bf16.msrb.mxu3 %v18349_v19  ;;  %v7253_v9 = vpop.f32.mrf.mxu1  ;;  %v21887_v19 = vld [vmem:[#allocation5 + $0x169c] sm:$0xf] }
 0x29c   :  { %v23588_v26 = vadd.f32 %v7253_v9, %v7241_v14  ;;  %v17581_v40 = vor.u32 %v21887_v19, %v17578_v25  ;;  %v17325_v14 = vor.u32 %v21823_v55, %v17322_v58  ;;  %v21791_v9 = vld [vmem:[#allocation5 + $0x1394] sm:$0xf0]  ;;  %v21664_v55 = vld [vmem:[#allocation5 + $0xf9c] sm:$0xf0] }
 0x29d   :  { %7493 = vmatpush.bf16.msrb.mxu0 %v16041_v39  ;;  %7519 = vmatpush.bf16.msrb.mxu2 %v16045_v36  ;;  %v15272_v39 = vld [vmem:[#allocation5 + $0x498] sm:$0xf]  ;;  %v7266_v36 = vpop.f32.mrf.mxu2  ;;  %v18608_v58 = vld [vmem:[#allocation5 + $0x1ea0] sm:$0xf] }
 0x29e   :  { %v7267_v49 = vadd.f32 %v7266_v36, %v1278_v22  ;;  %v15273_v57 = vor.u32 %v21343_v34, %v15272_v39  ;;  %v17066_v22 = vld [vmem:[#allocation5 + $0x1398] sm:$0xf0]  ;;  %v14760_v25 = vld [vmem:[#allocation5 + $0x98] sm:$0xf] }
 0x29f   :  { %7506 = vmatpush.bf16.msrb.mxu1 %v18089_v35  ;;  %7532 = vmatpush.bf16.msrb.mxu3 %v18093_v48  ;;  %v17320_v35 = vld [vmem:[#allocation5 + $0x1498] sm:$0xf]  ;;  %v15274_v48 = vld [vmem:[#allocation5 + $0x598] sm:$0xf0]  ;;  %v7242_v46 = vpop.f32.mrf.mxu0 }
 0x2a0   :  { %v17321_v62 = vor.u32 %v21855_v41, %v17320_v35  ;;  %v16808_v39 = vld [vmem:[#allocation5 + $0x1098] sm:$0xf]  ;;  %v21183_v35 = vld [vmem:[#allocation5 + $0x9c] sm:$0xf]  ;;  %v22176_v46 = vld [vmem:[#allocation5 + $0x1f9c] sm:$0xf0] }
 0x2a1   :  { %7494 = vmatpush.bf16.msrb.mxu0 %v15785_v60  ;;  %7520 = vmatpush.bf16.msrb.mxu2 %v15789_v61  ;;  %v23590_v60 = vadd.f32 %v7279_v52, %v7267_v49  ;;  %v15016_v61 = vld [vmem:[#allocation5 + $0x298] sm:$0xf]  ;;  %v14762_v41 = vld [vmem:[#allocation5 + $0x198] sm:$0xf0]  ;;  %v7281_v49 = vpop.f32.mrf.mxu3  ;;  %v16560_v52 = vld [vmem:[#allocation5 + $0xea0] sm:$0xf] }
 0x2a2   :  { %v15017_v19 = vor.u32 %v21279_v1, %v15016_v61  ;;  %v21727_v34 = vld [vmem:[#allocation5 + $0x1194] sm:$0xf0]  ;;  %v14765_v1 = vor.u32 %v21183_v35, %v14762_v41  ;;  %v16306_v49 = vld [vmem:[#allocation5 + $0xda0] sm:$0xf0]  ;;  %v21536_v41 = vld [vmem:[#allocation5 + $0xb9c] sm:$0xf0] }
 0x2a3   :  { %7507 = vmatpush.bf16.msrb.mxu1 %v17833_v63  ;;  %7533 = vmatpush.bf16.msrb.mxu3 %v17837_v13  ;;  %v15277_v63 = vor.u32 %v21311_v47, %v15274_v48  ;;  %v7255_v8 = vpop.f32.mrf.mxu1  ;;  %v21247_v13 = vld [vmem:[#allocation5 + $0x29c] sm:$0xf]  ;;  %v16809_v61 = vor.u32 %v21727_v34, %v16808_v39 }
 0x2a4   :  { %v21695_v47 = vld [vmem:[#allocation5 + $0x109c] sm:$0xf]  ;;  %v18610_v8 = vld [vmem:[#allocation5 + $0x1fa0] sm:$0xf0] }
 0x2a5   :  { %7495 = vmatpush.bf16.msrb.mxu0 %v15529_v27  ;;  %7521 = vmatpush.bf16.msrb.mxu2 %v15533_v33  ;;  %v21215_v27 = vld [vmem:[#allocation5 + $0x194] sm:$0xf0]  ;;  %v15021_v33 = vor.u32 %v21247_v13, %v15018_v15  ;;  %v7268_v36 = vpop.f32.mrf.mxu2  ;;  %v16810_v48 = vld [vmem:[#allocation5 + $0x1198] sm:$0xf0]  ;;  %v18609_v13 = vor.u32 %v22176_v46, %v18608_v58  ;;  %v16050_v58 = vld [vmem:[#allocation5 + $0xba0] sm:$0xf0] }
 0x2a6   :  { %v18352_v36 = vld [vmem:[#allocation5 + $0x1ca0] sm:$0xf]  ;;  %v18098_v46 = vld [vmem:[#allocation5 + $0x1ba0] sm:$0xf0] }
 0x2a7   :  { %7508 = vmatpush.bf16.msrb.mxu1 %v17577_v31  ;;  %7534 = vmatpush.bf16.msrb.mxu3 %v17581_v40  ;;  %v17065_v31 = vor.u32 %v21791_v9, %v17064_v5  ;;  %v17069_v40 = vor.u32 %v21759_v21, %v17066_v22  ;;  %v22144_v5 = vld [vmem:[#allocation5 + $0x1ea4] sm:$0xf]  ;;  %v16561_v9 = vor.u32 %v21664_v55, %v16560_v52  ;;  %v16304_v21 = vld [vmem:[#allocation5 + $0xca0] sm:$0xf] }
 0x2a8   :  { %v21600_v22 = vld [vmem:[#allocation5 + $0xd9c] sm:$0xf0]  ;;  %v21504_v55 = vld [vmem:[#allocation5 + $0xaa4] sm:$0xf] }
 0x2a9   :  { %7496 = vmatpush.bf16.msrb.mxu0 %v15273_v57  ;;  %7522 = vmatpush.bf16.msrb.mxu2 %v15277_v63  ;;  %v14761_v57 = vor.u32 %v21215_v27, %v14760_v25  ;;  %v16562_v63 = vld [vmem:[#allocation5 + $0xfa0] sm:$0xf0]  ;;  %v22112_v25 = vld [vmem:[#allocation5 + $0x1d9c] sm:$0xf0]  ;;  %v16305_v39 = vor.u32 %v21600_v22, %v16304_v21 }
 0x2aa   :  { %v21568_v27 = vld [vmem:[#allocation5 + $0xca4] sm:$0xf]  ;;  %v18353_v34 = vor.u32 %v22112_v25, %v18352_v36  ;;  %v22048_v52 = vld [vmem:[#allocation5 + $0x1b9c] sm:$0xf0] }
 0x2ab   :  { %7509 = vmatpush.bf16.msrb.mxu1 %v17321_v62  ;;  %7535 = vmatpush.bf16.msrb.mxu3 %v17325_v14  ;;  %v21632_v62 = vld [vmem:[#allocation5 + $0xea4] sm:$0xf]  ;;  %v16813_v14 = vor.u32 %v21695_v47, %v16810_v48  ;;  %v16309_v35 = vor.u32 %v21568_v27, %v16306_v49  ;;  %v18096_v47 = vld [vmem:[#allocation5 + $0x1aa0] sm:$0xf] }
 0x2ac   :  { %v16565_v15 = vor.u32 %v21632_v62, %v16562_v63  ;;  %v15792_v63 = vld [vmem:[#allocation5 + $0x8a0] sm:$0xf]  ;;  %v15794_v21 = vld [vmem:[#allocation5 + $0x9a0] sm:$0xf0] }
 0x2ad   :  { %7497 = vmatpush.bf16.msrb.mxu0 %v15017_v19  ;;  %7523 = vmatpush.bf16.msrb.mxu2 %v15021_v33  ;;  %v18613_v19 = vor.u32 %v22144_v5, %v18610_v8  ;;  %v18354_v33 = vld [vmem:[#allocation5 + $0x1da0] sm:$0xf0]  ;;  %v21472_v5 = vld [vmem:[#allocation5 + $0x99c] sm:$0xf0] }
 0x2ae   :  { %v17840_v8 = vld [vmem:[#allocation5 + $0x18a0] sm:$0xf]  ;;  %v21952_v22 = vld [vmem:[#allocation5 + $0x18a4] sm:$0xf] }
 0x2af   :  { %7510 = vmatpush.bf16.msrb.mxu1 %v17065_v31  ;;  %7536 = vmatpush.bf16.msrb.mxu3 %v17069_v40  ;;  %v22080_v31 = vld [vmem:[#allocation5 + $0x1ca4] sm:$0xf]  ;;  %v16048_v40 = vld [vmem:[#allocation5 + $0xaa0] sm:$0xf] }
 0x2b0   :  { %v18357_v48 = vor.u32 %v22080_v31, %v18354_v33  ;;  %v16049_v62 = vor.u32 %v21536_v41, %v16048_v40  ;;  %v17842_v36 = vld [vmem:[#allocation5 + $0x19a0] sm:$0xf0]  ;;  %v15536_v25 = vld [vmem:[#allocation5 + $0x6a0] sm:$0xf] }
 0x2b1   :  { %7498 = vmatpush.bf16.msrb.mxu0 %v14761_v57  ;;  %7524 = vmatpush.bf16.msrb.mxu2 %v14765_v1  ;;  %v22016_v57 = vld [vmem:[#allocation5 + $0x1aa4] sm:$0xf]  ;;  %v16053_v1 = vor.u32 %v21504_v55, %v16050_v58  ;;  %v7292_v27 = vpop.f32.mrf.mxu0  ;;  %v21408_v31 = vld [vmem:[#allocation5 + $0x79c] sm:$0xf0]  ;;  %v17845_v40 = vor.u32 %v21952_v22, %v17842_v36 }
 0x2b2   :  { %v17584_v33 = vld [vmem:[#allocation5 + $0x16a0] sm:$0xf]  ;;  %v21376_v41 = vld [vmem:[#allocation5 + $0x6a4] sm:$0xf] }
 0x2b3   :  { %7511 = vmatpush.bf16.msrb.mxu1 %v16809_v61  ;;  %7537 = vmatpush.bf16.msrb.mxu3 %v16813_v14  ;;  %v18097_v61 = vor.u32 %v22048_v52, %v18096_v47  ;;  %v1279_v14 = vperm.slane %v23557_v11, 6  ;;  %v15538_v47 = vld [vmem:[#allocation5 + $0x7a0] sm:$0xf0] }
 0x2b4   :  { %7525 = vmatmul.bf16.vlgmr.msrb.gmra.mxu2 %v23570_v10  ;;  %7499 = vmatmul.bf16.vlgmr.msrb.gmra.mxu0 %v23570_v10  ;;  %v21888_v52 = vld [vmem:[#allocation5 + $0x16a4] sm:$0xf] }
 0x2b5   :  { %7543 = vmatpush.bf16.msra.mxu0 %v16561_v9  ;;  %7569 = vmatpush.bf16.msra.mxu2 %v16565_v15  ;;  %v18101_v9 = vor.u32 %v22016_v57, %v18098_v46  ;;  %v21440_v15 = vld [vmem:[#allocation5 + $0x8a4] sm:$0xf]  ;;  %v15537_v57 = vor.u32 %v21408_v31, %v15536_v25  ;;  %v21280_v31 = vld [vmem:[#allocation5 + $0x39c] sm:$0xf0] }
 0x2b6   :  { %7538 = vmatmul.bf16.vlgmr.msrb.gmra.mxu3 %v23560_v16  ;;  %7512 = vmatmul.bf16.vlgmr.msrb.gmra.mxu1 %v23560_v16  ;;  %v15797_v49 = vor.u32 %v21440_v15, %v15794_v21  ;;  %v17586_v55 = vld [vmem:[#allocation5 + $0x17a0] sm:$0xf0] }
 0x2b7   :  { %7556 = vmatpush.bf16.msra.mxu1 %v18609_v13  ;;  %7582 = vmatpush.bf16.msra.mxu3 %v18613_v19  ;;  %v21984_v13 = vld [vmem:[#allocation5 + $0x199c] sm:$0xf0]  ;;  %v15793_v19 = vor.u32 %v21472_v5, %v15792_v63  ;;  %v7318_v5 = vpop.f32.mrf.mxu2  ;;  %v21824_v21 = vld [vmem:[#allocation5 + $0x14a4] sm:$0xf] }
 0x2b8   :  { %v17841_v16 = vor.u32 %v21984_v13, %v17840_v8  ;;  %v15280_v63 = vld [vmem:[#allocation5 + $0x4a0] sm:$0xf]  ;;  %v17589_v8 = vor.u32 %v21888_v52, %v17586_v55  ;;  %v15282_v13 = vld [vmem:[#allocation5 + $0x5a0] sm:$0xf0] }
 0x2b9   :  { %7544 = vmatpush.bf16.msra.mxu0 %v16305_v39  ;;  %7570 = vmatpush.bf16.msra.mxu2 %v16309_v35  ;;  %v21920_v39 = vld [vmem:[#allocation5 + $0x179c] sm:$0xf0]  ;;  %v7305_v35 = vpop.f32.mrf.mxu1  ;;  %v7331_v15 = vpop.f32.mrf.mxu3  ;;  %v17330_v22 = vld [vmem:[#allocation5 + $0x15a0] sm:$0xf0] }
 0x2ba   :  { %v17585_v46 = vor.u32 %v21920_v39, %v17584_v33  ;;  %v7294_v25 = vpop.f32.mrf.mxu0  ;;  %v17072_v33 = vld [vmem:[#allocation5 + $0x12a0] sm:$0xf] }
 0x2bb   :  { %7557 = vmatpush.bf16.msra.mxu1 %v18353_v34  ;;  %7583 = vmatpush.bf16.msra.mxu3 %v18357_v48  ;;  %v7293_v34 = vadd.f32 %v7292_v27, %v1279_v14  ;;  %v1280_v48 = vperm.slane %v23557_v11, 7  ;;  %v21856_v14 = vld [vmem:[#allocation5 + $0x159c] sm:$0xf0]  ;;  %v22177_v25 = vld [vmem:[#allocation5 + $0x1fa4] sm:$0xf0] }
 0x2bc   :  { %v14768_v55 = vld [vmem:[#allocation5 + $0xa0] sm:$0xf] }
 0x2bd   :  { %7545 = vmatpush.bf16.msra.mxu0 %v16049_v62  ;;  %7571 = vmatpush.bf16.msra.mxu2 %v16053_v1  ;;  %v23598_v58 = vadd.f32 %v7305_v35, %v7293_v34  ;;  %v15541_v62 = vor.u32 %v21376_v41, %v15538_v47  ;;  %v17328_v1 = vld [vmem:[#allocation5 + $0x14a0] sm:$0xf]  ;;  %v7319_v11 = vadd.f32 %v7318_v5, %v1280_v48  ;;  %v15026_v41 = vld [vmem:[#allocation5 + $0x3a0] sm:$0xf0] }
 0x2be   :  { %v17329_v27 = vor.u32 %v21856_v14, %v17328_v1  ;;  %v17333_v34 = vor.u32 %v21824_v21, %v17330_v22  ;;  %v21792_v35 = vld [vmem:[#allocation5 + $0x139c] sm:$0xf0]  ;;  %v21760_v47 = vld [vmem:[#allocation5 + $0x12a4] sm:$0xf]  ;;  %v21665_v21 = vld [vmem:[#allocation5 + $0xfa4] sm:$0xf0] }
 0x2bf   :  { %7558 = vmatpush.bf16.msra.mxu1 %v18097_v61  ;;  %7584 = vmatpush.bf16.msra.mxu3 %v18101_v9  ;;  %25603 = vst [vmem:[#allocation28_spill] sm:$0xff] %v23598_v58  ;;  %v21344_v61 = vld [vmem:[#allocation5 + $0x59c] sm:$0xf0]  ;;  %v21312_v9 = vld [vmem:[#allocation5 + $0x4a4] sm:$0xf]  ;;  %v7320_v5 = vpop.f32.mrf.mxu2 }
 0x2c0   :  { %v15281_v36 = vor.u32 %v21344_v61, %v15280_v63  ;;  %v17074_v48 = vld [vmem:[#allocation5 + $0x13a0] sm:$0xf0]  ;;  %v16816_v63 = vld [vmem:[#allocation5 + $0x10a0] sm:$0xf]  ;;  %v18616_v22 = vld [vmem:[#allocation5 + $0x1ea8] sm:$0xf] }
 0x2c1   :  { %7546 = vmatpush.bf16.msra.mxu0 %v15793_v19  ;;  %7572 = vmatpush.bf16.msra.mxu2 %v15797_v49  ;;  %v23600_v19 = vadd.f32 %v7331_v15, %v7319_v11  ;;  %v15024_v49 = vld [vmem:[#allocation5 + $0x2a0] sm:$0xf]  ;;  %v7307_v39 = vpop.f32.mrf.mxu1  ;;  %v21184_v1 = vld [vmem:[#allocation5 + $0xa4] sm:$0xf]  ;;  %v7333_v11 = vpop.f32.mrf.mxu3  ;;  %v16568_v15 = vld [vmem:[#allocation5 + $0xea8] sm:$0xf] }
 0x2c2   :  { %v15025_v52 = vor.u32 %v21280_v31, %v15024_v49  ;;  %v21728_v61 = vld [vmem:[#allocation5 + $0x119c] sm:$0xf0]  ;;  %v14770_v14 = vld [vmem:[#allocation5 + $0x1a0] sm:$0xf0]  ;;  %v18618_v39 = vld [vmem:[#allocation5 + $0x1fa8] sm:$0xf0] }
 0x2c3   :  { %7559 = vmatpush.bf16.msra.mxu1 %v17841_v16  ;;  %7585 = vmatpush.bf16.msra.mxu3 %v17845_v40  ;;  %25604 = vst [vmem:[#allocation29_spill] sm:$0xff] %v23600_v19  ;;  %v15285_v16 = vor.u32 %v21312_v9, %v15282_v13  ;;  %v21248_v40 = vld [vmem:[#allocation5 + $0x2a4] sm:$0xf]  ;;  %v16817_v49 = vor.u32 %v21728_v61, %v16816_v63  ;;  %v18360_v5 = vld [vmem:[#allocation5 + $0x1ca8] sm:$0xf] }
 0x2c4   :  { %v21696_v9 = vld [vmem:[#allocation5 + $0x10a4] sm:$0xf]  ;;  %v14773_v31 = vor.u32 %v21184_v1, %v14770_v14  ;;  %v16314_v11 = vld [vmem:[#allocation5 + $0xda8] sm:$0xf0]  ;;  %v16056_v61 = vld [vmem:[#allocation5 + $0xaa8] sm:$0xf] }
 0x2c5   :  { %7547 = vmatpush.bf16.msra.mxu0 %v15537_v57  ;;  %7573 = vmatpush.bf16.msra.mxu2 %v15541_v62  ;;  %v21216_v57 = vld [vmem:[#allocation5 + $0x19c] sm:$0xf0]  ;;  %v15029_v62 = vor.u32 %v21248_v40, %v15026_v41  ;;  %v16818_v13 = vld [vmem:[#allocation5 + $0x11a0] sm:$0xf0]  ;;  %v18617_v40 = vor.u32 %v22177_v25, %v18616_v22  ;;  %v21537_v14 = vld [vmem:[#allocation5 + $0xba4] sm:$0xf0] }
 0x2c6   :  { %v16058_v22 = vld [vmem:[#allocation5 + $0xba8] sm:$0xf0]  ;;  %v16322_v19 = vld [vmem:[#allocation5 + $0xdb0] sm:$0xf0]  ;;  %v16330_v58 = vld [vmem:[#allocation5 + $0xdb8] sm:$0xf0] }
 0x2c7   :  { %7560 = vmatpush.bf16.msra.mxu1 %v17585_v46  ;;  %7586 = vmatpush.bf16.msra.mxu3 %v17589_v8  ;;  %v17073_v46 = vor.u32 %v21792_v35, %v17072_v33  ;;  %v17077_v8 = vor.u32 %v21760_v47, %v17074_v48  ;;  %v22145_v33 = vld [vmem:[#allocation5 + $0x1eac] sm:$0xf]  ;;  %v16569_v35 = vor.u32 %v21665_v21, %v16568_v15  ;;  %v16312_v47 = vld [vmem:[#allocation5 + $0xca8] sm:$0xf] }
 0x2c8   :  { %v21601_v48 = vld [vmem:[#allocation5 + $0xda4] sm:$0xf0]  ;;  %v21505_v21 = vld [vmem:[#allocation5 + $0xaac] sm:$0xf] }
 0x2c9   :  { %7548 = vmatpush.bf16.msra.mxu0 %v15281_v36  ;;  %7574 = vmatpush.bf16.msra.mxu2 %v15285_v16  ;;  %v14769_v36 = vor.u32 %v21216_v57, %v14768_v55  ;;  %v16570_v16 = vld [vmem:[#allocation5 + $0xfa8] sm:$0xf0]  ;;  %v22113_v55 = vld [vmem:[#allocation5 + $0x1da4] sm:$0xf0]  ;;  %v16313_v63 = vor.u32 %v21601_v48, %v16312_v47 }
 0x2ca   :  { %v21569_v57 = vld [vmem:[#allocation5 + $0xcac] sm:$0xf]  ;;  %v18361_v1 = vor.u32 %v22113_v55, %v18360_v5 }
 0x2cb   :  { %7561 = vmatpush.bf16.msra.mxu1 %v17329_v27  ;;  %7587 = vmatpush.bf16.msra.mxu3 %v17333_v34  ;;  %v21633_v27 = vld [vmem:[#allocation5 + $0xeac] sm:$0xf]  ;;  %v16821_v34 = vor.u32 %v21696_v9, %v16818_v13  ;;  %v18104_v9 = vld [vmem:[#allocation5 + $0x1aa8] sm:$0xf] }
 0x2cc   :  { %v16573_v41 = vor.u32 %v21633_v27, %v16570_v16  ;;  %v22049_v13 = vld [vmem:[#allocation5 + $0x1ba4] sm:$0xf0]  ;;  %v22017_v25 = vld [vmem:[#allocation5 + $0x1aac] sm:$0xf]  ;;  %v23606_v16 = vld [vmem:[#allocation1 + $0x9] sm:$0xff] }
 0x2cd   :  { %7549 = vmatpush.bf16.msra.mxu0 %v15025_v52  ;;  %7575 = vmatpush.bf16.msra.mxu2 %v15029_v62  ;;  %v18621_v52 = vor.u32 %v22145_v33, %v18618_v39  ;;  %v18362_v62 = vld [vmem:[#allocation5 + $0x1da8] sm:$0xf0]  ;;  %v18105_v33 = vor.u32 %v22049_v13, %v18104_v9  ;;  %v16061_v39 = vor.u32 %v21505_v21, %v16058_v22 }
 0x2ce   :  { %v18106_v27 = vld [vmem:[#allocation5 + $0x1ba8] sm:$0xf0] }
 0x2cf   :  { %7562 = vmatpush.bf16.msra.mxu1 %v17073_v46  ;;  %7588 = vmatpush.bf16.msra.mxu3 %v17077_v8  ;;  %v22081_v46 = vld [vmem:[#allocation5 + $0x1cac] sm:$0xf]  ;;  %v16317_v8 = vor.u32 %v21569_v57, %v16314_v11  ;;  %v15544_v57 = vld [vmem:[#allocation5 + $0x6a8] sm:$0xf] }
 0x2d0   :  { %v18365_v15 = vor.u32 %v22081_v46, %v18362_v62  ;;  %v21441_v47 = vld [vmem:[#allocation5 + $0x8ac] sm:$0xf] }
 0x2d1   :  { %7550 = vmatpush.bf16.msra.mxu0 %v14769_v36  ;;  %7576 = vmatpush.bf16.msra.mxu2 %v14773_v31  ;;  %v23603_v36 = vld [vmem:[#allocation7 + $0x20] sm:$0xff]  ;;  %v15800_v31 = vld [vmem:[#allocation5 + $0x8a8] sm:$0xf]  ;;  %v15802_v48 = vld [vmem:[#allocation5 + $0x9a8] sm:$0xf0]  ;;  %v7344_v11 = vpop.f32.mrf.mxu0 }
 0x2d2   :  { %v21953_v5 = vld [vmem:[#allocation5 + $0x18ac] sm:$0xf]  ;;  %v15805_v62 = vor.u32 %v21441_v47, %v15802_v48  ;;  %v1282_v21 = vperm.slane %v23603_v36, 1 }
 0x2d3   :  { %7563 = vmatpush.bf16.msra.mxu1 %v16817_v49  ;;  %7589 = vmatpush.bf16.msra.mxu3 %v16821_v34  ;;  %v16057_v49 = vor.u32 %v21537_v14, %v16056_v61  ;;  %v21473_v34 = vld [vmem:[#allocation5 + $0x9a4] sm:$0xf0]  ;;  %v7357_v14 = vpop.f32.mrf.mxu1  ;;  %v21377_v13 = vld [vmem:[#allocation5 + $0x6ac] sm:$0xf] }
 0x2d4   :  { %7577 = vmatmul.bf16.vlgmr.msra.gmra.mxu2 %v23570_v10  ;;  %7551 = vmatmul.bf16.vlgmr.msra.gmra.mxu0 %v23570_v10  ;;  %v21985_v10 = vld [vmem:[#allocation5 + $0x19a4] sm:$0xf0]  ;;  %v15801_v55 = vor.u32 %v21473_v34, %v15800_v31  ;;  %v21889_v22 = vld [vmem:[#allocation5 + $0x16ac] sm:$0xf] }
 0x2d5   :  { %7595 = vmatpush.bf16.msrb.mxu0 %v16569_v35  ;;  %7621 = vmatpush.bf16.msrb.mxu2 %v16573_v41  ;;  %v17848_v35 = vld [vmem:[#allocation5 + $0x18a8] sm:$0xf]  ;;  %v18109_v41 = vor.u32 %v22017_v25, %v18106_v27  ;;  %v17594_v25 = vld [vmem:[#allocation5 + $0x17a8] sm:$0xf0] }
 0x2d6   :  { %7590 = vmatmul.bf16.vlgmr.msra.gmra.mxu3 %v23606_v16  ;;  %7564 = vmatmul.bf16.vlgmr.msra.gmra.mxu1 %v23606_v16  ;;  %v17849_v46 = vor.u32 %v21985_v10, %v17848_v35  ;;  %v17592_v61 = vld [vmem:[#allocation5 + $0x16a8] sm:$0xf]  ;;  %v21313_v47 = vld [vmem:[#allocation5 + $0x4ac] sm:$0xf] }
 0x2d7   :  { %7608 = vmatpush.bf16.msrb.mxu1 %v18617_v40  ;;  %7634 = vmatpush.bf16.msrb.mxu3 %v18621_v52  ;;  %v1281_v40 = vperm.slane %v23603_v36, 0  ;;  %v17850_v52 = vld [vmem:[#allocation5 + $0x19a8] sm:$0xf0]  ;;  %v21345_v34 = vld [vmem:[#allocation5 + $0x5a4] sm:$0xf0] }
 0x2d8   :  { %v17853_v9 = vor.u32 %v21953_v5, %v17850_v52  ;;  %v17336_v35 = vld [vmem:[#allocation5 + $0x14a8] sm:$0xf]  ;;  %v15290_v48 = vld [vmem:[#allocation5 + $0x5a8] sm:$0xf0] }
 0x2d9   :  { %7596 = vmatpush.bf16.msrb.mxu0 %v16313_v63  ;;  %7622 = vmatpush.bf16.msrb.mxu2 %v16317_v8  ;;  %v21409_v63 = vld [vmem:[#allocation5 + $0x7a4] sm:$0xf0]  ;;  %v7345_v8 = vadd.f32 %v7344_v11, %v1281_v40  ;;  %v7370_v40 = vpop.f32.mrf.mxu2  ;;  %v7383_v52 = vpop.f32.mrf.mxu3  ;;  %v21825_v11 = vld [vmem:[#allocation5 + $0x14ac] sm:$0xf] }
 0x2da   :  { %v21857_v10 = vld [vmem:[#allocation5 + $0x15a4] sm:$0xf0]  ;;  %v7371_v5 = vadd.f32 %v7370_v40, %v1282_v21  ;;  %v21249_v21 = vld [vmem:[#allocation5 + $0x2ac] sm:$0xf] }
 0x2db   :  { %7609 = vmatpush.bf16.msrb.mxu1 %v18361_v1  ;;  %7635 = vmatpush.bf16.msrb.mxu3 %v18365_v15  ;;  %v21921_v1 = vld [vmem:[#allocation5 + $0x17a4] sm:$0xf0]  ;;  %v15546_v15 = vld [vmem:[#allocation5 + $0x7a8] sm:$0xf0]  ;;  %v23612_v27 = vadd.f32 %v7357_v14, %v7345_v8 }
 0x2dc   :  { %v17593_v31 = vor.u32 %v21921_v1, %v17592_v61  ;;  %v17338_v8 = vld [vmem:[#allocation5 + $0x15a8] sm:$0xf0]  ;;  %v15032_v61 = vld [vmem:[#allocation5 + $0x2a8] sm:$0xf] }
 0x2dd   :  { %7597 = vmatpush.bf16.msrb.mxu0 %v16057_v49  ;;  %7623 = vmatpush.bf16.msrb.mxu2 %v16061_v39  ;;  %25605 = vst [vmem:[#allocation30_spill] sm:$0xff] %v23612_v27  ;;  %v15545_v49 = vor.u32 %v21409_v63, %v15544_v57  ;;  %v15288_v39 = vld [vmem:[#allocation5 + $0x4a8] sm:$0xf]  ;;  %v23614_v57 = vadd.f32 %v7383_v52, %v7371_v5  ;;  %v17082_v40 = vld [vmem:[#allocation5 + $0x13a8] sm:$0xf0] }
 0x2de   :  { %v15293_v63 = vor.u32 %v21313_v47, %v15290_v48  ;;  %v21281_v1 = vld [vmem:[#allocation5 + $0x3a4] sm:$0xf0]  ;;  %v21185_v47 = vld [vmem:[#allocation5 + $0xac] sm:$0xf]  ;;  %v18368_v27 = vld [vmem:[#allocation5 + $0x1cb0] sm:$0xf] }
 0x2df   :  { %7610 = vmatpush.bf16.msrb.mxu1 %v18105_v33  ;;  %7636 = vmatpush.bf16.msrb.mxu3 %v18109_v41  ;;  %v15549_v33 = vor.u32 %v21377_v13, %v15546_v15  ;;  %v17597_v41 = vor.u32 %v21889_v22, %v17594_v25  ;;  %25606 = vst [vmem:[#allocation31_spill] sm:$0xff] %v23614_v57  ;;  %v17080_v14 = vld [vmem:[#allocation5 + $0x12a8] sm:$0xf]  ;;  %v15034_v22 = vld [vmem:[#allocation5 + $0x3a8] sm:$0xf0] }
 0x2e0   :  { %v17341_v13 = vor.u32 %v21825_v11, %v17338_v8  ;;  %v21793_v15 = vld [vmem:[#allocation5 + $0x13a4] sm:$0xf0]  ;;  %v21761_v25 = vld [vmem:[#allocation5 + $0x12ac] sm:$0xf]  ;;  %v21602_v57 = vld [vmem:[#allocation5 + $0xdac] sm:$0xf0] }
 0x2e1   :  { %7598 = vmatpush.bf16.msrb.mxu0 %v15801_v55  ;;  %7624 = vmatpush.bf16.msrb.mxu2 %v15805_v62  ;;  %v15289_v55 = vor.u32 %v21345_v34, %v15288_v39  ;;  %v17337_v62 = vor.u32 %v21857_v10, %v17336_v35  ;;  %v14776_v39 = vld [vmem:[#allocation5 + $0xa8] sm:$0xf]  ;;  %v7372_v48 = vpop.f32.mrf.mxu2  ;;  %v14778_v5 = vld [vmem:[#allocation5 + $0x1a8] sm:$0xf0]  ;;  %v7385_v8 = vpop.f32.mrf.mxu3 }
 0x2e2   :  { %v21217_v34 = vld [vmem:[#allocation5 + $0x1a4] sm:$0xf0]  ;;  %v21697_v52 = vld [vmem:[#allocation5 + $0x10ac] sm:$0xf]  ;;  %v16320_v8 = vld [vmem:[#allocation5 + $0xcb0] sm:$0xf] }
 0x2e3   :  { %7611 = vmatpush.bf16.msrb.mxu1 %v17849_v46  ;;  %7637 = vmatpush.bf16.msrb.mxu3 %v17853_v9  ;;  %v7346_v46 = vpop.f32.mrf.mxu0  ;;  %v7359_v9 = vpop.f32.mrf.mxu1  ;;  %v16824_v35 = vld [vmem:[#allocation5 + $0x10a8] sm:$0xf]  ;;  %v16826_v11 = vld [vmem:[#allocation5 + $0x11a8] sm:$0xf0] }
 0x2e4   :  { %v21729_v10 = vld [vmem:[#allocation5 + $0x11a4] sm:$0xf0]  ;;  %v16576_v46 = vld [vmem:[#allocation5 + $0xeb0] sm:$0xf] }
 0x2e5   :  { %7599 = vmatpush.bf16.msrb.mxu0 %v15545_v49  ;;  %7625 = vmatpush.bf16.msrb.mxu2 %v15549_v33  ;;  %v15033_v49 = vor.u32 %v21281_v1, %v15032_v61  ;;  %v15037_v33 = vor.u32 %v21249_v21, %v15034_v22  ;;  %v21666_v9 = vld [vmem:[#allocation5 + $0xfac] sm:$0xf0]  ;;  %v14777_v61 = vor.u32 %v21217_v34, %v14776_v39  ;;  %v22146_v21 = vld [vmem:[#allocation5 + $0x1eb4] sm:$0xf] }
 0x2e6   :  { %v22178_v1 = vld [vmem:[#allocation5 + $0x1fac] sm:$0xf0]  ;;  %v18626_v22 = vld [vmem:[#allocation5 + $0x1fb0] sm:$0xf0] }
 0x2e7   :  { %7612 = vmatpush.bf16.msrb.mxu1 %v17593_v31  ;;  %7638 = vmatpush.bf16.msrb.mxu3 %v17597_v41  ;;  %v17081_v31 = vor.u32 %v21793_v15, %v17080_v14  ;;  %v17085_v41 = vor.u32 %v21761_v25, %v17082_v40  ;;  %v16825_v14 = vor.u32 %v21729_v10, %v16824_v35  ;;  %v22114_v39 = vld [vmem:[#allocation5 + $0x1dac] sm:$0xf0]  ;;  %v21570_v34 = vld [vmem:[#allocation5 + $0xcb4] sm:$0xf] }
 0x2e8   :  { %v14781_v15 = vor.u32 %v21185_v47, %v14778_v5  ;;  %v16577_v25 = vor.u32 %v21666_v9, %v16576_v46  ;;  %v16321_v35 = vor.u32 %v21602_v57, %v16320_v8  ;;  %v18369_v10 = vor.u32 %v22114_v39, %v18368_v27  ;;  %v21538_v5 = vld [vmem:[#allocation5 + $0xbac] sm:$0xf0]  ;;  %v21506_v9 = vld [vmem:[#allocation5 + $0xab4] sm:$0xf] }
 0x2e9   :  { %7600 = vmatpush.bf16.msrb.mxu0 %v15289_v55  ;;  %7626 = vmatpush.bf16.msrb.mxu2 %v15293_v63  ;;  %v18624_v55 = vld [vmem:[#allocation5 + $0x1eb0] sm:$0xf]  ;;  %v16578_v63 = vld [vmem:[#allocation5 + $0xfb0] sm:$0xf0]  ;;  %v16325_v47 = vor.u32 %v21570_v34, %v16322_v19 }
 0x2ea   :  { %v18625_v40 = vor.u32 %v22178_v1, %v18624_v55  ;;  %v22050_v46 = vld [vmem:[#allocation5 + $0x1bac] sm:$0xf0]  ;;  %v16066_v55 = vld [vmem:[#allocation5 + $0xbb0] sm:$0xf0] }
 0x2eb   :  { %7613 = vmatpush.bf16.msrb.mxu1 %v17337_v62  ;;  %7639 = vmatpush.bf16.msrb.mxu3 %v17341_v13  ;;  %v21634_v62 = vld [vmem:[#allocation5 + $0xeb4] sm:$0xf]  ;;  %v16829_v13 = vor.u32 %v21697_v52, %v16826_v11  ;;  %v18112_v52 = vld [vmem:[#allocation5 + $0x1ab0] sm:$0xf] }
 0x2ec   :  { %v16581_v48 = vor.u32 %v21634_v62, %v16578_v63  ;;  %v22018_v1 = vld [vmem:[#allocation5 + $0x1ab4] sm:$0xf]  ;;  %v15808_v27 = vld [vmem:[#allocation5 + $0x8b0] sm:$0xf]  ;;  %v18113_v57 = vor.u32 %v22050_v46, %v18112_v52  ;;  %v16069_v63 = vor.u32 %v21506_v9, %v16066_v55  ;;  %v1284_v9 = vperm.slane %v23603_v36, 3 }
 0x2ed   :  { %7601 = vmatpush.bf16.msrb.mxu0 %v15033_v49  ;;  %7627 = vmatpush.bf16.msrb.mxu2 %v15037_v33  ;;  %v18629_v49 = vor.u32 %v22146_v21, %v18626_v22  ;;  %v18370_v33 = vld [vmem:[#allocation5 + $0x1db0] sm:$0xf0]  ;;  %v1283_v21 = vperm.slane %v23603_v36, 2  ;;  %v15552_v39 = vld [vmem:[#allocation5 + $0x6b0] sm:$0xf] }
 0x2ee   :  { %v18114_v62 = vld [vmem:[#allocation5 + $0x1bb0] sm:$0xf0] }
 0x2ef   :  { %7614 = vmatpush.bf16.msrb.mxu1 %v17081_v31  ;;  %7640 = vmatpush.bf16.msrb.mxu3 %v17085_v41  ;;  %v22082_v31 = vld [vmem:[#allocation5 + $0x1cb4] sm:$0xf]  ;;  %v16064_v41 = vld [vmem:[#allocation5 + $0xab0] sm:$0xf]  ;;  %v18117_v22 = vor.u32 %v22018_v1, %v18114_v62 }
 0x2f0   :  { %v18373_v11 = vor.u32 %v22082_v31, %v18370_v33  ;;  %v16065_v19 = vor.u32 %v21538_v5, %v16064_v41  ;;  %v17858_v8 = vld [vmem:[#allocation5 + $0x19b0] sm:$0xf0] }
 0x2f1   :  { %7602 = vmatpush.bf16.msrb.mxu0 %v14777_v61  ;;  %7628 = vmatpush.bf16.msrb.mxu2 %v14781_v15  ;;  %v23616_v61 = vld [vmem:[#allocation1] sm:$0xff]  ;;  %v17856_v15 = vld [vmem:[#allocation5 + $0x18b0] sm:$0xf]  ;;  %v7396_v34 = vpop.f32.mrf.mxu0 }
 0x2f2   :  { %v7397_v41 = vadd.f32 %v7396_v34, %v1283_v21  ;;  %v15554_v46 = vld [vmem:[#allocation5 + $0x7b0] sm:$0xf0] }
 0x2f3   :  { %7615 = vmatpush.bf16.msrb.mxu1 %v16825_v14  ;;  %7641 = vmatpush.bf16.msrb.mxu3 %v16829_v13  ;;  %v21474_v14 = vld [vmem:[#allocation5 + $0x9ac] sm:$0xf0]  ;;  %v7409_v5 = vpop.f32.mrf.mxu1  ;;  %v21890_v55 = vld [vmem:[#allocation5 + $0x16b4] sm:$0xf] }
 0x2f4   :  { %7629 = vmatmul.bf16.vlgmr.msrb.gmra.mxu2 %v23616_v61  ;;  %7603 = vmatmul.bf16.vlgmr.msrb.gmra.mxu0 %v23616_v61  ;;  %v21986_v13 = vld [vmem:[#allocation5 + $0x19ac] sm:$0xf0]  ;;  %v17602_v1 = vld [vmem:[#allocation5 + $0x17b0] sm:$0xf0]  ;;  %v23624_v62 = vadd.f32 %v7409_v5, %v7397_v41 }
 0x2f5   :  { %7647 = vmatpush.bf16.msra.mxu0 %v16577_v25  ;;  %7673 = vmatpush.bf16.msra.mxu2 %v16581_v48  ;;  %v21442_v25 = vld [vmem:[#allocation5 + $0x8b4] sm:$0xf]  ;;  %v17857_v31 = vor.u32 %v21986_v13, %v17856_v15  ;;  %v17344_v15 = vld [vmem:[#allocation5 + $0x14b0] sm:$0xf] }
 0x2f6   :  { %7642 = vmatmul.bf16.vlgmr.msrb.gmra.mxu3 %v23606_v16  ;;  %7616 = vmatmul.bf16.vlgmr.msrb.gmra.mxu1 %v23606_v16  ;;  %v21954_v48 = vld [vmem:[#allocation5 + $0x18b4] sm:$0xf]  ;;  %25607 = vst [vmem:[#allocation32_spill] sm:$0xff] %v23624_v62  ;;  %v21858_v13 = vld [vmem:[#allocation5 + $0x15ac] sm:$0xf0] }
 0x2f7   :  { %7660 = vmatpush.bf16.msra.mxu1 %v18625_v40  ;;  %7686 = vmatpush.bf16.msra.mxu3 %v18629_v49  ;;  %v15810_v40 = vld [vmem:[#allocation5 + $0x9b0] sm:$0xf0]  ;;  %v15809_v49 = vor.u32 %v21474_v14, %v15808_v27  ;;  %v17861_v52 = vor.u32 %v21954_v48, %v17858_v8  ;;  %v21346_v14 = vld [vmem:[#allocation5 + $0x5ac] sm:$0xf0]  ;;  %v7422_v21 = vpop.f32.mrf.mxu2  ;;  %v18376_v62 = vld [vmem:[#allocation5 + $0x1cb8] sm:$0xf] }
 0x2f8   :  { %v15813_v33 = vor.u32 %v21442_v25, %v15810_v40  ;;  %v21314_v25 = vld [vmem:[#allocation5 + $0x4b4] sm:$0xf]  ;;  %v7423_v48 = vadd.f32 %v7422_v21, %v1284_v9  ;;  %v17088_v5 = vld [vmem:[#allocation5 + $0x12b0] sm:$0xf] }
 0x2f9   :  { %7648 = vmatpush.bf16.msra.mxu0 %v16321_v35  ;;  %7674 = vmatpush.bf16.msra.mxu2 %v16325_v47  ;;  %v21410_v35 = vld [vmem:[#allocation5 + $0x7ac] sm:$0xf0]  ;;  %v15298_v40 = vld [vmem:[#allocation5 + $0x5b0] sm:$0xf0]  ;;  %v7435_v8 = vpop.f32.mrf.mxu3 }
 0x2fa   :  { %v21922_v47 = vld [vmem:[#allocation5 + $0x17ac] sm:$0xf0]  ;;  %v21826_v34 = vld [vmem:[#allocation5 + $0x14b4] sm:$0xf] }
 0x2fb   :  { %7661 = vmatpush.bf16.msra.mxu1 %v18369_v10  ;;  %7687 = vmatpush.bf16.msra.mxu3 %v18373_v11  ;;  %v17600_v10 = vld [vmem:[#allocation5 + $0x16b0] sm:$0xf]  ;;  %v21378_v11 = vld [vmem:[#allocation5 + $0x6b4] sm:$0xf] }
 0x2fc   :  { %v17601_v27 = vor.u32 %v21922_v47, %v17600_v10  ;;  %v17346_v41 = vld [vmem:[#allocation5 + $0x15b0] sm:$0xf0]  ;;  %v15040_v10 = vld [vmem:[#allocation5 + $0x2b0] sm:$0xf] }
 0x2fd   :  { %7649 = vmatpush.bf16.msra.mxu0 %v16065_v19  ;;  %7675 = vmatpush.bf16.msra.mxu2 %v16069_v63  ;;  %v15553_v19 = vor.u32 %v21410_v35, %v15552_v39  ;;  %v15296_v63 = vld [vmem:[#allocation5 + $0x4b0] sm:$0xf]  ;;  %v23626_v39 = vadd.f32 %v7435_v8, %v7423_v48  ;;  %v15301_v35 = vor.u32 %v21314_v25, %v15298_v40  ;;  %v21250_v9 = vld [vmem:[#allocation5 + $0x2b4] sm:$0xf] }
 0x2fe   :  { %v21282_v47 = vld [vmem:[#allocation5 + $0x3ac] sm:$0xf0]  ;;  %v17090_v21 = vld [vmem:[#allocation5 + $0x13b0] sm:$0xf0] }
 0x2ff   :  { %7662 = vmatpush.bf16.msra.mxu1 %v18113_v57  ;;  %7688 = vmatpush.bf16.msra.mxu3 %v18117_v22  ;;  %v15557_v57 = vor.u32 %v21378_v11, %v15554_v46  ;;  %v17605_v22 = vor.u32 %v21890_v55, %v17602_v1  ;;  %25608 = vst [vmem:[#allocation33_spill] sm:$0xff] %v23626_v39  ;;  %v21794_v46 = vld [vmem:[#allocation5 + $0x13ac] sm:$0xf0]  ;;  %v15042_v55 = vld [vmem:[#allocation5 + $0x3b0] sm:$0xf0]  ;;  %v7424_v40 = vpop.f32.mrf.mxu2 }
 0x300   :  { %v17349_v11 = vor.u32 %v21826_v34, %v17346_v41  ;;  %v21762_v1 = vld [vmem:[#allocation5 + $0x12b4] sm:$0xf]  ;;  %v21603_v39 = vld [vmem:[#allocation5 + $0xdb4] sm:$0xf0] }
 0x301   :  { %7650 = vmatpush.bf16.msra.mxu0 %v15809_v49  ;;  %7676 = vmatpush.bf16.msra.mxu2 %v15813_v33  ;;  %v15297_v49 = vor.u32 %v21346_v14, %v15296_v63  ;;  %v17345_v33 = vor.u32 %v21858_v13, %v17344_v15  ;;  %v14784_v63 = vld [vmem:[#allocation5 + $0xb0] sm:$0xf]  ;;  %v21186_v25 = vld [vmem:[#allocation5 + $0xb4] sm:$0xf]  ;;  %v7437_v41 = vpop.f32.mrf.mxu3 }
 0x302   :  { %v21218_v14 = vld [vmem:[#allocation5 + $0x1ac] sm:$0xf0]  ;;  %v14786_v48 = vld [vmem:[#allocation5 + $0x1b0] sm:$0xf0]  ;;  %v16328_v41 = vld [vmem:[#allocation5 + $0xcb8] sm:$0xf] }
 0x303   :  { %7663 = vmatpush.bf16.msra.mxu1 %v17857_v31  ;;  %7689 = vmatpush.bf16.msra.mxu3 %v17861_v52  ;;  %v7398_v31 = vpop.f32.mrf.mxu0  ;;  %v7411_v52 = vpop.f32.mrf.mxu1  ;;  %v16832_v15 = vld [vmem:[#allocation5 + $0x10b0] sm:$0xf]  ;;  %v21698_v8 = vld [vmem:[#allocation5 + $0x10b4] sm:$0xf] }
 0x304   :  { %v21730_v13 = vld [vmem:[#allocation5 + $0x11ac] sm:$0xf0]  ;;  %v16834_v34 = vld [vmem:[#allocation5 + $0x11b0] sm:$0xf0]  ;;  %v16584_v31 = vld [vmem:[#allocation5 + $0xeb8] sm:$0xf] }
 0x305   :  { %7651 = vmatpush.bf16.msra.mxu0 %v15553_v19  ;;  %7677 = vmatpush.bf16.msra.mxu2 %v15557_v57  ;;  %v15041_v19 = vor.u32 %v21282_v47, %v15040_v10  ;;  %v15045_v57 = vor.u32 %v21250_v9, %v15042_v55  ;;  %v21667_v52 = vld [vmem:[#allocation5 + $0xfb4] sm:$0xf0]  ;;  %v14785_v10 = vor.u32 %v21218_v14, %v14784_v63  ;;  %v22147_v9 = vld [vmem:[#allocation5 + $0x1ebc] sm:$0xf] }
 0x306   :  { %v22179_v47 = vld [vmem:[#allocation5 + $0x1fb4] sm:$0xf0]  ;;  %v18634_v55 = vld [vmem:[#allocation5 + $0x1fb8] sm:$0xf0] }
 0x307   :  { %7664 = vmatpush.bf16.msra.mxu1 %v17601_v27  ;;  %7690 = vmatpush.bf16.msra.mxu3 %v17605_v22  ;;  %v17089_v27 = vor.u32 %v21794_v46, %v17088_v5  ;;  %v17093_v22 = vor.u32 %v21762_v1, %v17090_v21  ;;  %v16833_v5 = vor.u32 %v21730_v13, %v16832_v15  ;;  %v22115_v63 = vld [vmem:[#allocation5 + $0x1db4] sm:$0xf0]  ;;  %v21571_v14 = vld [vmem:[#allocation5 + $0xcbc] sm:$0xf] }
 0x308   :  { %v14789_v46 = vor.u32 %v21186_v25, %v14786_v48  ;;  %v16585_v1 = vor.u32 %v21667_v52, %v16584_v31  ;;  %v16329_v15 = vor.u32 %v21603_v39, %v16328_v41  ;;  %v18377_v13 = vor.u32 %v22115_v63, %v18376_v62  ;;  %v21539_v48 = vld [vmem:[#allocation5 + $0xbb4] sm:$0xf0]  ;;  %v21507_v52 = vld [vmem:[#allocation5 + $0xabc] sm:$0xf] }
 0x309   :  { %7652 = vmatpush.bf16.msra.mxu0 %v15297_v49  ;;  %7678 = vmatpush.bf16.msra.mxu2 %v15301_v35  ;;  %v18632_v49 = vld [vmem:[#allocation5 + $0x1eb8] sm:$0xf]  ;;  %v16586_v35 = vld [vmem:[#allocation5 + $0xfb8] sm:$0xf0]  ;;  %v16333_v25 = vor.u32 %v21571_v14, %v16330_v58 }
 0x30a   :  { %v18633_v21 = vor.u32 %v22179_v47, %v18632_v49  ;;  %v22051_v31 = vld [vmem:[#allocation5 + $0x1bb4] sm:$0xf0]  ;;  %v16074_v49 = vld [vmem:[#allocation5 + $0xbb8] sm:$0xf0] }
 0x30b   :  { %7665 = vmatpush.bf16.msra.mxu1 %v17345_v33  ;;  %7691 = vmatpush.bf16.msra.mxu3 %v17349_v11  ;;  %v21635_v33 = vld [vmem:[#allocation5 + $0xebc] sm:$0xf]  ;;  %v16837_v11 = vor.u32 %v21698_v8, %v16834_v34  ;;  %v18120_v8 = vld [vmem:[#allocation5 + $0x1ab8] sm:$0xf] }
 0x30c   :  { %v16589_v40 = vor.u32 %v21635_v33, %v16586_v35  ;;  %v18122_v47 = vld [vmem:[#allocation5 + $0x1bb8] sm:$0xf0]  ;;  %v15816_v62 = vld [vmem:[#allocation5 + $0x8b8] sm:$0xf]  ;;  %v18121_v58 = vor.u32 %v22051_v31, %v18120_v8  ;;  %v16077_v33 = vor.u32 %v21507_v52, %v16074_v49  ;;  %v1286_v31 = vperm.slane %v23603_v36, 5 }
 0x30d   :  { %7653 = vmatpush.bf16.msra.mxu0 %v15041_v19  ;;  %7679 = vmatpush.bf16.msra.mxu2 %v15045_v57  ;;  %v18637_v19 = vor.u32 %v22147_v9, %v18634_v55  ;;  %v18378_v57 = vld [vmem:[#allocation5 + $0x1db8] sm:$0xf0]  ;;  %v21475_v35 = vld [vmem:[#allocation5 + $0x9b4] sm:$0xf0] }
 0x30e   :  { %v21987_v55 = vld [vmem:[#allocation5 + $0x19b4] sm:$0xf0]  ;;  %v15817_v41 = vor.u32 %v21475_v35, %v15816_v62  ;;  %v21379_v8 = vld [vmem:[#allocation5 + $0x6bc] sm:$0xf] }
 0x30f   :  { %7666 = vmatpush.bf16.msra.mxu1 %v17089_v27  ;;  %7692 = vmatpush.bf16.msra.mxu3 %v17093_v22  ;;  %v22083_v27 = vld [vmem:[#allocation5 + $0x1cbc] sm:$0xf]  ;;  %v16072_v22 = vld [vmem:[#allocation5 + $0xab8] sm:$0xf] }
 0x310   :  { %v18381_v34 = vor.u32 %v22083_v27, %v18378_v57  ;;  %v16073_v39 = vor.u32 %v21539_v48, %v16072_v22  ;;  %v21411_v57 = vld [vmem:[#allocation5 + $0x7b4] sm:$0xf0]  ;;  %v21891_v52 = vld [vmem:[#allocation5 + $0x16bc] sm:$0xf] }
 0x311   :  { %7654 = vmatpush.bf16.msra.mxu0 %v14785_v10  ;;  %7680 = vmatpush.bf16.msra.mxu2 %v14789_v46  ;;  %v22019_v10 = vld [vmem:[#allocation5 + $0x1abc] sm:$0xf]  ;;  %v1285_v46 = vperm.slane %v23603_v36, 4  ;;  %v7448_v63 = vpop.f32.mrf.mxu0  ;;  %v17352_v35 = vld [vmem:[#allocation5 + $0x14b8] sm:$0xf] }
 0x312   :  { %v18125_v9 = vor.u32 %v22019_v10, %v18122_v47  ;;  %v17610_v49 = vld [vmem:[#allocation5 + $0x17b8] sm:$0xf0] }
 0x313   :  { %7667 = vmatpush.bf16.msra.mxu1 %v16833_v5  ;;  %7693 = vmatpush.bf16.msra.mxu3 %v16837_v11  ;;  %v17864_v5 = vld [vmem:[#allocation5 + $0x18b8] sm:$0xf]  ;;  %v21443_v11 = vld [vmem:[#allocation5 + $0x8bc] sm:$0xf]  ;;  %v7461_v22 = vpop.f32.mrf.mxu1 }
 0x314   :  { %7681 = vmatmul.bf16.vlgmr.msra.gmra.mxu2 %v23616_v61  ;;  %7655 = vmatmul.bf16.vlgmr.msra.gmra.mxu0 %v23616_v61  ;;  %v17865_v14 = vor.u32 %v21987_v55, %v17864_v5  ;;  %v21315_v55 = vld [vmem:[#allocation5 + $0x4bc] sm:$0xf] }
 0x315   :  { %7699 = vmatpush.bf16.msrb.mxu0 %v16585_v1  ;;  %7725 = vmatpush.bf16.msrb.mxu2 %v16589_v40  ;;  %v15818_v1 = vld [vmem:[#allocation5 + $0x9b8] sm:$0xf0] }
 0x316   :  { %7694 = vmatmul.bf16.vlgmr.msra.gmra.mxu3 %v23606_v16  ;;  %7668 = vmatmul.bf16.vlgmr.msra.gmra.mxu1 %v23606_v16  ;;  %v17866_v40 = vld [vmem:[#allocation5 + $0x19b8] sm:$0xf0]  ;;  %v15821_v27 = vor.u32 %v21443_v11, %v15818_v1 }
 0x317   :  { %7712 = vmatpush.bf16.msrb.mxu1 %v18633_v21  ;;  %7738 = vmatpush.bf16.msrb.mxu3 %v18637_v19  ;;  %v21955_v21 = vld [vmem:[#allocation5 + $0x18bc] sm:$0xf]  ;;  %v15560_v19 = vld [vmem:[#allocation5 + $0x6b8] sm:$0xf]  ;;  %v7474_v5 = vpop.f32.mrf.mxu2 }
 0x318   :  { %v17869_v48 = vor.u32 %v21955_v21, %v17866_v40  ;;  %v15561_v47 = vor.u32 %v21411_v57, %v15560_v19  ;;  %v15306_v11 = vld [vmem:[#allocation5 + $0x5b8] sm:$0xf0]  ;;  %v7475_v1 = vadd.f32 %v7474_v5, %v1286_v31  ;;  %v21731_v5 = vld [vmem:[#allocation5 + $0x11b4] sm:$0xf0] }
 0x319   :  { %7700 = vmatpush.bf16.msrb.mxu0 %v16329_v15  ;;  %7726 = vmatpush.bf16.msrb.mxu2 %v16333_v25  ;;  %v17608_v15 = vld [vmem:[#allocation5 + $0x16b8] sm:$0xf]  ;;  %v7449_v25 = vadd.f32 %v7448_v63, %v1285_v46  ;;  %v17613_v46 = vor.u32 %v21891_v52, %v17610_v49  ;;  %v7487_v21 = vpop.f32.mrf.mxu3  ;;  %v21827_v40 = vld [vmem:[#allocation5 + $0x14bc] sm:$0xf]  ;;  %v15309_v57 = vor.u32 %v21315_v55, %v15306_v11 }
 0x31a   :  { %v17354_v63 = vld [vmem:[#allocation5 + $0x15b8] sm:$0xf0]  ;;  %v23636_v19 = vadd.f32 %v7487_v21, %v7475_v1 }
 0x31b   :  { %7713 = vmatpush.bf16.msrb.mxu1 %v18377_v13  ;;  %7739 = vmatpush.bf16.msrb.mxu3 %v18381_v34  ;;  %v21923_v13 = vld [vmem:[#allocation5 + $0x17b4] sm:$0xf0]  ;;  %v15562_v34 = vld [vmem:[#allocation5 + $0x7b8] sm:$0xf0]  ;;  %v23634_v10 = vadd.f32 %v7461_v22, %v7449_v25  ;;  %v7463_v22 = vpop.f32.mrf.mxu1 }
 0x31c   :  { %v15565_v62 = vor.u32 %v21379_v8, %v15562_v34  ;;  %25610 = vst [vmem:[#allocation35_spill] sm:$0xff] %v23636_v19  ;;  %v17096_v25 = vld [vmem:[#allocation5 + $0x12b8] sm:$0xf]  ;;  %v21251_v34 = vld [vmem:[#allocation5 + $0x2bc] sm:$0xf] }
 0x31d   :  { %7701 = vmatpush.bf16.msrb.mxu0 %v16073_v39  ;;  %7727 = vmatpush.bf16.msrb.mxu2 %v16077_v33  ;;  %25609 = vst [vmem:[#allocation34_spill] sm:$0xff] %v23634_v10  ;;  %v17609_v39 = vor.u32 %v21923_v13, %v17608_v15  ;;  %v21347_v33 = vld [vmem:[#allocation5 + $0x5b4] sm:$0xf0]  ;;  %v15050_v31 = vld [vmem:[#allocation5 + $0x3b8] sm:$0xf0] }
 0x31e   :  { %v15048_v15 = vld [vmem:[#allocation5 + $0x2b8] sm:$0xf]  ;;  %v21763_v52 = vld [vmem:[#allocation5 + $0x12bc] sm:$0xf]  ;;  %v18384_v19 = vld [vmem:[#allocation5 + $0x1cc0] sm:$0xf] }
 0x31f   :  { %7714 = vmatpush.bf16.msrb.mxu1 %v18121_v58  ;;  %7740 = vmatpush.bf16.msrb.mxu3 %v18125_v9  ;;  %v15304_v58 = vld [vmem:[#allocation5 + $0x4b8] sm:$0xf]  ;;  %v17098_v49 = vld [vmem:[#allocation5 + $0x13b8] sm:$0xf0]  ;;  %v7476_v55 = vpop.f32.mrf.mxu2  ;;  %v16338_v10 = vld [vmem:[#allocation5 + $0xdc0] sm:$0xf0] }
 0x320   :  { %v21859_v9 = vld [vmem:[#allocation5 + $0x15b4] sm:$0xf0]  ;;  %v14794_v11 = vld [vmem:[#allocation5 + $0x1b8] sm:$0xf0]  ;;  %v16336_v55 = vld [vmem:[#allocation5 + $0xcc0] sm:$0xf] }
 0x321   :  { %7702 = vmatpush.bf16.msrb.mxu0 %v15817_v41  ;;  %7728 = vmatpush.bf16.msrb.mxu2 %v15821_v27  ;;  %v15305_v41 = vor.u32 %v21347_v33, %v15304_v58  ;;  %v17353_v27 = vor.u32 %v21859_v9, %v17352_v35  ;;  %v21283_v13 = vld [vmem:[#allocation5 + $0x3b4] sm:$0xf0]  ;;  %v21187_v9 = vld [vmem:[#allocation5 + $0xbc] sm:$0xf] }
 0x322   :  { %v21795_v8 = vld [vmem:[#allocation5 + $0x13b4] sm:$0xf0]  ;;  %v21699_v1 = vld [vmem:[#allocation5 + $0x10bc] sm:$0xf]  ;;  %v14797_v22 = vor.u32 %v21187_v9, %v14794_v11  ;;  %v21540_v11 = vld [vmem:[#allocation5 + $0xbbc] sm:$0xf0] }
 0x323   :  { %7715 = vmatpush.bf16.msrb.mxu1 %v17865_v14  ;;  %7741 = vmatpush.bf16.msrb.mxu3 %v17869_v48  ;;  %v7450_v14 = vpop.f32.mrf.mxu0  ;;  %v17357_v48 = vor.u32 %v21827_v40, %v17354_v63  ;;  %v14792_v58 = vld [vmem:[#allocation5 + $0xb8] sm:$0xf]  ;;  %v16842_v21 = vld [vmem:[#allocation5 + $0x11b8] sm:$0xf0]  ;;  %v7489_v40 = vpop.f32.mrf.mxu3  ;;  %v16592_v63 = vld [vmem:[#allocation5 + $0xec0] sm:$0xf] }
 0x324   :  { %v21219_v33 = vld [vmem:[#allocation5 + $0x1b4] sm:$0xf0]  ;;  %v21668_v14 = vld [vmem:[#allocation5 + $0xfbc] sm:$0xf0] }
 0x325   :  { %7703 = vmatpush.bf16.msrb.mxu0 %v15561_v47  ;;  %7729 = vmatpush.bf16.msrb.mxu2 %v15565_v62  ;;  %v15049_v47 = vor.u32 %v21283_v13, %v15048_v15  ;;  %v15053_v62 = vor.u32 %v21251_v34, %v15050_v31  ;;  %v16840_v35 = vld [vmem:[#allocation5 + $0x10b8] sm:$0xf]  ;;  %v14793_v15 = vor.u32 %v21219_v33, %v14792_v58  ;;  %v22180_v13 = vld [vmem:[#allocation5 + $0x1fbc] sm:$0xf0]  ;;  %v18642_v34 = vld [vmem:[#allocation5 + $0x1fc0] sm:$0xf0] }
 0x326   :  { %v16593_v31 = vor.u32 %v21668_v14, %v16592_v63  ;;  %v21604_v40 = vld [vmem:[#allocation5 + $0xdbc] sm:$0xf0]  ;;  %v21572_v33 = vld [vmem:[#allocation5 + $0xcc4] sm:$0xf] }
 0x327   :  { %7716 = vmatpush.bf16.msrb.mxu1 %v17609_v39  ;;  %7742 = vmatpush.bf16.msrb.mxu3 %v17613_v46  ;;  %v17097_v39 = vor.u32 %v21795_v8, %v17096_v25  ;;  %v17101_v46 = vor.u32 %v21763_v52, %v17098_v49  ;;  %v16841_v25 = vor.u32 %v21731_v5, %v16840_v35  ;;  %v22148_v8 = vld [vmem:[#allocation5 + $0x1ec4] sm:$0xf]  ;;  %v22116_v58 = vld [vmem:[#allocation5 + $0x1dbc] sm:$0xf0] }
 0x328   :  { %v16337_v35 = vor.u32 %v21604_v40, %v16336_v55  ;;  %v18385_v5 = vor.u32 %v22116_v58, %v18384_v19  ;;  %v16341_v9 = vor.u32 %v21572_v33, %v16338_v10  ;;  %v22052_v63 = vld [vmem:[#allocation5 + $0x1bbc] sm:$0xf0]  ;;  %v21508_v14 = vld [vmem:[#allocation5 + $0xac4] sm:$0xf] }
 0x329   :  { %7704 = vmatpush.bf16.msrb.mxu0 %v15305_v41  ;;  %7730 = vmatpush.bf16.msrb.mxu2 %v15309_v57  ;;  %v18640_v41 = vld [vmem:[#allocation5 + $0x1ec0] sm:$0xf]  ;;  %v16594_v57 = vld [vmem:[#allocation5 + $0xfc0] sm:$0xf0] }
 0x32a   :  { %v18641_v52 = vor.u32 %v22180_v13, %v18640_v41  ;;  %v16082_v41 = vld [vmem:[#allocation5 + $0xbc0] sm:$0xf0]  ;;  %v15824_v19 = vld [vmem:[#allocation5 + $0x8c0] sm:$0xf] }
 0x32b   :  { %7717 = vmatpush.bf16.msrb.mxu1 %v17353_v27  ;;  %7743 = vmatpush.bf16.msrb.mxu3 %v17357_v48  ;;  %v21636_v27 = vld [vmem:[#allocation5 + $0xec4] sm:$0xf]  ;;  %v16845_v48 = vor.u32 %v21699_v1, %v16842_v21  ;;  %v18128_v1 = vld [vmem:[#allocation5 + $0x1ac0] sm:$0xf] }
 0x32c   :  { %v16597_v49 = vor.u32 %v21636_v27, %v16594_v57  ;;  %v18130_v13 = vld [vmem:[#allocation5 + $0x1bc0] sm:$0xf0]  ;;  %v18129_v10 = vor.u32 %v22052_v63, %v18128_v1  ;;  %v16085_v57 = vor.u32 %v21508_v14, %v16082_v41 }
 0x32d   :  { %7705 = vmatpush.bf16.msrb.mxu0 %v15049_v47  ;;  %7731 = vmatpush.bf16.msrb.mxu2 %v15053_v62  ;;  %v18645_v47 = vor.u32 %v22148_v8, %v18642_v34  ;;  %v18386_v62 = vld [vmem:[#allocation5 + $0x1dc0] sm:$0xf0]  ;;  %v1287_v8 = vperm.slane %v23603_v36, 6 }
 0x32e   :  { %v17874_v55 = vld [vmem:[#allocation5 + $0x19c0] sm:$0xf0] }
 0x32f   :  { %7718 = vmatpush.bf16.msrb.mxu1 %v17097_v39  ;;  %7744 = vmatpush.bf16.msrb.mxu3 %v17101_v46  ;;  %v22084_v39 = vld [vmem:[#allocation5 + $0x1cc4] sm:$0xf]  ;;  %v16080_v46 = vld [vmem:[#allocation5 + $0xac0] sm:$0xf] }
 0x330   :  { %v18389_v21 = vor.u32 %v22084_v39, %v18386_v62  ;;  %v16081_v27 = vor.u32 %v21540_v11, %v16080_v46  ;;  %v21412_v39 = vld [vmem:[#allocation5 + $0x7bc] sm:$0xf0]  ;;  %v21380_v11 = vld [vmem:[#allocation5 + $0x6c4] sm:$0xf] }
 0x331   :  { %7706 = vmatpush.bf16.msrb.mxu0 %v14793_v15  ;;  %7732 = vmatpush.bf16.msrb.mxu2 %v14797_v22  ;;  %v22020_v15 = vld [vmem:[#allocation5 + $0x1ac4] sm:$0xf]  ;;  %v17872_v22 = vld [vmem:[#allocation5 + $0x18c0] sm:$0xf]  ;;  %v7500_v58 = vpop.f32.mrf.mxu0 }
 0x332   :  { %v18133_v34 = vor.u32 %v22020_v15, %v18130_v13  ;;  %v17616_v62 = vld [vmem:[#allocation5 + $0x16c0] sm:$0xf]  ;;  %v15570_v1 = vld [vmem:[#allocation5 + $0x7c0] sm:$0xf0] }
 0x333   :  { %7719 = vmatpush.bf16.msrb.mxu1 %v16841_v25  ;;  %7745 = vmatpush.bf16.msrb.mxu3 %v16845_v48  ;;  %v21476_v25 = vld [vmem:[#allocation5 + $0x9bc] sm:$0xf0]  ;;  %v21892_v63 = vld [vmem:[#allocation5 + $0x16c4] sm:$0xf] }
 0x334   :  { %7733 = vmatmul.bf16.vlgmr.msrb.gmra.mxu2 %v23616_v61  ;;  %7707 = vmatmul.bf16.vlgmr.msrb.gmra.mxu0 %v23616_v61  ;;  %v21988_v48 = vld [vmem:[#allocation5 + $0x19bc] sm:$0xf0]  ;;  %v15825_v40 = vor.u32 %v21476_v25, %v15824_v19  ;;  %v17618_v14 = vld [vmem:[#allocation5 + $0x17c0] sm:$0xf0] }
 0x335   :  { %7751 = vmatpush.bf16.msra.mxu0 %v16593_v31  ;;  %7777 = vmatpush.bf16.msra.mxu2 %v16597_v49  ;;  %v21444_v31 = vld [vmem:[#allocation5 + $0x8c4] sm:$0xf]  ;;  %v15312_v19 = vld [vmem:[#allocation5 + $0x4c0] sm:$0xf] }
 0x336   :  { %7746 = vmatmul.bf16.vlgmr.msrb.gmra.mxu3 %v23606_v16  ;;  %7720 = vmatmul.bf16.vlgmr.msrb.gmra.mxu1 %v23606_v16  ;;  %v21956_v49 = vld [vmem:[#allocation5 + $0x18c4] sm:$0xf]  ;;  %v17873_v16 = vor.u32 %v21988_v48, %v17872_v22  ;;  %v17621_v22 = vor.u32 %v21892_v63, %v17618_v14  ;;  %v14800_v14 = vld [vmem:[#allocation5 + $0xc0] sm:$0xf] }
 0x337   :  { %7764 = vmatpush.bf16.msra.mxu1 %v18641_v52  ;;  %7790 = vmatpush.bf16.msra.mxu3 %v18645_v47  ;;  %v15826_v52 = vld [vmem:[#allocation5 + $0x9c0] sm:$0xf0]  ;;  %v15568_v47 = vld [vmem:[#allocation5 + $0x6c0] sm:$0xf]  ;;  %v17877_v46 = vor.u32 %v21956_v49, %v17874_v55  ;;  %v7526_v25 = vpop.f32.mrf.mxu2 }
 0x338   :  { %v15829_v33 = vor.u32 %v21444_v31, %v15826_v52  ;;  %v15569_v15 = vor.u32 %v21412_v39, %v15568_v47  ;;  %v15314_v48 = vld [vmem:[#allocation5 + $0x5c0] sm:$0xf0]  ;;  %v21284_v39 = vld [vmem:[#allocation5 + $0x3bc] sm:$0xf0] }
 0x339   :  { %7752 = vmatpush.bf16.msra.mxu0 %v16337_v35  ;;  %7778 = vmatpush.bf16.msra.mxu2 %v16341_v9  ;;  %v21924_v35 = vld [vmem:[#allocation5 + $0x17bc] sm:$0xf0]  ;;  %v7513_v9 = vpop.f32.mrf.mxu1  ;;  %v7539_v31 = vpop.f32.mrf.mxu3  ;;  %v21828_v52 = vld [vmem:[#allocation5 + $0x14c4] sm:$0xf] }
 0x33a   :  { %v17617_v13 = vor.u32 %v21924_v35, %v17616_v62  ;;  %v17362_v49 = vld [vmem:[#allocation5 + $0x15c0] sm:$0xf0]  ;;  %v7502_v47 = vpop.f32.mrf.mxu0  ;;  %v17104_v62 = vld [vmem:[#allocation5 + $0x12c0] sm:$0xf] }
 0x33b   :  { %7765 = vmatpush.bf16.msra.mxu1 %v18385_v5  ;;  %7791 = vmatpush.bf16.msra.mxu3 %v18389_v21  ;;  %v7501_v5 = vadd.f32 %v7500_v58, %v1287_v8  ;;  %v1288_v21 = vperm.slane %v23603_v36, 7  ;;  %v21860_v8 = vld [vmem:[#allocation5 + $0x15bc] sm:$0xf0]  ;;  %v22181_v47 = vld [vmem:[#allocation5 + $0x1fc4] sm:$0xf0] }
 0x33d   :  { %7753 = vmatpush.bf16.msra.mxu0 %v16081_v27  ;;  %7779 = vmatpush.bf16.msra.mxu2 %v16085_v57  ;;  %v23644_v41 = vadd.f32 %v7513_v9, %v7501_v5  ;;  %v15573_v27 = vor.u32 %v21380_v11, %v15570_v1  ;;  %v17360_v57 = vld [vmem:[#allocation5 + $0x14c0] sm:$0xf]  ;;  %v7527_v36 = vadd.f32 %v7526_v25, %v1288_v21  ;;  %v15058_v11 = vld [vmem:[#allocation5 + $0x3c0] sm:$0xf0] }
 0x33e   :  { %v17361_v58 = vor.u32 %v21860_v8, %v17360_v57  ;;  %v17365_v5 = vor.u32 %v21828_v52, %v17362_v49  ;;  %v21796_v9 = vld [vmem:[#allocation5 + $0x13bc] sm:$0xf0]  ;;  %v21764_v1 = vld [vmem:[#allocation5 + $0x12c4] sm:$0xf]  ;;  %v21669_v52 = vld [vmem:[#allocation5 + $0xfc4] sm:$0xf0] }
 0x33f   :  { %7766 = vmatpush.bf16.msra.mxu1 %v18129_v10  ;;  %7792 = vmatpush.bf16.msra.mxu3 %v18133_v34  ;;  %25611 = vst [vmem:[#allocation36_spill] sm:$0xff] %v23644_v41  ;;  %v21348_v10 = vld [vmem:[#allocation5 + $0x5bc] sm:$0xf0]  ;;  %v21316_v34 = vld [vmem:[#allocation5 + $0x4c4] sm:$0xf]  ;;  %v7528_v25 = vpop.f32.mrf.mxu2 }
 0x340   :  { %v15313_v55 = vor.u32 %v21348_v10, %v15312_v19  ;;  %v17106_v21 = vld [vmem:[#allocation5 + $0x13c0] sm:$0xf0]  ;;  %v16848_v19 = vld [vmem:[#allocation5 + $0x10c0] sm:$0xf]  ;;  %v18648_v49 = vld [vmem:[#allocation5 + $0x1ec8] sm:$0xf] }
 0x341   :  { %7754 = vmatpush.bf16.msra.mxu0 %v15825_v40  ;;  %7780 = vmatpush.bf16.msra.mxu2 %v15829_v33  ;;  %v23646_v40 = vadd.f32 %v7539_v31, %v7527_v36  ;;  %v15056_v33 = vld [vmem:[#allocation5 + $0x2c0] sm:$0xf]  ;;  %v7515_v35 = vpop.f32.mrf.mxu1  ;;  %v21188_v57 = vld [vmem:[#allocation5 + $0xc4] sm:$0xf]  ;;  %v7541_v36 = vpop.f32.mrf.mxu3  ;;  %v16600_v31 = vld [vmem:[#allocation5 + $0xec8] sm:$0xf] }
 0x342   :  { %v15057_v63 = vor.u32 %v21284_v39, %v15056_v33  ;;  %v21732_v10 = vld [vmem:[#allocation5 + $0x11bc] sm:$0xf0]  ;;  %v14802_v8 = vld [vmem:[#allocation5 + $0x1c0] sm:$0xf0]  ;;  %v18650_v35 = vld [vmem:[#allocation5 + $0x1fc8] sm:$0xf0] }
 0x343   :  { %7767 = vmatpush.bf16.msra.mxu1 %v17873_v16  ;;  %7793 = vmatpush.bf16.msra.mxu3 %v17877_v46  ;;  %25612 = vst [vmem:[#allocation37_spill] sm:$0xff] %v23646_v40  ;;  %v15317_v16 = vor.u32 %v21316_v34, %v15314_v48  ;;  %v21252_v46 = vld [vmem:[#allocation5 + $0x2c4] sm:$0xf]  ;;  %v16849_v33 = vor.u32 %v21732_v10, %v16848_v19  ;;  %v18392_v25 = vld [vmem:[#allocation5 + $0x1cc8] sm:$0xf] }
 0x344   :  { %v21700_v34 = vld [vmem:[#allocation5 + $0x10c4] sm:$0xf]  ;;  %v14805_v39 = vor.u32 %v21188_v57, %v14802_v8  ;;  %v16346_v36 = vld [vmem:[#allocation5 + $0xdc8] sm:$0xf0]  ;;  %v16088_v10 = vld [vmem:[#allocation5 + $0xac8] sm:$0xf] }
 0x345   :  { %7755 = vmatpush.bf16.msra.mxu0 %v15569_v15  ;;  %7781 = vmatpush.bf16.msra.mxu2 %v15573_v27  ;;  %v21220_v15 = vld [vmem:[#allocation5 + $0x1bc] sm:$0xf0]  ;;  %v15061_v27 = vor.u32 %v21252_v46, %v15058_v11  ;;  %v16850_v48 = vld [vmem:[#allocation5 + $0x11c0] sm:$0xf0]  ;;  %v18649_v46 = vor.u32 %v22181_v47, %v18648_v49  ;;  %v21541_v8 = vld [vmem:[#allocation5 + $0xbc4] sm:$0xf0] }
 0x346   :  { %v16090_v49 = vld [vmem:[#allocation5 + $0xbc8] sm:$0xf0]  ;;  %v16354_v40 = vld [vmem:[#allocation5 + $0xdd0] sm:$0xf0]  ;;  %v16362_v41 = vld [vmem:[#allocation5 + $0xdd8] sm:$0xf0] }
 0x347   :  { %7768 = vmatpush.bf16.msra.mxu1 %v17617_v13  ;;  %7794 = vmatpush.bf16.msra.mxu3 %v17621_v22  ;;  %v17105_v13 = vor.u32 %v21796_v9, %v17104_v62  ;;  %v17109_v22 = vor.u32 %v21764_v1, %v17106_v21  ;;  %v22149_v62 = vld [vmem:[#allocation5 + $0x1ecc] sm:$0xf]  ;;  %v16601_v9 = vor.u32 %v21669_v52, %v16600_v31  ;;  %v16344_v1 = vld [vmem:[#allocation5 + $0xcc8] sm:$0xf] }
 0x348   :  { %v21605_v21 = vld [vmem:[#allocation5 + $0xdc4] sm:$0xf0]  ;;  %v21509_v52 = vld [vmem:[#allocation5 + $0xacc] sm:$0xf] }
 0x349   :  { %7756 = vmatpush.bf16.msra.mxu0 %v15313_v55  ;;  %7782 = vmatpush.bf16.msra.mxu2 %v15317_v16  ;;  %v14801_v55 = vor.u32 %v21220_v15, %v14800_v14  ;;  %v16602_v16 = vld [vmem:[#allocation5 + $0xfc8] sm:$0xf0]  ;;  %v22117_v14 = vld [vmem:[#allocation5 + $0x1dc4] sm:$0xf0]  ;;  %v16345_v19 = vor.u32 %v21605_v21, %v16344_v1 }
 0x34a   :  { %v21573_v15 = vld [vmem:[#allocation5 + $0xccc] sm:$0xf]  ;;  %v18393_v57 = vor.u32 %v22117_v14, %v18392_v25 }
 0x34b   :  { %7769 = vmatpush.bf16.msra.mxu1 %v17361_v58  ;;  %7795 = vmatpush.bf16.msra.mxu3 %v17365_v5  ;;  %v21637_v58 = vld [vmem:[#allocation5 + $0xecc] sm:$0xf]  ;;  %v16853_v5 = vor.u32 %v21700_v34, %v16850_v48  ;;  %v18136_v34 = vld [vmem:[#allocation5 + $0x1ac8] sm:$0xf] }
 0x34c   :  { %v16605_v11 = vor.u32 %v21637_v58, %v16602_v16  ;;  %v22053_v48 = vld [vmem:[#allocation5 + $0x1bc4] sm:$0xf0]  ;;  %v22021_v47 = vld [vmem:[#allocation5 + $0x1acc] sm:$0xf]  ;;  %v23652_v16 = vld [vmem:[#allocation1 + $0x9] sm:$0xff] }
 0x34d   :  { %7757 = vmatpush.bf16.msra.mxu0 %v15057_v63  ;;  %7783 = vmatpush.bf16.msra.mxu2 %v15061_v27  ;;  %v18653_v63 = vor.u32 %v22149_v62, %v18650_v35  ;;  %v18394_v27 = vld [vmem:[#allocation5 + $0x1dc8] sm:$0xf0]  ;;  %v18137_v62 = vor.u32 %v22053_v48, %v18136_v34  ;;  %v16093_v35 = vor.u32 %v21509_v52, %v16090_v49 }
 0x34e   :  { %v18138_v58 = vld [vmem:[#allocation5 + $0x1bc8] sm:$0xf0] }
 0x34f   :  { %7770 = vmatpush.bf16.msra.mxu1 %v17105_v13  ;;  %7796 = vmatpush.bf16.msra.mxu3 %v17109_v22  ;;  %v22085_v13 = vld [vmem:[#allocation5 + $0x1ccc] sm:$0xf]  ;;  %v16349_v22 = vor.u32 %v21573_v15, %v16346_v36  ;;  %v15576_v15 = vld [vmem:[#allocation5 + $0x6c8] sm:$0xf] }
 0x350   :  { %v18397_v31 = vor.u32 %v22085_v13, %v18394_v27  ;;  %v21445_v1 = vld [vmem:[#allocation5 + $0x8cc] sm:$0xf] }
 0x351   :  { %7758 = vmatpush.bf16.msra.mxu0 %v14801_v55  ;;  %7784 = vmatpush.bf16.msra.mxu2 %v14805_v39  ;;  %v23649_v55 = vld [vmem:[#allocation7 + $0x28] sm:$0xff]  ;;  %v7552_v36 = vpop.f32.mrf.mxu0 }
 0x352   :  { %v15832_v39 = vld [vmem:[#allocation5 + $0x8c8] sm:$0xf]  ;;  %v15834_v21 = vld [vmem:[#allocation5 + $0x9c8] sm:$0xf0]  ;;  %v1290_v52 = vperm.slane %v23649_v55, 1 }
 0x353   :  { %7771 = vmatpush.bf16.msra.mxu1 %v16849_v33  ;;  %7797 = vmatpush.bf16.msra.mxu3 %v16853_v5  ;;  %v16089_v33 = vor.u32 %v21541_v8, %v16088_v10  ;;  %v21477_v5 = vld [vmem:[#allocation5 + $0x9c4] sm:$0xf0]  ;;  %v21957_v25 = vld [vmem:[#allocation5 + $0x18cc] sm:$0xf]  ;;  %v15837_v27 = vor.u32 %v21445_v1, %v15834_v21  ;;  %v7565_v8 = vpop.f32.mrf.mxu1 }
 0x354   :  { %7785 = vmatmul.bf16.vlgmr.msra.gmra.mxu2 %v23616_v61  ;;  %7759 = vmatmul.bf16.vlgmr.msra.gmra.mxu0 %v23616_v61  ;;  %v21989_v61 = vld [vmem:[#allocation5 + $0x19c4] sm:$0xf0]  ;;  %v15833_v14 = vor.u32 %v21477_v5, %v15832_v39  ;;  %v21381_v48 = vld [vmem:[#allocation5 + $0x6cc] sm:$0xf] }
 0x355   :  { %7803 = vmatpush.bf16.msrb.mxu0 %v16601_v9  ;;  %7829 = vmatpush.bf16.msrb.mxu2 %v16605_v11  ;;  %v17880_v9 = vld [vmem:[#allocation5 + $0x18c8] sm:$0xf]  ;;  %v18141_v11 = vor.u32 %v22021_v47, %v18138_v58  ;;  %v21893_v49 = vld [vmem:[#allocation5 + $0x16cc] sm:$0xf] }
 0x356   :  { %7798 = vmatmul.bf16.vlgmr.msra.gmra.mxu3 %v23652_v16  ;;  %7772 = vmatmul.bf16.vlgmr.msra.gmra.mxu1 %v23652_v16  ;;  %v17881_v13 = vor.u32 %v21989_v61, %v17880_v9  ;;  %v17624_v10 = vld [vmem:[#allocation5 + $0x16c8] sm:$0xf]  ;;  %v17626_v47 = vld [vmem:[#allocation5 + $0x17c8] sm:$0xf0] }
 0x357   :  { %7816 = vmatpush.bf16.msrb.mxu1 %v18649_v46  ;;  %7842 = vmatpush.bf16.msrb.mxu3 %v18653_v63  ;;  %v1289_v46 = vperm.slane %v23649_v55, 0  ;;  %v17882_v63 = vld [vmem:[#allocation5 + $0x19c8] sm:$0xf0]  ;;  %v21349_v5 = vld [vmem:[#allocation5 + $0x5c4] sm:$0xf0] }
 0x358   :  { %v17885_v34 = vor.u32 %v21957_v25, %v17882_v63  ;;  %v17368_v9 = vld [vmem:[#allocation5 + $0x14c8] sm:$0xf]  ;;  %v21317_v1 = vld [vmem:[#allocation5 + $0x4cc] sm:$0xf] }
 0x359   :  { %7804 = vmatpush.bf16.msrb.mxu0 %v16345_v19  ;;  %7830 = vmatpush.bf16.msrb.mxu2 %v16349_v22  ;;  %v21413_v19 = vld [vmem:[#allocation5 + $0x7c4] sm:$0xf0]  ;;  %v7553_v22 = vadd.f32 %v7552_v36, %v1289_v46  ;;  %v7578_v46 = vpop.f32.mrf.mxu2  ;;  %v15322_v21 = vld [vmem:[#allocation5 + $0x5c8] sm:$0xf0]  ;;  %v7591_v63 = vpop.f32.mrf.mxu3 }
 0x35a   :  { %v21861_v61 = vld [vmem:[#allocation5 + $0x15c4] sm:$0xf0]  ;;  %v7579_v25 = vadd.f32 %v7578_v46, %v1290_v52  ;;  %v21829_v36 = vld [vmem:[#allocation5 + $0x14cc] sm:$0xf] }
 0x35b   :  { %7817 = vmatpush.bf16.msrb.mxu1 %v18393_v57  ;;  %7843 = vmatpush.bf16.msrb.mxu3 %v18397_v31  ;;  %v21925_v57 = vld [vmem:[#allocation5 + $0x17c4] sm:$0xf0]  ;;  %v15578_v31 = vld [vmem:[#allocation5 + $0x7c8] sm:$0xf0]  ;;  %v23658_v58 = vadd.f32 %v7565_v8, %v7553_v22 }
 0x35c   :  { %v17625_v39 = vor.u32 %v21925_v57, %v17624_v10  ;;  %v17370_v22 = vld [vmem:[#allocation5 + $0x15c8] sm:$0xf0]  ;;  %v15064_v10 = vld [vmem:[#allocation5 + $0x2c8] sm:$0xf] }
 0x35d   :  { %7805 = vmatpush.bf16.msrb.mxu0 %v16089_v33  ;;  %7831 = vmatpush.bf16.msrb.mxu2 %v16093_v35  ;;  %25613 = vst [vmem:[#allocation38_spill] sm:$0xff] %v23658_v58  ;;  %v15577_v33 = vor.u32 %v21413_v19, %v15576_v15  ;;  %v15320_v35 = vld [vmem:[#allocation5 + $0x4c8] sm:$0xf]  ;;  %v23660_v15 = vadd.f32 %v7591_v63, %v7579_v25  ;;  %v21253_v52 = vld [vmem:[#allocation5 + $0x2cc] sm:$0xf] }
 0x35e   :  { %v15325_v19 = vor.u32 %v21317_v1, %v15322_v21  ;;  %v21285_v57 = vld [vmem:[#allocation5 + $0x3c4] sm:$0xf0]  ;;  %v17114_v46 = vld [vmem:[#allocation5 + $0x13c8] sm:$0xf0]  ;;  %v18400_v58 = vld [vmem:[#allocation5 + $0x1cd0] sm:$0xf] }
 0x35f   :  { %7818 = vmatpush.bf16.msrb.mxu1 %v18137_v62  ;;  %7844 = vmatpush.bf16.msrb.mxu3 %v18141_v11  ;;  %v15581_v62 = vor.u32 %v21381_v48, %v15578_v31  ;;  %v17629_v11 = vor.u32 %v21893_v49, %v17626_v47  ;;  %25614 = vst [vmem:[#allocation39_spill] sm:$0xff] %v23660_v15  ;;  %v17112_v8 = vld [vmem:[#allocation5 + $0x12c8] sm:$0xf]  ;;  %v15066_v49 = vld [vmem:[#allocation5 + $0x3c8] sm:$0xf0] }
 0x360   :  { %v17373_v48 = vor.u32 %v21829_v36, %v17370_v22  ;;  %v21797_v31 = vld [vmem:[#allocation5 + $0x13c4] sm:$0xf0]  ;;  %v21765_v47 = vld [vmem:[#allocation5 + $0x12cc] sm:$0xf]  ;;  %v21606_v15 = vld [vmem:[#allocation5 + $0xdcc] sm:$0xf0] }
 0x361   :  { %7806 = vmatpush.bf16.msrb.mxu0 %v15833_v14  ;;  %7832 = vmatpush.bf16.msrb.mxu2 %v15837_v27  ;;  %v15321_v14 = vor.u32 %v21349_v5, %v15320_v35  ;;  %v17369_v27 = vor.u32 %v21861_v61, %v17368_v9  ;;  %v14808_v35 = vld [vmem:[#allocation5 + $0xc8] sm:$0xf]  ;;  %v21189_v1 = vld [vmem:[#allocation5 + $0xcc] sm:$0xf]  ;;  %v7580_v21 = vpop.f32.mrf.mxu2  ;;  %v7593_v22 = vpop.f32.mrf.mxu3 }
 0x362   :  { %v21221_v5 = vld [vmem:[#allocation5 + $0x1c4] sm:$0xf0]  ;;  %v14810_v25 = vld [vmem:[#allocation5 + $0x1c8] sm:$0xf0]  ;;  %v16352_v22 = vld [vmem:[#allocation5 + $0xcd0] sm:$0xf] }
 0x363   :  { %7819 = vmatpush.bf16.msrb.mxu1 %v17881_v13  ;;  %7845 = vmatpush.bf16.msrb.mxu3 %v17885_v34  ;;  %v7554_v13 = vpop.f32.mrf.mxu0  ;;  %v7567_v34 = vpop.f32.mrf.mxu1  ;;  %v16856_v9 = vld [vmem:[#allocation5 + $0x10c8] sm:$0xf]  ;;  %v21701_v63 = vld [vmem:[#allocation5 + $0x10cc] sm:$0xf] }
 0x364   :  { %v21733_v61 = vld [vmem:[#allocation5 + $0x11c4] sm:$0xf0]  ;;  %v16858_v36 = vld [vmem:[#allocation5 + $0x11c8] sm:$0xf0]  ;;  %v16608_v13 = vld [vmem:[#allocation5 + $0xed0] sm:$0xf] }
 0x365   :  { %7807 = vmatpush.bf16.msrb.mxu0 %v15577_v33  ;;  %7833 = vmatpush.bf16.msrb.mxu2 %v15581_v62  ;;  %v15065_v33 = vor.u32 %v21285_v57, %v15064_v10  ;;  %v15069_v62 = vor.u32 %v21253_v52, %v15066_v49  ;;  %v21670_v34 = vld [vmem:[#allocation5 + $0xfcc] sm:$0xf0]  ;;  %v14809_v10 = vor.u32 %v21221_v5, %v14808_v35  ;;  %v22150_v52 = vld [vmem:[#allocation5 + $0x1ed4] sm:$0xf] }
 0x366   :  { %v22182_v57 = vld [vmem:[#allocation5 + $0x1fcc] sm:$0xf0]  ;;  %v18658_v49 = vld [vmem:[#allocation5 + $0x1fd0] sm:$0xf0] }
 0x367   :  { %7820 = vmatpush.bf16.msrb.mxu1 %v17625_v39  ;;  %7846 = vmatpush.bf16.msrb.mxu3 %v17629_v11  ;;  %v17113_v39 = vor.u32 %v21797_v31, %v17112_v8  ;;  %v17117_v11 = vor.u32 %v21765_v47, %v17114_v46  ;;  %v16857_v8 = vor.u32 %v21733_v61, %v16856_v9  ;;  %v22118_v35 = vld [vmem:[#allocation5 + $0x1dcc] sm:$0xf0]  ;;  %v21574_v5 = vld [vmem:[#allocation5 + $0xcd4] sm:$0xf] }
 0x368   :  { %v14813_v31 = vor.u32 %v21189_v1, %v14810_v25  ;;  %v16609_v47 = vor.u32 %v21670_v34, %v16608_v13  ;;  %v16353_v9 = vor.u32 %v21606_v15, %v16352_v22  ;;  %v18401_v61 = vor.u32 %v22118_v35, %v18400_v58  ;;  %v21542_v25 = vld [vmem:[#allocation5 + $0xbcc] sm:$0xf0]  ;;  %v21510_v34 = vld [vmem:[#allocation5 + $0xad4] sm:$0xf] }
 0x369   :  { %7808 = vmatpush.bf16.msrb.mxu0 %v15321_v14  ;;  %7834 = vmatpush.bf16.msrb.mxu2 %v15325_v19  ;;  %v18656_v14 = vld [vmem:[#allocation5 + $0x1ed0] sm:$0xf]  ;;  %v16610_v19 = vld [vmem:[#allocation5 + $0xfd0] sm:$0xf0]  ;;  %v16357_v1 = vor.u32 %v21574_v5, %v16354_v40 }
 0x36a   :  { %v18657_v46 = vor.u32 %v22182_v57, %v18656_v14  ;;  %v22054_v13 = vld [vmem:[#allocation5 + $0x1bcc] sm:$0xf0]  ;;  %v16098_v14 = vld [vmem:[#allocation5 + $0xbd0] sm:$0xf0] }
 0x36b   :  { %7821 = vmatpush.bf16.msrb.mxu1 %v17369_v27  ;;  %7847 = vmatpush.bf16.msrb.mxu3 %v17373_v48  ;;  %v21638_v27 = vld [vmem:[#allocation5 + $0xed4] sm:$0xf]  ;;  %v16861_v48 = vor.u32 %v21701_v63, %v16858_v36  ;;  %v18144_v63 = vld [vmem:[#allocation5 + $0x1ad0] sm:$0xf] }
 0x36c   :  { %v16613_v21 = vor.u32 %v21638_v27, %v16610_v19  ;;  %v22022_v57 = vld [vmem:[#allocation5 + $0x1ad4] sm:$0xf]  ;;  %v15840_v58 = vld [vmem:[#allocation5 + $0x8d0] sm:$0xf]  ;;  %v18145_v15 = vor.u32 %v22054_v13, %v18144_v63  ;;  %v16101_v19 = vor.u32 %v21510_v34, %v16098_v14  ;;  %v1292_v34 = vperm.slane %v23649_v55, 3 }
 0x36d   :  { %7809 = vmatpush.bf16.msrb.mxu0 %v15065_v33  ;;  %7835 = vmatpush.bf16.msrb.mxu2 %v15069_v62  ;;  %v18661_v33 = vor.u32 %v22150_v52, %v18658_v49  ;;  %v18402_v62 = vld [vmem:[#allocation5 + $0x1dd0] sm:$0xf0]  ;;  %v1291_v52 = vperm.slane %v23649_v55, 2  ;;  %v15584_v35 = vld [vmem:[#allocation5 + $0x6d0] sm:$0xf] }
 0x36e   :  { %v18146_v27 = vld [vmem:[#allocation5 + $0x1bd0] sm:$0xf0] }
 0x36f   :  { %7822 = vmatpush.bf16.msrb.mxu1 %v17113_v39  ;;  %7848 = vmatpush.bf16.msrb.mxu3 %v17117_v11  ;;  %v22086_v39 = vld [vmem:[#allocation5 + $0x1cd4] sm:$0xf]  ;;  %v16096_v11 = vld [vmem:[#allocation5 + $0xad0] sm:$0xf]  ;;  %v18149_v49 = vor.u32 %v22022_v57, %v18146_v27 }
 0x370   :  { %v18405_v36 = vor.u32 %v22086_v39, %v18402_v62  ;;  %v16097_v40 = vor.u32 %v21542_v25, %v16096_v11  ;;  %v17890_v22 = vld [vmem:[#allocation5 + $0x19d0] sm:$0xf0] }
 0x371   :  { %7810 = vmatpush.bf16.msrb.mxu0 %v14809_v10  ;;  %7836 = vmatpush.bf16.msrb.mxu2 %v14813_v31  ;;  %v23662_v10 = vld [vmem:[#allocation1] sm:$0xff]  ;;  %v17888_v31 = vld [vmem:[#allocation5 + $0x18d0] sm:$0xf]  ;;  %v7604_v5 = vpop.f32.mrf.mxu0 }
 0x372   :  { %v7605_v11 = vadd.f32 %v7604_v5, %v1291_v52  ;;  %v15586_v13 = vld [vmem:[#allocation5 + $0x7d0] sm:$0xf0] }
 0x373   :  { %7823 = vmatpush.bf16.msrb.mxu1 %v16857_v8  ;;  %7849 = vmatpush.bf16.msrb.mxu3 %v16861_v48  ;;  %v21478_v8 = vld [vmem:[#allocation5 + $0x9cc] sm:$0xf0]  ;;  %v7617_v25 = vpop.f32.mrf.mxu1  ;;  %v21894_v14 = vld [vmem:[#allocation5 + $0x16d4] sm:$0xf] }
 0x374   :  { %7837 = vmatmul.bf16.vlgmr.msrb.gmra.mxu2 %v23662_v10  ;;  %7811 = vmatmul.bf16.vlgmr.msrb.gmra.mxu0 %v23662_v10  ;;  %v21990_v48 = vld [vmem:[#allocation5 + $0x19cc] sm:$0xf0]  ;;  %v17634_v57 = vld [vmem:[#allocation5 + $0x17d0] sm:$0xf0]  ;;  %v23670_v27 = vadd.f32 %v7617_v25, %v7605_v11 }
 0x375   :  { %7855 = vmatpush.bf16.msra.mxu0 %v16609_v47  ;;  %7881 = vmatpush.bf16.msra.mxu2 %v16613_v21  ;;  %v21446_v47 = vld [vmem:[#allocation5 + $0x8d4] sm:$0xf]  ;;  %v17889_v39 = vor.u32 %v21990_v48, %v17888_v31  ;;  %v17376_v31 = vld [vmem:[#allocation5 + $0x14d0] sm:$0xf] }
 0x376   :  { %7850 = vmatmul.bf16.vlgmr.msrb.gmra.mxu3 %v23652_v16  ;;  %7824 = vmatmul.bf16.vlgmr.msrb.gmra.mxu1 %v23652_v16  ;;  %v21958_v21 = vld [vmem:[#allocation5 + $0x18d4] sm:$0xf]  ;;  %25615 = vst [vmem:[#allocation40_spill] sm:$0xff] %v23670_v27  ;;  %v21862_v48 = vld [vmem:[#allocation5 + $0x15cc] sm:$0xf0] }
 0x377   :  { %7868 = vmatpush.bf16.msra.mxu1 %v18657_v46  ;;  %7894 = vmatpush.bf16.msra.mxu3 %v18661_v33  ;;  %v15842_v46 = vld [vmem:[#allocation5 + $0x9d0] sm:$0xf0]  ;;  %v15841_v33 = vor.u32 %v21478_v8, %v15840_v58  ;;  %v17893_v63 = vor.u32 %v21958_v21, %v17890_v22  ;;  %v21350_v8 = vld [vmem:[#allocation5 + $0x5cc] sm:$0xf0]  ;;  %v7630_v52 = vpop.f32.mrf.mxu2  ;;  %v18408_v27 = vld [vmem:[#allocation5 + $0x1cd8] sm:$0xf] }
 0x378   :  { %v15845_v62 = vor.u32 %v21446_v47, %v15842_v46  ;;  %v21318_v47 = vld [vmem:[#allocation5 + $0x4d4] sm:$0xf]  ;;  %v7631_v21 = vadd.f32 %v7630_v52, %v1292_v34  ;;  %v17120_v25 = vld [vmem:[#allocation5 + $0x12d0] sm:$0xf] }
 0x379   :  { %7856 = vmatpush.bf16.msra.mxu0 %v16353_v9  ;;  %7882 = vmatpush.bf16.msra.mxu2 %v16357_v1  ;;  %v21414_v9 = vld [vmem:[#allocation5 + $0x7cc] sm:$0xf0]  ;;  %v15330_v46 = vld [vmem:[#allocation5 + $0x5d0] sm:$0xf0]  ;;  %v7643_v22 = vpop.f32.mrf.mxu3 }
 0x37a   :  { %v21926_v1 = vld [vmem:[#allocation5 + $0x17cc] sm:$0xf0]  ;;  %v21830_v5 = vld [vmem:[#allocation5 + $0x14d4] sm:$0xf] }
 0x37b   :  { %7869 = vmatpush.bf16.msra.mxu1 %v18401_v61  ;;  %7895 = vmatpush.bf16.msra.mxu3 %v18405_v36  ;;  %v17632_v61 = vld [vmem:[#allocation5 + $0x16d0] sm:$0xf]  ;;  %v21382_v36 = vld [vmem:[#allocation5 + $0x6d4] sm:$0xf] }
 0x37c   :  { %v17633_v58 = vor.u32 %v21926_v1, %v17632_v61  ;;  %v17378_v11 = vld [vmem:[#allocation5 + $0x15d0] sm:$0xf0]  ;;  %v15072_v61 = vld [vmem:[#allocation5 + $0x2d0] sm:$0xf] }
 0x37d   :  { %7857 = vmatpush.bf16.msra.mxu0 %v16097_v40  ;;  %7883 = vmatpush.bf16.msra.mxu2 %v16101_v19  ;;  %v15585_v40 = vor.u32 %v21414_v9, %v15584_v35  ;;  %v15328_v19 = vld [vmem:[#allocation5 + $0x4d0] sm:$0xf]  ;;  %v23672_v35 = vadd.f32 %v7643_v22, %v7631_v21  ;;  %v15333_v9 = vor.u32 %v21318_v47, %v15330_v46  ;;  %v21254_v34 = vld [vmem:[#allocation5 + $0x2d4] sm:$0xf] }
 0x37e   :  { %v21286_v1 = vld [vmem:[#allocation5 + $0x3cc] sm:$0xf0]  ;;  %v17122_v52 = vld [vmem:[#allocation5 + $0x13d0] sm:$0xf0] }
 0x37f   :  { %7870 = vmatpush.bf16.msra.mxu1 %v18145_v15  ;;  %7896 = vmatpush.bf16.msra.mxu3 %v18149_v49  ;;  %v15589_v15 = vor.u32 %v21382_v36, %v15586_v13  ;;  %v17637_v49 = vor.u32 %v21894_v14, %v17634_v57  ;;  %25616 = vst [vmem:[#allocation41_spill] sm:$0xff] %v23672_v35  ;;  %v21798_v13 = vld [vmem:[#allocation5 + $0x13cc] sm:$0xf0]  ;;  %v15074_v14 = vld [vmem:[#allocation5 + $0x3d0] sm:$0xf0]  ;;  %v7632_v46 = vpop.f32.mrf.mxu2 }
 0x380   :  { %v17381_v36 = vor.u32 %v21830_v5, %v17378_v11  ;;  %v21766_v57 = vld [vmem:[#allocation5 + $0x12d4] sm:$0xf]  ;;  %v21607_v35 = vld [vmem:[#allocation5 + $0xdd4] sm:$0xf0] }
 0x381   :  { %7858 = vmatpush.bf16.msra.mxu0 %v15841_v33  ;;  %7884 = vmatpush.bf16.msra.mxu2 %v15845_v62  ;;  %v15329_v33 = vor.u32 %v21350_v8, %v15328_v19  ;;  %v17377_v62 = vor.u32 %v21862_v48, %v17376_v31  ;;  %v14816_v19 = vld [vmem:[#allocation5 + $0xd0] sm:$0xf]  ;;  %v21190_v47 = vld [vmem:[#allocation5 + $0xd4] sm:$0xf]  ;;  %v7645_v11 = vpop.f32.mrf.mxu3 }
 0x382   :  { %v21222_v8 = vld [vmem:[#allocation5 + $0x1cc] sm:$0xf0]  ;;  %v14818_v21 = vld [vmem:[#allocation5 + $0x1d0] sm:$0xf0]  ;;  %v16360_v11 = vld [vmem:[#allocation5 + $0xcd8] sm:$0xf] }
 0x383   :  { %7871 = vmatpush.bf16.msra.mxu1 %v17889_v39  ;;  %7897 = vmatpush.bf16.msra.mxu3 %v17893_v63  ;;  %v7606_v39 = vpop.f32.mrf.mxu0  ;;  %v7619_v63 = vpop.f32.mrf.mxu1  ;;  %v16864_v31 = vld [vmem:[#allocation5 + $0x10d0] sm:$0xf]  ;;  %v21702_v22 = vld [vmem:[#allocation5 + $0x10d4] sm:$0xf] }
 0x384   :  { %v21734_v48 = vld [vmem:[#allocation5 + $0x11cc] sm:$0xf0]  ;;  %v16866_v5 = vld [vmem:[#allocation5 + $0x11d0] sm:$0xf0]  ;;  %v16616_v39 = vld [vmem:[#allocation5 + $0xed8] sm:$0xf] }
 0x385   :  { %7859 = vmatpush.bf16.msra.mxu0 %v15585_v40  ;;  %7885 = vmatpush.bf16.msra.mxu2 %v15589_v15  ;;  %v15073_v40 = vor.u32 %v21286_v1, %v15072_v61  ;;  %v15077_v15 = vor.u32 %v21254_v34, %v15074_v14  ;;  %v21671_v63 = vld [vmem:[#allocation5 + $0xfd4] sm:$0xf0]  ;;  %v14817_v61 = vor.u32 %v21222_v8, %v14816_v19  ;;  %v22151_v34 = vld [vmem:[#allocation5 + $0x1edc] sm:$0xf] }
 0x386   :  { %v22183_v1 = vld [vmem:[#allocation5 + $0x1fd4] sm:$0xf0]  ;;  %v18666_v14 = vld [vmem:[#allocation5 + $0x1fd8] sm:$0xf0] }
 0x387   :  { %7872 = vmatpush.bf16.msra.mxu1 %v17633_v58  ;;  %7898 = vmatpush.bf16.msra.mxu3 %v17637_v49  ;;  %v17121_v58 = vor.u32 %v21798_v13, %v17120_v25  ;;  %v17125_v49 = vor.u32 %v21766_v57, %v17122_v52  ;;  %v16865_v25 = vor.u32 %v21734_v48, %v16864_v31  ;;  %v22119_v19 = vld [vmem:[#allocation5 + $0x1dd4] sm:$0xf0]  ;;  %v21575_v8 = vld [vmem:[#allocation5 + $0xcdc] sm:$0xf] }
 0x388   :  { %v14821_v13 = vor.u32 %v21190_v47, %v14818_v21  ;;  %v16617_v57 = vor.u32 %v21671_v63, %v16616_v39  ;;  %v16361_v31 = vor.u32 %v21607_v35, %v16360_v11  ;;  %v18409_v48 = vor.u32 %v22119_v19, %v18408_v27  ;;  %v21543_v21 = vld [vmem:[#allocation5 + $0xbd4] sm:$0xf0]  ;;  %v21511_v63 = vld [vmem:[#allocation5 + $0xadc] sm:$0xf] }
 0x389   :  { %7860 = vmatpush.bf16.msra.mxu0 %v15329_v33  ;;  %7886 = vmatpush.bf16.msra.mxu2 %v15333_v9  ;;  %v18664_v33 = vld [vmem:[#allocation5 + $0x1ed8] sm:$0xf]  ;;  %v16618_v9 = vld [vmem:[#allocation5 + $0xfd8] sm:$0xf0]  ;;  %v16365_v47 = vor.u32 %v21575_v8, %v16362_v41 }
 0x38a   :  { %v18665_v52 = vor.u32 %v22183_v1, %v18664_v33  ;;  %v22055_v39 = vld [vmem:[#allocation5 + $0x1bd4] sm:$0xf0]  ;;  %v16106_v33 = vld [vmem:[#allocation5 + $0xbd8] sm:$0xf0] }
 0x38b   :  { %7873 = vmatpush.bf16.msra.mxu1 %v17377_v62  ;;  %7899 = vmatpush.bf16.msra.mxu3 %v17381_v36  ;;  %v21639_v62 = vld [vmem:[#allocation5 + $0xedc] sm:$0xf]  ;;  %v16869_v36 = vor.u32 %v21702_v22, %v16866_v5  ;;  %v18152_v22 = vld [vmem:[#allocation5 + $0x1ad8] sm:$0xf] }
 0x38c   :  { %v16621_v46 = vor.u32 %v21639_v62, %v16618_v9  ;;  %v18154_v1 = vld [vmem:[#allocation5 + $0x1bd8] sm:$0xf0]  ;;  %v15848_v27 = vld [vmem:[#allocation5 + $0x8d8] sm:$0xf]  ;;  %v18153_v41 = vor.u32 %v22055_v39, %v18152_v22  ;;  %v16109_v62 = vor.u32 %v21511_v63, %v16106_v33  ;;  %v1294_v39 = vperm.slane %v23649_v55, 5 }
 0x38d   :  { %7861 = vmatpush.bf16.msra.mxu0 %v15073_v40  ;;  %7887 = vmatpush.bf16.msra.mxu2 %v15077_v15  ;;  %v18669_v40 = vor.u32 %v22151_v34, %v18666_v14  ;;  %v18410_v15 = vld [vmem:[#allocation5 + $0x1dd8] sm:$0xf0]  ;;  %v21479_v9 = vld [vmem:[#allocation5 + $0x9d4] sm:$0xf0] }
 0x38e   :  { %v21991_v14 = vld [vmem:[#allocation5 + $0x19d4] sm:$0xf0]  ;;  %v15849_v11 = vor.u32 %v21479_v9, %v15848_v27  ;;  %v21383_v22 = vld [vmem:[#allocation5 + $0x6dc] sm:$0xf] }
 0x38f   :  { %7874 = vmatpush.bf16.msra.mxu1 %v17121_v58  ;;  %7900 = vmatpush.bf16.msra.mxu3 %v17125_v49  ;;  %v22087_v58 = vld [vmem:[#allocation5 + $0x1cdc] sm:$0xf]  ;;  %v16104_v49 = vld [vmem:[#allocation5 + $0xad8] sm:$0xf] }
 0x390   :  { %v18413_v5 = vor.u32 %v22087_v58, %v18410_v15  ;;  %v16105_v35 = vor.u32 %v21543_v21, %v16104_v49  ;;  %v21415_v15 = vld [vmem:[#allocation5 + $0x7d4] sm:$0xf0]  ;;  %v21895_v63 = vld [vmem:[#allocation5 + $0x16dc] sm:$0xf] }
 0x391   :  { %7862 = vmatpush.bf16.msra.mxu0 %v14817_v61  ;;  %7888 = vmatpush.bf16.msra.mxu2 %v14821_v13  ;;  %v22023_v61 = vld [vmem:[#allocation5 + $0x1adc] sm:$0xf]  ;;  %v1293_v13 = vperm.slane %v23649_v55, 4  ;;  %v7656_v19 = vpop.f32.mrf.mxu0  ;;  %v17384_v9 = vld [vmem:[#allocation5 + $0x14d8] sm:$0xf] }
 0x392   :  { %v18157_v34 = vor.u32 %v22023_v61, %v18154_v1  ;;  %v17642_v33 = vld [vmem:[#allocation5 + $0x17d8] sm:$0xf0] }
 0x393   :  { %7875 = vmatpush.bf16.msra.mxu1 %v16865_v25  ;;  %7901 = vmatpush.bf16.msra.mxu3 %v16869_v36  ;;  %v17896_v25 = vld [vmem:[#allocation5 + $0x18d8] sm:$0xf]  ;;  %v21447_v36 = vld [vmem:[#allocation5 + $0x8dc] sm:$0xf]  ;;  %v7669_v49 = vpop.f32.mrf.mxu1 }
 0x394   :  { %7889 = vmatmul.bf16.vlgmr.msra.gmra.mxu2 %v23662_v10  ;;  %7863 = vmatmul.bf16.vlgmr.msra.gmra.mxu0 %v23662_v10  ;;  %v17897_v8 = vor.u32 %v21991_v14, %v17896_v25  ;;  %v21319_v14 = vld [vmem:[#allocation5 + $0x4dc] sm:$0xf] }
 0x395   :  { %7907 = vmatpush.bf16.msrb.mxu0 %v16617_v57  ;;  %7933 = vmatpush.bf16.msrb.mxu2 %v16621_v46  ;;  %v15850_v57 = vld [vmem:[#allocation5 + $0x9d8] sm:$0xf0] }
 0x396   :  { %7902 = vmatmul.bf16.vlgmr.msra.gmra.mxu3 %v23652_v16  ;;  %7876 = vmatmul.bf16.vlgmr.msra.gmra.mxu1 %v23652_v16  ;;  %v17898_v46 = vld [vmem:[#allocation5 + $0x19d8] sm:$0xf0]  ;;  %v15853_v58 = vor.u32 %v21447_v36, %v15850_v57 }
 0x397   :  { %7920 = vmatpush.bf16.msrb.mxu1 %v18665_v52  ;;  %7946 = vmatpush.bf16.msrb.mxu3 %v18669_v40  ;;  %v21959_v52 = vld [vmem:[#allocation5 + $0x18dc] sm:$0xf]  ;;  %v15592_v40 = vld [vmem:[#allocation5 + $0x6d8] sm:$0xf]  ;;  %v7682_v25 = vpop.f32.mrf.mxu2 }
 0x398   :  { %v17901_v21 = vor.u32 %v21959_v52, %v17898_v46  ;;  %v15593_v1 = vor.u32 %v21415_v15, %v15592_v40  ;;  %v15338_v36 = vld [vmem:[#allocation5 + $0x5d8] sm:$0xf0]  ;;  %v7683_v57 = vadd.f32 %v7682_v25, %v1294_v39  ;;  %v21735_v25 = vld [vmem:[#allocation5 + $0x11d4] sm:$0xf0] }
 0x399   :  { %7908 = vmatpush.bf16.msrb.mxu0 %v16361_v31  ;;  %7934 = vmatpush.bf16.msrb.mxu2 %v16365_v47  ;;  %v17640_v31 = vld [vmem:[#allocation5 + $0x16d8] sm:$0xf]  ;;  %v7657_v47 = vadd.f32 %v7656_v19, %v1293_v13  ;;  %v17645_v13 = vor.u32 %v21895_v63, %v17642_v33  ;;  %v7695_v52 = vpop.f32.mrf.mxu3  ;;  %v21831_v46 = vld [vmem:[#allocation5 + $0x14dc] sm:$0xf]  ;;  %v15341_v15 = vor.u32 %v21319_v14, %v15338_v36 }
 0x39a   :  { %v17386_v19 = vld [vmem:[#allocation5 + $0x15d8] sm:$0xf0]  ;;  %v23682_v40 = vadd.f32 %v7695_v52, %v7683_v57 }
 0x39b   :  { %7921 = vmatpush.bf16.msrb.mxu1 %v18409_v48  ;;  %7947 = vmatpush.bf16.msrb.mxu3 %v18413_v5  ;;  %v21927_v48 = vld [vmem:[#allocation5 + $0x17d4] sm:$0xf0]  ;;  %v15594_v5 = vld [vmem:[#allocation5 + $0x7d8] sm:$0xf0]  ;;  %v23680_v61 = vadd.f32 %v7669_v49, %v7657_v47  ;;  %v7671_v49 = vpop.f32.mrf.mxu1 }
 0x39c   :  { %v15597_v27 = vor.u32 %v21383_v22, %v15594_v5  ;;  %25618 = vst [vmem:[#allocation43_spill] sm:$0xff] %v23682_v40  ;;  %v17128_v47 = vld [vmem:[#allocation5 + $0x12d8] sm:$0xf]  ;;  %v21255_v5 = vld [vmem:[#allocation5 + $0x2dc] sm:$0xf] }
 0x39d   :  { %7909 = vmatpush.bf16.msrb.mxu0 %v16105_v35  ;;  %7935 = vmatpush.bf16.msrb.mxu2 %v16109_v62  ;;  %25617 = vst [vmem:[#allocation42_spill] sm:$0xff] %v23680_v61  ;;  %v17641_v35 = vor.u32 %v21927_v48, %v17640_v31  ;;  %v21351_v62 = vld [vmem:[#allocation5 + $0x5d4] sm:$0xf0]  ;;  %v15082_v39 = vld [vmem:[#allocation5 + $0x3d8] sm:$0xf0] }
 0x39e   :  { %v15080_v31 = vld [vmem:[#allocation5 + $0x2d8] sm:$0xf]  ;;  %v21767_v63 = vld [vmem:[#allocation5 + $0x12dc] sm:$0xf]  ;;  %v18416_v40 = vld [vmem:[#allocation5 + $0x1ce0] sm:$0xf] }
 0x39f   :  { %7922 = vmatpush.bf16.msrb.mxu1 %v18153_v41  ;;  %7948 = vmatpush.bf16.msrb.mxu3 %v18157_v34  ;;  %v15336_v41 = vld [vmem:[#allocation5 + $0x4d8] sm:$0xf]  ;;  %v17130_v33 = vld [vmem:[#allocation5 + $0x13d8] sm:$0xf0]  ;;  %v7684_v14 = vpop.f32.mrf.mxu2  ;;  %v16370_v61 = vld [vmem:[#allocation5 + $0xde0] sm:$0xf0] }
 0x3a0   :  { %v21863_v34 = vld [vmem:[#allocation5 + $0x15d4] sm:$0xf0]  ;;  %v14826_v36 = vld [vmem:[#allocation5 + $0x1d8] sm:$0xf0]  ;;  %v16368_v14 = vld [vmem:[#allocation5 + $0xce0] sm:$0xf] }
 0x3a1   :  { %7910 = vmatpush.bf16.msrb.mxu0 %v15849_v11  ;;  %7936 = vmatpush.bf16.msrb.mxu2 %v15853_v58  ;;  %v15337_v11 = vor.u32 %v21351_v62, %v15336_v41  ;;  %v17385_v58 = vor.u32 %v21863_v34, %v17384_v9  ;;  %v21287_v48 = vld [vmem:[#allocation5 + $0x3d4] sm:$0xf0]  ;;  %v21191_v34 = vld [vmem:[#allocation5 + $0xdc] sm:$0xf] }
 0x3a2   :  { %v21799_v22 = vld [vmem:[#allocation5 + $0x13d4] sm:$0xf0]  ;;  %v21703_v57 = vld [vmem:[#allocation5 + $0x10dc] sm:$0xf]  ;;  %v14829_v49 = vor.u32 %v21191_v34, %v14826_v36  ;;  %v21544_v36 = vld [vmem:[#allocation5 + $0xbdc] sm:$0xf0] }
 0x3a3   :  { %7923 = vmatpush.bf16.msrb.mxu1 %v17897_v8  ;;  %7949 = vmatpush.bf16.msrb.mxu3 %v17901_v21  ;;  %v7658_v8 = vpop.f32.mrf.mxu0  ;;  %v17389_v21 = vor.u32 %v21831_v46, %v17386_v19  ;;  %v14824_v41 = vld [vmem:[#allocation5 + $0xd8] sm:$0xf]  ;;  %v16874_v52 = vld [vmem:[#allocation5 + $0x11d8] sm:$0xf0]  ;;  %v7697_v46 = vpop.f32.mrf.mxu3  ;;  %v16624_v19 = vld [vmem:[#allocation5 + $0xee0] sm:$0xf] }
 0x3a4   :  { %v21223_v62 = vld [vmem:[#allocation5 + $0x1d4] sm:$0xf0]  ;;  %v21672_v8 = vld [vmem:[#allocation5 + $0xfdc] sm:$0xf0] }
 0x3a5   :  { %7911 = vmatpush.bf16.msrb.mxu0 %v15593_v1  ;;  %7937 = vmatpush.bf16.msrb.mxu2 %v15597_v27  ;;  %v15081_v1 = vor.u32 %v21287_v48, %v15080_v31  ;;  %v15085_v27 = vor.u32 %v21255_v5, %v15082_v39  ;;  %v16872_v9 = vld [vmem:[#allocation5 + $0x10d8] sm:$0xf]  ;;  %v14825_v31 = vor.u32 %v21223_v62, %v14824_v41  ;;  %v22184_v48 = vld [vmem:[#allocation5 + $0x1fdc] sm:$0xf0]  ;;  %v18674_v5 = vld [vmem:[#allocation5 + $0x1fe0] sm:$0xf0] }
 0x3a6   :  { %v16625_v39 = vor.u32 %v21672_v8, %v16624_v19  ;;  %v21608_v46 = vld [vmem:[#allocation5 + $0xddc] sm:$0xf0]  ;;  %v21576_v62 = vld [vmem:[#allocation5 + $0xce4] sm:$0xf] }
 0x3a7   :  { %7924 = vmatpush.bf16.msrb.mxu1 %v17641_v35  ;;  %7950 = vmatpush.bf16.msrb.mxu3 %v17645_v13  ;;  %v17129_v35 = vor.u32 %v21799_v22, %v17128_v47  ;;  %v17133_v13 = vor.u32 %v21767_v63, %v17130_v33  ;;  %v16873_v47 = vor.u32 %v21735_v25, %v16872_v9  ;;  %v22152_v22 = vld [vmem:[#allocation5 + $0x1ee4] sm:$0xf]  ;;  %v22120_v41 = vld [vmem:[#allocation5 + $0x1ddc] sm:$0xf0] }
 0x3a8   :  { %v16369_v9 = vor.u32 %v21608_v46, %v16368_v14  ;;  %v18417_v25 = vor.u32 %v22120_v41, %v18416_v40  ;;  %v16373_v34 = vor.u32 %v21576_v62, %v16370_v61  ;;  %v22056_v19 = vld [vmem:[#allocation5 + $0x1bdc] sm:$0xf0]  ;;  %v21512_v8 = vld [vmem:[#allocation5 + $0xae4] sm:$0xf] }
 0x3a9   :  { %7912 = vmatpush.bf16.msrb.mxu0 %v15337_v11  ;;  %7938 = vmatpush.bf16.msrb.mxu2 %v15341_v15  ;;  %v18672_v11 = vld [vmem:[#allocation5 + $0x1ee0] sm:$0xf]  ;;  %v16626_v15 = vld [vmem:[#allocation5 + $0xfe0] sm:$0xf0] }
 0x3aa   :  { %v18673_v63 = vor.u32 %v22184_v48, %v18672_v11  ;;  %v16114_v11 = vld [vmem:[#allocation5 + $0xbe0] sm:$0xf0]  ;;  %v15856_v40 = vld [vmem:[#allocation5 + $0x8e0] sm:$0xf] }
 0x3ab   :  { %7925 = vmatpush.bf16.msrb.mxu1 %v17385_v58  ;;  %7951 = vmatpush.bf16.msrb.mxu3 %v17389_v21  ;;  %v21640_v58 = vld [vmem:[#allocation5 + $0xee4] sm:$0xf]  ;;  %v16877_v21 = vor.u32 %v21703_v57, %v16874_v52  ;;  %v18160_v57 = vld [vmem:[#allocation5 + $0x1ae0] sm:$0xf] }
 0x3ac   :  { %v16629_v33 = vor.u32 %v21640_v58, %v16626_v15  ;;  %v18162_v48 = vld [vmem:[#allocation5 + $0x1be0] sm:$0xf0]  ;;  %v18161_v61 = vor.u32 %v22056_v19, %v18160_v57  ;;  %v16117_v15 = vor.u32 %v21512_v8, %v16114_v11 }
 0x3ad   :  { %7913 = vmatpush.bf16.msrb.mxu0 %v15081_v1  ;;  %7939 = vmatpush.bf16.msrb.mxu2 %v15085_v27  ;;  %v18677_v1 = vor.u32 %v22152_v22, %v18674_v5  ;;  %v18418_v27 = vld [vmem:[#allocation5 + $0x1de0] sm:$0xf0]  ;;  %v1295_v22 = vperm.slane %v23649_v55, 6 }
 0x3ae   :  { %v17906_v14 = vld [vmem:[#allocation5 + $0x19e0] sm:$0xf0] }
 0x3af   :  { %7926 = vmatpush.bf16.msrb.mxu1 %v17129_v35  ;;  %7952 = vmatpush.bf16.msrb.mxu3 %v17133_v13  ;;  %v22088_v35 = vld [vmem:[#allocation5 + $0x1ce4] sm:$0xf]  ;;  %v16112_v13 = vld [vmem:[#allocation5 + $0xae0] sm:$0xf] }
 0x3b0   :  { %v18421_v52 = vor.u32 %v22088_v35, %v18418_v27  ;;  %v16113_v58 = vor.u32 %v21544_v36, %v16112_v13  ;;  %v21416_v35 = vld [vmem:[#allocation5 + $0x7dc] sm:$0xf0]  ;;  %v21384_v36 = vld [vmem:[#allocation5 + $0x6e4] sm:$0xf] }
 0x3b1   :  { %7914 = vmatpush.bf16.msrb.mxu0 %v14825_v31  ;;  %7940 = vmatpush.bf16.msrb.mxu2 %v14829_v49  ;;  %v22024_v31 = vld [vmem:[#allocation5 + $0x1ae4] sm:$0xf]  ;;  %v17904_v49 = vld [vmem:[#allocation5 + $0x18e0] sm:$0xf]  ;;  %v7708_v41 = vpop.f32.mrf.mxu0 }
 0x3b2   :  { %v18165_v5 = vor.u32 %v22024_v31, %v18162_v48  ;;  %v17648_v27 = vld [vmem:[#allocation5 + $0x16e0] sm:$0xf]  ;;  %v15602_v57 = vld [vmem:[#allocation5 + $0x7e0] sm:$0xf0] }
 0x3b3   :  { %7927 = vmatpush.bf16.msrb.mxu1 %v16873_v47  ;;  %7953 = vmatpush.bf16.msrb.mxu3 %v16877_v21  ;;  %v21480_v47 = vld [vmem:[#allocation5 + $0x9dc] sm:$0xf0]  ;;  %v21896_v19 = vld [vmem:[#allocation5 + $0x16e4] sm:$0xf] }
 0x3b4   :  { %7941 = vmatmul.bf16.vlgmr.msrb.gmra.mxu2 %v23662_v10  ;;  %7915 = vmatmul.bf16.vlgmr.msrb.gmra.mxu0 %v23662_v10  ;;  %v21992_v21 = vld [vmem:[#allocation5 + $0x19dc] sm:$0xf0]  ;;  %v15857_v46 = vor.u32 %v21480_v47, %v15856_v40  ;;  %v17650_v8 = vld [vmem:[#allocation5 + $0x17e0] sm:$0xf0] }
 0x3b5   :  { %7959 = vmatpush.bf16.msra.mxu0 %v16625_v39  ;;  %7985 = vmatpush.bf16.msra.mxu2 %v16629_v33  ;;  %v21448_v39 = vld [vmem:[#allocation5 + $0x8e4] sm:$0xf]  ;;  %v15344_v40 = vld [vmem:[#allocation5 + $0x4e0] sm:$0xf] }
 0x3b6   :  { %7954 = vmatmul.bf16.vlgmr.msrb.gmra.mxu3 %v23652_v16  ;;  %7928 = vmatmul.bf16.vlgmr.msrb.gmra.mxu1 %v23652_v16  ;;  %v21960_v33 = vld [vmem:[#allocation5 + $0x18e4] sm:$0xf]  ;;  %v17905_v16 = vor.u32 %v21992_v21, %v17904_v49  ;;  %v17653_v49 = vor.u32 %v21896_v19, %v17650_v8  ;;  %v14832_v8 = vld [vmem:[#allocation5 + $0xe0] sm:$0xf] }
 0x3b7   :  { %7972 = vmatpush.bf16.msra.mxu1 %v18673_v63  ;;  %7998 = vmatpush.bf16.msra.mxu3 %v18677_v1  ;;  %v15858_v63 = vld [vmem:[#allocation5 + $0x9e0] sm:$0xf0]  ;;  %v15600_v1 = vld [vmem:[#allocation5 + $0x6e0] sm:$0xf]  ;;  %v17909_v13 = vor.u32 %v21960_v33, %v17906_v14  ;;  %v7734_v47 = vpop.f32.mrf.mxu2 }
 0x3b8   :  { %v15861_v62 = vor.u32 %v21448_v39, %v15858_v63  ;;  %v15601_v31 = vor.u32 %v21416_v35, %v15600_v1  ;;  %v15346_v21 = vld [vmem:[#allocation5 + $0x5e0] sm:$0xf0]  ;;  %v21288_v35 = vld [vmem:[#allocation5 + $0x3dc] sm:$0xf0] }
 0x3b9   :  { %7960 = vmatpush.bf16.msra.mxu0 %v16369_v9  ;;  %7986 = vmatpush.bf16.msra.mxu2 %v16373_v34  ;;  %v21928_v9 = vld [vmem:[#allocation5 + $0x17dc] sm:$0xf0]  ;;  %v7721_v34 = vpop.f32.mrf.mxu1  ;;  %v7747_v39 = vpop.f32.mrf.mxu3  ;;  %v21832_v63 = vld [vmem:[#allocation5 + $0x14e4] sm:$0xf] }
 0x3ba   :  { %v17649_v48 = vor.u32 %v21928_v9, %v17648_v27  ;;  %v17394_v33 = vld [vmem:[#allocation5 + $0x15e0] sm:$0xf0]  ;;  %v7710_v1 = vpop.f32.mrf.mxu0  ;;  %v17136_v27 = vld [vmem:[#allocation5 + $0x12e0] sm:$0xf] }
 0x3bb   :  { %7973 = vmatpush.bf16.msra.mxu1 %v18417_v25  ;;  %7999 = vmatpush.bf16.msra.mxu3 %v18421_v52  ;;  %v7709_v25 = vadd.f32 %v7708_v41, %v1295_v22  ;;  %v1296_v52 = vperm.slane %v23649_v55, 7  ;;  %v21864_v22 = vld [vmem:[#allocation5 + $0x15dc] sm:$0xf0]  ;;  %v22185_v1 = vld [vmem:[#allocation5 + $0x1fe4] sm:$0xf0] }
 0x3bd   :  { %7961 = vmatpush.bf16.msra.mxu0 %v16113_v58  ;;  %7987 = vmatpush.bf16.msra.mxu2 %v16117_v15  ;;  %v23690_v11 = vadd.f32 %v7721_v34, %v7709_v25  ;;  %v15605_v58 = vor.u32 %v21384_v36, %v15602_v57  ;;  %v17392_v15 = vld [vmem:[#allocation5 + $0x14e0] sm:$0xf]  ;;  %v7735_v55 = vadd.f32 %v7734_v47, %v1296_v52  ;;  %v15090_v36 = vld [vmem:[#allocation5 + $0x3e0] sm:$0xf0] }
 0x3be   :  { %v17393_v41 = vor.u32 %v21864_v22, %v17392_v15  ;;  %v17397_v25 = vor.u32 %v21832_v63, %v17394_v33  ;;  %v21800_v34 = vld [vmem:[#allocation5 + $0x13dc] sm:$0xf0]  ;;  %v21768_v57 = vld [vmem:[#allocation5 + $0x12e4] sm:$0xf]  ;;  %v21673_v63 = vld [vmem:[#allocation5 + $0xfe4] sm:$0xf0] }
 0x3bf   :  { %7974 = vmatpush.bf16.msra.mxu1 %v18161_v61  ;;  %8000 = vmatpush.bf16.msra.mxu3 %v18165_v5  ;;  %25619 = vst [vmem:[#allocation44_spill] sm:$0xff] %v23690_v11  ;;  %v21352_v61 = vld [vmem:[#allocation5 + $0x5dc] sm:$0xf0]  ;;  %v21320_v5 = vld [vmem:[#allocation5 + $0x4e4] sm:$0xf]  ;;  %v7736_v47 = vpop.f32.mrf.mxu2 }
 0x3c0   :  { %v15345_v14 = vor.u32 %v21352_v61, %v15344_v40  ;;  %v17138_v52 = vld [vmem:[#allocation5 + $0x13e0] sm:$0xf0]  ;;  %v16880_v40 = vld [vmem:[#allocation5 + $0x10e0] sm:$0xf]  ;;  %v18680_v33 = vld [vmem:[#allocation5 + $0x1ee8] sm:$0xf] }
 0x3c1   :  { %7962 = vmatpush.bf16.msra.mxu0 %v15857_v46  ;;  %7988 = vmatpush.bf16.msra.mxu2 %v15861_v62  ;;  %v23692_v46 = vadd.f32 %v7747_v39, %v7735_v55  ;;  %v15088_v62 = vld [vmem:[#allocation5 + $0x2e0] sm:$0xf]  ;;  %v7723_v9 = vpop.f32.mrf.mxu1  ;;  %v21192_v15 = vld [vmem:[#allocation5 + $0xe4] sm:$0xf]  ;;  %v7749_v55 = vpop.f32.mrf.mxu3  ;;  %v16632_v39 = vld [vmem:[#allocation5 + $0xee8] sm:$0xf] }
 0x3c2   :  { %v15089_v19 = vor.u32 %v21288_v35, %v15088_v62  ;;  %v21736_v61 = vld [vmem:[#allocation5 + $0x11dc] sm:$0xf0]  ;;  %v14834_v22 = vld [vmem:[#allocation5 + $0x1e0] sm:$0xf0]  ;;  %v18682_v9 = vld [vmem:[#allocation5 + $0x1fe8] sm:$0xf0] }
 0x3c3   :  { %7975 = vmatpush.bf16.msra.mxu1 %v17905_v16  ;;  %8001 = vmatpush.bf16.msra.mxu3 %v17909_v13  ;;  %25620 = vst [vmem:[#allocation45_spill] sm:$0xff] %v23692_v46  ;;  %v15349_v16 = vor.u32 %v21320_v5, %v15346_v21  ;;  %v21256_v13 = vld [vmem:[#allocation5 + $0x2e4] sm:$0xf]  ;;  %v16881_v62 = vor.u32 %v21736_v61, %v16880_v40  ;;  %v18424_v47 = vld [vmem:[#allocation5 + $0x1ce8] sm:$0xf] }
 0x3c4   :  { %v21704_v5 = vld [vmem:[#allocation5 + $0x10e4] sm:$0xf]  ;;  %v14837_v35 = vor.u32 %v21192_v15, %v14834_v22  ;;  %v16378_v55 = vld [vmem:[#allocation5 + $0xde8] sm:$0xf0]  ;;  %v16120_v61 = vld [vmem:[#allocation5 + $0xae8] sm:$0xf] }
 0x3c5   :  { %7963 = vmatpush.bf16.msra.mxu0 %v15601_v31  ;;  %7989 = vmatpush.bf16.msra.mxu2 %v15605_v58  ;;  %v21224_v31 = vld [vmem:[#allocation5 + $0x1dc] sm:$0xf0]  ;;  %v15093_v58 = vor.u32 %v21256_v13, %v15090_v36  ;;  %v16882_v21 = vld [vmem:[#allocation5 + $0x11e0] sm:$0xf0]  ;;  %v18681_v13 = vor.u32 %v22185_v1, %v18680_v33  ;;  %v21545_v22 = vld [vmem:[#allocation5 + $0xbe4] sm:$0xf0] }
 0x3c6   :  { %v16122_v33 = vld [vmem:[#allocation5 + $0xbe8] sm:$0xf0]  ;;  %v16386_v46 = vld [vmem:[#allocation5 + $0xdf0] sm:$0xf0]  ;;  %v16394_v11 = vld [vmem:[#allocation5 + $0xdf8] sm:$0xf0] }
 0x3c7   :  { %7976 = vmatpush.bf16.msra.mxu1 %v17649_v48  ;;  %8002 = vmatpush.bf16.msra.mxu3 %v17653_v49  ;;  %v17137_v48 = vor.u32 %v21800_v34, %v17136_v27  ;;  %v17141_v49 = vor.u32 %v21768_v57, %v17138_v52  ;;  %v22153_v27 = vld [vmem:[#allocation5 + $0x1eec] sm:$0xf]  ;;  %v16633_v34 = vor.u32 %v21673_v63, %v16632_v39  ;;  %v16376_v57 = vld [vmem:[#allocation5 + $0xce8] sm:$0xf] }
 0x3c8   :  { %v21609_v52 = vld [vmem:[#allocation5 + $0xde4] sm:$0xf0]  ;;  %v21513_v63 = vld [vmem:[#allocation5 + $0xaec] sm:$0xf] }
 0x3c9   :  { %7964 = vmatpush.bf16.msra.mxu0 %v15345_v14  ;;  %7990 = vmatpush.bf16.msra.mxu2 %v15349_v16  ;;  %v14833_v14 = vor.u32 %v21224_v31, %v14832_v8  ;;  %v16634_v16 = vld [vmem:[#allocation5 + $0xfe8] sm:$0xf0]  ;;  %v22121_v8 = vld [vmem:[#allocation5 + $0x1de4] sm:$0xf0]  ;;  %v16377_v40 = vor.u32 %v21609_v52, %v16376_v57 }
 0x3ca   :  { %v21577_v31 = vld [vmem:[#allocation5 + $0xcec] sm:$0xf]  ;;  %v18425_v15 = vor.u32 %v22121_v8, %v18424_v47 }
 0x3cb   :  { %7977 = vmatpush.bf16.msra.mxu1 %v17393_v41  ;;  %8003 = vmatpush.bf16.msra.mxu3 %v17397_v25  ;;  %v21641_v41 = vld [vmem:[#allocation5 + $0xeec] sm:$0xf]  ;;  %v16885_v25 = vor.u32 %v21704_v5, %v16882_v21  ;;  %v18168_v5 = vld [vmem:[#allocation5 + $0x1ae8] sm:$0xf] }
 0x3cc   :  { %v16637_v36 = vor.u32 %v21641_v41, %v16634_v16  ;;  %v22057_v21 = vld [vmem:[#allocation5 + $0x1be4] sm:$0xf0]  ;;  %v22025_v1 = vld [vmem:[#allocation5 + $0x1aec] sm:$0xf]  ;;  %v23698_v16 = vld [vmem:[#allocation1 + $0x9] sm:$0xff] }
 0x3cd   :  { %7965 = vmatpush.bf16.msra.mxu0 %v15089_v19  ;;  %7991 = vmatpush.bf16.msra.mxu2 %v15093_v58  ;;  %v18685_v19 = vor.u32 %v22153_v27, %v18682_v9  ;;  %v18426_v58 = vld [vmem:[#allocation5 + $0x1de8] sm:$0xf0]  ;;  %v18169_v27 = vor.u32 %v22057_v21, %v18168_v5  ;;  %v16125_v9 = vor.u32 %v21513_v63, %v16122_v33 }
 0x3ce   :  { %v18170_v41 = vld [vmem:[#allocation5 + $0x1be8] sm:$0xf0] }
 0x3cf   :  { %7978 = vmatpush.bf16.msra.mxu1 %v17137_v48  ;;  %8004 = vmatpush.bf16.msra.mxu3 %v17141_v49  ;;  %v22089_v48 = vld [vmem:[#allocation5 + $0x1cec] sm:$0xf]  ;;  %v16381_v49 = vor.u32 %v21577_v31, %v16378_v55  ;;  %v15608_v31 = vld [vmem:[#allocation5 + $0x6e8] sm:$0xf] }
 0x3d0   :  { %v18429_v39 = vor.u32 %v22089_v48, %v18426_v58  ;;  %v21449_v57 = vld [vmem:[#allocation5 + $0x8ec] sm:$0xf] }
 0x3d1   :  { %7966 = vmatpush.bf16.msra.mxu0 %v14833_v14  ;;  %7992 = vmatpush.bf16.msra.mxu2 %v14837_v35  ;;  %v23695_v14 = vld [vmem:[#allocation7 + $0x30] sm:$0xff]  ;;  %v15864_v35 = vld [vmem:[#allocation5 + $0x8e8] sm:$0xf]  ;;  %v15866_v52 = vld [vmem:[#allocation5 + $0x9e8] sm:$0xf0]  ;;  %v7760_v55 = vpop.f32.mrf.mxu0 }
 0x3d2   :  { %v21961_v47 = vld [vmem:[#allocation5 + $0x18ec] sm:$0xf]  ;;  %v15869_v58 = vor.u32 %v21449_v57, %v15866_v52  ;;  %v1298_v63 = vperm.slane %v23695_v14, 1 }
 0x3d3   :  { %7979 = vmatpush.bf16.msra.mxu1 %v16881_v62  ;;  %8005 = vmatpush.bf16.msra.mxu3 %v16885_v25  ;;  %v16121_v62 = vor.u32 %v21545_v22, %v16120_v61  ;;  %v21481_v25 = vld [vmem:[#allocation5 + $0x9e4] sm:$0xf0]  ;;  %v7773_v22 = vpop.f32.mrf.mxu1  ;;  %v21385_v21 = vld [vmem:[#allocation5 + $0x6ec] sm:$0xf] }
 0x3d4   :  { %7993 = vmatmul.bf16.vlgmr.msra.gmra.mxu2 %v23662_v10  ;;  %7967 = vmatmul.bf16.vlgmr.msra.gmra.mxu0 %v23662_v10  ;;  %v21993_v10 = vld [vmem:[#allocation5 + $0x19e4] sm:$0xf0]  ;;  %v15865_v8 = vor.u32 %v21481_v25, %v15864_v35  ;;  %v21897_v33 = vld [vmem:[#allocation5 + $0x16ec] sm:$0xf] }
 0x3d5   :  { %8011 = vmatpush.bf16.msrb.mxu0 %v16633_v34  ;;  %8037 = vmatpush.bf16.msrb.mxu2 %v16637_v36  ;;  %v17912_v34 = vld [vmem:[#allocation5 + $0x18e8] sm:$0xf]  ;;  %v18173_v36 = vor.u32 %v22025_v1, %v18170_v41  ;;  %v17658_v1 = vld [vmem:[#allocation5 + $0x17e8] sm:$0xf0] }
 0x3d6   :  { %8006 = vmatmul.bf16.vlgmr.msra.gmra.mxu3 %v23698_v16  ;;  %7980 = vmatmul.bf16.vlgmr.msra.gmra.mxu1 %v23698_v16  ;;  %v17913_v48 = vor.u32 %v21993_v10, %v17912_v34  ;;  %v17656_v61 = vld [vmem:[#allocation5 + $0x16e8] sm:$0xf]  ;;  %v21321_v57 = vld [vmem:[#allocation5 + $0x4ec] sm:$0xf] }
 0x3d7   :  { %8024 = vmatpush.bf16.msrb.mxu1 %v18681_v13  ;;  %8050 = vmatpush.bf16.msrb.mxu3 %v18685_v19  ;;  %v1297_v13 = vperm.slane %v23695_v14, 0  ;;  %v17914_v19 = vld [vmem:[#allocation5 + $0x19e8] sm:$0xf0]  ;;  %v21353_v25 = vld [vmem:[#allocation5 + $0x5e4] sm:$0xf0] }
 0x3d8   :  { %v17917_v5 = vor.u32 %v21961_v47, %v17914_v19  ;;  %v17400_v34 = vld [vmem:[#allocation5 + $0x14e8] sm:$0xf]  ;;  %v15354_v52 = vld [vmem:[#allocation5 + $0x5e8] sm:$0xf0] }
 0x3d9   :  { %8012 = vmatpush.bf16.msrb.mxu0 %v16377_v40  ;;  %8038 = vmatpush.bf16.msrb.mxu2 %v16381_v49  ;;  %v21417_v40 = vld [vmem:[#allocation5 + $0x7e4] sm:$0xf0]  ;;  %v7761_v49 = vadd.f32 %v7760_v55, %v1297_v13  ;;  %v7786_v13 = vpop.f32.mrf.mxu2  ;;  %v7799_v19 = vpop.f32.mrf.mxu3  ;;  %v21833_v55 = vld [vmem:[#allocation5 + $0x14ec] sm:$0xf] }
 0x3da   :  { %v21865_v10 = vld [vmem:[#allocation5 + $0x15e4] sm:$0xf0]  ;;  %v7787_v47 = vadd.f32 %v7786_v13, %v1298_v63  ;;  %v21257_v63 = vld [vmem:[#allocation5 + $0x2ec] sm:$0xf] }
 0x3db   :  { %8025 = vmatpush.bf16.msrb.mxu1 %v18425_v15  ;;  %8051 = vmatpush.bf16.msrb.mxu3 %v18429_v39  ;;  %v21929_v15 = vld [vmem:[#allocation5 + $0x17e4] sm:$0xf0]  ;;  %v15610_v39 = vld [vmem:[#allocation5 + $0x7e8] sm:$0xf0]  ;;  %v23704_v41 = vadd.f32 %v7773_v22, %v7761_v49 }
 0x3dc   :  { %v17657_v35 = vor.u32 %v21929_v15, %v17656_v61  ;;  %v17402_v49 = vld [vmem:[#allocation5 + $0x15e8] sm:$0xf0]  ;;  %v15096_v61 = vld [vmem:[#allocation5 + $0x2e8] sm:$0xf] }
 0x3dd   :  { %8013 = vmatpush.bf16.msrb.mxu0 %v16121_v62  ;;  %8039 = vmatpush.bf16.msrb.mxu2 %v16125_v9  ;;  %25621 = vst [vmem:[#allocation46_spill] sm:$0xff] %v23704_v41  ;;  %v15609_v62 = vor.u32 %v21417_v40, %v15608_v31  ;;  %v15352_v9 = vld [vmem:[#allocation5 + $0x4e8] sm:$0xf]  ;;  %v23706_v31 = vadd.f32 %v7799_v19, %v7787_v47  ;;  %v17146_v13 = vld [vmem:[#allocation5 + $0x13e8] sm:$0xf0] }
 0x3de   :  { %v15357_v40 = vor.u32 %v21321_v57, %v15354_v52  ;;  %v21289_v15 = vld [vmem:[#allocation5 + $0x3e4] sm:$0xf0]  ;;  %v21193_v57 = vld [vmem:[#allocation5 + $0xec] sm:$0xf]  ;;  %v18432_v41 = vld [vmem:[#allocation5 + $0x1cf0] sm:$0xf] }
 0x3df   :  { %8026 = vmatpush.bf16.msrb.mxu1 %v18169_v27  ;;  %8052 = vmatpush.bf16.msrb.mxu3 %v18173_v36  ;;  %v15613_v27 = vor.u32 %v21385_v21, %v15610_v39  ;;  %v17661_v36 = vor.u32 %v21897_v33, %v17658_v1  ;;  %25622 = vst [vmem:[#allocation47_spill] sm:$0xff] %v23706_v31  ;;  %v17144_v22 = vld [vmem:[#allocation5 + $0x12e8] sm:$0xf]  ;;  %v15098_v33 = vld [vmem:[#allocation5 + $0x3e8] sm:$0xf0] }
 0x3e0   :  { %v17405_v21 = vor.u32 %v21833_v55, %v17402_v49  ;;  %v21801_v39 = vld [vmem:[#allocation5 + $0x13e4] sm:$0xf0]  ;;  %v21769_v1 = vld [vmem:[#allocation5 + $0x12ec] sm:$0xf]  ;;  %v21610_v31 = vld [vmem:[#allocation5 + $0xdec] sm:$0xf0] }
 0x3e1   :  { %8014 = vmatpush.bf16.msrb.mxu0 %v15865_v8  ;;  %8040 = vmatpush.bf16.msrb.mxu2 %v15869_v58  ;;  %v15353_v8 = vor.u32 %v21353_v25, %v15352_v9  ;;  %v17401_v58 = vor.u32 %v21865_v10, %v17400_v34  ;;  %v14840_v9 = vld [vmem:[#allocation5 + $0xe8] sm:$0xf]  ;;  %v7788_v52 = vpop.f32.mrf.mxu2  ;;  %v14842_v47 = vld [vmem:[#allocation5 + $0x1e8] sm:$0xf0]  ;;  %v7801_v49 = vpop.f32.mrf.mxu3 }
 0x3e2   :  { %v21225_v25 = vld [vmem:[#allocation5 + $0x1e4] sm:$0xf0]  ;;  %v21705_v19 = vld [vmem:[#allocation5 + $0x10ec] sm:$0xf]  ;;  %v16384_v49 = vld [vmem:[#allocation5 + $0xcf0] sm:$0xf] }
 0x3e3   :  { %8027 = vmatpush.bf16.msrb.mxu1 %v17913_v48  ;;  %8053 = vmatpush.bf16.msrb.mxu3 %v17917_v5  ;;  %v7762_v48 = vpop.f32.mrf.mxu0  ;;  %v7775_v5 = vpop.f32.mrf.mxu1  ;;  %v16888_v34 = vld [vmem:[#allocation5 + $0x10e8] sm:$0xf]  ;;  %v16890_v55 = vld [vmem:[#allocation5 + $0x11e8] sm:$0xf0] }
 0x3e4   :  { %v21737_v10 = vld [vmem:[#allocation5 + $0x11e4] sm:$0xf0]  ;;  %v16640_v48 = vld [vmem:[#allocation5 + $0xef0] sm:$0xf] }
 0x3e5   :  { %8015 = vmatpush.bf16.msrb.mxu0 %v15609_v62  ;;  %8041 = vmatpush.bf16.msrb.mxu2 %v15613_v27  ;;  %v15097_v62 = vor.u32 %v21289_v15, %v15096_v61  ;;  %v15101_v27 = vor.u32 %v21257_v63, %v15098_v33  ;;  %v21674_v5 = vld [vmem:[#allocation5 + $0xfec] sm:$0xf0]  ;;  %v14841_v61 = vor.u32 %v21225_v25, %v14840_v9  ;;  %v22154_v63 = vld [vmem:[#allocation5 + $0x1ef4] sm:$0xf] }
 0x3e6   :  { %v22186_v15 = vld [vmem:[#allocation5 + $0x1fec] sm:$0xf0]  ;;  %v18690_v33 = vld [vmem:[#allocation5 + $0x1ff0] sm:$0xf0] }
 0x3e7   :  { %8028 = vmatpush.bf16.msrb.mxu1 %v17657_v35  ;;  %8054 = vmatpush.bf16.msrb.mxu3 %v17661_v36  ;;  %v17145_v35 = vor.u32 %v21801_v39, %v17144_v22  ;;  %v17149_v36 = vor.u32 %v21769_v1, %v17146_v13  ;;  %v16889_v22 = vor.u32 %v21737_v10, %v16888_v34  ;;  %v22122_v9 = vld [vmem:[#allocation5 + $0x1dec] sm:$0xf0]  ;;  %v21578_v25 = vld [vmem:[#allocation5 + $0xcf4] sm:$0xf] }
 0x3e8   :  { %v14845_v39 = vor.u32 %v21193_v57, %v14842_v47  ;;  %v16641_v1 = vor.u32 %v21674_v5, %v16640_v48  ;;  %v16385_v34 = vor.u32 %v21610_v31, %v16384_v49  ;;  %v18433_v10 = vor.u32 %v22122_v9, %v18432_v41  ;;  %v21546_v47 = vld [vmem:[#allocation5 + $0xbec] sm:$0xf0]  ;;  %v21514_v5 = vld [vmem:[#allocation5 + $0xaf4] sm:$0xf] }
 0x3e9   :  { %8016 = vmatpush.bf16.msrb.mxu0 %v15353_v8  ;;  %8042 = vmatpush.bf16.msrb.mxu2 %v15357_v40  ;;  %v18688_v8 = vld [vmem:[#allocation5 + $0x1ef0] sm:$0xf]  ;;  %v16642_v40 = vld [vmem:[#allocation5 + $0xff0] sm:$0xf0]  ;;  %v16389_v57 = vor.u32 %v21578_v25, %v16386_v46 }
 0x3ea   :  { %v18689_v13 = vor.u32 %v22186_v15, %v18688_v8  ;;  %v22058_v48 = vld [vmem:[#allocation5 + $0x1bec] sm:$0xf0]  ;;  %v16130_v8 = vld [vmem:[#allocation5 + $0xbf0] sm:$0xf0] }
 0x3eb   :  { %8029 = vmatpush.bf16.msrb.mxu1 %v17401_v58  ;;  %8055 = vmatpush.bf16.msrb.mxu3 %v17405_v21  ;;  %v21642_v58 = vld [vmem:[#allocation5 + $0xef4] sm:$0xf]  ;;  %v16893_v21 = vor.u32 %v21705_v19, %v16890_v55  ;;  %v18176_v19 = vld [vmem:[#allocation5 + $0x1af0] sm:$0xf] }
 0x3ec   :  { %v16645_v52 = vor.u32 %v21642_v58, %v16642_v40  ;;  %v22026_v15 = vld [vmem:[#allocation5 + $0x1af4] sm:$0xf]  ;;  %v15872_v41 = vld [vmem:[#allocation5 + $0x8f0] sm:$0xf]  ;;  %v18177_v31 = vor.u32 %v22058_v48, %v18176_v19  ;;  %v16133_v40 = vor.u32 %v21514_v5, %v16130_v8  ;;  %v1300_v5 = vperm.slane %v23695_v14, 3 }
 0x3ed   :  { %8017 = vmatpush.bf16.msrb.mxu0 %v15097_v62  ;;  %8043 = vmatpush.bf16.msrb.mxu2 %v15101_v27  ;;  %v18693_v62 = vor.u32 %v22154_v63, %v18690_v33  ;;  %v18434_v27 = vld [vmem:[#allocation5 + $0x1df0] sm:$0xf0]  ;;  %v1299_v63 = vperm.slane %v23695_v14, 2  ;;  %v15616_v9 = vld [vmem:[#allocation5 + $0x6f0] sm:$0xf] }
 0x3ee   :  { %v18178_v58 = vld [vmem:[#allocation5 + $0x1bf0] sm:$0xf0] }
 0x3ef   :  { %8030 = vmatpush.bf16.msrb.mxu1 %v17145_v35  ;;  %8056 = vmatpush.bf16.msrb.mxu3 %v17149_v36  ;;  %v22090_v35 = vld [vmem:[#allocation5 + $0x1cf4] sm:$0xf]  ;;  %v16128_v36 = vld [vmem:[#allocation5 + $0xaf0] sm:$0xf]  ;;  %v18181_v33 = vor.u32 %v22026_v15, %v18178_v58 }
 0x3f0   :  { %v18437_v55 = vor.u32 %v22090_v35, %v18434_v27  ;;  %v16129_v46 = vor.u32 %v21546_v47, %v16128_v36  ;;  %v17922_v49 = vld [vmem:[#allocation5 + $0x19f0] sm:$0xf0] }
 0x3f1   :  { %8018 = vmatpush.bf16.msrb.mxu0 %v14841_v61  ;;  %8044 = vmatpush.bf16.msrb.mxu2 %v14845_v39  ;;  %v23708_v61 = vld [vmem:[#allocation1] sm:$0xff]  ;;  %v17920_v39 = vld [vmem:[#allocation5 + $0x18f0] sm:$0xf]  ;;  %v7812_v25 = vpop.f32.mrf.mxu0 }
 0x3f2   :  { %v7813_v36 = vadd.f32 %v7812_v25, %v1299_v63  ;;  %v15618_v48 = vld [vmem:[#allocation5 + $0x7f0] sm:$0xf0] }
 0x3f3   :  { %8031 = vmatpush.bf16.msrb.mxu1 %v16889_v22  ;;  %8057 = vmatpush.bf16.msrb.mxu3 %v16893_v21  ;;  %v21482_v22 = vld [vmem:[#allocation5 + $0x9ec] sm:$0xf0]  ;;  %v7825_v47 = vpop.f32.mrf.mxu1  ;;  %v21898_v8 = vld [vmem:[#allocation5 + $0x16f4] sm:$0xf] }
 0x3f4   :  { %8045 = vmatmul.bf16.vlgmr.msrb.gmra.mxu2 %v23708_v61  ;;  %8019 = vmatmul.bf16.vlgmr.msrb.gmra.mxu0 %v23708_v61  ;;  %v21994_v21 = vld [vmem:[#allocation5 + $0x19ec] sm:$0xf0]  ;;  %v17666_v15 = vld [vmem:[#allocation5 + $0x17f0] sm:$0xf0]  ;;  %v23716_v58 = vadd.f32 %v7825_v47, %v7813_v36 }
 0x3f5   :  { %8063 = vmatpush.bf16.msra.mxu0 %v16641_v1  ;;  %8089 = vmatpush.bf16.msra.mxu2 %v16645_v52  ;;  %v21450_v1 = vld [vmem:[#allocation5 + $0x8f4] sm:$0xf]  ;;  %v17921_v35 = vor.u32 %v21994_v21, %v17920_v39  ;;  %v17408_v39 = vld [vmem:[#allocation5 + $0x14f0] sm:$0xf] }
 0x3f6   :  { %8058 = vmatmul.bf16.vlgmr.msrb.gmra.mxu3 %v23698_v16  ;;  %8032 = vmatmul.bf16.vlgmr.msrb.gmra.mxu1 %v23698_v16  ;;  %v21962_v52 = vld [vmem:[#allocation5 + $0x18f4] sm:$0xf]  ;;  %25623 = vst [vmem:[#allocation48_spill] sm:$0xff] %v23716_v58  ;;  %v21866_v21 = vld [vmem:[#allocation5 + $0x15ec] sm:$0xf0] }
 0x3f7   :  { %8076 = vmatpush.bf16.msra.mxu1 %v18689_v13  ;;  %8102 = vmatpush.bf16.msra.mxu3 %v18693_v62  ;;  %v15874_v13 = vld [vmem:[#allocation5 + $0x9f0] sm:$0xf0]  ;;  %v15873_v62 = vor.u32 %v21482_v22, %v15872_v41  ;;  %v17925_v19 = vor.u32 %v21962_v52, %v17922_v49  ;;  %v21354_v22 = vld [vmem:[#allocation5 + $0x5ec] sm:$0xf0]  ;;  %v7838_v63 = vpop.f32.mrf.mxu2  ;;  %v18440_v58 = vld [vmem:[#allocation5 + $0x1cf8] sm:$0xf] }
 0x3f8   :  { %v15877_v27 = vor.u32 %v21450_v1, %v15874_v13  ;;  %v21322_v1 = vld [vmem:[#allocation5 + $0x4f4] sm:$0xf]  ;;  %v7839_v52 = vadd.f32 %v7838_v63, %v1300_v5  ;;  %v17152_v47 = vld [vmem:[#allocation5 + $0x12f0] sm:$0xf] }
 0x3f9   :  { %8064 = vmatpush.bf16.msra.mxu0 %v16385_v34  ;;  %8090 = vmatpush.bf16.msra.mxu2 %v16389_v57  ;;  %v21418_v34 = vld [vmem:[#allocation5 + $0x7ec] sm:$0xf0]  ;;  %v15362_v13 = vld [vmem:[#allocation5 + $0x5f0] sm:$0xf0]  ;;  %v7851_v49 = vpop.f32.mrf.mxu3 }
 0x3fa   :  { %v21930_v57 = vld [vmem:[#allocation5 + $0x17ec] sm:$0xf0]  ;;  %v21834_v25 = vld [vmem:[#allocation5 + $0x14f4] sm:$0xf] }
 0x3fb   :  { %8077 = vmatpush.bf16.msra.mxu1 %v18433_v10  ;;  %8103 = vmatpush.bf16.msra.mxu3 %v18437_v55  ;;  %v17664_v10 = vld [vmem:[#allocation5 + $0x16f0] sm:$0xf]  ;;  %v21386_v55 = vld [vmem:[#allocation5 + $0x6f4] sm:$0xf] }
 0x3fc   :  { %v17665_v41 = vor.u32 %v21930_v57, %v17664_v10  ;;  %v17410_v36 = vld [vmem:[#allocation5 + $0x15f0] sm:$0xf0]  ;;  %v15104_v10 = vld [vmem:[#allocation5 + $0x2f0] sm:$0xf] }
 0x3fd   :  { %8065 = vmatpush.bf16.msra.mxu0 %v16129_v46  ;;  %8091 = vmatpush.bf16.msra.mxu2 %v16133_v40  ;;  %v15617_v46 = vor.u32 %v21418_v34, %v15616_v9  ;;  %v15360_v40 = vld [vmem:[#allocation5 + $0x4f0] sm:$0xf]  ;;  %v23718_v9 = vadd.f32 %v7851_v49, %v7839_v52  ;;  %v15365_v34 = vor.u32 %v21322_v1, %v15362_v13  ;;  %v21258_v5 = vld [vmem:[#allocation5 + $0x2f4] sm:$0xf] }
 0x3fe   :  { %v21290_v57 = vld [vmem:[#allocation5 + $0x3ec] sm:$0xf0]  ;;  %v17154_v63 = vld [vmem:[#allocation5 + $0x13f0] sm:$0xf0] }
 0x3ff   :  { %8078 = vmatpush.bf16.msra.mxu1 %v18177_v31  ;;  %8104 = vmatpush.bf16.msra.mxu3 %v18181_v33  ;;  %v15621_v31 = vor.u32 %v21386_v55, %v15618_v48  ;;  %v17669_v33 = vor.u32 %v21898_v8, %v17666_v15  ;;  %25624 = vst [vmem:[#allocation49_spill] sm:$0xff] %v23718_v9  ;;  %v21802_v48 = vld [vmem:[#allocation5 + $0x13ec] sm:$0xf0]  ;;  %v15106_v8 = vld [vmem:[#allocation5 + $0x3f0] sm:$0xf0]  ;;  %v7840_v13 = vpop.f32.mrf.mxu2 }
 0x400   :  { %v17413_v55 = vor.u32 %v21834_v25, %v17410_v36  ;;  %v21770_v15 = vld [vmem:[#allocation5 + $0x12f4] sm:$0xf]  ;;  %v21611_v9 = vld [vmem:[#allocation5 + $0xdf4] sm:$0xf0] }
 0x401   :  { %8066 = vmatpush.bf16.msra.mxu0 %v15873_v62  ;;  %8092 = vmatpush.bf16.msra.mxu2 %v15877_v27  ;;  %v15361_v62 = vor.u32 %v21354_v22, %v15360_v40  ;;  %v17409_v27 = vor.u32 %v21866_v21, %v17408_v39  ;;  %v14848_v40 = vld [vmem:[#allocation5 + $0xf0] sm:$0xf]  ;;  %v21194_v1 = vld [vmem:[#allocation5 + $0xf4] sm:$0xf]  ;;  %v7853_v36 = vpop.f32.mrf.mxu3 }
 0x402   :  { %v21226_v22 = vld [vmem:[#allocation5 + $0x1ec] sm:$0xf0]  ;;  %v14850_v52 = vld [vmem:[#allocation5 + $0x1f0] sm:$0xf0]  ;;  %v16392_v36 = vld [vmem:[#allocation5 + $0xcf8] sm:$0xf] }
 0x403   :  { %8079 = vmatpush.bf16.msra.mxu1 %v17921_v35  ;;  %8105 = vmatpush.bf16.msra.mxu3 %v17925_v19  ;;  %v7814_v35 = vpop.f32.mrf.mxu0  ;;  %v7827_v19 = vpop.f32.mrf.mxu1  ;;  %v16896_v39 = vld [vmem:[#allocation5 + $0x10f0] sm:$0xf]  ;;  %v21706_v49 = vld [vmem:[#allocation5 + $0x10f4] sm:$0xf] }
 0x404   :  { %v21738_v21 = vld [vmem:[#allocation5 + $0x11ec] sm:$0xf0]  ;;  %v16898_v25 = vld [vmem:[#allocation5 + $0x11f0] sm:$0xf0]  ;;  %v16648_v35 = vld [vmem:[#allocation5 + $0xef8] sm:$0xf] }
 0x405   :  { %8067 = vmatpush.bf16.msra.mxu0 %v15617_v46  ;;  %8093 = vmatpush.bf16.msra.mxu2 %v15621_v31  ;;  %v15105_v46 = vor.u32 %v21290_v57, %v15104_v10  ;;  %v15109_v31 = vor.u32 %v21258_v5, %v15106_v8  ;;  %v21675_v19 = vld [vmem:[#allocation5 + $0xff4] sm:$0xf0]  ;;  %v14849_v10 = vor.u32 %v21226_v22, %v14848_v40  ;;  %v22155_v5 = vld [vmem:[#allocation5 + $0x1efc] sm:$0xf] }
 0x406   :  { %v22187_v57 = vld [vmem:[#allocation5 + $0x1ff4] sm:$0xf0]  ;;  %v18698_v8 = vld [vmem:[#allocation5 + $0x1ff8] sm:$0xf0] }
 0x407   :  { %8080 = vmatpush.bf16.msra.mxu1 %v17665_v41  ;;  %8106 = vmatpush.bf16.msra.mxu3 %v17669_v33  ;;  %v17153_v41 = vor.u32 %v21802_v48, %v17152_v47  ;;  %v17157_v33 = vor.u32 %v21770_v15, %v17154_v63  ;;  %v16897_v47 = vor.u32 %v21738_v21, %v16896_v39  ;;  %v22123_v40 = vld [vmem:[#allocation5 + $0x1df4] sm:$0xf0]  ;;  %v21579_v22 = vld [vmem:[#allocation5 + $0xcfc] sm:$0xf] }
 0x408   :  { %v14853_v48 = vor.u32 %v21194_v1, %v14850_v52  ;;  %v16649_v15 = vor.u32 %v21675_v19, %v16648_v35  ;;  %v16393_v39 = vor.u32 %v21611_v9, %v16392_v36  ;;  %v18441_v21 = vor.u32 %v22123_v40, %v18440_v58  ;;  %v21547_v52 = vld [vmem:[#allocation5 + $0xbf4] sm:$0xf0]  ;;  %v21515_v19 = vld [vmem:[#allocation5 + $0xafc] sm:$0xf] }
 0x409   :  { %8068 = vmatpush.bf16.msra.mxu0 %v15361_v62  ;;  %8094 = vmatpush.bf16.msra.mxu2 %v15365_v34  ;;  %v18696_v62 = vld [vmem:[#allocation5 + $0x1ef8] sm:$0xf]  ;;  %v16650_v34 = vld [vmem:[#allocation5 + $0xff8] sm:$0xf0]  ;;  %v16397_v1 = vor.u32 %v21579_v22, %v16394_v11 }
 0x40a   :  { %v18697_v63 = vor.u32 %v22187_v57, %v18696_v62  ;;  %v22059_v35 = vld [vmem:[#allocation5 + $0x1bf4] sm:$0xf0]  ;;  %v16138_v62 = vld [vmem:[#allocation5 + $0xbf8] sm:$0xf0] }
 0x40b   :  { %8081 = vmatpush.bf16.msra.mxu1 %v17409_v27  ;;  %8107 = vmatpush.bf16.msra.mxu3 %v17413_v55  ;;  %v21643_v27 = vld [vmem:[#allocation5 + $0xefc] sm:$0xf]  ;;  %v16901_v55 = vor.u32 %v21706_v49, %v16898_v25  ;;  %v18184_v49 = vld [vmem:[#allocation5 + $0x1af8] sm:$0xf] }
 0x40c   :  { %v16653_v13 = vor.u32 %v21643_v27, %v16650_v34  ;;  %v18186_v57 = vld [vmem:[#allocation5 + $0x1bf8] sm:$0xf0]  ;;  %v15880_v58 = vld [vmem:[#allocation5 + $0x8f8] sm:$0xf]  ;;  %v18185_v11 = vor.u32 %v22059_v35, %v18184_v49  ;;  %v16141_v27 = vor.u32 %v21515_v19, %v16138_v62  ;;  %v1302_v35 = vperm.slane %v23695_v14, 5 }
 0x40d   :  { %8069 = vmatpush.bf16.msra.mxu0 %v15105_v46  ;;  %8095 = vmatpush.bf16.msra.mxu2 %v15109_v31  ;;  %v18701_v46 = vor.u32 %v22155_v5, %v18698_v8  ;;  %v18442_v31 = vld [vmem:[#allocation5 + $0x1df8] sm:$0xf0]  ;;  %v21483_v34 = vld [vmem:[#allocation5 + $0x9f4] sm:$0xf0] }
 0x40e   :  { %v21995_v8 = vld [vmem:[#allocation5 + $0x19f4] sm:$0xf0]  ;;  %v15881_v36 = vor.u32 %v21483_v34, %v15880_v58  ;;  %v21387_v49 = vld [vmem:[#allocation5 + $0x6fc] sm:$0xf] }
 0x40f   :  { %8082 = vmatpush.bf16.msra.mxu1 %v17153_v41  ;;  %8108 = vmatpush.bf16.msra.mxu3 %v17157_v33  ;;  %v22091_v41 = vld [vmem:[#allocation5 + $0x1cfc] sm:$0xf]  ;;  %v16136_v33 = vld [vmem:[#allocation5 + $0xaf8] sm:$0xf] }
 0x410   :  { %v18445_v25 = vor.u32 %v22091_v41, %v18442_v31  ;;  %v16137_v9 = vor.u32 %v21547_v52, %v16136_v33  ;;  %v21419_v31 = vld [vmem:[#allocation5 + $0x7f4] sm:$0xf0]  ;;  %v21899_v19 = vld [vmem:[#allocation5 + $0x16fc] sm:$0xf] }
 0x411   :  { %8070 = vmatpush.bf16.msra.mxu0 %v14849_v10  ;;  %8096 = vmatpush.bf16.msra.mxu2 %v14853_v48  ;;  %v22027_v10 = vld [vmem:[#allocation5 + $0x1afc] sm:$0xf]  ;;  %v1301_v48 = vperm.slane %v23695_v14, 4  ;;  %v7864_v40 = vpop.f32.mrf.mxu0  ;;  %v17416_v34 = vld [vmem:[#allocation5 + $0x14f8] sm:$0xf] }
 0x412   :  { %v18189_v5 = vor.u32 %v22027_v10, %v18186_v57  ;;  %v17674_v62 = vld [vmem:[#allocation5 + $0x17f8] sm:$0xf0] }
 0x413   :  { %8083 = vmatpush.bf16.msra.mxu1 %v16897_v47  ;;  %8109 = vmatpush.bf16.msra.mxu3 %v16901_v55  ;;  %v17928_v47 = vld [vmem:[#allocation5 + $0x18f8] sm:$0xf]  ;;  %v21451_v55 = vld [vmem:[#allocation5 + $0x8fc] sm:$0xf]  ;;  %v7877_v33 = vpop.f32.mrf.mxu1 }
 0x414   :  { %8097 = vmatmul.bf16.vlgmr.msra.gmra.mxu2 %v23708_v61  ;;  %8071 = vmatmul.bf16.vlgmr.msra.gmra.mxu0 %v23708_v61  ;;  %v17929_v22 = vor.u32 %v21995_v8, %v17928_v47  ;;  %v21323_v8 = vld [vmem:[#allocation5 + $0x4fc] sm:$0xf] }
 0x415   :  { %8115 = vmatpush.bf16.msrb.mxu0 %v16649_v15  ;;  %8141 = vmatpush.bf16.msrb.mxu2 %v16653_v13  ;;  %v15882_v15 = vld [vmem:[#allocation5 + $0x9f8] sm:$0xf0] }
 0x416   :  { %8110 = vmatmul.bf16.vlgmr.msra.gmra.mxu3 %v23698_v16  ;;  %8084 = vmatmul.bf16.vlgmr.msra.gmra.mxu1 %v23698_v16  ;;  %v17930_v13 = vld [vmem:[#allocation5 + $0x19f8] sm:$0xf0]  ;;  %v15885_v41 = vor.u32 %v21451_v55, %v15882_v15 }
 0x417   :  { %8128 = vmatpush.bf16.msrb.mxu1 %v18697_v63  ;;  %8154 = vmatpush.bf16.msrb.mxu3 %v18701_v46  ;;  %v21963_v63 = vld [vmem:[#allocation5 + $0x18fc] sm:$0xf]  ;;  %v15624_v46 = vld [vmem:[#allocation5 + $0x6f8] sm:$0xf]  ;;  %v7890_v47 = vpop.f32.mrf.mxu2 }
 0x418   :  { %v17933_v52 = vor.u32 %v21963_v63, %v17930_v13  ;;  %v15625_v57 = vor.u32 %v21419_v31, %v15624_v46  ;;  %v15370_v55 = vld [vmem:[#allocation5 + $0x5f8] sm:$0xf0]  ;;  %v7891_v15 = vadd.f32 %v7890_v47, %v1302_v35 }
 0x419   :  { %8116 = vmatpush.bf16.msrb.mxu0 %v16393_v39  ;;  %8142 = vmatpush.bf16.msrb.mxu2 %v16397_v1  ;;  %v17672_v39 = vld [vmem:[#allocation5 + $0x16f8] sm:$0xf]  ;;  %v7865_v1 = vadd.f32 %v7864_v40, %v1301_v48  ;;  %v17677_v48 = vor.u32 %v21899_v19, %v17674_v62  ;;  %v7903_v63 = vpop.f32.mrf.mxu3  ;;  %v21835_v13 = vld [vmem:[#allocation5 + $0x14fc] sm:$0xf]  ;;  %v15373_v31 = vor.u32 %v21323_v8, %v15370_v55 }
 0x41a   :  { %v17418_v40 = vld [vmem:[#allocation5 + $0x15f8] sm:$0xf0]  ;;  %v23728_v46 = vadd.f32 %v7903_v63, %v7891_v15  ;;  %v21739_v8 = vld [vmem:[#allocation5 + $0x11f4] sm:$0xf0] }
 0x41b   :  { %8129 = vmatpush.bf16.msrb.mxu1 %v18441_v21  ;;  %8155 = vmatpush.bf16.msrb.mxu3 %v18445_v25  ;;  %v21931_v21 = vld [vmem:[#allocation5 + $0x17f4] sm:$0xf0]  ;;  %v15626_v25 = vld [vmem:[#allocation5 + $0x7f8] sm:$0xf0]  ;;  %v23726_v10 = vadd.f32 %v7877_v33, %v7865_v1  ;;  %v7879_v33 = vpop.f32.mrf.mxu1 }
 0x41c   :  { %v15629_v58 = vor.u32 %v21387_v49, %v15626_v25  ;;  %v17160_v1 = vld [vmem:[#allocation5 + $0x12f8] sm:$0xf]  ;;  %v21259_v25 = vld [vmem:[#allocation5 + $0x2fc] sm:$0xf]  ;;  %v22194_v33 = vld [vmem:[%s25592_s4 + $0x30] sm:$0xff] }
 0x41d   :  { %8117 = vmatpush.bf16.msrb.mxu0 %v16137_v9  ;;  %8143 = vmatpush.bf16.msrb.mxu2 %v16141_v27  ;;  %v17673_v9 = vor.u32 %v21931_v21, %v17672_v39  ;;  %v21355_v27 = vld [vmem:[#allocation5 + $0x5f4] sm:$0xf0]  ;;  %v15114_v35 = vld [vmem:[#allocation5 + $0x3f8] sm:$0xf0] }
 0x41e   :  { %v15112_v39 = vld [vmem:[#allocation5 + $0x2f8] sm:$0xf]  ;;  %v21771_v19 = vld [vmem:[#allocation5 + $0x12fc] sm:$0xf] }
 0x41f   :  { %8130 = vmatpush.bf16.msrb.mxu1 %v18185_v11  ;;  %8156 = vmatpush.bf16.msrb.mxu3 %v18189_v5  ;;  %v15368_v11 = vld [vmem:[#allocation5 + $0x4f8] sm:$0xf]  ;;  %v17162_v62 = vld [vmem:[#allocation5 + $0x13f8] sm:$0xf0]  ;;  %v7892_v47 = vpop.f32.mrf.mxu2 }
 0x420   :  { %v21867_v5 = vld [vmem:[#allocation5 + $0x15f4] sm:$0xf0]  ;;  %v14858_v55 = vld [vmem:[#allocation5 + $0x1f8] sm:$0xf0] }
 0x421   :  { %8118 = vmatpush.bf16.msrb.mxu0 %v15881_v36  ;;  %8144 = vmatpush.bf16.msrb.mxu2 %v15885_v41  ;;  %v15369_v36 = vor.u32 %v21355_v27, %v15368_v11  ;;  %v17417_v41 = vor.u32 %v21867_v5, %v17416_v34  ;;  %v21291_v21 = vld [vmem:[#allocation5 + $0x3f4] sm:$0xf0]  ;;  %v17165_v5 = vor.u32 %v21771_v19, %v17162_v62  ;;  %v7905_v15 = vpop.f32.mrf.mxu3  ;;  %v21707_v63 = vld [vmem:[#allocation5 + $0x10fc] sm:$0xf] }
 0x422   :  { %v21803_v49 = vld [vmem:[#allocation5 + $0x13f4] sm:$0xf0]  ;;  %v22201_v19 = vld [vmem:[%s25592_s4 + $0x68] sm:$0xff]  ;;  %v22191_v15 = vld [vmem:[%s25592_s4 + $0x18] sm:$0xff] }
 0x423   :  { %8131 = vmatpush.bf16.msrb.mxu1 %v17929_v22  ;;  %8157 = vmatpush.bf16.msrb.mxu3 %v17933_v52  ;;  %v7866_v22 = vpop.f32.mrf.mxu0  ;;  %v17421_v52 = vor.u32 %v21835_v13, %v17418_v40  ;;  %v17161_v11 = vor.u32 %v21803_v49, %v17160_v1  ;;  %v21227_v27 = vld [vmem:[#allocation5 + $0x1f4] sm:$0xf0]  ;;  %v16906_v13 = vld [vmem:[#allocation5 + $0x11f8] sm:$0xf0]  ;;  %v22219_v1 = vld [vmem:[%s25592_s4 + $0xf8] sm:$0xff] }
 0x424   :  { %v16904_v34 = vld [vmem:[#allocation5 + $0x10f8] sm:$0xf]  ;;  %v22210_v49 = vld [vmem:[%s25592_s4 + $0xb0] sm:$0xff]  ;;  %v22209_v62 = vld [vmem:[%s25592_s4 + $0xa8] sm:$0xff] }
 0x425   :  { %8119 = vmatpush.bf16.msrb.mxu0 %v15625_v57  ;;  %8145 = vmatpush.bf16.msrb.mxu2 %v15629_v58  ;;  %v15113_v57 = vor.u32 %v21291_v21, %v15112_v39  ;;  %v14856_v58 = vld [vmem:[#allocation5 + $0xf8] sm:$0xf]  ;;  %v22203_v39 = vld [vmem:[%s25592_s4 + $0x78] sm:$0xff] }
 0x426   :  { %v14857_v40 = vor.u32 %v21227_v27, %v14856_v58  ;;  %v22211_v21 = vld [vmem:[%s25592_s4 + $0xb8] sm:$0xff]  ;;  %v23778_v58 = vmul.f32 0.5, %v23430_v28  ;;  %v22200_v27 = vld [vmem:[%s25592_s4 + $0x60] sm:$0xff] }
 0x427   :  { %8132 = vmatpush.bf16.msrb.mxu1 %v17673_v9  ;;  %8158 = vmatpush.bf16.msrb.mxu3 %v17677_v48  ;;  %v15117_v9 = vor.u32 %v21259_v25, %v15114_v35  ;;  %v21195_v48 = vld [vmem:[#allocation5 + $0xfc] sm:$0xf]  ;;  %v22218_v25 = vld [vmem:[%s25592_s4 + $0xf0] sm:$0xff] }
 0x428   :  { %v14861_v22 = vor.u32 %v21195_v48, %v14858_v55  ;;  %v22193_v35 = vld [vmem:[%s25592_s4 + $0x28] sm:$0xff]  ;;  %v22216_v28 = vld [vmem:[%s25592_s4 + $0xe0] sm:$0xff]  ;;  %v8170_v48 = vmul.f32 0.5, %v23442_v50  ;;  %v22207_v50 = vld [vmem:[%s25592_s4 + $0x98] sm:$0xff] }
 0x429   :  { %8120 = vmatpush.bf16.msrb.mxu0 %v15369_v36  ;;  %8146 = vmatpush.bf16.msrb.mxu2 %v15373_v31  ;;  %v16905_v36 = vor.u32 %v21739_v8, %v16904_v34  ;;  %v22195_v31 = vld [vmem:[%s25592_s4 + $0x38] sm:$0xff]  ;;  %v1304_v8 = vperm.slane %v23695_v14, 7 }
 0x42b   :  { %8133 = vmatpush.bf16.msrb.mxu1 %v17417_v41  ;;  %8159 = vmatpush.bf16.msrb.mxu3 %v17421_v52  ;;  %v16909_v41 = vor.u32 %v21707_v63, %v16906_v13  ;;  %v22202_v52 = vld [vmem:[%s25592_s4 + $0x70] sm:$0xff]  ;;  %v22215_v63 = vld [vmem:[%s25592_s4 + $0xd8] sm:$0xff] }
 0x42d   :  { %8121 = vmatpush.bf16.msrb.mxu0 %v15113_v57  ;;  %8147 = vmatpush.bf16.msrb.mxu2 %v15117_v9  ;;  %v1303_v57 = vperm.slane %v23695_v14, 6 }
 0x42f   :  { %8134 = vmatpush.bf16.msrb.mxu1 %v17161_v11  ;;  %8160 = vmatpush.bf16.msrb.mxu3 %v17165_v5  ;;  %v23772_v11 = vmul.f32 0.5, %v23428_v4  ;;  %v22208_v4 = vld [vmem:[%s25592_s4 + $0xa0] sm:$0xff]  ;;  %v8169_v5 = vmul.f32 0.5, %v23440_v32  ;;  %v22199_v32 = vld [vmem:[%s25592_s4 + $0x58] sm:$0xff] }
 0x431   :  { %8122 = vmatpush.bf16.msrb.mxu0 %v14857_v40  ;;  %8148 = vmatpush.bf16.msrb.mxu2 %v14861_v22  ;;  %v7916_v9 = vpop.f32.mrf.mxu0  ;;  %22823 = vtanh.f32 %v23772_v11 }
 0x432   :  { %v7917_v34 = vadd.f32 %v7916_v9, %v1303_v57  ;;  %22825 = vtanh.f32 %v23778_v58 }
 0x433   :  { %8135 = vmatpush.bf16.msrb.mxu1 %v16905_v36  ;;  %8161 = vmatpush.bf16.msrb.mxu3 %v16909_v41  ;;  %v7929_v47 = vpop.f32.mrf.mxu1  ;;  %22827 = vtanh.f32 %v8169_v5  ;;  %v22190_v36 = vld [vmem:[%s25592_s4 + $0x10] sm:$0xff] }
 0x434   :  { %8123 = vmatmul.bf16.vlgmr.msrb.gmra.mxu0 %v23708_v61  ;;  %8149 = vmatmul.bf16.vlgmr.msrb.gmra.mxu2 %v23708_v61  ;;  %v22217_v61 = vld [vmem:[%s25592_s4 + $0xe8] sm:$0xff]  ;;  %v23792_v55 = vadd.f32 %v7929_v47, %v7917_v34  ;;  %22829 = vtanh.f32 %v8170_v48  ;;  %v22188_v47 = vld [vmem:[%s25592_s4] sm:$0xff] }
 0x435   :  { %12583 = vmatpush.bf16.msra.mxu0 %v22195_v31  ;;  %12609 = vmatpush.bf16.msra.mxu2 %v22211_v21  ;;  %v22198_v31 = vld [vmem:[%s25592_s4 + $0x50] sm:$0xff] }
 0x436   :  { %8136 = vmatmul.bf16.vlgmr.msrb.gmra.mxu1 %v23698_v16  ;;  %8162 = vmatmul.bf16.vlgmr.msrb.gmra.mxu3 %v23698_v16  ;;  %v22192_v16 = vld [vmem:[%s25592_s4 + $0x20] sm:$0xff] }
 0x437   :  { %12596 = vmatpush.bf16.msra.mxu1 %v22203_v39  ;;  %12622 = vmatpush.bf16.msra.mxu3 %v22219_v1  ;;  %v7942_v14 = vpop.f32.mrf.mxu2  ;;  %v22206_v39 = vld [vmem:[%s25592_s4 + $0x90] sm:$0xff]  ;;  %v22824_v1 = vpop.eup %22823 }
 0x438   :  { %v7943_v13 = vadd.f32 %v7942_v14, %v1304_v8  ;;  %v22204_v8 = vld [vmem:[%s25592_s4 + $0x80] sm:$0xff] }
 0x439   :  { %12584 = vmatpush.bf16.msra.mxu0 %v22194_v33  ;;  %12610 = vmatpush.bf16.msra.mxu2 %v22210_v49  ;;  %v7955_v40 = vpop.f32.mrf.mxu3  ;;  %v7918_v41 = vpop.f32.mrf.mxu0  ;;  %v22214_v33 = vld [vmem:[%s25592_s4 + $0xd0] sm:$0xff] }
 0x43a   :  { %v23811_v22 = vadd.f32 %v7955_v40, %v7943_v13  ;;  %v22235_v13 = vld [vmem:[%s25592_s4 + $0x178] sm:$0xff] }
 0x43b   :  { %12597 = vmatpush.bf16.msra.mxu1 %v22202_v52  ;;  %12623 = vmatpush.bf16.msra.mxu3 %v22218_v25  ;;  %v7931_v21 = vpop.f32.mrf.mxu1  ;;  %v22826_v52 = vpop.eup %22825  ;;  %v22189_v25 = vld [vmem:[%s25592_s4 + $0x8] sm:$0xff] }
 0x43c   :  { %v22828_v49 = vpop.eup %22827 }
 0x43d   :  { %12585 = vmatpush.bf16.msra.mxu0 %v22193_v35  ;;  %12611 = vmatpush.bf16.msra.mxu2 %v22209_v62  ;;  %v22830_v35 = vpop.eup %22829  ;;  %v22205_v62 = vld [vmem:[%s25592_s4 + $0x88] sm:$0xff] }
 0x43e   :  { %v8298_v34 = vadd.f32 1.0, %v22830_v35 }
 0x43f   :  { %12598 = vmatpush.bf16.msra.mxu1 %v22201_v19  ;;  %12624 = vmatpush.bf16.msra.mxu3 %v22217_v61  ;;  %v22197_v19 = vld [vmem:[%s25592_s4 + $0x48] sm:$0xff]  ;;  %v7944_v57 = vpop.f32.mrf.mxu2  ;;  %v8295_v61 = vadd.f32 1.0, %v22824_v1  ;;  %v22250_v1 = vld [vmem:[%s25592_s4 + $0x1f0] sm:$0xff] }
 0x440   :  { %v8362_v40 = vmul.f32 %v8298_v34, %v8170_v48  ;;  %v22234_v48 = vld [vmem:[%s25592_s4 + $0x170] sm:$0xff]  ;;  %v22224_v57 = vld [vmem:[%s25592_s4 + $0x120] sm:$0xff]  ;;  %v8173_v34 = vmul.f32 0.5, %v23460_v24  ;;  %v22231_v24 = vld [vmem:[%s25592_s4 + $0x158] sm:$0xff] }
 0x441   :  { %12586 = vmatpush.bf16.msra.mxu0 %v22192_v16  ;;  %12612 = vmatpush.bf16.msra.mxu2 %v22208_v4  ;;  %v22213_v16 = vld [vmem:[%s25592_s4 + $0xc8] sm:$0xff]  ;;  %v7957_v9 = vpop.f32.mrf.mxu3  ;;  %v8297_v4 = vadd.f32 1.0, %v22828_v49 }
 0x442   :  { %v8426_v21 = vpack.c.bf16 %v8362_v40, %v8362_v40  ;;  %v22233_v49 = vld [vmem:[%s25592_s4 + $0x168] sm:$0xff]  ;;  %v22232_v9 = vld [vmem:[%s25592_s4 + $0x160] sm:$0xff] }
 0x443   :  { %12599 = vmatpush.bf16.msra.mxu1 %v22200_v27  ;;  %12625 = vmatpush.bf16.msra.mxu3 %v22216_v28  ;;  %v8296_v27 = vadd.f32 1.0, %v22826_v52  ;;  %v22196_v28 = vld [vmem:[%s25592_s4 + $0x40] sm:$0xff]  ;;  %v22225_v52 = vld [vmem:[%s25592_s4 + $0x128] sm:$0xff] }
 0x445   :  { %12587 = vmatpush.bf16.msra.mxu0 %v22191_v15  ;;  %12613 = vmatpush.bf16.msra.mxu2 %v22207_v50  ;;  %v8359_v15 = vmul.f32 %v8295_v61, %v23772_v11  ;;  %v22227_v50 = vld [vmem:[%s25592_s4 + $0x138] sm:$0xff]  ;;  %v8360_v14 = vmul.f32 %v8296_v27, %v23778_v58  ;;  %v22226_v58 = vld [vmem:[%s25592_s4 + $0x130] sm:$0xff] }
 0x446   :  { %v22243_v11 = vld [vmem:[%s25592_s4 + $0x1b8] sm:$0xff] }
 0x447   :  { %12600 = vmatpush.bf16.msra.mxu1 %v22199_v32  ;;  %12626 = vmatpush.bf16.msra.mxu3 %v22215_v63  ;;  %v22212_v32 = vld [vmem:[%s25592_s4 + $0xc0] sm:$0xff]  ;;  %v8361_v63 = vmul.f32 %v8297_v4, %v8169_v5  ;;  %v8423_v41 = vpack.c.bf16 %v8359_v15, %v8359_v15  ;;  %v8424_v5 = vpack.c.bf16 %v8360_v14, %v8360_v14  ;;  %v22223_v15 = vld [vmem:[%s25592_s4 + $0x118] sm:$0xff] }
 0x449   :  { %12588 = vmatpush.bf16.msra.mxu0 %v22190_v36  ;;  %12614 = vmatpush.bf16.msra.mxu2 %v22206_v39  ;;  %v22251_v36 = vld [vmem:[%s25592_s4 + $0x1f8] sm:$0xff]  ;;  %v22242_v39 = vld [vmem:[%s25592_s4 + $0x1b0] sm:$0xff] }
 0x44b   :  { %12601 = vmatpush.bf16.msra.mxu1 %v22198_v31  ;;  %12627 = vmatpush.bf16.msra.mxu3 %v22214_v33  ;;  %v8425_v31 = vpack.c.bf16 %v8361_v63, %v8361_v63  ;;  %v23872_v33 = vld [vmem:[#allocation7 + $0x38] sm:$0xff] }
 0x44c   :  { %v1305_v35 = vperm.slane %v23872_v33, 0 }
 0x44d   :  { %12589 = vmatpush.bf16.msra.mxu0 %v22189_v25  ;;  %12615 = vmatpush.bf16.msra.mxu2 %v22205_v62  ;;  %v22241_v25 = vld [vmem:[%s25592_s4 + $0x1a8] sm:$0xff]  ;;  %v23888_v62 = vmul.f32 0.5, %v23450_v20  ;;  %v22240_v20 = vld [vmem:[%s25592_s4 + $0x1a0] sm:$0xff] }
 0x44f   :  { %12602 = vmatpush.bf16.msra.mxu1 %v22197_v19  ;;  %12628 = vmatpush.bf16.msra.mxu3 %v22213_v16  ;;  %v22249_v19 = vld [vmem:[%s25592_s4 + $0x1e8] sm:$0xff]  ;;  %v23894_v16 = vmul.f32 0.5, %v23452_v45  ;;  %v22248_v45 = vld [vmem:[%s25592_s4 + $0x1e0] sm:$0xff]  ;;  %22831 = vtanh.f32 %v23888_v62 }
 0x451   :  { %12590 = vmatpush.bf16.msra.mxu0 %v22188_v47  ;;  %12616 = vmatpush.bf16.msra.mxu2 %v22204_v8  ;;  %v7968_v61 = vpop.f32.mrf.mxu0  ;;  %v1306_v47 = vperm.slane %v23872_v33, 1  ;;  %22833 = vtanh.f32 %v23894_v16 }
 0x452   :  { %v7969_v27 = vadd.f32 %v7968_v61, %v1305_v35  ;;  %22835 = vtanh.f32 %v8173_v34 }
 0x453   :  { %12603 = vmatpush.bf16.msra.mxu1 %v22196_v28  ;;  %12629 = vmatpush.bf16.msra.mxu3 %v22212_v32  ;;  %v7981_v4 = vpop.f32.mrf.mxu1  ;;  %v8174_v28 = vmul.f32 0.5, %v23462_v42  ;;  %v22239_v42 = vld [vmem:[%s25592_s4 + $0x198] sm:$0xff] }
 0x454   :  { %12591 = vmatmul.bf16.vlgmr.msra.gmra.mxu0 %v8423_v41  ;;  %12617 = vmatmul.bf16.vlgmr.msra.gmra.mxu2 %v8425_v31  ;;  %v23908_v8 = vadd.f32 %v7981_v4, %v7969_v27  ;;  %v22238_v41 = vld [vmem:[%s25592_s4 + $0x190] sm:$0xff]  ;;  %v22220_v27 = vld [vmem:[%s25592_s4 + $0x100] sm:$0xff] }
 0x455   :  { %12635 = vmatpush.bf16.msrb.mxu0 %v22227_v50  ;;  %12661 = vmatpush.bf16.msrb.mxu2 %v22243_v11  ;;  %v22247_v50 = vld [vmem:[%s25592_s4 + $0x1d8] sm:$0xff]  ;;  %22837 = vtanh.f32 %v8174_v28  ;;  %v22246_v31 = vld [vmem:[%s25592_s4 + $0x1d0] sm:$0xff]  ;;  %v22228_v4 = vld [vmem:[%s25592_s4 + $0x140] sm:$0xff] }
 0x456   :  { %12604 = vmatmul.bf16.vlgmr.msra.gmra.mxu1 %v8424_v5  ;;  %12630 = vmatmul.bf16.vlgmr.msra.gmra.mxu3 %v8426_v21  ;;  %v22832_v5 = vpop.eup %22831  ;;  %v22221_v21 = vld [vmem:[%s25592_s4 + $0x108] sm:$0xff] }
 0x457   :  { %12648 = vmatpush.bf16.msrb.mxu1 %v22235_v13  ;;  %12674 = vmatpush.bf16.msrb.mxu3 %v22251_v36  ;;  %v7994_v32 = vpop.f32.mrf.mxu2  ;;  %v22222_v13 = vld [vmem:[%s25592_s4 + $0x110] sm:$0xff]  ;;  %v8299_v35 = vadd.f32 1.0, %v22832_v5  ;;  %v22257_v5 = vld [vmem:[%s25592_s4 + $0x228] sm:$0xff] }
 0x458   :  { %v7995_v14 = vadd.f32 %v7994_v32, %v1306_v47  ;;  %v22230_v36 = vld [vmem:[%s25592_s4 + $0x150] sm:$0xff] }
 0x459   :  { %12636 = vmatpush.bf16.msrb.mxu0 %v22226_v58  ;;  %12662 = vmatpush.bf16.msrb.mxu2 %v22242_v39  ;;  %v8007_v63 = vpop.f32.mrf.mxu3  ;;  %v7970_v40 = vpop.f32.mrf.mxu0  ;;  %v8363_v47 = vmul.f32 %v8299_v35, %v23888_v62  ;;  %v22275_v62 = vld [vmem:[%s25592_s4 + $0x2b8] sm:$0xff]  ;;  %v22264_v35 = vld [vmem:[%s25592_s4 + $0x260] sm:$0xff] }
 0x45a   :  { %v23927_v11 = vadd.f32 %v8007_v63, %v7995_v14  ;;  %v22283_v63 = vld [vmem:[%s25592_s4 + $0x2f8] sm:$0xff] }
 0x45b   :  { %12649 = vmatpush.bf16.msrb.mxu1 %v22234_v48  ;;  %12675 = vmatpush.bf16.msrb.mxu3 %v22250_v1  ;;  %v7983_v58 = vpop.f32.mrf.mxu1  ;;  %v22834_v48 = vpop.eup %22833 }
 0x45c   :  { %v22836_v39 = vpop.eup %22835  ;;  %v8300_v61 = vadd.f32 1.0, %v22834_v48  ;;  %v22282_v58 = vld [vmem:[%s25592_s4 + $0x2f0] sm:$0xff]  ;;  %v22273_v48 = vld [vmem:[%s25592_s4 + $0x2a8] sm:$0xff] }
 0x45d   :  { %12637 = vmatpush.bf16.msrb.mxu0 %v22225_v52  ;;  %12663 = vmatpush.bf16.msrb.mxu2 %v22241_v25  ;;  %v22838_v1 = vpop.eup %22837  ;;  %v22229_v52 = vld [vmem:[%s25592_s4 + $0x148] sm:$0xff] }
 0x45f   :  { %12650 = vmatpush.bf16.msrb.mxu1 %v22233_v49  ;;  %12676 = vmatpush.bf16.msrb.mxu3 %v22249_v19  ;;  %v22237_v49 = vld [vmem:[%s25592_s4 + $0x188] sm:$0xff]  ;;  %v7996_v25 = vpop.f32.mrf.mxu2 }
 0x460   :  { %v22245_v19 = vld [vmem:[%s25592_s4 + $0x1c8] sm:$0xff]  ;;  %v24008_v25 = vmul.f32 0.5, %v23476_v43  ;;  %v22280_v43 = vld [vmem:[%s25592_s4 + $0x2e0] sm:$0xff] }
 0x461   :  { %12638 = vmatpush.bf16.msrb.mxu0 %v22224_v57  ;;  %12664 = vmatpush.bf16.msrb.mxu2 %v22240_v20  ;;  %v8009_v57 = vpop.f32.mrf.mxu3  ;;  %v8302_v20 = vadd.f32 1.0, %v22838_v1  ;;  %v24002_v1 = vmul.f32 0.5, %v23474_v23  ;;  %v22272_v23 = vld [vmem:[%s25592_s4 + $0x2a0] sm:$0xff] }
 0x463   :  { %12651 = vmatpush.bf16.msrb.mxu1 %v22232_v9  ;;  %12677 = vmatpush.bf16.msrb.mxu3 %v22248_v45  ;;  %v8301_v9 = vadd.f32 1.0, %v22836_v39  ;;  %v22236_v45 = vld [vmem:[%s25592_s4 + $0x180] sm:$0xff]  ;;  %v8366_v14 = vmul.f32 %v8302_v20, %v8174_v28  ;;  %v22266_v28 = vld [vmem:[%s25592_s4 + $0x270] sm:$0xff]  ;;  %v1307_v39 = vperm.slane %v23872_v33, 2  ;;  %v8178_v20 = vmul.f32 0.5, %v23488_v53  ;;  %v22271_v53 = vld [vmem:[%s25592_s4 + $0x298] sm:$0xff] }
 0x464   :  { %22839 = vtanh.f32 %v24002_v1 }
 0x465   :  { %12639 = vmatpush.bf16.msrb.mxu0 %v22223_v15  ;;  %12665 = vmatpush.bf16.msrb.mxu2 %v22239_v42  ;;  %v22244_v15 = vld [vmem:[%s25592_s4 + $0x1c0] sm:$0xff]  ;;  %v8364_v42 = vmul.f32 %v8300_v61, %v23894_v16  ;;  %v8365_v32 = vmul.f32 %v8301_v9, %v8173_v34  ;;  %v22258_v16 = vld [vmem:[%s25592_s4 + $0x230] sm:$0xff]  ;;  %v8177_v61 = vmul.f32 0.5, %v23486_v30  ;;  %v1308_v9 = vperm.slane %v23872_v33, 3  ;;  %v22263_v30 = vld [vmem:[%s25592_s4 + $0x258] sm:$0xff] }
 0x466   :  { %22841 = vtanh.f32 %v24008_v25 }
 0x467   :  { %12652 = vmatpush.bf16.msrb.mxu1 %v22231_v24  ;;  %12678 = vmatpush.bf16.msrb.mxu3 %v22247_v50  ;;  %v22259_v24 = vld [vmem:[%s25592_s4 + $0x238] sm:$0xff]  ;;  %v8428_v34 = vpack.c.bf16 %v8364_v42, %v8364_v42  ;;  %v8429_v40 = vpack.c.bf16 %v8365_v32, %v8365_v32  ;;  %22843 = vtanh.f32 %v8177_v61  ;;  %v22254_v42 = vld [vmem:[%s25592_s4 + $0x210] sm:$0xff] }
 0x468   :  { %v22267_v50 = vld [vmem:[%s25592_s4 + $0x278] sm:$0xff]  ;;  %22845 = vtanh.f32 %v8178_v20 }
 0x469   :  { %12640 = vmatpush.bf16.msrb.mxu0 %v22222_v13  ;;  %12666 = vmatpush.bf16.msrb.mxu2 %v22238_v41  ;;  %v8427_v13 = vpack.c.bf16 %v8363_v47, %v8363_v47  ;;  %v8430_v41 = vpack.c.bf16 %v8366_v14, %v8366_v14  ;;  %v22279_v47 = vld [vmem:[%s25592_s4 + $0x2d8] sm:$0xff]  ;;  %v22270_v14 = vld [vmem:[%s25592_s4 + $0x290] sm:$0xff] }
 0x46b   :  { %12653 = vmatpush.bf16.msrb.mxu1 %v22230_v36  ;;  %12679 = vmatpush.bf16.msrb.mxu3 %v22246_v31  ;;  %v22274_v36 = vld [vmem:[%s25592_s4 + $0x2b0] sm:$0xff]  ;;  %v22265_v31 = vld [vmem:[%s25592_s4 + $0x268] sm:$0xff] }
 0x46d   :  { %12641 = vmatpush.bf16.msrb.mxu0 %v22221_v21  ;;  %12667 = vmatpush.bf16.msrb.mxu2 %v22237_v49  ;;  %v22281_v21 = vld [vmem:[%s25592_s4 + $0x2e8] sm:$0xff] }
 0x46f   :  { %12654 = vmatpush.bf16.msrb.mxu1 %v22229_v52  ;;  %12680 = vmatpush.bf16.msrb.mxu3 %v22245_v19  ;;  %v22256_v52 = vld [vmem:[%s25592_s4 + $0x220] sm:$0xff] }
 0x471   :  { %12642 = vmatpush.bf16.msrb.mxu0 %v22220_v27  ;;  %12668 = vmatpush.bf16.msrb.mxu2 %v22236_v45  ;;  %v8020_v49 = vpop.f32.mrf.mxu0 }
 0x472   :  { %v8021_v19 = vadd.f32 %v8020_v49, %v1307_v39 }
 0x473   :  { %12655 = vmatpush.bf16.msrb.mxu1 %v22228_v4  ;;  %12681 = vmatpush.bf16.msrb.mxu3 %v22244_v15  ;;  %v8033_v57 = vpop.f32.mrf.mxu1  ;;  %v22255_v4 = vld [vmem:[%s25592_s4 + $0x218] sm:$0xff] }
 0x474   :  { %12643 = vmatmul.bf16.vlgmr.msrb.gmra.mxu0 %v8427_v13  ;;  %12669 = vmatmul.bf16.vlgmr.msrb.gmra.mxu2 %v8429_v40  ;;  %v24022_v27 = vadd.f32 %v8033_v57, %v8021_v19  ;;  %v22840_v13 = vpop.eup %22839  ;;  %v22268_v19 = vld [vmem:[%s25592_s4 + $0x280] sm:$0xff] }
 0x475   :  { %12687 = vmatpush.bf16.msra.mxu0 %v22259_v24  ;;  %12713 = vmatpush.bf16.msra.mxu2 %v22275_v62  ;;  %v22262_v62 = vld [vmem:[%s25592_s4 + $0x250] sm:$0xff] }
 0x476   :  { %12656 = vmatmul.bf16.vlgmr.msrb.gmra.mxu1 %v8428_v34  ;;  %12682 = vmatmul.bf16.vlgmr.msrb.gmra.mxu3 %v8430_v41  ;;  %v22842_v34 = vpop.eup %22841  ;;  %v22261_v41 = vld [vmem:[%s25592_s4 + $0x248] sm:$0xff] }
 0x477   :  { %12700 = vmatpush.bf16.msra.mxu1 %v22267_v50  ;;  %12726 = vmatpush.bf16.msra.mxu3 %v22283_v63  ;;  %v8046_v45 = vpop.f32.mrf.mxu2  ;;  %v22844_v40 = vpop.eup %22843 }
 0x478   :  { %v8047_v15 = vadd.f32 %v8046_v45, %v1308_v9  ;;  %v22291_v9 = vld [vmem:[%s25592_s4 + $0x338] sm:$0xff] }
 0x479   :  { %12688 = vmatpush.bf16.msra.mxu0 %v22258_v16  ;;  %12714 = vmatpush.bf16.msra.mxu2 %v22274_v36  ;;  %v8059_v24 = vpop.f32.mrf.mxu3  ;;  %v8022_v50 = vpop.f32.mrf.mxu0  ;;  %v22278_v16 = vld [vmem:[%s25592_s4 + $0x2d0] sm:$0xff] }
 0x47a   :  { %v24041_v32 = vadd.f32 %v8059_v24, %v8047_v15  ;;  %v22846_v36 = vpop.eup %22845 }
 0x47b   :  { %12701 = vmatpush.bf16.msra.mxu1 %v22266_v28  ;;  %12727 = vmatpush.bf16.msra.mxu3 %v22282_v58  ;;  %v8035_v63 = vpop.f32.mrf.mxu1  ;;  %v22253_v28 = vld [vmem:[%s25592_s4 + $0x208] sm:$0xff]  ;;  %v8306_v49 = vadd.f32 1.0, %v22846_v36 }
 0x47c   :  { %v22269_v58 = vld [vmem:[%s25592_s4 + $0x288] sm:$0xff] }
 0x47d   :  { %12689 = vmatpush.bf16.msra.mxu0 %v22257_v5  ;;  %12715 = vmatpush.bf16.msra.mxu2 %v22273_v48  ;;  %v22277_v48 = vld [vmem:[%s25592_s4 + $0x2c8] sm:$0xff]  ;;  %v8370_v45 = vmul.f32 %v8306_v49, %v8178_v20  ;;  %v22298_v20 = vld [vmem:[%s25592_s4 + $0x370] sm:$0xff]  ;;  %v22287_v49 = vld [vmem:[%s25592_s4 + $0x318] sm:$0xff] }
 0x47e   :  { %v22297_v63 = vld [vmem:[%s25592_s4 + $0x368] sm:$0xff] }
 0x47f   :  { %12702 = vmatpush.bf16.msra.mxu1 %v22265_v31  ;;  %12728 = vmatpush.bf16.msra.mxu3 %v22281_v21  ;;  %v8048_v5 = vpop.f32.mrf.mxu2  ;;  %v8303_v31 = vadd.f32 1.0, %v22840_v13  ;;  %v8304_v21 = vadd.f32 1.0, %v22842_v34  ;;  %v8434_v50 = vpack.c.bf16 %v8370_v45, %v8370_v45  ;;  %v22305_v13 = vld [vmem:[%s25592_s4 + $0x3a8] sm:$0xff] }
 0x480   :  { %v22313_v34 = vld [vmem:[%s25592_s4 + $0x3e8] sm:$0xff] }
 0x481   :  { %12690 = vmatpush.bf16.msra.mxu0 %v22256_v52  ;;  %12716 = vmatpush.bf16.msra.mxu2 %v22272_v23  ;;  %v8061_v39 = vpop.f32.mrf.mxu3  ;;  %v8305_v52 = vadd.f32 1.0, %v22844_v40  ;;  %v22260_v23 = vld [vmem:[%s25592_s4 + $0x240] sm:$0xff]  ;;  %v8367_v57 = vmul.f32 %v8303_v31, %v24002_v1  ;;  %v22307_v1 = vld [vmem:[%s25592_s4 + $0x3b8] sm:$0xff]  ;;  %v24116_v40 = vmul.f32 0.5, %v23496_v44 }
 0x482   :  { %v22304_v44 = vld [vmem:[%s25592_s4 + $0x3a0] sm:$0xff]  ;;  %v1310_v39 = vperm.slane %v23872_v33, 5 }
 0x483   :  { %12703 = vmatpush.bf16.msra.mxu1 %v22264_v35  ;;  %12729 = vmatpush.bf16.msra.mxu3 %v22280_v43  ;;  %v22252_v35 = vld [vmem:[%s25592_s4 + $0x200] sm:$0xff]  ;;  %v8431_v15 = vpack.c.bf16 %v8367_v57, %v8367_v57  ;;  %22847 = vtanh.f32 %v24116_v40 }
 0x484   :  { %v22276_v43 = vld [vmem:[%s25592_s4 + $0x2c0] sm:$0xff] }
 0x485   :  { %12691 = vmatpush.bf16.msra.mxu0 %v22255_v4  ;;  %12717 = vmatpush.bf16.msra.mxu2 %v22271_v53  ;;  %v8368_v4 = vmul.f32 %v8304_v21, %v24008_v25  ;;  %v22299_v53 = vld [vmem:[%s25592_s4 + $0x378] sm:$0xff]  ;;  %v22290_v25 = vld [vmem:[%s25592_s4 + $0x330] sm:$0xff]  ;;  %v8182_v21 = vmul.f32 0.5, %v23508_v18 }
 0x486   :  { %v22303_v18 = vld [vmem:[%s25592_s4 + $0x398] sm:$0xff] }
 0x487   :  { %12704 = vmatpush.bf16.msra.mxu1 %v22263_v30  ;;  %12730 = vmatpush.bf16.msra.mxu3 %v22279_v47  ;;  %v8369_v30 = vmul.f32 %v8305_v52, %v8177_v61  ;;  %v22315_v47 = vld [vmem:[%s25592_s4 + $0x3f8] sm:$0xff]  ;;  %v8432_v61 = vpack.c.bf16 %v8368_v4, %v8368_v4 }
 0x489   :  { %12692 = vmatpush.bf16.msra.mxu0 %v22254_v42  ;;  %12718 = vmatpush.bf16.msra.mxu2 %v22270_v14  ;;  %v8433_v24 = vpack.c.bf16 %v8369_v30, %v8369_v30  ;;  %v22306_v42 = vld [vmem:[%s25592_s4 + $0x3b0] sm:$0xff]  ;;  %v22289_v14 = vld [vmem:[%s25592_s4 + $0x328] sm:$0xff]  ;;  %v22848_v45 = vpop.eup %22847 }
 0x48a   :  { %v22294_v30 = vld [vmem:[%s25592_s4 + $0x350] sm:$0xff] }
 0x48b   :  { %12705 = vmatpush.bf16.msra.mxu1 %v22262_v62  ;;  %12731 = vmatpush.bf16.msra.mxu3 %v22278_v16  ;;  %v22314_v62 = vld [vmem:[%s25592_s4 + $0x3f0] sm:$0xff]  ;;  %v1309_v16 = vperm.slane %v23872_v33, 4 }
 0x48d   :  { %12693 = vmatpush.bf16.msra.mxu0 %v22253_v28  ;;  %12719 = vmatpush.bf16.msra.mxu2 %v22269_v58  ;;  %v22288_v28 = vld [vmem:[%s25592_s4 + $0x320] sm:$0xff] }
 0x48e   :  { %v22296_v58 = vld [vmem:[%s25592_s4 + $0x360] sm:$0xff] }
 0x48f   :  { %12706 = vmatpush.bf16.msra.mxu1 %v22261_v41  ;;  %12732 = vmatpush.bf16.msra.mxu3 %v22277_v48  ;;  %v24122_v41 = vmul.f32 0.5, %v23498_v3  ;;  %v8181_v48 = vmul.f32 0.5, %v23506_v0  ;;  %v22312_v3 = vld [vmem:[%s25592_s4 + $0x3e0] sm:$0xff]  ;;  %v22295_v0 = vld [vmem:[%s25592_s4 + $0x358] sm:$0xff] }
 0x491   :  { %12694 = vmatpush.bf16.msra.mxu0 %v22252_v35  ;;  %12720 = vmatpush.bf16.msra.mxu2 %v22268_v19  ;;  %v8072_v36 = vpop.f32.mrf.mxu0  ;;  %22849 = vtanh.f32 %v24122_v41 }
 0x492   :  { %v8073_v5 = vadd.f32 %v8072_v36, %v1309_v16  ;;  %22851 = vtanh.f32 %v8181_v48  ;;  %v22292_v36 = vld [vmem:[%s25592_s4 + $0x340] sm:$0xff] }
 0x493   :  { %12707 = vmatpush.bf16.msra.mxu1 %v22260_v23  ;;  %12733 = vmatpush.bf16.msra.mxu3 %v22276_v43  ;;  %v8085_v31 = vpop.f32.mrf.mxu1  ;;  %v22311_v23 = vld [vmem:[%s25592_s4 + $0x3d8] sm:$0xff]  ;;  %22853 = vtanh.f32 %v8182_v21  ;;  %v22286_v43 = vld [vmem:[%s25592_s4 + $0x310] sm:$0xff] }
 0x494   :  { %12695 = vmatmul.bf16.vlgmr.msra.gmra.mxu0 %v8431_v15  ;;  %12721 = vmatmul.bf16.vlgmr.msra.gmra.mxu2 %v8433_v24  ;;  %v24136_v52 = vadd.f32 %v8085_v31, %v8073_v5  ;;  %v22308_v5 = vld [vmem:[%s25592_s4 + $0x3c0] sm:$0xff]  ;;  %v22323_v31 = vld [vmem:[%s25592_s4 + $0x438] sm:$0xff] }
 0x495   :  { %12739 = vmatpush.bf16.msrb.mxu0 %v22291_v9  ;;  %12765 = vmatpush.bf16.msrb.mxu2 %v22307_v1 }
 0x496   :  { %12708 = vmatmul.bf16.vlgmr.msra.gmra.mxu1 %v8432_v61  ;;  %12734 = vmatmul.bf16.vlgmr.msra.gmra.mxu3 %v8434_v50  ;;  %v22285_v61 = vld [vmem:[%s25592_s4 + $0x308] sm:$0xff] }
 0x497   :  { %12752 = vmatpush.bf16.msrb.mxu1 %v22299_v53  ;;  %12778 = vmatpush.bf16.msrb.mxu3 %v22315_v47  ;;  %v8098_v35 = vpop.f32.mrf.mxu2  ;;  %v22302_v53 = vld [vmem:[%s25592_s4 + $0x390] sm:$0xff]  ;;  %v22850_v15 = vpop.eup %22849 }
 0x498   :  { %v8099_v19 = vadd.f32 %v8098_v35, %v1310_v39  ;;  %v22310_v47 = vld [vmem:[%s25592_s4 + $0x3d0] sm:$0xff] }
 0x499   :  { %12740 = vmatpush.bf16.msrb.mxu0 %v22290_v25  ;;  %12766 = vmatpush.bf16.msrb.mxu2 %v22306_v42  ;;  %v8111_v57 = vpop.f32.mrf.mxu3  ;;  %v8074_v4 = vpop.f32.mrf.mxu0  ;;  %v22301_v42 = vld [vmem:[%s25592_s4 + $0x388] sm:$0xff] }
 0x49a   :  { %v24155_v9 = vadd.f32 %v8111_v57, %v8099_v19  ;;  %v22852_v25 = vpop.eup %22851  ;;  %v22338_v19 = vld [vmem:[%s25592_s4 + $0x4b0] sm:$0xff]  ;;  %v22321_v4 = vld [vmem:[%s25592_s4 + $0x428] sm:$0xff] }
 0x49b   :  { %12753 = vmatpush.bf16.msrb.mxu1 %v22298_v20  ;;  %12779 = vmatpush.bf16.msrb.mxu3 %v22314_v62  ;;  %v8087_v1 = vpop.f32.mrf.mxu1  ;;  %v22854_v24 = vpop.eup %22853  ;;  %v22293_v20 = vld [vmem:[%s25592_s4 + $0x348] sm:$0xff]  ;;  %v8307_v62 = vadd.f32 1.0, %v22848_v45  ;;  %v8309_v16 = vadd.f32 1.0, %v22852_v25  ;;  %v22320_v25 = vld [vmem:[%s25592_s4 + $0x420] sm:$0xff] }
 0x49c   :  { %v22337_v1 = vld [vmem:[%s25592_s4 + $0x4a8] sm:$0xff] }
 0x49d   :  { %12741 = vmatpush.bf16.msrb.mxu0 %v22289_v14  ;;  %12767 = vmatpush.bf16.msrb.mxu2 %v22305_v13  ;;  %v22309_v14 = vld [vmem:[%s25592_s4 + $0x3c8] sm:$0xff]  ;;  %v8308_v13 = vadd.f32 1.0, %v22850_v15  ;;  %v8373_v39 = vmul.f32 %v8309_v16, %v8181_v48  ;;  %v24230_v15 = vmul.f32 0.5, %v23520_v17  ;;  %v22336_v17 = vld [vmem:[%s25592_s4 + $0x4a0] sm:$0xff] }
 0x49e   :  { %v22345_v45 = vld [vmem:[%s25592_s4 + $0x4e8] sm:$0xff] }
 0x49f   :  { %12754 = vmatpush.bf16.msrb.mxu1 %v22297_v63  ;;  %12780 = vmatpush.bf16.msrb.mxu3 %v22313_v34  ;;  %v8100_v50 = vpop.f32.mrf.mxu2  ;;  %v8310_v34 = vadd.f32 1.0, %v22854_v24  ;;  %22855 = vtanh.f32 %v24230_v15 }
 0x4a0   :  { %v8185_v50 = vmul.f32 0.5, %v23532_v56  ;;  %v22327_v56 = vld [vmem:[%s25592_s4 + $0x458] sm:$0xff] }
 0x4a1   :  { %12742 = vmatpush.bf16.msrb.mxu0 %v22288_v28  ;;  %12768 = vmatpush.bf16.msrb.mxu2 %v22304_v44  ;;  %v8113_v63 = vpop.f32.mrf.mxu3  ;;  %v22284_v28 = vld [vmem:[%s25592_s4 + $0x300] sm:$0xff]  ;;  %v8371_v44 = vmul.f32 %v8307_v62, %v24116_v40  ;;  %v22339_v40 = vld [vmem:[%s25592_s4 + $0x4b8] sm:$0xff] }
 0x4a2   :  { %v22344_v62 = vld [vmem:[%s25592_s4 + $0x4e0] sm:$0xff]  ;;  %v1312_v63 = vperm.slane %v23872_v33, 7 }
 0x4a3   :  { %12755 = vmatpush.bf16.msrb.mxu1 %v22296_v58  ;;  %12781 = vmatpush.bf16.msrb.mxu3 %v22312_v3  ;;  %v22300_v58 = vld [vmem:[%s25592_s4 + $0x380] sm:$0xff]  ;;  %v8372_v3 = vmul.f32 %v8308_v13, %v24122_v41  ;;  %v8435_v35 = vpack.c.bf16 %v8371_v44, %v8371_v44  ;;  %v22322_v41 = vld [vmem:[%s25592_s4 + $0x430] sm:$0xff]  ;;  %v22319_v13 = vld [vmem:[%s25592_s4 + $0x418] sm:$0xff] }
 0x4a5   :  { %12743 = vmatpush.bf16.msrb.mxu0 %v22287_v49  ;;  %12769 = vmatpush.bf16.msrb.mxu2 %v22303_v18  ;;  %v22331_v49 = vld [vmem:[%s25592_s4 + $0x478] sm:$0xff]  ;;  %v8436_v48 = vpack.c.bf16 %v8372_v3, %v8372_v3 }
 0x4a6   :  { %v22347_v18 = vld [vmem:[%s25592_s4 + $0x4f8] sm:$0xff] }
 0x4a7   :  { %12756 = vmatpush.bf16.msrb.mxu1 %v22295_v0  ;;  %12782 = vmatpush.bf16.msrb.mxu3 %v22311_v23  ;;  %v8374_v0 = vmul.f32 %v8310_v34, %v8182_v21  ;;  %v8437_v23 = vpack.c.bf16 %v8373_v39, %v8373_v39  ;;  %v22330_v21 = vld [vmem:[%s25592_s4 + $0x470] sm:$0xff]  ;;  %v22856_v39 = vpop.eup %22855 }
 0x4a9   :  { %12744 = vmatpush.bf16.msrb.mxu0 %v22286_v43  ;;  %12770 = vmatpush.bf16.msrb.mxu2 %v22302_v53  ;;  %v8438_v57 = vpack.c.bf16 %v8374_v0, %v8374_v0  ;;  %v22346_v43 = vld [vmem:[%s25592_s4 + $0x4f0] sm:$0xff]  ;;  %v22329_v53 = vld [vmem:[%s25592_s4 + $0x468] sm:$0xff] }
 0x4ab   :  { %12757 = vmatpush.bf16.msrb.mxu1 %v22294_v30  ;;  %12783 = vmatpush.bf16.msrb.mxu3 %v22310_v47  ;;  %v1311_v30 = vperm.slane %v23872_v33, 6  ;;  %v22343_v33 = vld [vmem:[%s25592_s4 + $0x4d8] sm:$0xff] }
 0x4ad   :  { %12745 = vmatpush.bf16.msrb.mxu0 %v22285_v61  ;;  %12771 = vmatpush.bf16.msrb.mxu2 %v22301_v42  ;;  %v22328_v42 = vld [vmem:[%s25592_s4 + $0x460] sm:$0xff] }
 0x4af   :  { %12758 = vmatpush.bf16.msrb.mxu1 %v22293_v20  ;;  %12784 = vmatpush.bf16.msrb.mxu3 %v22309_v14  ;;  %v24236_v20 = vmul.f32 0.5, %v23522_v54  ;;  %v8186_v54 = vmul.f32 0.5, %v23534_v12  ;;  %v22335_v12 = vld [vmem:[%s25592_s4 + $0x498] sm:$0xff] }
 0x4b1   :  { %12746 = vmatpush.bf16.msrb.mxu0 %v22284_v28  ;;  %12772 = vmatpush.bf16.msrb.mxu2 %v22300_v58  ;;  %v8124_v47 = vpop.f32.mrf.mxu0  ;;  %22857 = vtanh.f32 %v24236_v20  ;;  %v22318_v58 = vld [vmem:[%s25592_s4 + $0x410] sm:$0xff] }
 0x4b2   :  { %v8125_v61 = vadd.f32 %v8124_v47, %v1311_v30  ;;  %22859 = vtanh.f32 %v8185_v50 }
 0x4b3   :  { %12759 = vmatpush.bf16.msrb.mxu1 %v22292_v36  ;;  %12785 = vmatpush.bf16.msrb.mxu3 %v22308_v5  ;;  %v8137_v24 = vpop.f32.mrf.mxu1  ;;  %22861 = vtanh.f32 %v8186_v54  ;;  %v22326_v5 = vld [vmem:[%s25592_s4 + $0x450] sm:$0xff] }
 0x4b4   :  { %12747 = vmatmul.bf16.vlgmr.msrb.gmra.mxu0 %v8435_v35  ;;  %12773 = vmatmul.bf16.vlgmr.msrb.gmra.mxu2 %v8437_v23  ;;  %v24248_v14 = vadd.f32 %v8137_v24, %v8125_v61  ;;  %v8311_v23 = vadd.f32 1.0, %v22856_v39  ;;  %v22355_v61 = vld [vmem:[%s25592_s4 + $0x538] sm:$0xff]  ;;  %v22352_v39 = vld [vmem:[%s25592_s4 + $0x520] sm:$0xff] }
 0x4b5   :  { %12791 = vmatpush.bf16.msra.mxu0 %v22323_v31  ;;  %12817 = vmatpush.bf16.msra.mxu2 %v22339_v40  ;;  %v22334_v31 = vld [vmem:[%s25592_s4 + $0x490] sm:$0xff] }
 0x4b6   :  { %12760 = vmatmul.bf16.vlgmr.msrb.gmra.mxu1 %v8436_v48  ;;  %12786 = vmatmul.bf16.vlgmr.msrb.gmra.mxu3 %v8438_v57  ;;  %v22333_v48 = vld [vmem:[%s25592_s4 + $0x488] sm:$0xff]  ;;  %v8375_v47 = vmul.f32 %v8311_v23, %v24230_v15  ;;  %v22371_v15 = vld [vmem:[%s25592_s4 + $0x5b8] sm:$0xff] }
 0x4b7   :  { %12804 = vmatpush.bf16.msra.mxu1 %v22331_v49  ;;  %12830 = vmatpush.bf16.msra.mxu3 %v22347_v18  ;;  %v8150_v16 = vpop.f32.mrf.mxu2  ;;  %v22342_v49 = vld [vmem:[%s25592_s4 + $0x4d0] sm:$0xff]  ;;  %v22858_v40 = vpop.eup %22857  ;;  %v22317_v18 = vld [vmem:[%s25592_s4 + $0x408] sm:$0xff] }
 0x4b8   :  { %v8151_v34 = vadd.f32 %v8150_v16, %v1312_v63  ;;  %v22860_v0 = vpop.eup %22859  ;;  %v8312_v57 = vadd.f32 1.0, %v22858_v40  ;;  %v22379_v63 = vld [vmem:[%s25592_s4 + $0x5f8] sm:$0xff]  ;;  %v22378_v16 = vld [vmem:[%s25592_s4 + $0x5f0] sm:$0xff] }
 0x4b9   :  { %12792 = vmatpush.bf16.msra.mxu0 %v22322_v41  ;;  %12818 = vmatpush.bf16.msra.mxu2 %v22338_v19  ;;  %v8163_v28 = vpop.f32.mrf.mxu3  ;;  %v8126_v36 = vpop.f32.mrf.mxu0  ;;  %v22325_v41 = vld [vmem:[%s25592_s4 + $0x448] sm:$0xff] }
 0x4ba   :  { %v24275_v3 = vadd.f32 %v8163_v28, %v8151_v34  ;;  %v22862_v35 = vpop.eup %22861  ;;  %v8376_v24 = vmul.f32 %v8312_v57, %v24236_v20  ;;  %v22354_v20 = vld [vmem:[%s25592_s4 + $0x530] sm:$0xff]  ;;  %v22353_v34 = vld [vmem:[%s25592_s4 + $0x528] sm:$0xff] }
 0x4bb   :  { %12805 = vmatpush.bf16.msra.mxu1 %v22330_v21  ;;  %12831 = vmatpush.bf16.msra.mxu3 %v22346_v43  ;;  %v8139_v44 = vpop.f32.mrf.mxu1  ;;  %v22341_v21 = vld [vmem:[%s25592_s4 + $0x4c8] sm:$0xff]  ;;  %v8313_v43 = vadd.f32 1.0, %v22860_v0  ;;  %v8314_v30 = vadd.f32 1.0, %v22862_v35  ;;  %v22360_v0 = vld [vmem:[%s25592_s4 + $0x560] sm:$0xff] }
 0x4bc   :  { %v22361_v28 = vld [vmem:[%s25592_s4 + $0x568] sm:$0xff]  ;;  %v22376_v35 = vld [vmem:[%s25592_s4 + $0x5e0] sm:$0xff] }
 0x4bd   :  { %12793 = vmatpush.bf16.msra.mxu0 %v22321_v4  ;;  %12819 = vmatpush.bf16.msra.mxu2 %v22337_v1  ;;  %v22324_v1 = vld [vmem:[%s25592_s4 + $0x440] sm:$0xff]  ;;  %v22369_v36 = vld [vmem:[%s25592_s4 + $0x5a8] sm:$0xff] }
 0x4bf   :  { %12806 = vmatpush.bf16.msra.mxu1 %v22329_v53  ;;  %12832 = vmatpush.bf16.msra.mxu3 %v22345_v45  ;;  %v8152_v19 = vpop.f32.mrf.mxu2  ;;  %v22316_v53 = vld [vmem:[%s25592_s4 + $0x400] sm:$0xff] }
 0x4c0   :  { %v22332_v45 = vld [vmem:[%s25592_s4 + $0x480] sm:$0xff] }
 0x4c1   :  { %12794 = vmatpush.bf16.msra.mxu0 %v22320_v25  ;;  %12820 = vmatpush.bf16.msra.mxu2 %v22336_v17  ;;  %v8165_v4 = vpop.f32.mrf.mxu3  ;;  %v22340_v25 = vld [vmem:[%s25592_s4 + $0x4c0] sm:$0xff]  ;;  %v22363_v17 = vld [vmem:[%s25592_s4 + $0x578] sm:$0xff] }
 0x4c2   :  { %v22350_v4 = vld [vmem:[%s25592_s4 + $0x510] sm:$0xff] }
 0x4c3   :  { %12807 = vmatpush.bf16.msra.mxu1 %v22328_v42  ;;  %12833 = vmatpush.bf16.msra.mxu3 %v22344_v62  ;;  %v8377_v42 = vmul.f32 %v8313_v43, %v8185_v50  ;;  %v8378_v62 = vmul.f32 %v8314_v30, %v8186_v54  ;;  %v8440_v50 = vpack.c.bf16 %v8376_v24, %v8376_v24  ;;  %v22362_v54 = vld [vmem:[%s25592_s4 + $0x570] sm:$0xff]  ;;  %v22349_v24 = vld [vmem:[%s25592_s4 + $0x508] sm:$0xff] }
 0x4c5   :  { %12795 = vmatpush.bf16.msra.mxu0 %v22319_v13  ;;  %12821 = vmatpush.bf16.msra.mxu2 %v22335_v12  ;;  %v8439_v13 = vpack.c.bf16 %v8375_v47, %v8375_v47  ;;  %v22370_v12 = vld [vmem:[%s25592_s4 + $0x5b0] sm:$0xff] }
 0x4c6   :  { %v22374_v47 = vld [vmem:[%s25592_s4 + $0x5d0] sm:$0xff] }
 0x4c7   :  { %12808 = vmatpush.bf16.msra.mxu1 %v22327_v56  ;;  %12834 = vmatpush.bf16.msra.mxu3 %v22343_v33  ;;  %v8441_v56 = vpack.c.bf16 %v8377_v42, %v8377_v42  ;;  %v8442_v33 = vpack.c.bf16 %v8378_v62, %v8378_v62 }
 0x4c9   :  { %12796 = vmatpush.bf16.msra.mxu0 %v22318_v58  ;;  %12822 = vmatpush.bf16.msra.mxu2 %v22334_v31  ;;  %v22377_v58 = vld [vmem:[%s25592_s4 + $0x5e8] sm:$0xff] }
 0x4cb   :  { %12809 = vmatpush.bf16.msra.mxu1 %v22326_v5  ;;  %12835 = vmatpush.bf16.msra.mxu3 %v22342_v49  ;;  %v24343_v5 = vmul.f32 0.5, %v23542_v29  ;;  %v24349_v49 = vmul.f32 0.5, %v23544_v59  ;;  %v22368_v29 = vld [vmem:[%s25592_s4 + $0x5a0] sm:$0xff]  ;;  %v8190_v59 = vmul.f32 0.5, %v23554_v38  ;;  %v22375_v38 = vld [vmem:[%s25592_s4 + $0x5d8] sm:$0xff] }
 0x4cd   :  { %12797 = vmatpush.bf16.msra.mxu0 %v22317_v18  ;;  %12823 = vmatpush.bf16.msra.mxu2 %v22333_v48  ;;  %v8189_v18 = vmul.f32 0.5, %v23552_v51  ;;  %22863 = vtanh.f32 %v24343_v5  ;;  %v22359_v51 = vld [vmem:[%s25592_s4 + $0x558] sm:$0xff] }
 0x4ce   :  { %22865 = vtanh.f32 %v24349_v49  ;;  %v22367_v48 = vld [vmem:[%s25592_s4 + $0x598] sm:$0xff] }
 0x4cf   :  { %12810 = vmatpush.bf16.msra.mxu1 %v22325_v41  ;;  %12836 = vmatpush.bf16.msra.mxu3 %v22341_v21  ;;  %v22351_v41 = vld [vmem:[%s25592_s4 + $0x518] sm:$0xff]  ;;  %22867 = vtanh.f32 %v8189_v18 }
 0x4d0   :  { %22869 = vtanh.f32 %v8190_v59 }
 0x4d1   :  { %12798 = vmatpush.bf16.msra.mxu0 %v22316_v53  ;;  %12824 = vmatpush.bf16.msra.mxu2 %v22332_v45  ;;  %v12592_v44 = vpop.f32.mrf.mxu0  ;;  %v22358_v53 = vld [vmem:[%s25592_s4 + $0x550] sm:$0xff] }
 0x4d3   :  { %12811 = vmatpush.bf16.msra.mxu1 %v22324_v1  ;;  %12837 = vmatpush.bf16.msra.mxu3 %v22340_v25  ;;  %v12605_v31 = vpop.f32.mrf.mxu1  ;;  %v22366_v1 = vld [vmem:[%s25592_s4 + $0x590] sm:$0xff]  ;;  %v22864_v45 = vpop.eup %22863 }
 0x4d4   :  { %12799 = vmatmul.bf16.vlgmr.msra.gmra.mxu0 %v8439_v13  ;;  %12825 = vmatmul.bf16.vlgmr.msra.gmra.mxu2 %v8441_v56  ;;  %v12606_v40 = vadd.f32 %v12605_v31, %v12592_v44  ;;  %v22866_v25 = vpop.eup %22865  ;;  %v8315_v62 = vadd.f32 1.0, %v22864_v45  ;;  %v22395_v31 = vld [vmem:[%s25592_s4 + $0x678] sm:$0xff]  ;;  %v22392_v45 = vld [vmem:[%s25592_s4 + $0x660] sm:$0xff] }
 0x4d5   :  { %12843 = vmatpush.bf16.msrb.mxu0 %v22355_v61  ;;  %12869 = vmatpush.bf16.msrb.mxu2 %v22371_v15  ;;  %v22868_v61 = vpop.eup %22867  ;;  %v22365_v15 = vld [vmem:[%s25592_s4 + $0x588] sm:$0xff] }
 0x4d6   :  { %12812 = vmatmul.bf16.vlgmr.msra.gmra.mxu1 %v8440_v50  ;;  %12838 = vmatmul.bf16.vlgmr.msra.gmra.mxu3 %v8442_v33  ;;  %v22870_v42 = vpop.eup %22869  ;;  %v8317_v50 = vadd.f32 1.0, %v22868_v61  ;;  %v22356_v33 = vld [vmem:[%s25592_s4 + $0x540] sm:$0xff]  ;;  %v22383_v61 = vld [vmem:[%s25592_s4 + $0x618] sm:$0xff] }
 0x4d7   :  { %12856 = vmatpush.bf16.msrb.mxu1 %v22363_v17  ;;  %12882 = vmatpush.bf16.msrb.mxu3 %v22379_v63  ;;  %v12618_v23 = vpop.f32.mrf.mxu2  ;;  %v22357_v17 = vld [vmem:[%s25592_s4 + $0x548] sm:$0xff] }
 0x4d8   :  { %v12619_v21 = vadd.f32 %v12618_v23, %v12606_v40  ;;  %v22373_v63 = vld [vmem:[%s25592_s4 + $0x5c8] sm:$0xff]  ;;  %v8381_v44 = vmul.f32 %v8317_v50, %v8189_v18  ;;  %v22411_v40 = vld [vmem:[%s25592_s4 + $0x6f8] sm:$0xff]  ;;  %v22390_v50 = vld [vmem:[%s25592_s4 + $0x650] sm:$0xff] }
 0x4d9   :  { %12844 = vmatpush.bf16.msrb.mxu0 %v22354_v20  ;;  %12870 = vmatpush.bf16.msrb.mxu2 %v22370_v12  ;;  %v12631_v19 = vpop.f32.mrf.mxu3  ;;  %v12594_v57 = vpop.f32.mrf.mxu0  ;;  %v8316_v20 = vadd.f32 1.0, %v22866_v25  ;;  %v22348_v12 = vld [vmem:[%s25592_s4 + $0x500] sm:$0xff]  ;;  %v22401_v23 = vld [vmem:[%s25592_s4 + $0x6a8] sm:$0xff] }
 0x4da   :  { %v24379_v30 = vadd.f32 %v12631_v19, %v12619_v21  ;;  %v8445_v18 = vpack.c.bf16 %v8381_v44, %v8381_v44  ;;  %v22409_v21 = vld [vmem:[%s25592_s4 + $0x6e8] sm:$0xff]  ;;  %v24453_v57 = vmul.f32 0.5, %v23566_v2  ;;  %v22400_v2 = vld [vmem:[%s25592_s4 + $0x6a0] sm:$0xff] }
 0x4db   :  { %12857 = vmatpush.bf16.msrb.mxu1 %v22362_v54  ;;  %12883 = vmatpush.bf16.msrb.mxu3 %v22378_v16  ;;  %v12607_v43 = vpop.f32.mrf.mxu1  ;;  %v8318_v54 = vadd.f32 1.0, %v22870_v42  ;;  %v22364_v16 = vld [vmem:[%s25592_s4 + $0x580] sm:$0xff] }
 0x4dc   :  { %v22408_v25 = vld [vmem:[%s25592_s4 + $0x6e0] sm:$0xff]  ;;  %22871 = vtanh.f32 %v24453_v57 }
 0x4dd   :  { %12845 = vmatpush.bf16.msrb.mxu0 %v22353_v34  ;;  %12871 = vmatpush.bf16.msrb.mxu2 %v22369_v36  ;;  %v8379_v34 = vmul.f32 %v8315_v62, %v24343_v5  ;;  %v22387_v36 = vld [vmem:[%s25592_s4 + $0x638] sm:$0xff] }
 0x4de   :  { %v22403_v5 = vld [vmem:[%s25592_s4 + $0x6b8] sm:$0xff] }
 0x4df   :  { %12858 = vmatpush.bf16.msrb.mxu1 %v22361_v28  ;;  %12884 = vmatpush.bf16.msrb.mxu3 %v22377_v58  ;;  %v12620_v13 = vpop.f32.mrf.mxu2  ;;  %v22372_v28 = vld [vmem:[%s25592_s4 + $0x5c0] sm:$0xff]  ;;  %v8380_v58 = vmul.f32 %v8316_v20, %v24349_v49  ;;  %v22386_v49 = vld [vmem:[%s25592_s4 + $0x630] sm:$0xff] }
 0x4e0   :  { %v22382_v13 = vld [vmem:[%s25592_s4 + $0x610] sm:$0xff] }
 0x4e1   :  { %12846 = vmatpush.bf16.msrb.mxu0 %v22352_v39  ;;  %12872 = vmatpush.bf16.msrb.mxu2 %v22368_v29  ;;  %v12633_v56 = vpop.f32.mrf.mxu3  ;;  %v8382_v39 = vmul.f32 %v8318_v54, %v8190_v59  ;;  %v8444_v29 = vpack.c.bf16 %v8380_v58, %v8380_v58  ;;  %v22402_v59 = vld [vmem:[%s25592_s4 + $0x6b0] sm:$0xff]  ;;  %v22397_v58 = vld [vmem:[%s25592_s4 + $0x688] sm:$0xff] }
 0x4e2   :  { %v22398_v56 = vld [vmem:[%s25592_s4 + $0x690] sm:$0xff]  ;;  %v22872_v54 = vpop.eup %22871 }
 0x4e3   :  { %12859 = vmatpush.bf16.msrb.mxu1 %v22360_v0  ;;  %12885 = vmatpush.bf16.msrb.mxu3 %v22376_v35  ;;  %v8443_v0 = vpack.c.bf16 %v8379_v34, %v8379_v34  ;;  %v22394_v35 = vld [vmem:[%s25592_s4 + $0x670] sm:$0xff]  ;;  %v22381_v34 = vld [vmem:[%s25592_s4 + $0x608] sm:$0xff]  ;;  %v8319_v44 = vadd.f32 1.0, %v22872_v54 }
 0x4e5   :  { %12847 = vmatpush.bf16.msrb.mxu0 %v22351_v41  ;;  %12873 = vmatpush.bf16.msrb.mxu2 %v22367_v48  ;;  %v8446_v41 = vpack.c.bf16 %v8382_v39, %v8382_v39  ;;  %v22385_v48 = vld [vmem:[%s25592_s4 + $0x628] sm:$0xff] }
 0x4e7   :  { %12860 = vmatpush.bf16.msrb.mxu1 %v22359_v51  ;;  %12886 = vmatpush.bf16.msrb.mxu3 %v22375_v38  ;;  %v22410_v51 = vld [vmem:[%s25592_s4 + $0x6f0] sm:$0xff]  ;;  %v22393_v38 = vld [vmem:[%s25592_s4 + $0x668] sm:$0xff] }
 0x4e9   :  { %12848 = vmatpush.bf16.msrb.mxu0 %v22350_v4  ;;  %12874 = vmatpush.bf16.msrb.mxu2 %v22366_v1  ;;  %v24460_v1 = vmul.f32 0.5, %v23568_v7  ;;  %v8194_v7 = vmul.f32 0.5, %v23580_v37  ;;  %v22407_v37 = vld [vmem:[%s25592_s4 + $0x6d8] sm:$0xff] }
 0x4eb   :  { %12861 = vmatpush.bf16.msrb.mxu1 %v22358_v53  ;;  %12887 = vmatpush.bf16.msrb.mxu3 %v22374_v47  ;;  %v22384_v53 = vld [vmem:[%s25592_s4 + $0x620] sm:$0xff]  ;;  %22873 = vtanh.f32 %v24460_v1 }
 0x4ed   :  { %12849 = vmatpush.bf16.msrb.mxu0 %v22349_v24  ;;  %12875 = vmatpush.bf16.msrb.mxu2 %v22365_v15  ;;  %v22399_v24 = vld [vmem:[%s25592_s4 + $0x698] sm:$0xff] }
 0x4ef   :  { %12862 = vmatpush.bf16.msrb.mxu1 %v22357_v17  ;;  %12888 = vmatpush.bf16.msrb.mxu3 %v22373_v63 }
 0x4f1   :  { %12850 = vmatpush.bf16.msrb.mxu0 %v22348_v12  ;;  %12876 = vmatpush.bf16.msrb.mxu2 %v22364_v16  ;;  %v12644_v19 = vpop.f32.mrf.mxu0  ;;  %v22406_v12 = vld [vmem:[%s25592_s4 + $0x6d0] sm:$0xff] }
 0x4f2   :  { %v12645_v43 = vadd.f32 %v12644_v19, %v24379_v30  ;;  %v8193_v30 = vmul.f32 0.5, %v23578_v6  ;;  %v22391_v6 = vld [vmem:[%s25592_s4 + $0x658] sm:$0xff] }
 0x4f3   :  { %12863 = vmatpush.bf16.msrb.mxu1 %v22356_v33  ;;  %12889 = vmatpush.bf16.msrb.mxu3 %v22372_v28  ;;  %v12657_v4 = vpop.f32.mrf.mxu1  ;;  %v22874_v33 = vpop.eup %22873 }
 0x4f4   :  { %12851 = vmatmul.bf16.vlgmr.msrb.gmra.mxu0 %v8443_v0  ;;  %12877 = vmatmul.bf16.vlgmr.msrb.gmra.mxu2 %v8445_v18  ;;  %v12658_v47 = vadd.f32 %v12657_v4, %v12645_v43  ;;  %22875 = vtanh.f32 %v8193_v30  ;;  %v8320_v39 = vadd.f32 1.0, %v22874_v33  ;;  %v22388_v18 = vld [vmem:[%s25592_s4 + $0x640] sm:$0xff]  ;;  %v22418_v4 = vld [vmem:[%s25592_s4 + $0x730] sm:$0xff]  ;;  %v22423_v33 = vld [vmem:[%s25592_s4 + $0x758] sm:$0xff] }
 0x4f5   :  { %12895 = vmatpush.bf16.msra.mxu0 %v22387_v36  ;;  %12921 = vmatpush.bf16.msra.mxu2 %v22403_v5  ;;  %22877 = vtanh.f32 %v8194_v7  ;;  %v22389_v36 = vld [vmem:[%s25592_s4 + $0x648] sm:$0xff] }
 0x4f6   :  { %12864 = vmatmul.bf16.vlgmr.msrb.gmra.mxu1 %v8444_v29  ;;  %12890 = vmatmul.bf16.vlgmr.msrb.gmra.mxu3 %v8446_v41  ;;  %v22380_v29 = vld [vmem:[%s25592_s4 + $0x600] sm:$0xff] }
 0x4f7   :  { %12908 = vmatpush.bf16.msra.mxu1 %v22395_v31  ;;  %12934 = vmatpush.bf16.msra.mxu3 %v22411_v40  ;;  %v12670_v42 = vpop.f32.mrf.mxu2  ;;  %v22405_v31 = vld [vmem:[%s25592_s4 + $0x6c8] sm:$0xff]  ;;  %v22404_v41 = vld [vmem:[%s25592_s4 + $0x6c0] sm:$0xff] }
 0x4f8   :  { %v12671_v17 = vadd.f32 %v12670_v42, %v12658_v47  ;;  %v22442_v47 = vld [vmem:[%s25592_s4 + $0x7f0] sm:$0xff] }
 0x4f9   :  { %12896 = vmatpush.bf16.msra.mxu0 %v22386_v49  ;;  %12922 = vmatpush.bf16.msra.mxu2 %v22402_v59  ;;  %v12683_v15 = vpop.f32.mrf.mxu3  ;;  %v12646_v62 = vpop.f32.mrf.mxu0  ;;  %v8383_v59 = vmul.f32 %v8319_v44, %v24453_v57  ;;  %v22443_v57 = vld [vmem:[%s25592_s4 + $0x7f8] sm:$0xff] }
 0x4fa   :  { %v24490_v20 = vadd.f32 %v12683_v15, %v12671_v17  ;;  %v22876_v16 = vpop.eup %22875  ;;  %v22416_v15 = vld [vmem:[%s25592_s4 + $0x720] sm:$0xff]  ;;  %v24571_v62 = vmul.f32 0.5, %v23590_v60  ;;  %v25626_v60 = vld [vmem:[#allocation29_spill] sm:$0xff] }
 0x4fb   :  { %12909 = vmatpush.bf16.msra.mxu1 %v22394_v35  ;;  %12935 = vmatpush.bf16.msra.mxu3 %v22410_v51  ;;  %v12659_v63 = vpop.f32.mrf.mxu1  ;;  %v22878_v28 = vpop.eup %22877  ;;  %v8321_v40 = vadd.f32 1.0, %v22876_v16  ;;  %v22396_v35 = vld [vmem:[%s25592_s4 + $0x680] sm:$0xff]  ;;  %v22419_v51 = vld [vmem:[%s25592_s4 + $0x738] sm:$0xff]  ;;  %v8447_v43 = vpack.c.bf16 %v8383_v59, %v8383_v59  ;;  %v8198_v54 = vmul.f32 0.5, %v25626_v60  ;;  %v22413_v59 = vld [vmem:[%s25592_s4 + $0x708] sm:$0xff] }
 0x4fc   :  { %v8322_v49 = vadd.f32 1.0, %v22878_v28  ;;  %v22424_v63 = vld [vmem:[%s25592_s4 + $0x760] sm:$0xff]  ;;  %v22431_v16 = vld [vmem:[%s25592_s4 + $0x798] sm:$0xff]  ;;  %v22465_v60 = vld [vmem:[%s25592_s4 + $0x8a8] sm:$0xff] }
 0x4fd   :  { %12897 = vmatpush.bf16.msra.mxu0 %v22385_v48  ;;  %12923 = vmatpush.bf16.msra.mxu2 %v22401_v23  ;;  %v8384_v48 = vmul.f32 %v8320_v39, %v24460_v1  ;;  %v22427_v23 = vld [vmem:[%s25592_s4 + $0x778] sm:$0xff] }
 0x4fe   :  { %v8386_v19 = vmul.f32 %v8322_v49, %v8194_v7  ;;  %v22425_v7 = vld [vmem:[%s25592_s4 + $0x768] sm:$0xff] }
 0x4ff   :  { %12910 = vmatpush.bf16.msra.mxu1 %v22393_v38  ;;  %12936 = vmatpush.bf16.msra.mxu3 %v22409_v21  ;;  %v12672_v5 = vpop.f32.mrf.mxu2  ;;  %v8385_v38 = vmul.f32 %v8321_v40, %v8193_v30  ;;  %v22435_v21 = vld [vmem:[%s25592_s4 + $0x7b8] sm:$0xff]  ;;  %v22422_v40 = vld [vmem:[%s25592_s4 + $0x750] sm:$0xff] }
 0x500   :  { %v8450_v30 = vpack.c.bf16 %v8386_v19, %v8386_v19  ;;  %v22414_v5 = vld [vmem:[%s25592_s4 + $0x710] sm:$0xff] }
 0x501   :  { %12898 = vmatpush.bf16.msra.mxu0 %v22384_v53  ;;  %12924 = vmatpush.bf16.msra.mxu2 %v22400_v2  ;;  %v12685_v0 = vpop.f32.mrf.mxu3  ;;  %v8448_v53 = vpack.c.bf16 %v8384_v48, %v8384_v48  ;;  %v8449_v1 = vpack.c.bf16 %v8385_v38, %v8385_v38  ;;  %v22434_v2 = vld [vmem:[%s25592_s4 + $0x7b0] sm:$0xff]  ;;  %v22429_v48 = vld [vmem:[%s25592_s4 + $0x788] sm:$0xff] }
 0x502   :  { %v22430_v0 = vld [vmem:[%s25592_s4 + $0x790] sm:$0xff] }
 0x503   :  { %12911 = vmatpush.bf16.msra.mxu1 %v22392_v45  ;;  %12937 = vmatpush.bf16.msra.mxu3 %v22408_v25  ;;  %v22426_v45 = vld [vmem:[%s25592_s4 + $0x770] sm:$0xff]  ;;  %v22417_v25 = vld [vmem:[%s25592_s4 + $0x728] sm:$0xff] }
 0x505   :  { %12899 = vmatpush.bf16.msra.mxu0 %v22383_v61  ;;  %12925 = vmatpush.bf16.msra.mxu2 %v22399_v24  ;;  %v22433_v61 = vld [vmem:[%s25592_s4 + $0x7a8] sm:$0xff] }
 0x507   :  { %12912 = vmatpush.bf16.msra.mxu1 %v22391_v6  ;;  %12938 = vmatpush.bf16.msra.mxu3 %v22407_v37  ;;  %v22441_v6 = vld [vmem:[%s25592_s4 + $0x7e8] sm:$0xff]  ;;  %v24564_v37 = vmul.f32 0.5, %v23588_v26  ;;  %v22432_v26 = vld [vmem:[%s25592_s4 + $0x7a0] sm:$0xff] }
 0x509   :  { %12900 = vmatpush.bf16.msra.mxu0 %v22382_v13  ;;  %12926 = vmatpush.bf16.msra.mxu2 %v22398_v56  ;;  %v25625_v13 = vld [vmem:[#allocation28_spill] sm:$0xff]  ;;  %v22440_v56 = vld [vmem:[%s25592_s4 + $0x7e0] sm:$0xff]  ;;  %22879 = vtanh.f32 %v24564_v37 }
 0x50a   :  { %22881 = vtanh.f32 %v24571_v62 }
 0x50b   :  { %12913 = vmatpush.bf16.msra.mxu1 %v22390_v50  ;;  %12939 = vmatpush.bf16.msra.mxu3 %v22406_v12  ;;  %v22415_v12 = vld [vmem:[%s25592_s4 + $0x718] sm:$0xff] }
 0x50d   :  { %12901 = vmatpush.bf16.msra.mxu0 %v22381_v34  ;;  %12927 = vmatpush.bf16.msra.mxu2 %v22397_v58  ;;  %v22439_v34 = vld [vmem:[%s25592_s4 + $0x7d8] sm:$0xff] }
 0x50f   :  { %12914 = vmatpush.bf16.msra.mxu1 %v22389_v36  ;;  %12940 = vmatpush.bf16.msra.mxu3 %v22405_v31  ;;  %v22880_v49 = vpop.eup %22879 }
 0x510   :  { %v8323_v38 = vadd.f32 1.0, %v22880_v49  ;;  %v22472_v49 = vld [vmem:[%s25592_s4 + $0x8e0] sm:$0xff] }
 0x511   :  { %12902 = vmatpush.bf16.msra.mxu0 %v22380_v29  ;;  %12928 = vmatpush.bf16.msra.mxu2 %v22396_v35  ;;  %v12696_v24 = vpop.f32.mrf.mxu0  ;;  %v22438_v29 = vld [vmem:[%s25592_s4 + $0x7d0] sm:$0xff] }
 0x512   :  { %v12697_v42 = vadd.f32 %v12696_v24, %v24490_v20  ;;  %v8197_v20 = vmul.f32 0.5, %v25625_v13 }
 0x513   :  { %12915 = vmatpush.bf16.msra.mxu1 %v22388_v18  ;;  %12941 = vmatpush.bf16.msra.mxu3 %v22404_v41  ;;  %v12709_v17 = vpop.f32.mrf.mxu1  ;;  %v22882_v18 = vpop.eup %22881 }
 0x514   :  { %12903 = vmatmul.bf16.vlgmr.msra.gmra.mxu0 %v8447_v43  ;;  %12929 = vmatmul.bf16.vlgmr.msra.gmra.mxu2 %v8449_v1  ;;  %v12710_v50 = vadd.f32 %v12709_v17, %v12697_v42  ;;  %22883 = vtanh.f32 %v8197_v20  ;;  %v8324_v19 = vadd.f32 1.0, %v22882_v18  ;;  %v22420_v1 = vld [vmem:[%s25592_s4 + $0x740] sm:$0xff]  ;;  %v22450_v17 = vld [vmem:[%s25592_s4 + $0x830] sm:$0xff] }
 0x515   :  { %12947 = vmatpush.bf16.msrb.mxu0 %v22419_v51  ;;  %12973 = vmatpush.bf16.msrb.mxu2 %v22435_v21  ;;  %22885 = vtanh.f32 %v8198_v54  ;;  %v22421_v51 = vld [vmem:[%s25592_s4 + $0x748] sm:$0xff] }
 0x516   :  { %12916 = vmatmul.bf16.vlgmr.msra.gmra.mxu1 %v8448_v53  ;;  %12942 = vmatmul.bf16.vlgmr.msra.gmra.mxu3 %v8450_v30  ;;  %v22412_v53 = vld [vmem:[%s25592_s4 + $0x700] sm:$0xff] }
 0x517   :  { %12960 = vmatpush.bf16.msrb.mxu1 %v22427_v23  ;;  %12986 = vmatpush.bf16.msrb.mxu3 %v22443_v57  ;;  %v12722_v28 = vpop.f32.mrf.mxu2  ;;  %v22437_v23 = vld [vmem:[%s25592_s4 + $0x7c8] sm:$0xff]  ;;  %v22436_v30 = vld [vmem:[%s25592_s4 + $0x7c0] sm:$0xff] }
 0x518   :  { %v12723_v36 = vadd.f32 %v12722_v28, %v12710_v50  ;;  %v22449_v50 = vld [vmem:[%s25592_s4 + $0x828] sm:$0xff] }
 0x519   :  { %12948 = vmatpush.bf16.msrb.mxu0 %v22418_v4  ;;  %12974 = vmatpush.bf16.msrb.mxu2 %v22434_v2  ;;  %v12735_v58 = vpop.f32.mrf.mxu3  ;;  %v12698_v44 = vpop.f32.mrf.mxu0  ;;  %v8387_v2 = vmul.f32 %v8323_v38, %v24564_v37  ;;  %v22475_v37 = vld [vmem:[%s25592_s4 + $0x8f8] sm:$0xff] }
 0x51a   :  { %v24601_v39 = vadd.f32 %v12735_v58, %v12723_v36  ;;  %v22884_v35 = vpop.eup %22883  ;;  %v22448_v36 = vld [vmem:[%s25592_s4 + $0x820] sm:$0xff] }
 0x51b   :  { %12961 = vmatpush.bf16.msrb.mxu1 %v22426_v45  ;;  %12987 = vmatpush.bf16.msrb.mxu3 %v22442_v47  ;;  %v12711_v31 = vpop.f32.mrf.mxu1  ;;  %v22886_v41 = vpop.eup %22885  ;;  %v8325_v57 = vadd.f32 1.0, %v22884_v35  ;;  %v22428_v45 = vld [vmem:[%s25592_s4 + $0x780] sm:$0xff]  ;;  %v22451_v47 = vld [vmem:[%s25592_s4 + $0x838] sm:$0xff]  ;;  %v8451_v42 = vpack.c.bf16 %v8387_v2, %v8387_v2 }
 0x51c   :  { %v8326_v4 = vadd.f32 1.0, %v22886_v41  ;;  %v25628_v58 = vld [vmem:[#allocation31_spill] sm:$0xff]  ;;  %v22447_v35 = vld [vmem:[%s25592_s4 + $0x818] sm:$0xff] }
 0x51d   :  { %12949 = vmatpush.bf16.msrb.mxu0 %v22417_v25  ;;  %12975 = vmatpush.bf16.msrb.mxu2 %v22433_v61  ;;  %v8388_v25 = vmul.f32 %v8324_v19, %v24571_v62  ;;  %v22459_v61 = vld [vmem:[%s25592_s4 + $0x878] sm:$0xff]  ;;  %v24682_v44 = vmul.f32 0.5, %v25628_v58  ;;  %v22456_v31 = vld [vmem:[%s25592_s4 + $0x860] sm:$0xff] }
 0x51e   :  { %v8390_v24 = vmul.f32 %v8326_v4, %v8198_v54  ;;  %v22473_v54 = vld [vmem:[%s25592_s4 + $0x8e8] sm:$0xff]  ;;  %v22463_v41 = vld [vmem:[%s25592_s4 + $0x898] sm:$0xff]  ;;  %v22454_v4 = vld [vmem:[%s25592_s4 + $0x850] sm:$0xff] }
 0x51f   :  { %12962 = vmatpush.bf16.msrb.mxu1 %v22425_v7  ;;  %12988 = vmatpush.bf16.msrb.mxu3 %v22441_v6  ;;  %v12724_v21 = vpop.f32.mrf.mxu2  ;;  %v8389_v7 = vmul.f32 %v8325_v57, %v8197_v20  ;;  %v22467_v6 = vld [vmem:[%s25592_s4 + $0x8b8] sm:$0xff]  ;;  %v22474_v20 = vld [vmem:[%s25592_s4 + $0x8f0] sm:$0xff] }
 0x520   :  { %v8454_v13 = vpack.c.bf16 %v8390_v24, %v8390_v24  ;;  %v22446_v57 = vld [vmem:[%s25592_s4 + $0x810] sm:$0xff]  ;;  %v22469_v24 = vld [vmem:[%s25592_s4 + $0x8c8] sm:$0xff] }
 0x521   :  { %12950 = vmatpush.bf16.msrb.mxu0 %v22416_v15  ;;  %12976 = vmatpush.bf16.msrb.mxu2 %v22432_v26  ;;  %v12737_v43 = vpop.f32.mrf.mxu3  ;;  %v8452_v15 = vpack.c.bf16 %v8388_v25, %v8388_v25  ;;  %v8453_v62 = vpack.c.bf16 %v8389_v7, %v8389_v7  ;;  %v22466_v26 = vld [vmem:[%s25592_s4 + $0x8b0] sm:$0xff]  ;;  %v22453_v7 = vld [vmem:[%s25592_s4 + $0x848] sm:$0xff] }
 0x523   :  { %12963 = vmatpush.bf16.msrb.mxu1 %v22424_v63  ;;  %12989 = vmatpush.bf16.msrb.mxu3 %v22440_v56  ;;  %v22458_v63 = vld [vmem:[%s25592_s4 + $0x870] sm:$0xff]  ;;  %v22457_v56 = vld [vmem:[%s25592_s4 + $0x868] sm:$0xff] }
 0x525   :  { %12951 = vmatpush.bf16.msrb.mxu0 %v22415_v12  ;;  %12977 = vmatpush.bf16.msrb.mxu2 %v22431_v16 }
 0x527   :  { %12964 = vmatpush.bf16.msrb.mxu1 %v22423_v33  ;;  %12990 = vmatpush.bf16.msrb.mxu3 %v22439_v34  ;;  %v25627_v33 = vld [vmem:[#allocation30_spill] sm:$0xff] }
 0x528   :  { %v24675_v16 = vmul.f32 0.5, %v25627_v33  ;;  %v22499_v33 = vld [vmem:[%s25592_s4 + $0x9b8] sm:$0xff] }
 0x529   :  { %12952 = vmatpush.bf16.msrb.mxu0 %v22414_v5  ;;  %12978 = vmatpush.bf16.msrb.mxu2 %v22430_v0  ;;  %v22464_v5 = vld [vmem:[%s25592_s4 + $0x8a0] sm:$0xff] }
 0x52a   :  { %22887 = vtanh.f32 %v24675_v16 }
 0x52b   :  { %12965 = vmatpush.bf16.msrb.mxu1 %v22422_v40  ;;  %12991 = vmatpush.bf16.msrb.mxu3 %v22438_v29  ;;  %v25629_v40 = vld [vmem:[#allocation32_spill] sm:$0xff]  ;;  %v25630_v29 = vld [vmem:[#allocation33_spill] sm:$0xff]  ;;  %22889 = vtanh.f32 %v24682_v44 }
 0x52c   :  { %v8202_v18 = vmul.f32 0.5, %v25630_v29  ;;  %v22497_v29 = vld [vmem:[%s25592_s4 + $0x9a8] sm:$0xff] }
 0x52d   :  { %12953 = vmatpush.bf16.msrb.mxu0 %v22413_v59  ;;  %12979 = vmatpush.bf16.msrb.mxu2 %v22429_v48  ;;  %v22455_v59 = vld [vmem:[%s25592_s4 + $0x858] sm:$0xff] }
 0x52f   :  { %12966 = vmatpush.bf16.msrb.mxu1 %v22421_v51  ;;  %12992 = vmatpush.bf16.msrb.mxu3 %v22437_v23  ;;  %v22471_v51 = vld [vmem:[%s25592_s4 + $0x8d8] sm:$0xff] }
 0x531   :  { %12954 = vmatpush.bf16.msrb.mxu0 %v22412_v53  ;;  %12980 = vmatpush.bf16.msrb.mxu2 %v22428_v45  ;;  %v12748_v12 = vpop.f32.mrf.mxu0  ;;  %v22462_v53 = vld [vmem:[%s25592_s4 + $0x890] sm:$0xff] }
 0x532   :  { %v12749_v34 = vadd.f32 %v12748_v12, %v24601_v39  ;;  %v8201_v39 = vmul.f32 0.5, %v25629_v40  ;;  %v22470_v45 = vld [vmem:[%s25592_s4 + $0x8d0] sm:$0xff]  ;;  %v22491_v12 = vld [vmem:[%s25592_s4 + $0x978] sm:$0xff] }
 0x533   :  { %12967 = vmatpush.bf16.msrb.mxu1 %v22420_v1  ;;  %12993 = vmatpush.bf16.msrb.mxu3 %v22436_v30  ;;  %v12761_v28 = vpop.f32.mrf.mxu1  ;;  %v22888_v1 = vpop.eup %22887 }
 0x534   :  { %12955 = vmatmul.bf16.vlgmr.msrb.gmra.mxu0 %v8451_v42  ;;  %12981 = vmatmul.bf16.vlgmr.msrb.gmra.mxu2 %v8453_v62  ;;  %v12762_v0 = vadd.f32 %v12761_v28, %v12749_v34  ;;  %22891 = vtanh.f32 %v8201_v39  ;;  %v22890_v2 = vpop.eup %22889  ;;  %v22507_v34 = vld [vmem:[%s25592_s4 + $0x9f8] sm:$0xff] }
 0x535   :  { %12999 = vmatpush.bf16.msra.mxu0 %v22451_v47  ;;  %13025 = vmatpush.bf16.msra.mxu2 %v22467_v6  ;;  %22893 = vtanh.f32 %v8202_v18  ;;  %v22445_v47 = vld [vmem:[%s25592_s4 + $0x808] sm:$0xff]  ;;  %v8327_v6 = vadd.f32 1.0, %v22888_v1  ;;  %v8328_v42 = vadd.f32 1.0, %v22890_v2  ;;  %v22504_v1 = vld [vmem:[%s25592_s4 + $0x9e0] sm:$0xff] }
 0x536   :  { %12968 = vmatmul.bf16.vlgmr.msrb.gmra.mxu1 %v8452_v15  ;;  %12994 = vmatmul.bf16.vlgmr.msrb.gmra.mxu3 %v8454_v13  ;;  %v22460_v13 = vld [vmem:[%s25592_s4 + $0x880] sm:$0xff] }
 0x537   :  { %13012 = vmatpush.bf16.msra.mxu1 %v22459_v61  ;;  %13038 = vmatpush.bf16.msra.mxu3 %v22475_v37  ;;  %v12774_v48 = vpop.f32.mrf.mxu2  ;;  %v22461_v61 = vld [vmem:[%s25592_s4 + $0x888] sm:$0xff] }
 0x538   :  { %v12775_v38 = vadd.f32 %v12774_v48, %v12762_v0  ;;  %v22481_v0 = vld [vmem:[%s25592_s4 + $0x928] sm:$0xff] }
 0x539   :  { %13000 = vmatpush.bf16.msra.mxu0 %v22450_v17  ;;  %13026 = vmatpush.bf16.msra.mxu2 %v22466_v26  ;;  %v12787_v23 = vpop.f32.mrf.mxu3  ;;  %v12750_v21 = vpop.f32.mrf.mxu0  ;;  %v22452_v26 = vld [vmem:[%s25592_s4 + $0x840] sm:$0xff] }
 0x53a   :  { %v24712_v43 = vadd.f32 %v12787_v23, %v12775_v38  ;;  %v22892_v30 = vpop.eup %22891  ;;  %v22480_v38 = vld [vmem:[%s25592_s4 + $0x920] sm:$0xff] }
 0x53b   :  { %13013 = vmatpush.bf16.msra.mxu1 %v22458_v63  ;;  %13039 = vmatpush.bf16.msra.mxu3 %v22474_v20  ;;  %v12763_v19 = vpop.f32.mrf.mxu1  ;;  %v22894_v25 = vpop.eup %22893  ;;  %v8329_v17 = vadd.f32 1.0, %v22892_v30  ;;  %v22444_v63 = vld [vmem:[%s25592_s4 + $0x800] sm:$0xff]  ;;  %v8391_v20 = vmul.f32 %v8327_v6, %v24675_v16  ;;  %v22479_v30 = vld [vmem:[%s25592_s4 + $0x918] sm:$0xff] }
 0x53c   :  { %v8330_v62 = vadd.f32 1.0, %v22894_v25  ;;  %v25632_v23 = vld [vmem:[#allocation35_spill] sm:$0xff]  ;;  %v22495_v25 = vld [vmem:[%s25592_s4 + $0x998] sm:$0xff] }
 0x53d   :  { %13001 = vmatpush.bf16.msra.mxu0 %v22449_v50  ;;  %13027 = vmatpush.bf16.msra.mxu2 %v22465_v60  ;;  %v22468_v50 = vld [vmem:[%s25592_s4 + $0x8c0] sm:$0xff]  ;;  %v8392_v60 = vmul.f32 %v8328_v42, %v24682_v44  ;;  %v8455_v28 = vpack.c.bf16 %v8391_v20, %v8391_v20  ;;  %v24793_v21 = vmul.f32 0.5, %v25632_v23 }
 0x53e   :  { %v8394_v16 = vmul.f32 %v8330_v62, %v8202_v18  ;;  %v22505_v18 = vld [vmem:[%s25592_s4 + $0x9e8] sm:$0xff]  ;;  %v22488_v19 = vld [vmem:[%s25592_s4 + $0x960] sm:$0xff]  ;;  %v22486_v62 = vld [vmem:[%s25592_s4 + $0x950] sm:$0xff] }
 0x53f   :  { %13014 = vmatpush.bf16.msra.mxu1 %v22457_v56  ;;  %13040 = vmatpush.bf16.msra.mxu3 %v22473_v54  ;;  %v12776_v37 = vpop.f32.mrf.mxu2  ;;  %v22483_v56 = vld [vmem:[%s25592_s4 + $0x938] sm:$0xff]  ;;  %v8393_v54 = vmul.f32 %v8329_v17, %v8201_v39  ;;  %v8456_v58 = vpack.c.bf16 %v8392_v60, %v8392_v60  ;;  %v22506_v39 = vld [vmem:[%s25592_s4 + $0x9f0] sm:$0xff] }
 0x540   :  { %v8458_v40 = vpack.c.bf16 %v8394_v16, %v8394_v16  ;;  %v22478_v17 = vld [vmem:[%s25592_s4 + $0x910] sm:$0xff]  ;;  %v22501_v16 = vld [vmem:[%s25592_s4 + $0x9c8] sm:$0xff] }
 0x541   :  { %13002 = vmatpush.bf16.msra.mxu0 %v22448_v36  ;;  %13028 = vmatpush.bf16.msra.mxu2 %v22464_v5  ;;  %v12789_v15 = vpop.f32.mrf.mxu3  ;;  %v22482_v36 = vld [vmem:[%s25592_s4 + $0x930] sm:$0xff]  ;;  %v8457_v44 = vpack.c.bf16 %v8393_v54, %v8393_v54  ;;  %v22485_v54 = vld [vmem:[%s25592_s4 + $0x948] sm:$0xff] }
 0x542   :  { %v22498_v5 = vld [vmem:[%s25592_s4 + $0x9b0] sm:$0xff] }
 0x543   :  { %13015 = vmatpush.bf16.msra.mxu1 %v22456_v31  ;;  %13041 = vmatpush.bf16.msra.mxu3 %v22472_v49  ;;  %v22490_v31 = vld [vmem:[%s25592_s4 + $0x970] sm:$0xff]  ;;  %v22489_v49 = vld [vmem:[%s25592_s4 + $0x968] sm:$0xff] }
 0x545   :  { %13003 = vmatpush.bf16.msra.mxu0 %v22447_v35  ;;  %13029 = vmatpush.bf16.msra.mxu2 %v22463_v41 }
 0x547   :  { %13016 = vmatpush.bf16.msra.mxu1 %v22455_v59  ;;  %13042 = vmatpush.bf16.msra.mxu3 %v22471_v51  ;;  %v25631_v59 = vld [vmem:[#allocation34_spill] sm:$0xff] }
 0x548   :  { %v24786_v41 = vmul.f32 0.5, %v25631_v59  ;;  %v22531_v59 = vld [vmem:[%s25592_s4 + $0xab8] sm:$0xff] }
 0x549   :  { %13004 = vmatpush.bf16.msra.mxu0 %v22446_v57  ;;  %13030 = vmatpush.bf16.msra.mxu2 %v22462_v53  ;;  %v22496_v57 = vld [vmem:[%s25592_s4 + $0x9a0] sm:$0xff] }
 0x54a   :  { %22895 = vtanh.f32 %v24786_v41 }
 0x54b   :  { %13017 = vmatpush.bf16.msra.mxu1 %v22454_v4  ;;  %13043 = vmatpush.bf16.msra.mxu3 %v22470_v45  ;;  %v25633_v4 = vld [vmem:[#allocation36_spill] sm:$0xff]  ;;  %v25634_v45 = vld [vmem:[#allocation37_spill] sm:$0xff]  ;;  %22897 = vtanh.f32 %v24793_v21 }
 0x54c   :  { %v8206_v2 = vmul.f32 0.5, %v25634_v45  ;;  %v22529_v45 = vld [vmem:[%s25592_s4 + $0xaa8] sm:$0xff] }
 0x54d   :  { %13005 = vmatpush.bf16.msra.mxu0 %v22445_v47  ;;  %13031 = vmatpush.bf16.msra.mxu2 %v22461_v61  ;;  %v22487_v47 = vld [vmem:[%s25592_s4 + $0x958] sm:$0xff] }
 0x54f   :  { %13018 = vmatpush.bf16.msra.mxu1 %v22453_v7  ;;  %13044 = vmatpush.bf16.msra.mxu3 %v22469_v24  ;;  %v22503_v7 = vld [vmem:[%s25592_s4 + $0x9d8] sm:$0xff] }
 0x551   :  { %13006 = vmatpush.bf16.msra.mxu0 %v22444_v63  ;;  %13032 = vmatpush.bf16.msra.mxu2 %v22460_v13  ;;  %v12800_v35 = vpop.f32.mrf.mxu0  ;;  %v22494_v63 = vld [vmem:[%s25592_s4 + $0x990] sm:$0xff] }
 0x552   :  { %v12801_v51 = vadd.f32 %v12800_v35, %v24712_v43  ;;  %v8205_v43 = vmul.f32 0.5, %v25633_v4  ;;  %v22502_v13 = vld [vmem:[%s25592_s4 + $0x9d0] sm:$0xff]  ;;  %v22523_v35 = vld [vmem:[%s25592_s4 + $0xa78] sm:$0xff] }
 0x553   :  { %13019 = vmatpush.bf16.msra.mxu1 %v22452_v26  ;;  %13045 = vmatpush.bf16.msra.mxu3 %v22468_v50  ;;  %v12813_v48 = vpop.f32.mrf.mxu1  ;;  %v22896_v26 = vpop.eup %22895 }
 0x554   :  { %13007 = vmatmul.bf16.vlgmr.msra.gmra.mxu0 %v8455_v28  ;;  %13033 = vmatmul.bf16.vlgmr.msra.gmra.mxu2 %v8457_v44  ;;  %v12814_v53 = vadd.f32 %v12813_v48, %v12801_v51  ;;  %22899 = vtanh.f32 %v8205_v43  ;;  %v22898_v20 = vpop.eup %22897  ;;  %v22539_v51 = vld [vmem:[%s25592_s4 + $0xaf8] sm:$0xff] }
 0x555   :  { %13051 = vmatpush.bf16.msrb.mxu0 %v22483_v56  ;;  %13077 = vmatpush.bf16.msrb.mxu2 %v22499_v33  ;;  %22901 = vtanh.f32 %v8206_v2  ;;  %v22477_v56 = vld [vmem:[%s25592_s4 + $0x908] sm:$0xff]  ;;  %v8331_v33 = vadd.f32 1.0, %v22896_v26  ;;  %v8332_v28 = vadd.f32 1.0, %v22898_v20  ;;  %v22536_v26 = vld [vmem:[%s25592_s4 + $0xae0] sm:$0xff] }
 0x556   :  { %13020 = vmatmul.bf16.vlgmr.msra.gmra.mxu1 %v8456_v58  ;;  %13046 = vmatmul.bf16.vlgmr.msra.gmra.mxu3 %v8458_v40  ;;  %v22492_v40 = vld [vmem:[%s25592_s4 + $0x980] sm:$0xff] }
 0x557   :  { %13064 = vmatpush.bf16.msrb.mxu1 %v22491_v12  ;;  %13090 = vmatpush.bf16.msrb.mxu3 %v22507_v34  ;;  %v12826_v61 = vpop.f32.mrf.mxu2  ;;  %v22493_v12 = vld [vmem:[%s25592_s4 + $0x988] sm:$0xff] }
 0x558   :  { %v12827_v6 = vadd.f32 %v12826_v61, %v12814_v53  ;;  %v22513_v53 = vld [vmem:[%s25592_s4 + $0xa28] sm:$0xff] }
 0x559   :  { %13052 = vmatpush.bf16.msrb.mxu0 %v22482_v36  ;;  %13078 = vmatpush.bf16.msrb.mxu2 %v22498_v5  ;;  %v12839_v24 = vpop.f32.mrf.mxu3  ;;  %v12802_v37 = vpop.f32.mrf.mxu0  ;;  %v22484_v5 = vld [vmem:[%s25592_s4 + $0x940] sm:$0xff] }
 0x55a   :  { %v24823_v15 = vadd.f32 %v12839_v24, %v12827_v6  ;;  %v22900_v50 = vpop.eup %22899  ;;  %v22512_v6 = vld [vmem:[%s25592_s4 + $0xa20] sm:$0xff] }
 0x55b   :  { %13065 = vmatpush.bf16.msrb.mxu1 %v22490_v31  ;;  %13091 = vmatpush.bf16.msrb.mxu3 %v22506_v39  ;;  %v12815_v42 = vpop.f32.mrf.mxu1  ;;  %v22902_v60 = vpop.eup %22901  ;;  %v8333_v36 = vadd.f32 1.0, %v22900_v50  ;;  %v22476_v31 = vld [vmem:[%s25592_s4 + $0x900] sm:$0xff]  ;;  %v8395_v39 = vmul.f32 %v8331_v33, %v24786_v41  ;;  %v22511_v50 = vld [vmem:[%s25592_s4 + $0xa18] sm:$0xff] }
 0x55c   :  { %v8334_v44 = vadd.f32 1.0, %v22902_v60  ;;  %v25636_v24 = vld [vmem:[#allocation39_spill] sm:$0xff]  ;;  %v22527_v60 = vld [vmem:[%s25592_s4 + $0xa98] sm:$0xff] }
 0x55d   :  { %13053 = vmatpush.bf16.msrb.mxu0 %v22481_v0  ;;  %13079 = vmatpush.bf16.msrb.mxu2 %v22497_v29  ;;  %v22500_v0 = vld [vmem:[%s25592_s4 + $0x9c0] sm:$0xff]  ;;  %v8396_v29 = vmul.f32 %v8332_v28, %v24793_v21  ;;  %v8459_v48 = vpack.c.bf16 %v8395_v39, %v8395_v39  ;;  %v24904_v37 = vmul.f32 0.5, %v25636_v24 }
 0x55e   :  { %v8398_v41 = vmul.f32 %v8334_v44, %v8206_v2  ;;  %v22537_v2 = vld [vmem:[%s25592_s4 + $0xae8] sm:$0xff]  ;;  %v22520_v42 = vld [vmem:[%s25592_s4 + $0xa60] sm:$0xff]  ;;  %v22518_v44 = vld [vmem:[%s25592_s4 + $0xa50] sm:$0xff] }
 0x55f   :  { %13066 = vmatpush.bf16.msrb.mxu1 %v22489_v49  ;;  %13092 = vmatpush.bf16.msrb.mxu3 %v22505_v18  ;;  %v12828_v34 = vpop.f32.mrf.mxu2  ;;  %v22515_v49 = vld [vmem:[%s25592_s4 + $0xa38] sm:$0xff]  ;;  %v8397_v18 = vmul.f32 %v8333_v36, %v8205_v43  ;;  %v8460_v23 = vpack.c.bf16 %v8396_v29, %v8396_v29  ;;  %v22538_v43 = vld [vmem:[%s25592_s4 + $0xaf0] sm:$0xff] }
 0x560   :  { %v8462_v4 = vpack.c.bf16 %v8398_v41, %v8398_v41  ;;  %v22510_v36 = vld [vmem:[%s25592_s4 + $0xa10] sm:$0xff]  ;;  %v22533_v41 = vld [vmem:[%s25592_s4 + $0xac8] sm:$0xff] }
 0x561   :  { %13054 = vmatpush.bf16.msrb.mxu0 %v22480_v38  ;;  %13080 = vmatpush.bf16.msrb.mxu2 %v22496_v57  ;;  %v12841_v58 = vpop.f32.mrf.mxu3  ;;  %v22514_v38 = vld [vmem:[%s25592_s4 + $0xa30] sm:$0xff]  ;;  %v8461_v21 = vpack.c.bf16 %v8397_v18, %v8397_v18  ;;  %v22517_v18 = vld [vmem:[%s25592_s4 + $0xa48] sm:$0xff] }
 0x562   :  { %v22530_v57 = vld [vmem:[%s25592_s4 + $0xab0] sm:$0xff] }
 0x563   :  { %13067 = vmatpush.bf16.msrb.mxu1 %v22488_v19  ;;  %13093 = vmatpush.bf16.msrb.mxu3 %v22504_v1  ;;  %v22522_v19 = vld [vmem:[%s25592_s4 + $0xa70] sm:$0xff]  ;;  %v22521_v1 = vld [vmem:[%s25592_s4 + $0xa68] sm:$0xff] }
 0x565   :  { %13055 = vmatpush.bf16.msrb.mxu0 %v22479_v30  ;;  %13081 = vmatpush.bf16.msrb.mxu2 %v22495_v25 }
 0x567   :  { %13068 = vmatpush.bf16.msrb.mxu1 %v22487_v47  ;;  %13094 = vmatpush.bf16.msrb.mxu3 %v22503_v7  ;;  %v25635_v47 = vld [vmem:[#allocation38_spill] sm:$0xff] }
 0x568   :  { %v24897_v25 = vmul.f32 0.5, %v25635_v47  ;;  %v22563_v47 = vld [vmem:[%s25592_s4 + $0xbb8] sm:$0xff] }
 0x569   :  { %13056 = vmatpush.bf16.msrb.mxu0 %v22478_v17  ;;  %13082 = vmatpush.bf16.msrb.mxu2 %v22494_v63  ;;  %v22528_v17 = vld [vmem:[%s25592_s4 + $0xaa0] sm:$0xff] }
 0x56a   :  { %22903 = vtanh.f32 %v24897_v25 }
 0x56b   :  { %13069 = vmatpush.bf16.msrb.mxu1 %v22486_v62  ;;  %13095 = vmatpush.bf16.msrb.mxu3 %v22502_v13  ;;  %v25637_v62 = vld [vmem:[#allocation40_spill] sm:$0xff]  ;;  %v25638_v13 = vld [vmem:[#allocation41_spill] sm:$0xff]  ;;  %22905 = vtanh.f32 %v24904_v37 }
 0x56c   :  { %v8210_v20 = vmul.f32 0.5, %v25638_v13  ;;  %v22561_v13 = vld [vmem:[%s25592_s4 + $0xba8] sm:$0xff] }
 0x56d   :  { %13057 = vmatpush.bf16.msrb.mxu0 %v22477_v56  ;;  %13083 = vmatpush.bf16.msrb.mxu2 %v22493_v12  ;;  %v22519_v56 = vld [vmem:[%s25592_s4 + $0xa58] sm:$0xff] }
 0x56f   :  { %13070 = vmatpush.bf16.msrb.mxu1 %v22485_v54  ;;  %13096 = vmatpush.bf16.msrb.mxu3 %v22501_v16  ;;  %v22535_v54 = vld [vmem:[%s25592_s4 + $0xad8] sm:$0xff] }
 0x571   :  { %13058 = vmatpush.bf16.msrb.mxu0 %v22476_v31  ;;  %13084 = vmatpush.bf16.msrb.mxu2 %v22492_v40  ;;  %v12852_v30 = vpop.f32.mrf.mxu0  ;;  %v22526_v31 = vld [vmem:[%s25592_s4 + $0xa90] sm:$0xff] }
 0x572   :  { %v12853_v7 = vadd.f32 %v12852_v30, %v24823_v15  ;;  %v8209_v15 = vmul.f32 0.5, %v25637_v62  ;;  %v22534_v40 = vld [vmem:[%s25592_s4 + $0xad0] sm:$0xff]  ;;  %v22555_v30 = vld [vmem:[%s25592_s4 + $0xb78] sm:$0xff] }
 0x573   :  { %13071 = vmatpush.bf16.msrb.mxu1 %v22484_v5  ;;  %13097 = vmatpush.bf16.msrb.mxu3 %v22500_v0  ;;  %v12865_v61 = vpop.f32.mrf.mxu1  ;;  %v22904_v5 = vpop.eup %22903 }
 0x574   :  { %13059 = vmatmul.bf16.vlgmr.msrb.gmra.mxu0 %v8459_v48  ;;  %13085 = vmatmul.bf16.vlgmr.msrb.gmra.mxu2 %v8461_v21  ;;  %v12866_v63 = vadd.f32 %v12865_v61, %v12853_v7  ;;  %22907 = vtanh.f32 %v8209_v15  ;;  %v22906_v39 = vpop.eup %22905  ;;  %v22571_v7 = vld [vmem:[%s25592_s4 + $0xbf8] sm:$0xff] }
 0x575   :  { %13103 = vmatpush.bf16.msra.mxu0 %v22515_v49  ;;  %13129 = vmatpush.bf16.msra.mxu2 %v22531_v59  ;;  %22909 = vtanh.f32 %v8210_v20  ;;  %v22509_v49 = vld [vmem:[%s25592_s4 + $0xa08] sm:$0xff]  ;;  %v8335_v59 = vadd.f32 1.0, %v22904_v5  ;;  %v8336_v48 = vadd.f32 1.0, %v22906_v39  ;;  %v22568_v5 = vld [vmem:[%s25592_s4 + $0xbe0] sm:$0xff] }
 0x576   :  { %13072 = vmatmul.bf16.vlgmr.msrb.gmra.mxu1 %v8460_v23  ;;  %13098 = vmatmul.bf16.vlgmr.msrb.gmra.mxu3 %v8462_v4  ;;  %v22524_v4 = vld [vmem:[%s25592_s4 + $0xa80] sm:$0xff] }
 0x577   :  { %13116 = vmatpush.bf16.msra.mxu1 %v22523_v35  ;;  %13142 = vmatpush.bf16.msra.mxu3 %v22539_v51  ;;  %v12878_v12 = vpop.f32.mrf.mxu2  ;;  %v22525_v35 = vld [vmem:[%s25592_s4 + $0xa88] sm:$0xff] }
 0x578   :  { %v12879_v33 = vadd.f32 %v12878_v12, %v12866_v63  ;;  %v22545_v63 = vld [vmem:[%s25592_s4 + $0xb28] sm:$0xff] }
 0x579   :  { %13104 = vmatpush.bf16.msra.mxu0 %v22514_v38  ;;  %13130 = vmatpush.bf16.msra.mxu2 %v22530_v57  ;;  %v12891_v16 = vpop.f32.mrf.mxu3  ;;  %v12854_v34 = vpop.f32.mrf.mxu0  ;;  %v22516_v57 = vld [vmem:[%s25592_s4 + $0xa40] sm:$0xff] }
 0x57a   :  { %v24934_v58 = vadd.f32 %v12891_v16, %v12879_v33  ;;  %v22908_v0 = vpop.eup %22907  ;;  %v22544_v33 = vld [vmem:[%s25592_s4 + $0xb20] sm:$0xff] }
 0x57b   :  { %13117 = vmatpush.bf16.msra.mxu1 %v22522_v19  ;;  %13143 = vmatpush.bf16.msra.mxu3 %v22538_v43  ;;  %v12867_v28 = vpop.f32.mrf.mxu1  ;;  %v22910_v29 = vpop.eup %22909  ;;  %v8337_v38 = vadd.f32 1.0, %v22908_v0  ;;  %v22508_v19 = vld [vmem:[%s25592_s4 + $0xa00] sm:$0xff]  ;;  %v8399_v43 = vmul.f32 %v8335_v59, %v24897_v25  ;;  %v22543_v0 = vld [vmem:[%s25592_s4 + $0xb18] sm:$0xff] }
 0x57c   :  { %v8338_v21 = vadd.f32 1.0, %v22910_v29  ;;  %v25640_v16 = vld [vmem:[#allocation43_spill] sm:$0xff]  ;;  %v22559_v29 = vld [vmem:[%s25592_s4 + $0xb98] sm:$0xff] }
 0x57d   :  { %13105 = vmatpush.bf16.msra.mxu0 %v22513_v53  ;;  %13131 = vmatpush.bf16.msra.mxu2 %v22529_v45  ;;  %v22532_v53 = vld [vmem:[%s25592_s4 + $0xac0] sm:$0xff]  ;;  %v8400_v45 = vmul.f32 %v8336_v48, %v24904_v37  ;;  %v8463_v61 = vpack.c.bf16 %v8399_v43, %v8399_v43  ;;  %v25015_v34 = vmul.f32 0.5, %v25640_v16 }
 0x57e   :  { %v8402_v25 = vmul.f32 %v8338_v21, %v8210_v20  ;;  %v22569_v20 = vld [vmem:[%s25592_s4 + $0xbe8] sm:$0xff]  ;;  %v22552_v28 = vld [vmem:[%s25592_s4 + $0xb60] sm:$0xff]  ;;  %v22550_v21 = vld [vmem:[%s25592_s4 + $0xb50] sm:$0xff] }
 0x57f   :  { %13118 = vmatpush.bf16.msra.mxu1 %v22521_v1  ;;  %13144 = vmatpush.bf16.msra.mxu3 %v22537_v2  ;;  %v12880_v51 = vpop.f32.mrf.mxu2  ;;  %v22547_v1 = vld [vmem:[%s25592_s4 + $0xb38] sm:$0xff]  ;;  %v8401_v2 = vmul.f32 %v8337_v38, %v8209_v15  ;;  %v8464_v24 = vpack.c.bf16 %v8400_v45, %v8400_v45  ;;  %v22570_v15 = vld [vmem:[%s25592_s4 + $0xbf0] sm:$0xff] }
 0x580   :  { %v8466_v62 = vpack.c.bf16 %v8402_v25, %v8402_v25  ;;  %v22542_v38 = vld [vmem:[%s25592_s4 + $0xb10] sm:$0xff]  ;;  %v22565_v25 = vld [vmem:[%s25592_s4 + $0xbc8] sm:$0xff] }
 0x581   :  { %13106 = vmatpush.bf16.msra.mxu0 %v22512_v6  ;;  %13132 = vmatpush.bf16.msra.mxu2 %v22528_v17  ;;  %v12893_v23 = vpop.f32.mrf.mxu3  ;;  %v22546_v6 = vld [vmem:[%s25592_s4 + $0xb30] sm:$0xff]  ;;  %v8465_v37 = vpack.c.bf16 %v8401_v2, %v8401_v2  ;;  %v22549_v2 = vld [vmem:[%s25592_s4 + $0xb48] sm:$0xff] }
 0x582   :  { %v22562_v17 = vld [vmem:[%s25592_s4 + $0xbb0] sm:$0xff] }
 0x583   :  { %13119 = vmatpush.bf16.msra.mxu1 %v22520_v42  ;;  %13145 = vmatpush.bf16.msra.mxu3 %v22536_v26  ;;  %v22554_v42 = vld [vmem:[%s25592_s4 + $0xb70] sm:$0xff]  ;;  %v22553_v26 = vld [vmem:[%s25592_s4 + $0xb68] sm:$0xff] }
 0x585   :  { %13107 = vmatpush.bf16.msra.mxu0 %v22511_v50  ;;  %13133 = vmatpush.bf16.msra.mxu2 %v22527_v60 }
 0x587   :  { %13120 = vmatpush.bf16.msra.mxu1 %v22519_v56  ;;  %13146 = vmatpush.bf16.msra.mxu3 %v22535_v54  ;;  %v25639_v56 = vld [vmem:[#allocation42_spill] sm:$0xff] }
 0x588   :  { %v25008_v60 = vmul.f32 0.5, %v25639_v56  ;;  %v22595_v56 = vld [vmem:[%s25592_s4 + $0xcb8] sm:$0xff] }
 0x589   :  { %13108 = vmatpush.bf16.msra.mxu0 %v22510_v36  ;;  %13134 = vmatpush.bf16.msra.mxu2 %v22526_v31  ;;  %v22560_v36 = vld [vmem:[%s25592_s4 + $0xba0] sm:$0xff] }
 0x58a   :  { %22911 = vtanh.f32 %v25008_v60 }
 0x58b   :  { %13121 = vmatpush.bf16.msra.mxu1 %v22518_v44  ;;  %13147 = vmatpush.bf16.msra.mxu3 %v22534_v40  ;;  %v25641_v44 = vld [vmem:[#allocation44_spill] sm:$0xff]  ;;  %v25642_v40 = vld [vmem:[#allocation45_spill] sm:$0xff]  ;;  %22913 = vtanh.f32 %v25015_v34 }
 0x58c   :  { %v8214_v39 = vmul.f32 0.5, %v25642_v40  ;;  %v22593_v40 = vld [vmem:[%s25592_s4 + $0xca8] sm:$0xff] }
 0x58d   :  { %13109 = vmatpush.bf16.msra.mxu0 %v22509_v49  ;;  %13135 = vmatpush.bf16.msra.mxu2 %v22525_v35  ;;  %v22551_v49 = vld [vmem:[%s25592_s4 + $0xb58] sm:$0xff] }
 0x58f   :  { %13122 = vmatpush.bf16.msra.mxu1 %v22517_v18  ;;  %13148 = vmatpush.bf16.msra.mxu3 %v22533_v41  ;;  %v22567_v18 = vld [vmem:[%s25592_s4 + $0xbd8] sm:$0xff] }
 0x591   :  { %13110 = vmatpush.bf16.msra.mxu0 %v22508_v19  ;;  %13136 = vmatpush.bf16.msra.mxu2 %v22524_v4  ;;  %v12904_v50 = vpop.f32.mrf.mxu0  ;;  %v22558_v19 = vld [vmem:[%s25592_s4 + $0xb90] sm:$0xff] }
 0x592   :  { %v12905_v54 = vadd.f32 %v12904_v50, %v24934_v58  ;;  %v8213_v58 = vmul.f32 0.5, %v25641_v44  ;;  %v22566_v4 = vld [vmem:[%s25592_s4 + $0xbd0] sm:$0xff]  ;;  %v22587_v50 = vld [vmem:[%s25592_s4 + $0xc78] sm:$0xff] }
 0x593   :  { %13123 = vmatpush.bf16.msra.mxu1 %v22516_v57  ;;  %13149 = vmatpush.bf16.msra.mxu3 %v22532_v53  ;;  %v12917_v12 = vpop.f32.mrf.mxu1  ;;  %v22912_v57 = vpop.eup %22911 }
 0x594   :  { %13111 = vmatmul.bf16.vlgmr.msra.gmra.mxu0 %v8463_v61  ;;  %13137 = vmatmul.bf16.vlgmr.msra.gmra.mxu2 %v8465_v37  ;;  %v12918_v31 = vadd.f32 %v12917_v12, %v12905_v54  ;;  %22915 = vtanh.f32 %v8213_v58  ;;  %v22914_v43 = vpop.eup %22913  ;;  %v22603_v54 = vld [vmem:[%s25592_s4 + $0xcf8] sm:$0xff] }
 0x595   :  { %13155 = vmatpush.bf16.msrb.mxu0 %v22547_v1  ;;  %13181 = vmatpush.bf16.msrb.mxu2 %v22563_v47  ;;  %22917 = vtanh.f32 %v8214_v39  ;;  %v22541_v1 = vld [vmem:[%s25592_s4 + $0xb08] sm:$0xff]  ;;  %v8339_v47 = vadd.f32 1.0, %v22912_v57  ;;  %v8340_v61 = vadd.f32 1.0, %v22914_v43  ;;  %v22600_v57 = vld [vmem:[%s25592_s4 + $0xce0] sm:$0xff] }
 0x596   :  { %13124 = vmatmul.bf16.vlgmr.msra.gmra.mxu1 %v8464_v24  ;;  %13150 = vmatmul.bf16.vlgmr.msra.gmra.mxu3 %v8466_v62  ;;  %v22556_v62 = vld [vmem:[%s25592_s4 + $0xb80] sm:$0xff] }
 0x597   :  { %13168 = vmatpush.bf16.msrb.mxu1 %v22555_v30  ;;  %13194 = vmatpush.bf16.msrb.mxu3 %v22571_v7  ;;  %v12930_v35 = vpop.f32.mrf.mxu2  ;;  %v22557_v30 = vld [vmem:[%s25592_s4 + $0xb88] sm:$0xff] }
 0x598   :  { %v12931_v59 = vadd.f32 %v12930_v35, %v12918_v31  ;;  %v22577_v31 = vld [vmem:[%s25592_s4 + $0xc28] sm:$0xff] }
 0x599   :  { %13156 = vmatpush.bf16.msrb.mxu0 %v22546_v6  ;;  %13182 = vmatpush.bf16.msrb.mxu2 %v22562_v17  ;;  %v12943_v41 = vpop.f32.mrf.mxu3  ;;  %v12906_v51 = vpop.f32.mrf.mxu0  ;;  %v22548_v17 = vld [vmem:[%s25592_s4 + $0xb40] sm:$0xff] }
 0x59a   :  { %v25045_v23 = vadd.f32 %v12943_v41, %v12931_v59  ;;  %v22916_v53 = vpop.eup %22915  ;;  %v22576_v59 = vld [vmem:[%s25592_s4 + $0xc20] sm:$0xff] }
 0x59b   :  { %13169 = vmatpush.bf16.msrb.mxu1 %v22554_v42  ;;  %13195 = vmatpush.bf16.msrb.mxu3 %v22570_v15  ;;  %v12919_v48 = vpop.f32.mrf.mxu1  ;;  %v22918_v45 = vpop.eup %22917  ;;  %v8341_v6 = vadd.f32 1.0, %v22916_v53  ;;  %v22540_v42 = vld [vmem:[%s25592_s4 + $0xb00] sm:$0xff]  ;;  %v8403_v15 = vmul.f32 %v8339_v47, %v25008_v60  ;;  %v22575_v53 = vld [vmem:[%s25592_s4 + $0xc18] sm:$0xff] }
 0x59c   :  { %v8342_v37 = vadd.f32 1.0, %v22918_v45  ;;  %v25644_v41 = vld [vmem:[#allocation47_spill] sm:$0xff]  ;;  %v22591_v45 = vld [vmem:[%s25592_s4 + $0xc98] sm:$0xff] }
 0x59d   :  { %13157 = vmatpush.bf16.msrb.mxu0 %v22545_v63  ;;  %13183 = vmatpush.bf16.msrb.mxu2 %v22561_v13  ;;  %v22564_v63 = vld [vmem:[%s25592_s4 + $0xbc0] sm:$0xff]  ;;  %v8404_v13 = vmul.f32 %v8340_v61, %v25015_v34  ;;  %v8467_v12 = vpack.c.bf16 %v8403_v15, %v8403_v15  ;;  %v8216_v51 = vmul.f32 0.5, %v25644_v41  ;;  %v22574_v61 = vld [vmem:[%s25592_s4 + $0xc10] sm:$0xff]  ;;  %v22573_v15 = vld [vmem:[%s25592_s4 + $0xc08] sm:$0xff] }
 0x59e   :  { %v8406_v60 = vmul.f32 %v8342_v37, %v8214_v39  ;;  %v22601_v39 = vld [vmem:[%s25592_s4 + $0xce8] sm:$0xff]  ;;  %v22584_v48 = vld [vmem:[%s25592_s4 + $0xc60] sm:$0xff]  ;;  %v22618_v41 = vld [vmem:[%s25592_s4 + $0xd70] sm:$0xff] }
 0x59f   :  { %13170 = vmatpush.bf16.msrb.mxu1 %v22553_v26  ;;  %13196 = vmatpush.bf16.msrb.mxu3 %v22569_v20  ;;  %v12932_v7 = vpop.f32.mrf.mxu2  ;;  %v22579_v26 = vld [vmem:[%s25592_s4 + $0xc38] sm:$0xff]  ;;  %v8405_v20 = vmul.f32 %v8341_v6, %v8213_v58  ;;  %v8468_v16 = vpack.c.bf16 %v8404_v13, %v8404_v13  ;;  %v22602_v58 = vld [vmem:[%s25592_s4 + $0xcf0] sm:$0xff]  ;;  %v22589_v13 = vld [vmem:[%s25592_s4 + $0xc88] sm:$0xff] }
 0x5a0   :  { %v8470_v44 = vpack.c.bf16 %v8406_v60, %v8406_v60  ;;  %v22582_v6 = vld [vmem:[%s25592_s4 + $0xc50] sm:$0xff] }
 0x5a1   :  { %13158 = vmatpush.bf16.msrb.mxu0 %v22544_v33  ;;  %13184 = vmatpush.bf16.msrb.mxu2 %v22560_v36  ;;  %v12945_v24 = vpop.f32.mrf.mxu3  ;;  %v22578_v33 = vld [vmem:[%s25592_s4 + $0xc30] sm:$0xff]  ;;  %v8469_v34 = vpack.c.bf16 %v8405_v20, %v8405_v20 }
 0x5a2   :  { %v22594_v36 = vld [vmem:[%s25592_s4 + $0xcb0] sm:$0xff] }
 0x5a3   :  { %13171 = vmatpush.bf16.msrb.mxu1 %v22552_v28  ;;  %13197 = vmatpush.bf16.msrb.mxu3 %v22568_v5  ;;  %v22586_v28 = vld [vmem:[%s25592_s4 + $0xc70] sm:$0xff]  ;;  %v22585_v5 = vld [vmem:[%s25592_s4 + $0xc68] sm:$0xff] }
 0x5a4   :  { %v22590_v24 = vld [vmem:[%s25592_s4 + $0xc90] sm:$0xff] }
 0x5a5   :  { %13159 = vmatpush.bf16.msrb.mxu0 %v22543_v0  ;;  %13185 = vmatpush.bf16.msrb.mxu2 %v22559_v29 }
 0x5a7   :  { %13172 = vmatpush.bf16.msrb.mxu1 %v22551_v49  ;;  %13198 = vmatpush.bf16.msrb.mxu3 %v22567_v18  ;;  %v25643_v49 = vld [vmem:[#allocation46_spill] sm:$0xff] }
 0x5a8   :  { %v25119_v29 = vmul.f32 0.5, %v25643_v49  ;;  %v22635_v49 = vld [vmem:[%s25592_s4 + $0xdf8] sm:$0xff] }
 0x5a9   :  { %13160 = vmatpush.bf16.msrb.mxu0 %v22542_v38  ;;  %13186 = vmatpush.bf16.msrb.mxu2 %v22558_v19  ;;  %v22592_v38 = vld [vmem:[%s25592_s4 + $0xca0] sm:$0xff] }
 0x5aa   :  { %22919 = vtanh.f32 %v25119_v29 }
 0x5ab   :  { %13173 = vmatpush.bf16.msrb.mxu1 %v22550_v21  ;;  %13199 = vmatpush.bf16.msrb.mxu3 %v22566_v4  ;;  %v25645_v21 = vld [vmem:[#allocation48_spill] sm:$0xff]  ;;  %v25646_v4 = vld [vmem:[#allocation49_spill] sm:$0xff]  ;;  %22921 = vtanh.f32 %v8216_v51 }
 0x5ac   :  { %v8217_v19 = vmul.f32 0.5, %v25645_v21  ;;  %v8218_v43 = vmul.f32 0.5, %v25646_v4  ;;  %v22634_v21 = vld [vmem:[%s25592_s4 + $0xdf0] sm:$0xff] }
 0x5ad   :  { %13161 = vmatpush.bf16.msrb.mxu0 %v22541_v1  ;;  %13187 = vmatpush.bf16.msrb.mxu2 %v22557_v30  ;;  %v22583_v1 = vld [vmem:[%s25592_s4 + $0xc58] sm:$0xff] }
 0x5ae   :  { %22923 = vtanh.f32 %v8217_v19 }
 0x5af   :  { %13174 = vmatpush.bf16.msrb.mxu1 %v22549_v2  ;;  %13200 = vmatpush.bf16.msrb.mxu3 %v22565_v25  ;;  %v22599_v2 = vld [vmem:[%s25592_s4 + $0xcd8] sm:$0xff]  ;;  %22925 = vtanh.f32 %v8218_v43 }
 0x5b0   :  { %v22920_v37 = vpop.eup %22919 }
 0x5b1   :  { %13162 = vmatpush.bf16.msrb.mxu0 %v22540_v42  ;;  %13188 = vmatpush.bf16.msrb.mxu2 %v22556_v62  ;;  %v12956_v0 = vpop.f32.mrf.mxu0  ;;  %v22598_v42 = vld [vmem:[%s25592_s4 + $0xcd0] sm:$0xff]  ;;  %v8343_v20 = vadd.f32 1.0, %v22920_v37  ;;  %v22623_v37 = vld [vmem:[%s25592_s4 + $0xd98] sm:$0xff] }
 0x5b2   :  { %v12957_v18 = vadd.f32 %v12956_v0, %v25045_v23 }
 0x5b3   :  { %13175 = vmatpush.bf16.msrb.mxu1 %v22548_v17  ;;  %13201 = vmatpush.bf16.msrb.mxu3 %v22564_v63  ;;  %v12969_v35 = vpop.f32.mrf.mxu1  ;;  %v22922_v17 = vpop.eup %22921 }
 0x5b4   :  { %13163 = vmatmul.bf16.vlgmr.msrb.gmra.mxu0 %v8467_v12  ;;  %13189 = vmatmul.bf16.vlgmr.msrb.gmra.mxu2 %v8469_v34  ;;  %v25133_v23 = vadd.f32 %v12969_v35, %v12957_v18  ;;  %v22924_v62 = vpop.eup %22923  ;;  %v8344_v60 = vadd.f32 1.0, %v22922_v17  ;;  %v22580_v34 = vld [vmem:[%s25592_s4 + $0xc40] sm:$0xff]  ;;  %v22610_v18 = vld [vmem:[%s25592_s4 + $0xd30] sm:$0xff] }
 0x5b5   :  { %13207 = vmatpush.bf16.msra.mxu0 %v22579_v26  ;;  %13233 = vmatpush.bf16.msra.mxu2 %v22595_v56  ;;  %v22926_v63 = vpop.eup %22925  ;;  %v22581_v26 = vld [vmem:[%s25592_s4 + $0xc48] sm:$0xff] }
 0x5b6   :  { %13176 = vmatmul.bf16.vlgmr.msrb.gmra.mxu1 %v8468_v16  ;;  %13202 = vmatmul.bf16.vlgmr.msrb.gmra.mxu3 %v8470_v44  ;;  %v22572_v16 = vld [vmem:[%s25592_s4 + $0xc00] sm:$0xff] }
 0x5b7   :  { %13220 = vmatpush.bf16.msra.mxu1 %v22587_v50  ;;  %13246 = vmatpush.bf16.msra.mxu3 %v22603_v54  ;;  %v12982_v30 = vpop.f32.mrf.mxu2  ;;  %v22597_v50 = vld [vmem:[%s25592_s4 + $0xcc8] sm:$0xff]  ;;  %v8345_v54 = vadd.f32 1.0, %v22924_v62  ;;  %v22596_v44 = vld [vmem:[%s25592_s4 + $0xcc0] sm:$0xff] }
 0x5b9   :  { %13208 = vmatpush.bf16.msra.mxu0 %v22578_v33  ;;  %13234 = vmatpush.bf16.msra.mxu2 %v22594_v36  ;;  %v25152_v47 = vpop.f32.mrf.mxu3  ;;  %v12958_v25 = vpop.f32.mrf.mxu0  ;;  %v8346_v33 = vadd.f32 1.0, %v22926_v63  ;;  %v8407_v36 = vmul.f32 %v8343_v20, %v25119_v29  ;;  %v22622_v20 = vld [vmem:[%s25592_s4 + $0xd90] sm:$0xff] }
 0x5ba   :  { %v25236_v25 = vmul.f32 0.5, %v23728_v46  ;;  %v8222_v46 = vmul.f32 0.5, %v23811_v22  ;;  %v22631_v22 = vld [vmem:[%s25592_s4 + $0xdd8] sm:$0xff] }
 0x5bb   :  { %13221 = vmatpush.bf16.msra.mxu1 %v22586_v28  ;;  %13247 = vmatpush.bf16.msra.mxu3 %v22602_v58  ;;  %v12971_v7 = vpop.f32.mrf.mxu1  ;;  %v22588_v28 = vld [vmem:[%s25592_s4 + $0xc80] sm:$0xff]  ;;  %v22611_v58 = vld [vmem:[%s25592_s4 + $0xd38] sm:$0xff]  ;;  %v8410_v0 = vmul.f32 %v8346_v33, %v8218_v43  ;;  %v8471_v29 = vpack.c.bf16 %v8407_v36, %v8407_v36  ;;  %v22633_v43 = vld [vmem:[%s25592_s4 + $0xde8] sm:$0xff] }
 0x5bc   :  { %v8221_v7 = vmul.f32 0.5, %v23792_v55  ;;  %v22615_v55 = vld [vmem:[%s25592_s4 + $0xd58] sm:$0xff]  ;;  %v22629_v36 = vld [vmem:[%s25592_s4 + $0xdc8] sm:$0xff] }
 0x5bd   :  { %13209 = vmatpush.bf16.msra.mxu0 %v22577_v31  ;;  %13235 = vmatpush.bf16.msra.mxu2 %v22593_v40  ;;  %v8408_v31 = vmul.f32 %v8344_v60, %v8216_v51  ;;  %v22619_v40 = vld [vmem:[%s25592_s4 + $0xd78] sm:$0xff]  ;;  %v22626_v51 = vld [vmem:[%s25592_s4 + $0xdb0] sm:$0xff] }
 0x5bf   :  { %13222 = vmatpush.bf16.msra.mxu1 %v22585_v5  ;;  %13248 = vmatpush.bf16.msra.mxu3 %v22601_v39  ;;  %v12984_v56 = vpop.f32.mrf.mxu2  ;;  %v8409_v5 = vmul.f32 %v8345_v54, %v8217_v19  ;;  %v22627_v39 = vld [vmem:[%s25592_s4 + $0xdb8] sm:$0xff]  ;;  %v8472_v35 = vpack.c.bf16 %v8408_v31, %v8408_v31  ;;  %v22609_v19 = vld [vmem:[%s25592_s4 + $0xd28] sm:$0xff] }
 0x5c0   :  { %v22630_v56 = vld [vmem:[%s25592_s4 + $0xdd0] sm:$0xff] }
 0x5c1   :  { %13210 = vmatpush.bf16.msra.mxu0 %v22576_v59  ;;  %13236 = vmatpush.bf16.msra.mxu2 %v22592_v38  ;;  %v12997_v12 = vpop.f32.mrf.mxu3  ;;  %v8473_v59 = vpack.c.bf16 %v8409_v5, %v8409_v5  ;;  %v12983_v38 = vadd.f32 %v12982_v30, %v25133_v23  ;;  %v22617_v23 = vld [vmem:[%s25592_s4 + $0xd68] sm:$0xff]  ;;  %v22608_v30 = vld [vmem:[%s25592_s4 + $0xd20] sm:$0xff] }
 0x5c2   :  { %v22605_v12 = vld [vmem:[%s25592_s4 + $0xd08] sm:$0xff] }
 0x5c3   :  { %13223 = vmatpush.bf16.msra.mxu1 %v22584_v48  ;;  %13249 = vmatpush.bf16.msra.mxu3 %v22600_v57  ;;  %v8474_v48 = vpack.c.bf16 %v8410_v0, %v8410_v0  ;;  %v22625_v57 = vld [vmem:[%s25592_s4 + $0xda8] sm:$0xff]  ;;  %v12996_v4 = vadd.f32 %v25152_v47, %v12983_v38  ;;  %v22616_v47 = vld [vmem:[%s25592_s4 + $0xd60] sm:$0xff] }
 0x5c4   :  { %v22612_v0 = vld [vmem:[%s25592_s4 + $0xd40] sm:$0xff] }
 0x5c5   :  { %13211 = vmatpush.bf16.msra.mxu0 %v22575_v53  ;;  %13237 = vmatpush.bf16.msra.mxu2 %v22591_v45 }
 0x5c7   :  { %13224 = vmatpush.bf16.msra.mxu1 %v22583_v1  ;;  %13250 = vmatpush.bf16.msra.mxu3 %v22599_v2  ;;  %v25230_v1 = vmul.f32 0.5, %v23726_v10  ;;  %v22624_v10 = vld [vmem:[%s25592_s4 + $0xda0] sm:$0xff] }
 0x5c9   :  { %13212 = vmatpush.bf16.msra.mxu0 %v22574_v61  ;;  %13238 = vmatpush.bf16.msra.mxu2 %v22590_v24  ;;  %22927 = vtanh.f32 %v25230_v1  ;;  %v22607_v24 = vld [vmem:[%s25592_s4 + $0xd18] sm:$0xff] }
 0x5ca   :  { %22929 = vtanh.f32 %v25236_v25 }
 0x5cb   :  { %13225 = vmatpush.bf16.msra.mxu1 %v22582_v6  ;;  %13251 = vmatpush.bf16.msra.mxu3 %v22598_v42  ;;  %v22632_v6 = vld [vmem:[%s25592_s4 + $0xde0] sm:$0xff]  ;;  %22931 = vtanh.f32 %v8221_v7 }
 0x5cc   :  { %22933 = vtanh.f32 %v8222_v46 }
 0x5cd   :  { %13213 = vmatpush.bf16.msra.mxu0 %v22573_v15  ;;  %13239 = vmatpush.bf16.msra.mxu2 %v22589_v13  ;;  %v22614_v13 = vld [vmem:[%s25592_s4 + $0xd50] sm:$0xff] }
 0x5cf   :  { %13226 = vmatpush.bf16.msra.mxu1 %v22581_v26  ;;  %13252 = vmatpush.bf16.msra.mxu3 %v22597_v50  ;;  %v22606_v26 = vld [vmem:[%s25592_s4 + $0xd10] sm:$0xff]  ;;  %v22928_v50 = vpop.eup %22927 }
 0x5d0   :  { %v22930_v60 = vpop.eup %22929 }
 0x5d1   :  { %13214 = vmatpush.bf16.msra.mxu0 %v22572_v16  ;;  %13240 = vmatpush.bf16.msra.mxu2 %v22588_v28  ;;  %v13008_v53 = vpop.f32.mrf.mxu0  ;;  %v22932_v54 = vpop.eup %22931  ;;  %v22613_v16 = vld [vmem:[%s25592_s4 + $0xd48] sm:$0xff]  ;;  %v8347_v28 = vadd.f32 1.0, %v22928_v50 }
 0x5d2   :  { %v13009_v45 = vadd.f32 %v13008_v53, %v12996_v4  ;;  %v22934_v33 = vpop.eup %22933  ;;  %v8349_v31 = vadd.f32 1.0, %v22932_v54  ;;  %v22658_v53 = vld [vmem:[%s25592_s4 + $0xeb0] sm:$0xff] }
 0x5d3   :  { %13227 = vmatpush.bf16.msra.mxu1 %v22580_v34  ;;  %13253 = vmatpush.bf16.msra.mxu3 %v22596_v44  ;;  %v13021_v2 = vpop.f32.mrf.mxu1  ;;  %v22621_v34 = vld [vmem:[%s25592_s4 + $0xd88] sm:$0xff]  ;;  %v22654_v54 = vld [vmem:[%s25592_s4 + $0xe90] sm:$0xff] }
 0x5d4   :  { %13215 = vmatmul.bf16.vlgmr.msra.gmra.mxu0 %v8471_v29  ;;  %13241 = vmatmul.bf16.vlgmr.msra.gmra.mxu2 %v8473_v59  ;;  %v13022_v61 = vadd.f32 %v13021_v2, %v13009_v45  ;;  %v8411_v29 = vmul.f32 %v8347_v28, %v25230_v1  ;;  %v22666_v45 = vld [vmem:[%s25592_s4 + $0xef0] sm:$0xff]  ;;  %v22641_v2 = vld [vmem:[%s25592_s4 + $0xe28] sm:$0xff] }
 0x5d5   :  { %13259 = vmatpush.bf16.msrb.mxu0 %v22611_v58  ;;  %13285 = vmatpush.bf16.msrb.mxu2 %v22627_v39  ;;  %v8348_v58 = vadd.f32 1.0, %v22930_v60  ;;  %v22604_v39 = vld [vmem:[%s25592_s4 + $0xd00] sm:$0xff]  ;;  %v22646_v60 = vld [vmem:[%s25592_s4 + $0xe50] sm:$0xff]  ;;  %v22637_v28 = vld [vmem:[%s25592_s4 + $0xe08] sm:$0xff] }
 0x5d6   :  { %13228 = vmatmul.bf16.vlgmr.msra.gmra.mxu1 %v8472_v35  ;;  %13254 = vmatmul.bf16.vlgmr.msra.gmra.mxu3 %v8474_v48  ;;  %v22643_v35 = vld [vmem:[%s25592_s4 + $0xe38] sm:$0xff] }
 0x5d7   :  { %13272 = vmatpush.bf16.msrb.mxu1 %v22619_v40  ;;  %13298 = vmatpush.bf16.msrb.mxu3 %v22635_v49  ;;  %v13034_v42 = vpop.f32.mrf.mxu2  ;;  %v8350_v40 = vadd.f32 1.0, %v22934_v33  ;;  %v22620_v49 = vld [vmem:[%s25592_s4 + $0xd80] sm:$0xff]  ;;  %v8412_v59 = vmul.f32 %v8348_v58, %v25236_v25  ;;  %v22659_v48 = vld [vmem:[%s25592_s4 + $0xeb8] sm:$0xff]  ;;  %v22657_v25 = vld [vmem:[%s25592_s4 + $0xea8] sm:$0xff] }
 0x5d8   :  { %v25263_v17 = vadd.f32 %v13034_v42, %v13022_v61  ;;  %v25344_v61 = vmul.f32 0.5, %v23908_v8  ;;  %v22656_v8 = vld [vmem:[%s25592_s4 + $0xea0] sm:$0xff]  ;;  %v22662_v33 = vld [vmem:[%s25592_s4 + $0xed0] sm:$0xff]  ;;  %v22653_v58 = vld [vmem:[%s25592_s4 + $0xe88] sm:$0xff] }
 0x5d9   :  { %13260 = vmatpush.bf16.msrb.mxu0 %v22610_v18  ;;  %13286 = vmatpush.bf16.msrb.mxu2 %v22626_v51  ;;  %v25265_v62 = vpop.f32.mrf.mxu3  ;;  %v13010_v15 = vpop.f32.mrf.mxu0  ;;  %v22628_v18 = vld [vmem:[%s25592_s4 + $0xdc0] sm:$0xff]  ;;  %v22651_v51 = vld [vmem:[%s25592_s4 + $0xe78] sm:$0xff]  ;;  %v8414_v38 = vmul.f32 %v8350_v40, %v8222_v46 }
 0x5da   :  { %22935 = vtanh.f32 %v25344_v61  ;;  %v22655_v15 = vld [vmem:[%s25592_s4 + $0xe98] sm:$0xff] }
 0x5db   :  { %13273 = vmatpush.bf16.msrb.mxu1 %v22618_v41  ;;  %13299 = vmatpush.bf16.msrb.mxu3 %v22634_v21  ;;  %v13023_v63 = vpop.f32.mrf.mxu1  ;;  %v8413_v41 = vmul.f32 %v8349_v31, %v8221_v7  ;;  %v22667_v21 = vld [vmem:[%s25592_s4 + $0xef8] sm:$0xff]  ;;  %v8478_v1 = vpack.c.bf16 %v8414_v38, %v8414_v38 }
 0x5dd   :  { %13261 = vmatpush.bf16.msrb.mxu0 %v22609_v19  ;;  %13287 = vmatpush.bf16.msrb.mxu2 %v22625_v57  ;;  %v8475_v19 = vpack.c.bf16 %v8411_v29, %v8411_v29  ;;  %v8476_v57 = vpack.c.bf16 %v8412_v59, %v8412_v59  ;;  %v8477_v4 = vpack.c.bf16 %v8413_v41, %v8413_v41  ;;  %v22652_v59 = vld [vmem:[%s25592_s4 + $0xe80] sm:$0xff] }
 0x5df   :  { %13274 = vmatpush.bf16.msrb.mxu1 %v22617_v23  ;;  %13300 = vmatpush.bf16.msrb.mxu3 %v22633_v43  ;;  %v13036_v44 = vpop.f32.mrf.mxu2  ;;  %v22642_v23 = vld [vmem:[%s25592_s4 + $0xe30] sm:$0xff] }
 0x5e0   :  { %v22650_v43 = vld [vmem:[%s25592_s4 + $0xe70] sm:$0xff]  ;;  %v22645_v44 = vld [vmem:[%s25592_s4 + $0xe48] sm:$0xff] }
 0x5e1   :  { %13262 = vmatpush.bf16.msrb.mxu0 %v22608_v30  ;;  %13288 = vmatpush.bf16.msrb.mxu2 %v22624_v10  ;;  %v13049_v5 = vpop.f32.mrf.mxu3  ;;  %v22649_v30 = vld [vmem:[%s25592_s4 + $0xe68] sm:$0xff] }
 0x5e2   :  { %v22665_v10 = vld [vmem:[%s25592_s4 + $0xee8] sm:$0xff] }
 0x5e3   :  { %13275 = vmatpush.bf16.msrb.mxu1 %v22616_v47  ;;  %13301 = vmatpush.bf16.msrb.mxu3 %v22632_v6  ;;  %v13048_v47 = vadd.f32 %v25265_v62, %v25263_v17  ;;  %v22664_v17 = vld [vmem:[%s25592_s4 + $0xee0] sm:$0xff]  ;;  %v22639_v62 = vld [vmem:[%s25592_s4 + $0xe18] sm:$0xff]  ;;  %v22661_v5 = vld [vmem:[%s25592_s4 + $0xec8] sm:$0xff] }
 0x5e5   :  { %13263 = vmatpush.bf16.msrb.mxu0 %v22607_v24  ;;  %13289 = vmatpush.bf16.msrb.mxu2 %v22623_v37  ;;  %v22640_v24 = vld [vmem:[%s25592_s4 + $0xe20] sm:$0xff] }
 0x5e6   :  { %v22648_v37 = vld [vmem:[%s25592_s4 + $0xe60] sm:$0xff] }
 0x5e7   :  { %13276 = vmatpush.bf16.msrb.mxu1 %v22615_v55  ;;  %13302 = vmatpush.bf16.msrb.mxu3 %v22631_v22  ;;  %v25350_v55 = vmul.f32 0.5, %v23927_v11  ;;  %v8225_v22 = vmul.f32 0.5, %v24022_v27  ;;  %v8226_v11 = vmul.f32 0.5, %v24041_v32  ;;  %v22647_v27 = vld [vmem:[%s25592_s4 + $0xe58] sm:$0xff] }
 0x5e8   :  { %v22663_v32 = vld [vmem:[%s25592_s4 + $0xed8] sm:$0xff] }
 0x5e9   :  { %13264 = vmatpush.bf16.msrb.mxu0 %v22606_v26  ;;  %13290 = vmatpush.bf16.msrb.mxu2 %v22622_v20  ;;  %22937 = vtanh.f32 %v25350_v55 }
 0x5ea   :  { %22939 = vtanh.f32 %v8225_v22 }
 0x5eb   :  { %13277 = vmatpush.bf16.msrb.mxu1 %v22614_v13  ;;  %13303 = vmatpush.bf16.msrb.mxu3 %v22630_v56  ;;  %22941 = vtanh.f32 %v8226_v11  ;;  %v22638_v56 = vld [vmem:[%s25592_s4 + $0xe10] sm:$0xff] }
 0x5ed   :  { %13265 = vmatpush.bf16.msrb.mxu0 %v22605_v12  ;;  %13291 = vmatpush.bf16.msrb.mxu2 %v22621_v34  ;;  %v22936_v12 = vpop.eup %22935 }
 0x5ee   :  { %v8351_v31 = vadd.f32 1.0, %v22936_v12  ;;  %v22678_v12 = vld [vmem:[%s25592_s4 + $0xf50] sm:$0xff] }
 0x5ef   :  { %13278 = vmatpush.bf16.msrb.mxu1 %v22613_v16  ;;  %13304 = vmatpush.bf16.msrb.mxu3 %v22629_v36  ;;  %v22938_v16 = vpop.eup %22937 }
 0x5f0   :  { %v22940_v34 = vpop.eup %22939  ;;  %v8415_v41 = vmul.f32 %v8351_v31, %v25344_v61  ;;  %v22689_v61 = vld [vmem:[%s25592_s4 + $0xfa8] sm:$0xff] }
 0x5f1   :  { %13266 = vmatpush.bf16.msrb.mxu0 %v22604_v39  ;;  %13292 = vmatpush.bf16.msrb.mxu2 %v22620_v49  ;;  %v13060_v7 = vpop.f32.mrf.mxu0  ;;  %v22942_v36 = vpop.eup %22941  ;;  %v8352_v39 = vadd.f32 1.0, %v22938_v16  ;;  %v22677_v31 = vld [vmem:[%s25592_s4 + $0xf48] sm:$0xff] }
 0x5f2   :  { %v13061_v6 = vadd.f32 %v13060_v7, %v13048_v47  ;;  %v8354_v29 = vadd.f32 1.0, %v22942_v36  ;;  %v22698_v47 = vld [vmem:[%s25592_s4 + $0xff0] sm:$0xff]  ;;  %v22681_v7 = vld [vmem:[%s25592_s4 + $0xf68] sm:$0xff] }
 0x5f3   :  { %13279 = vmatpush.bf16.msrb.mxu1 %v22612_v0  ;;  %13305 = vmatpush.bf16.msrb.mxu3 %v22628_v18  ;;  %v13073_v46 = vpop.f32.mrf.mxu1  ;;  %v8353_v0 = vadd.f32 1.0, %v22940_v34  ;;  %v22636_v18 = vld [vmem:[%s25592_s4 + $0xe00] sm:$0xff]  ;;  %v8416_v38 = vmul.f32 %v8352_v39, %v25350_v55  ;;  %v22694_v34 = vld [vmem:[%s25592_s4 + $0xfd0] sm:$0xff] }
 0x5f4   :  { %13267 = vmatmul.bf16.vlgmr.msrb.gmra.mxu0 %v8475_v19  ;;  %13293 = vmatmul.bf16.vlgmr.msrb.gmra.mxu2 %v8477_v4  ;;  %v13074_v42 = vadd.f32 %v13073_v46, %v13061_v6  ;;  %v22683_v19 = vld [vmem:[%s25592_s4 + $0xf78] sm:$0xff]  ;;  %v22697_v46 = vld [vmem:[%s25592_s4 + $0xfe8] sm:$0xff] }
 0x5f5   :  { %13311 = vmatpush.bf16.msra.mxu0 %v22643_v35  ;;  %13337 = vmatpush.bf16.msra.mxu2 %v22659_v48  ;;  %v22644_v35 = vld [vmem:[%s25592_s4 + $0xe40] sm:$0xff]  ;;  %v22675_v48 = vld [vmem:[%s25592_s4 + $0xf38] sm:$0xff] }
 0x5f6   :  { %13280 = vmatmul.bf16.vlgmr.msrb.gmra.mxu1 %v8476_v57  ;;  %13306 = vmatmul.bf16.vlgmr.msrb.gmra.mxu3 %v8478_v1  ;;  %v8418_v57 = vmul.f32 %v8354_v29, %v8226_v11  ;;  %v22699_v4 = vld [vmem:[%s25592_s4 + $0xff8] sm:$0xff]  ;;  %v8480_v1 = vpack.c.bf16 %v8416_v38, %v8416_v38  ;;  %v22680_v11 = vld [vmem:[%s25592_s4 + $0xf60] sm:$0xff] }
 0x5f7   :  { %13324 = vmatpush.bf16.msra.mxu1 %v22651_v51  ;;  %13350 = vmatpush.bf16.msra.mxu3 %v22667_v21  ;;  %v13086_v63 = vpop.f32.mrf.mxu2  ;;  %v22660_v51 = vld [vmem:[%s25592_s4 + $0xec0] sm:$0xff]  ;;  %v8417_v21 = vmul.f32 %v8353_v0, %v8225_v22  ;;  %v22693_v0 = vld [vmem:[%s25592_s4 + $0xfc8] sm:$0xff] }
 0x5f8   :  { %v25377_v26 = vadd.f32 %v13086_v63, %v13074_v42  ;;  %v22672_v42 = vld [vmem:[%s25592_s4 + $0xf20] sm:$0xff] }
 0x5f9   :  { %13312 = vmatpush.bf16.msra.mxu0 %v22642_v23  ;;  %13338 = vmatpush.bf16.msra.mxu2 %v22658_v53  ;;  %v25379_v13 = vpop.f32.mrf.mxu3  ;;  %v13062_v20 = vpop.f32.mrf.mxu0  ;;  %v22691_v23 = vld [vmem:[%s25592_s4 + $0xfb8] sm:$0xff]  ;;  %v22674_v53 = vld [vmem:[%s25592_s4 + $0xf30] sm:$0xff] }
 0x5fa   :  { %v13100_v6 = vadd.f32 %v25379_v13, %v25377_v26 }
 0x5fb   :  { %13325 = vmatpush.bf16.msra.mxu1 %v22650_v43  ;;  %13351 = vmatpush.bf16.msra.mxu3 %v22666_v45  ;;  %v13075_v50 = vpop.f32.mrf.mxu1  ;;  %v8479_v43 = vpack.c.bf16 %v8415_v41, %v8415_v41  ;;  %v8481_v45 = vpack.c.bf16 %v8417_v21, %v8417_v21  ;;  %v22676_v41 = vld [vmem:[%s25592_s4 + $0xf40] sm:$0xff] }
 0x5fc   :  { %v22692_v21 = vld [vmem:[%s25592_s4 + $0xfc0] sm:$0xff] }
 0x5fd   :  { %13313 = vmatpush.bf16.msra.mxu0 %v22641_v2  ;;  %13339 = vmatpush.bf16.msra.mxu2 %v22657_v25  ;;  %v22682_v2 = vld [vmem:[%s25592_s4 + $0xf70] sm:$0xff]  ;;  %v8482_v25 = vpack.c.bf16 %v8418_v57, %v8418_v57 }
 0x5ff   :  { %13326 = vmatpush.bf16.msra.mxu1 %v22649_v30  ;;  %13352 = vmatpush.bf16.msra.mxu3 %v22665_v10  ;;  %v13088_v40 = vpop.f32.mrf.mxu2  ;;  %v22690_v30 = vld [vmem:[%s25592_s4 + $0xfb0] sm:$0xff]  ;;  %v22673_v10 = vld [vmem:[%s25592_s4 + $0xf28] sm:$0xff] }
 0x601   :  { %13314 = vmatpush.bf16.msra.mxu0 %v22640_v24  ;;  %13340 = vmatpush.bf16.msra.mxu2 %v22656_v8  ;;  %v13101_v49 = vpop.f32.mrf.mxu3  ;;  %v8227_v24 = vmul.f32 0.5, %v24136_v52  ;;  %v22688_v52 = vld [vmem:[%s25592_s4 + $0xfa0] sm:$0xff] }
 0x603   :  { %13327 = vmatpush.bf16.msra.mxu1 %v22648_v37  ;;  %13353 = vmatpush.bf16.msra.mxu3 %v22664_v17  ;;  %v25459_v37 = vmul.f32 0.5, %v24155_v9  ;;  %v8229_v17 = vmul.f32 0.5, %v24248_v14  ;;  %v8230_v9 = vmul.f32 0.5, %v24275_v3  ;;  %22943 = vtanh.f32 %v8227_v24  ;;  %v22671_v14 = vld [vmem:[%s25592_s4 + $0xf18] sm:$0xff] }
 0x604   :  { %v22679_v3 = vld [vmem:[%s25592_s4 + $0xf58] sm:$0xff] }
 0x605   :  { %13315 = vmatpush.bf16.msra.mxu0 %v22639_v62  ;;  %13341 = vmatpush.bf16.msra.mxu2 %v22655_v15  ;;  %22945 = vtanh.f32 %v25459_v37  ;;  %v22687_v15 = vld [vmem:[%s25592_s4 + $0xf98] sm:$0xff] }
 0x606   :  { %22947 = vtanh.f32 %v8229_v17 }
 0x607   :  { %13328 = vmatpush.bf16.msra.mxu1 %v22647_v27  ;;  %13354 = vmatpush.bf16.msra.mxu3 %v22663_v32  ;;  %v22696_v27 = vld [vmem:[%s25592_s4 + $0xfe0] sm:$0xff]  ;;  %22949 = vtanh.f32 %v8230_v9  ;;  %v22695_v32 = vld [vmem:[%s25592_s4 + $0xfd8] sm:$0xff] }
 0x609   :  { %13316 = vmatpush.bf16.msra.mxu0 %v22638_v56  ;;  %13342 = vmatpush.bf16.msra.mxu2 %v22654_v54  ;;  %v22670_v56 = vld [vmem:[%s25592_s4 + $0xf10] sm:$0xff] }
 0x60b   :  { %13329 = vmatpush.bf16.msra.mxu1 %v22646_v60  ;;  %13355 = vmatpush.bf16.msra.mxu3 %v22662_v33  ;;  %v22944_v60 = vpop.eup %22943  ;;  %v22686_v33 = vld [vmem:[%s25592_s4 + $0xf90] sm:$0xff] }
 0x60c   :  { %v22946_v16 = vpop.eup %22945 }
 0x60d   :  { %13317 = vmatpush.bf16.msra.mxu0 %v22637_v28  ;;  %13343 = vmatpush.bf16.msra.mxu2 %v22653_v58  ;;  %v22948_v28 = vpop.eup %22947  ;;  %v8355_v58 = vadd.f32 1.0, %v22944_v60  ;;  %v8356_v40 = vadd.f32 1.0, %v22946_v16 }
 0x60e   :  { %v22950_v36 = vpop.eup %22949  ;;  %v8357_v39 = vadd.f32 1.0, %v22948_v28  ;;  %v20792_v28 = vld [vmem:[#allocation8 + $0x50] sm:$0xf] }
 0x60f   :  { %13330 = vmatpush.bf16.msra.mxu1 %v22645_v44  ;;  %13356 = vmatpush.bf16.msra.mxu3 %v22661_v5  ;;  %v22669_v44 = vld [vmem:[%s25592_s4 + $0xf08] sm:$0xff]  ;;  %v8358_v29 = vadd.f32 1.0, %v22950_v36  ;;  %v22715_v36 = vld [vmem:[#allocation8 + $0x74] sm:$0xf0] }
 0x610   :  { %v22685_v5 = vld [vmem:[%s25592_s4 + $0xf88] sm:$0xff]  ;;  %v8421_v38 = vmul.f32 %v8357_v39, %v8229_v17 }
 0x611   :  { %13318 = vmatpush.bf16.msra.mxu0 %v22636_v18  ;;  %13344 = vmatpush.bf16.msra.mxu2 %v22652_v59  ;;  %v13112_v55 = vpop.f32.mrf.mxu0  ;;  %v8419_v59 = vmul.f32 %v8355_v58, %v8227_v24  ;;  %v20793_v58 = vor.u32 %v22715_v36, %v20792_v28 }
 0x612   :  { %v13113_v8 = vadd.f32 %v13112_v55, %v13100_v6 }
 0x613   :  { %13331 = vmatpush.bf16.msra.mxu1 %v22644_v35  ;;  %13357 = vmatpush.bf16.msra.mxu3 %v22660_v51  ;;  %v13125_v22 = vpop.f32.mrf.mxu1  ;;  %v22668_v35 = vld [vmem:[%s25592_s4 + $0xf00] sm:$0xff] }
 0x614   :  { %13319 = vmatmul.bf16.vlgmr.msra.gmra.mxu0 %v8479_v43  ;;  %13345 = vmatmul.bf16.vlgmr.msra.gmra.mxu2 %v8481_v45  ;;  %v13126_v62 = vadd.f32 %v13125_v22, %v13113_v8  ;;  %v22684_v51 = vld [vmem:[%s25592_s4 + $0xf80] sm:$0xff] }
 0x615   :  { %13363 = vmatpush.bf16.msrb.mxu0 %v22675_v48  ;;  %13389 = vmatpush.bf16.msrb.mxu2 %v22691_v23  ;;  %v8420_v48 = vmul.f32 %v8356_v40, %v25459_v37  ;;  %v8483_v23 = vpack.c.bf16 %v8419_v59, %v8419_v59  ;;  %v20810_v40 = vld [vmem:[#allocation8 + $0x88] sm:$0xf0] }
 0x616   :  { %13332 = vmatmul.bf16.vlgmr.msra.gmra.mxu1 %v8480_v1  ;;  %13358 = vmatmul.bf16.vlgmr.msra.gmra.mxu3 %v8482_v25 }
 0x617   :  { %13376 = vmatpush.bf16.msrb.mxu1 %v22683_v19  ;;  %13402 = vmatpush.bf16.msrb.mxu3 %v22699_v4  ;;  %v13138_v63 = vpop.f32.mrf.mxu2  ;;  %v8422_v19 = vmul.f32 %v8358_v29, %v8230_v9  ;;  %v8484_v57 = vpack.c.bf16 %v8420_v48, %v8420_v48  ;;  %v8485_v4 = vpack.c.bf16 %v8421_v38, %v8421_v38  ;;  %v22705_v29 = vld [vmem:[#allocation8 + $0x24] sm:$0xf0]  ;;  %v22702_v48 = vld [vmem:[#allocation8 + $0x14] sm:$0xf]  ;;  %v20770_v38 = vld [vmem:[#allocation8 + $0x38] sm:$0xf0] }
 0x618   :  { %v13139_v26 = vadd.f32 %v13138_v63, %v13126_v62 }
 0x619   :  { %13364 = vmatpush.bf16.msrb.mxu0 %v22674_v53  ;;  %13390 = vmatpush.bf16.msrb.mxu2 %v22690_v30  ;;  %v13151_v13 = vpop.f32.mrf.mxu3  ;;  %v13114_v20 = vpop.f32.mrf.mxu0  ;;  %v8486_v43 = vpack.c.bf16 %v8422_v19, %v8422_v19 }
 0x61a   :  { %v13152_v54 = vadd.f32 %v13151_v13, %v13139_v26  ;;  %v22710_v13 = vld [vmem:[#allocation8 + $0x54] sm:$0xf]  ;;  %v20794_v20 = vld [vmem:[#allocation8 + $0x78] sm:$0xf0] }
 0x61b   :  { %13377 = vmatpush.bf16.msrb.mxu1 %v22682_v2  ;;  %13403 = vmatpush.bf16.msrb.mxu3 %v22698_v47  ;;  %v13127_v50 = vpop.f32.mrf.mxu1 }
 0x61d   :  { %13365 = vmatpush.bf16.msrb.mxu0 %v22673_v10  ;;  %13391 = vmatpush.bf16.msrb.mxu2 %v22689_v61 }
 0x61f   :  { %13378 = vmatpush.bf16.msrb.mxu1 %v22681_v7  ;;  %13404 = vmatpush.bf16.msrb.mxu3 %v22697_v46  ;;  %v13140_v49 = vpop.f32.mrf.mxu2 }
 0x620   :  { %v20752_v49 = vld [vmem:[#allocation8] sm:$0xf] }
 0x621   :  { %13366 = vmatpush.bf16.msrb.mxu0 %v22672_v42  ;;  %13392 = vmatpush.bf16.msrb.mxu2 %v22688_v52  ;;  %v13153_v18 = vpop.f32.mrf.mxu3 }
 0x622   :  { %v20768_v18 = vld [vmem:[#allocation8 + $0x10] sm:$0xf] }
 0x623   :  { %13379 = vmatpush.bf16.msrb.mxu1 %v22680_v11  ;;  %13405 = vmatpush.bf16.msrb.mxu3 %v22696_v27 }
 0x625   :  { %13367 = vmatpush.bf16.msrb.mxu0 %v22671_v14  ;;  %13393 = vmatpush.bf16.msrb.mxu2 %v22687_v15 }
 0x627   :  { %13380 = vmatpush.bf16.msrb.mxu1 %v22679_v3  ;;  %13406 = vmatpush.bf16.msrb.mxu3 %v22695_v32 }
 0x629   :  { %13368 = vmatpush.bf16.msrb.mxu0 %v22670_v56  ;;  %13394 = vmatpush.bf16.msrb.mxu2 %v22686_v33  ;;  %v20797_v56 = vor.u32 %v22710_v13, %v20794_v20  ;;  %v20754_v33 = vld [vmem:[#allocation8 + $0x28] sm:$0xf0] }
 0x62b   :  { %13381 = vmatpush.bf16.msrb.mxu1 %v22678_v12  ;;  %13407 = vmatpush.bf16.msrb.mxu3 %v22694_v34  ;;  %v22700_v12 = vld [vmem:[#allocation8 + $0x4] sm:$0xf] }
 0x62c   :  { %v20757_v34 = vor.u32 %v22700_v12, %v20754_v33 }
 0x62d   :  { %13369 = vmatpush.bf16.msrb.mxu0 %v22669_v44  ;;  %13395 = vmatpush.bf16.msrb.mxu2 %v22685_v5  ;;  %v20808_v44 = vld [vmem:[#allocation8 + $0x60] sm:$0xf]  ;;  %v22712_v5 = vld [vmem:[#allocation8 + $0x64] sm:$0xf] }
 0x62f   :  { %13382 = vmatpush.bf16.msrb.mxu1 %v22677_v31  ;;  %13408 = vmatpush.bf16.msrb.mxu3 %v22693_v0  ;;  %v22717_v31 = vld [vmem:[#allocation8 + $0x84] sm:$0xf0]  ;;  %v20813_v0 = vor.u32 %v22712_v5, %v20810_v40  ;;  %v22713_v5 = vld [vmem:[#allocation8 + $0x6c] sm:$0xf] }
 0x630   :  { %v20809_v39 = vor.u32 %v22717_v31, %v20808_v44  ;;  %v20816_v44 = vld [vmem:[#allocation8 + $0x68] sm:$0xf]  ;;  %v22718_v31 = vld [vmem:[#allocation8 + $0x8c] sm:$0xf0] }
 0x631   :  { %13370 = vmatpush.bf16.msrb.mxu0 %v22668_v35  ;;  %13396 = vmatpush.bf16.msrb.mxu2 %v22684_v51  ;;  %v13164_v53 = vpop.f32.mrf.mxu0  ;;  %v22707_v51 = vld [vmem:[#allocation8 + $0x34] sm:$0xf0] }
 0x632   :  { %v13165_v1 = vadd.f32 %v13164_v53, %v13152_v54  ;;  %v20800_v53 = vld [vmem:[#allocation8 + $0x58] sm:$0xf] }
 0x633   :  { %13383 = vmatpush.bf16.msrb.mxu1 %v22676_v41  ;;  %13409 = vmatpush.bf16.msrb.mxu3 %v22692_v21  ;;  %v13177_v45 = vpop.f32.mrf.mxu1  ;;  %v20753_v41 = vor.u32 %v22705_v29, %v20752_v49  ;;  %v22708_v29 = vld [vmem:[#allocation8 + $0x3c] sm:$0xf0] }
 0x634   :  { %13371 = vmatmul.bf16.vlgmr.msrb.gmra.mxu0 %v8483_v23  ;;  %13397 = vmatmul.bf16.vlgmr.msrb.gmra.mxu2 %v8485_v4  ;;  %v13178_v2 = vadd.f32 %v13177_v45, %v13165_v1  ;;  %v20769_v23 = vor.u32 %v22707_v51, %v20768_v18  ;;  %v22716_v1 = vld [vmem:[#allocation8 + $0x7c] sm:$0xf0]  ;;  %v22703_v18 = vld [vmem:[#allocation8 + $0x1c] sm:$0xf] }
 0x635   :  { %13583 = vmatpush.bf16.msra.mxu2 %v20797_v56  ;;  %13622 = vmatpush.bf16.msra.mxu0 %v20809_v39  ;;  %v20801_v45 = vor.u32 %v22716_v1, %v20800_v53  ;;  %v13697_v53 = vld [vmem:[#allocation11 + $0x10] sm:$0xff]  ;;  %v22725_v1 = vld [vmem:[#allocation16 + $0x28] sm:$0xff] }
 0x636   :  { %13384 = vmatmul.bf16.vlgmr.msrb.gmra.mxu1 %v8484_v57  ;;  %13410 = vmatmul.bf16.vlgmr.msrb.gmra.mxu3 %v8486_v43  ;;  %v20773_v57 = vor.u32 %v22702_v48, %v20770_v38  ;;  %v13700_v38 = vld [vmem:[#allocation11 + $0x28] sm:$0x7] }
 0x637   :  { %v13190_v30 = vpop.f32.mrf.mxu2  ;;  %13570 = vmatpush.bf16.msra.mxu3 %v20793_v58  ;;  %13635 = vmatpush.bf16.msra.mxu1 %v20813_v0  ;;  %v20817_v0 = vor.u32 %v22718_v31, %v20816_v44  ;;  %v22743_v44 = vld [vmem:[#allocation16 + $0xb8] sm:$0xff] }
 0x638   :  { %v13191_v25 = vadd.f32 %v13190_v30, %v13178_v2  ;;  %v20760_v30 = vld [vmem:[#allocation8 + $0x8] sm:$0xf] }
 0x639   :  { %v13203_v47 = vpop.f32.mrf.mxu3  ;;  %v13166_v10 = vpop.f32.mrf.mxu0  ;;  %13584 = vmatpush.bf16.msra.mxu2 %v20757_v34  ;;  %13623 = vmatpush.bf16.msra.mxu0 %v20769_v23  ;;  %v13699_v23 = vld [vmem:[#allocation11 + $0x20] sm:$0xff] }
 0x63a   :  { %v13204_v61 = vadd.f32 %v13203_v47, %v13191_v25  ;;  %v22706_v25 = vld [vmem:[#allocation8 + $0x2c] sm:$0xf0]  ;;  %v22711_v47 = vld [vmem:[#allocation8 + $0x5c] sm:$0xf] }
 0x63b   :  { %v13179_v7 = vpop.f32.mrf.mxu1  ;;  %13571 = vmatpush.bf16.msra.mxu3 %v20753_v41  ;;  %13636 = vmatpush.bf16.msra.mxu1 %v20773_v57  ;;  %v20761_v10 = vor.u32 %v22706_v25, %v20760_v30  ;;  %v22726_v57 = vld [vmem:[#allocation16 + $0x30] sm:$0xff]  ;;  %v22724_v25 = vld [vmem:[#allocation16 + $0x20] sm:$0xff] }
 0x63c   :  { %v20802_v7 = vld [vmem:[#allocation8 + $0x80] sm:$0xf0]  ;;  %v13695_v30 = vld [vmem:[#allocation11] sm:$0xff] }
 0x63d   :  { %13596 = vmatpush.bf16.msrb.mxu2 %v20801_v45  ;;  %v13696_v45 = vld [vmem:[#allocation11 + $0x8] sm:$0xff] }
 0x63f   :  { %v13192_v6 = vpop.f32.mrf.mxu2 }
 0x640   :  { %v22719_v6 = vld [vmem:[#allocation8 + $0x94] sm:$0xf0] }
 0x641   :  { %v13205_v46 = vpop.f32.mrf.mxu3  ;;  %13597 = vmatpush.bf16.msrb.mxu2 %v20761_v10  ;;  %v22723_v10 = vld [vmem:[#allocation16 + $0x18] sm:$0xff] }
 0x651   :  { %v13216_v24 = vpop.f32.mrf.mxu0 }
 0x652   :  { %v13217_v55 = vadd.f32 %v13216_v24, %v13204_v61  ;;  %v20824_v61 = vld [vmem:[#allocation8 + $0x70] sm:$0xf]  ;;  %v20805_v24 = vor.u32 %v22711_v47, %v20802_v7  ;;  %v22732_v47 = vld [vmem:[#allocation16 + $0x60] sm:$0xff]  ;;  %v22731_v7 = vld [vmem:[#allocation16 + $0x58] sm:$0xff] }
 0x653   :  { %v13229_v37 = vpop.f32.mrf.mxu1 }
 0x654   :  { %v13230_v8 = vadd.f32 %v13229_v37, %v13217_v55  ;;  %v20825_v55 = vor.u32 %v22719_v6, %v20824_v61  ;;  %v22714_v37 = vld [vmem:[#allocation8 + $0x74] sm:$0xf]  ;;  %13609 = vmatpush.bf16.msrb.mxu3 %v20805_v24  ;;  %v22729_v24 = vld [vmem:[#allocation16 + $0x48] sm:$0xff] }
 0x655   :  { %v22722_v61 = vld [vmem:[#allocation16 + $0x10] sm:$0xff] }
 0x656   :  { %13674 = vmatpush.bf16.msrb.mxu0 %v20825_v55  ;;  %v22730_v6 = vld [vmem:[#allocation16 + $0x50] sm:$0xff]  ;;  %v22720_v55 = vld [vmem:[#allocation16] sm:$0xff] }
 0x657   :  { %v13242_v22 = vpop.f32.mrf.mxu2 }
 0x658   :  { %v13243_v42 = vadd.f32 %v13242_v22, %v13230_v8  ;;  %v20826_v8 = vld [vmem:[#allocation8 + $0x98] sm:$0xf0]  ;;  %v22701_v22 = vld [vmem:[#allocation8 + $0xc] sm:$0xf] }
 0x659   :  { %v13255_v17 = vpop.f32.mrf.mxu3  ;;  %v13218_v11 = vpop.f32.mrf.mxu0 }
 0x65a   :  { %v13256_v9 = vadd.f32 %v13255_v17, %v13243_v42  ;;  %v20829_v17 = vor.u32 %v22714_v37, %v20826_v8  ;;  %v20762_v11 = vld [vmem:[#allocation8 + $0x30] sm:$0xf0]  ;;  %v22728_v37 = vld [vmem:[#allocation16 + $0x40] sm:$0xff] }
 0x65b   :  { %v13231_v52 = vpop.f32.mrf.mxu1  ;;  %v22759_v8 = vld [vmem:[#allocation16 + $0x138] sm:$0xff] }
 0x65c   :  { %v20784_v52 = vld [vmem:[#allocation8 + $0x20] sm:$0xf]  ;;  %13687 = vmatpush.bf16.msrb.mxu1 %v20829_v17  ;;  %v22758_v17 = vld [vmem:[#allocation16 + $0x130] sm:$0xff] }
 0x65f   :  { %v13244_v62 = vpop.f32.mrf.mxu2 }
 0x661   :  { %v13257_v27 = vpop.f32.mrf.mxu3 }
 0x662   :  { %v20765_v27 = vor.u32 %v22701_v22, %v20762_v11  ;;  %v22767_v22 = vld [vmem:[#allocation16 + $0x178] sm:$0xff]  ;;  %v22766_v11 = vld [vmem:[#allocation16 + $0x170] sm:$0xff] }
 0x664   :  { %13610 = vmatpush.bf16.msrb.mxu3 %v20765_v27  ;;  %v22764_v27 = vld [vmem:[#allocation16 + $0x160] sm:$0xff] }
 0x671   :  { %v13268_v14 = vpop.f32.mrf.mxu0 }
 0x672   :  { %v13269_v35 = vadd.f32 %v13268_v14, %v13256_v9  ;;  %v22709_v9 = vld [vmem:[#allocation8 + $0x44] sm:$0xf0] }
 0x673   :  { %v13281_v3 = vpop.f32.mrf.mxu1  ;;  %v20785_v14 = vor.u32 %v22709_v9, %v20784_v52  ;;  %v22757_v52 = vld [vmem:[#allocation16 + $0x128] sm:$0xff] }
 0x674   :  { %v13282_v43 = vadd.f32 %v13281_v3, %v13269_v35  ;;  %v22704_v3 = vld [vmem:[#allocation8 + $0x24] sm:$0xf] }
 0x675   :  { %13675 = vmatpush.bf16.msrb.mxu0 %v20785_v14  ;;  %v20778_v35 = vld [vmem:[#allocation8 + $0x40] sm:$0xf0]  ;;  %v22755_v14 = vld [vmem:[#allocation16 + $0x118] sm:$0xff] }
 0x676   :  { %v20781_v48 = vor.u32 %v22703_v18, %v20778_v35  ;;  %v22765_v9 = vld [vmem:[#allocation16 + $0x168] sm:$0xff]  ;;  %v22791_v35 = vld [vmem:[#allocation16 + $0x238] sm:$0xff] }
 0x677   :  { %v13294_v15 = vpop.f32.mrf.mxu2 }
 0x678   :  { %v13295_v2 = vadd.f32 %v13294_v15, %v13282_v43  ;;  %v20786_v15 = vld [vmem:[#allocation8 + $0x48] sm:$0xf0] }
 0x679   :  { %v25525_v32 = vpop.f32.mrf.mxu3  ;;  %v13270_v63 = vpop.f32.mrf.mxu0  ;;  %v22734_v43 = vld [vmem:[#allocation16 + $0x70] sm:$0xff] }
 0x67a   :  { %v13308_v62 = vadd.f32 %v25525_v32, %v13295_v2  ;;  %v20789_v63 = vor.u32 %v22704_v3, %v20786_v15  ;;  %v22733_v2 = vld [vmem:[#allocation16 + $0x68] sm:$0xff]  ;;  %v22763_v3 = vld [vmem:[#allocation16 + $0x158] sm:$0xff]  ;;  %v22754_v15 = vld [vmem:[#allocation16 + $0x110] sm:$0xff] }
 0x67b   :  { %v13283_v26 = vpop.f32.mrf.mxu1 }
 0x67c   :  { %13688 = vmatpush.bf16.msrb.mxu1 %v20789_v63  ;;  %v22762_v63 = vld [vmem:[#allocation16 + $0x150] sm:$0xff] }
 0x67f   :  { %v13296_v50 = vpop.f32.mrf.mxu2 }
 0x681   :  { %v13309_v60 = vpop.f32.mrf.mxu3 }
 0x691   :  { %v25527_v54 = vpop.f32.mrf.mxu0 }
 0x692   :  { %v13321_v26 = vadd.f32 %v25527_v54, %v13308_v62  ;;  %v20818_v54 = vld [vmem:[#allocation8 + $0x90] sm:$0xf0]  ;;  %v22756_v62 = vld [vmem:[#allocation16 + $0x120] sm:$0xff] }
 0x693   :  { %v25529_v16 = vpop.f32.mrf.mxu1  ;;  %v20821_v49 = vor.u32 %v22713_v5, %v20818_v54  ;;  %v25568_v54 = vld [vmem:[#allocation10] sm:$0xff] }
 0x694   :  { %v13334_v13 = vadd.f32 %v25529_v16, %v13321_v26  ;;  %v20776_v16 = vld [vmem:[#allocation8 + $0x18] sm:$0xf]  ;;  %v22753_v26 = vld [vmem:[#allocation16 + $0x108] sm:$0xff] }
 0x695   :  { %v20777_v51 = vor.u32 %v22708_v29, %v20776_v16 }
 0x697   :  { %v13346_v59 = vpop.f32.mrf.mxu2 }
 0x698   :  { %v13347_v20 = vadd.f32 %v13346_v59, %v13334_v13  ;;  %v22761_v13 = vld [vmem:[#allocation16 + $0x148] sm:$0xff] }
 0x699   :  { %v13359_v21 = vpop.f32.mrf.mxu3  ;;  %v13322_v19 = vpop.f32.mrf.mxu0 }
 0x69a   :  { %v13360_v50 = vadd.f32 %v13359_v21, %v13347_v20  ;;  %v22727_v21 = vld [vmem:[#allocation16 + $0x38] sm:$0xff]  ;;  %v22752_v20 = vld [vmem:[#allocation16 + $0x100] sm:$0xff] }
 0x69b   :  { %v13335_v4 = vpop.f32.mrf.mxu1  ;;  %v22735_v19 = vld [vmem:[#allocation16 + $0x78] sm:$0xff] }
 0x69c   :  { %v13698_v4 = vld [vmem:[#allocation11 + $0x18] sm:$0xff] }
 0x69f   :  { %v13348_v46 = vpop.f32.mrf.mxu2 }
 0x6a0   :  { %v22721_v46 = vld [vmem:[#allocation16 + $0x8] sm:$0xff] }
 0x6a1   :  { %v13361_v42 = vpop.f32.mrf.mxu3 }
 0x6a2   :  { %v13694_v42 = vld [vmem:[#allocation2] sm:$0x3] }
 0x6b1   :  { %v13372_v56 = vpop.f32.mrf.mxu0 }
 0x6b2   :  { %v13373_v60 = vadd.f32 %v13372_v56, %v13360_v50  ;;  %v22760_v50 = vld [vmem:[#allocation16 + $0x140] sm:$0xff]  ;;  %v13741_v56 = vld [vmem:[%s25597_s9 + $0x38] sm:$0xff] }
 0x6b3   :  { %v13385_v32 = vpop.f32.mrf.mxu1 }
 0x6b4   :  { %v13386_v12 = vadd.f32 %v13385_v32, %v13373_v60  ;;  %v13740_v32 = vld [vmem:[%s25597_s9 + $0x30] sm:$0xff]  ;;  %v13739_v60 = vld [vmem:[%s25597_s9 + $0x28] sm:$0xff] }
 0x6b7   :  { %v13398_v33 = vpop.f32.mrf.mxu2 }
 0x6b8   :  { %v13399_v34 = vadd.f32 %v13398_v33, %v13386_v12  ;;  %v13738_v12 = vld [vmem:[%s25597_s9 + $0x20] sm:$0xff]  ;;  %v13737_v33 = vld [vmem:[%s25597_s9 + $0x18] sm:$0xff] }
 0x6b9   :  { %v13411_v28 = vpop.f32.mrf.mxu3  ;;  %v13374_v36 = vpop.f32.mrf.mxu0 }
 0x6ba   :  { %v13412_v40 = vadd.f32 %v13411_v28, %v13399_v34  ;;  %v13736_v34 = vld [vmem:[%s25597_s9 + $0x10] sm:$0xff]  ;;  %v13735_v28 = vld [vmem:[%s25597_s9 + $0x8] sm:$0xff]  ;;  %v13734_v36 = vld [vmem:[%s25597_s9] sm:$0xff]  ;;  %s23286_s9 = smov [#allocation20]  }
 0x6bb   :  { %v13387_v58 = vpop.f32.mrf.mxu1  ;;  %s14589_s16 = sshll.u32 %s23286_s9, 4  ;;  %s14590_s16 = int_to_ptr.vmem [resolvable:$true] %s14589_s16 }
 0x6bc   :  { %v13415_v39 = vpack.c.bf16 %v13412_v40, %v13412_v40  ;;  %v22742_v58 = vld [vmem:[#allocation16 + $0xb0] sm:$0xff]  ;;  %v13440_v40 = vperm.slane %v25568_v54, 0 }
 0x6be   :  { %20830 = vmatmul.msk.bf16.vlgmr.msra.gmra.mxu3 %vm13560_vm0, %v13415_v39  ;;  %20831 = vmatmul.msk.bf16.vlgmr.msra.gmra.mxu2 %vm13560_vm0, %v13415_v39 }
 0x6bf   :  { %20834 = vmatmul.msk.bf16.vlgmr.msra.gmra.mxu0 %vm13560_vm0, %v13415_v39  ;;  %20835 = vmatmul.msk.bf16.vlgmr.msra.gmra.mxu1 %vm13560_vm0, %v13415_v39  ;;  %v13400_v59 = vpop.f32.mrf.mxu2 }
 0x6c0   :  { %13648 = vmatpush.bf16.msra.mxu2 %v20817_v0  ;;  %13661 = vmatpush.bf16.msra.mxu3 %v20821_v49  ;;  %v22741_v0 = vld [vmem:[#allocation16 + $0xa8] sm:$0xff]  ;;  %v22799_v59 = vld [vmem:[#allocation16 + $0x278] sm:$0xff] }
 0x6c1   :  { %v13413_v41 = vpop.f32.mrf.mxu3  ;;  %14448 = vmatpush.bf16.msra.mxu0 %v22727_v21  ;;  %14461 = vmatpush.bf16.msra.mxu1 %v22735_v19  ;;  %v22740_v21 = vld [vmem:[#allocation16 + $0xa0] sm:$0xff]  ;;  %v22790_v19 = vld [vmem:[#allocation16 + $0x230] sm:$0xff] }
 0x6c4   :  { %13649 = vmatpush.bf16.msra.mxu2 %v20777_v51  ;;  %13662 = vmatpush.bf16.msra.mxu3 %v20781_v48 }
 0x6c5   :  { %14449 = vmatpush.bf16.msra.mxu0 %v22726_v57  ;;  %14462 = vmatpush.bf16.msra.mxu1 %v22734_v43  ;;  %v22739_v57 = vld [vmem:[#allocation16 + $0x98] sm:$0xff] }
 0x6c9   :  { %14450 = vmatpush.bf16.msra.mxu0 %v22725_v1  ;;  %14463 = vmatpush.bf16.msra.mxu1 %v22733_v2  ;;  %v22797_v1 = vld [vmem:[#allocation16 + $0x268] sm:$0xff]  ;;  %v13445_v2 = vperm.slane %v25568_v54, 5 }
 0x6cd   :  { %14451 = vmatpush.bf16.msra.mxu0 %v22724_v25  ;;  %14464 = vmatpush.bf16.msra.mxu1 %v22732_v47  ;;  %v22738_v47 = vld [vmem:[#allocation16 + $0x90] sm:$0xff] }
 0x6ce   :  { %20832 = vmatmul.msk.bf16.vlgmr.msrb.gmra.mxu2 %vm13560_vm0, %v13415_v39  ;;  %20833 = vmatmul.msk.bf16.vlgmr.msrb.gmra.mxu3 %vm13560_vm0, %v13415_v39 }
 0x6cf   :  { %20838 = vmatmul.msk.bf16.vlgmr.msrb.gmra.mxu0 %vm13560_vm0, %v13415_v39  ;;  %20839 = vmatmul.msk.bf16.vlgmr.msrb.gmra.mxu1 %vm13560_vm0, %v13415_v39 }
 0x6d0   :  { %20840 = vmatpush.msk.msrb.mxu2 %vm13709_vm1, %v13700_v38  ;;  %13758 = vmatpush.msrb.mxu3 %v13741_v56 }
 0x6d1   :  { %14452 = vmatpush.bf16.msra.mxu0 %v22723_v10  ;;  %14465 = vmatpush.bf16.msra.mxu1 %v22731_v7  ;;  %v22788_v10 = vld [vmem:[#allocation16 + $0x220] sm:$0xff] }
 0x6d2   :  { %13724 = vmatpush.msrb.mxu2 %v13699_v23  ;;  %13759 = vmatpush.msrb.mxu3 %v13740_v32  ;;  %v22798_v23 = vld [vmem:[#allocation16 + $0x270] sm:$0xff]  ;;  %v22796_v7 = vld [vmem:[#allocation16 + $0x260] sm:$0xff] }
 0x6d4   :  { %13725 = vmatpush.msrb.mxu2 %v13698_v4  ;;  %13760 = vmatpush.msrb.mxu3 %v13739_v60 }
 0x6d5   :  { %14453 = vmatpush.bf16.msra.mxu0 %v22722_v61  ;;  %14466 = vmatpush.bf16.msra.mxu1 %v22730_v6 }
 0x6d6   :  { %13726 = vmatpush.msrb.mxu2 %v13697_v53  ;;  %13761 = vmatpush.msrb.mxu3 %v13738_v12  ;;  %v22789_v53 = vld [vmem:[#allocation16 + $0x228] sm:$0xff] }
 0x6d8   :  { %13727 = vmatpush.msrb.mxu2 %v13696_v45  ;;  %13762 = vmatpush.msrb.mxu3 %v13737_v33  ;;  %v13444_v45 = vperm.slane %v25568_v54, 4 }
 0x6d9   :  { %14454 = vmatpush.bf16.msra.mxu0 %v22721_v46  ;;  %14467 = vmatpush.bf16.msra.mxu1 %v22729_v24  ;;  %v22737_v46 = vld [vmem:[#allocation16 + $0x88] sm:$0xff] }
 0x6da   :  { %13728 = vmatpush.msrb.mxu2 %v13695_v30  ;;  %13763 = vmatpush.msrb.mxu3 %v13736_v34 }
 0x6dc   :  { %13764 = vmatpush.msrb.mxu3 %v13735_v28 }
 0x6dd   :  { %14455 = vmatpush.bf16.msra.mxu0 %v22720_v55  ;;  %14468 = vmatpush.bf16.msra.mxu1 %v22728_v37  ;;  %v22787_v37 = vld [vmem:[#allocation16 + $0x218] sm:$0xff] }
 0x6de   :  { %20836 = vmatmul.msk.bf16.vlgmr.msra.gmra.mxu2 %vm13560_vm0, %v13415_v39  ;;  %20837 = vmatmul.msk.bf16.vlgmr.msra.gmra.mxu3 %vm13560_vm0, %v13415_v39  ;;  %v13441_v39 = vperm.slane %v25568_v54, 1 }
 0x6df   :  { %13765 = vmatpush.msrb.mxu3 %v13734_v36 }
 0x6e1   :  { %14500 = vmatpush.bf16.msrb.mxu0 %v22759_v8  ;;  %14513 = vmatpush.bf16.msrb.mxu1 %v22767_v22  ;;  %v22795_v8 = vld [vmem:[#allocation16 + $0x258] sm:$0xff] }
 0x6e2   :  { %14474 = vmatpush.bf16.msra.mxu3 %v22743_v44  ;;  %v22820_v44 = vld [vmem:[#allocation13] ss:$0 sm:$0xff] }
 0x6e5   :  { %14501 = vmatpush.bf16.msrb.mxu0 %v22758_v17  ;;  %14514 = vmatpush.bf16.msrb.mxu1 %v22766_v11 }
 0x6e6   :  { %14475 = vmatpush.bf16.msra.mxu3 %v22742_v58 }
 0x6e9   :  { %14502 = vmatpush.bf16.msrb.mxu0 %v22757_v52  ;;  %14515 = vmatpush.bf16.msrb.mxu1 %v22765_v9  ;;  %v22736_v52 = vld [vmem:[#allocation16 + $0x80] sm:$0xff]  ;;  %v22786_v9 = vld [vmem:[#allocation16 + $0x210] sm:$0xff] }
 0x6ea   :  { %14476 = vmatpush.bf16.msra.mxu3 %v22741_v0  ;;  %v22774_v0 = vld [vmem:[#allocation16 + $0x1b0] sm:$0xff] }
 0x6ed   :  { %14503 = vmatpush.bf16.msrb.mxu0 %v22756_v62  ;;  %14516 = vmatpush.bf16.msrb.mxu1 %v22764_v27  ;;  %v22794_v62 = vld [vmem:[#allocation16 + $0x250] sm:$0xff]  ;;  %v13437_v27 = vld [vmem:[#allocation10 + $0x8] sm:$0x3] }
 0x6ee   :  { %20841 = vmatmul.msk.f32.vlgmr.msrb.gmra.mxu2 %vm13705_vm2, %v13694_v42  ;;  %14477 = vmatpush.bf16.msra.mxu3 %v22740_v21 }
 0x6f1   :  { %14504 = vmatpush.bf16.msrb.mxu0 %v22755_v14  ;;  %14517 = vmatpush.bf16.msrb.mxu1 %v22763_v3 }
 0x6f2   :  { %14478 = vmatpush.bf16.msra.mxu3 %v22739_v57  ;;  %v13942_v57 = vld [vmem:[#allocation17 + $0x8] sm:$0xff] }
 0x6f5   :  { %14505 = vmatpush.bf16.msrb.mxu0 %v22754_v15  ;;  %14518 = vmatpush.bf16.msrb.mxu1 %v22762_v63  ;;  %v22785_v15 = vld [vmem:[#allocation16 + $0x208] sm:$0xff] }
 0x6f6   :  { %14479 = vmatpush.bf16.msra.mxu3 %v22738_v47  ;;  %v22793_v63 = vld [vmem:[#allocation16 + $0x248] sm:$0xff]  ;;  %v22748_v47 = vld [vmem:[#allocation16 + $0xe0] sm:$0xff] }
 0x6f9   :  { %14506 = vmatpush.bf16.msrb.mxu0 %v22753_v26  ;;  %14519 = vmatpush.bf16.msrb.mxu1 %v22761_v13  ;;  %v13448_v26 = vperm.slane %v13437_v27, 0  ;;  %v13449_v13 = vperm.slane %v13437_v27, 1  ;;  %v22783_v27 = vld [vmem:[#allocation16 + $0x1f8] sm:$0xff] }
 0x6fa   :  { %14480 = vmatpush.bf16.msra.mxu3 %v22737_v46  ;;  %v22745_v46 = vld [vmem:[#allocation16 + $0xc8] sm:$0xff] }
 0x6fd   :  { %14507 = vmatpush.bf16.msrb.mxu0 %v22752_v20  ;;  %14520 = vmatpush.bf16.msrb.mxu1 %v22760_v50  ;;  %v22784_v20 = vld [vmem:[#allocation16 + $0x200] sm:$0xff] }
 0x6fe   :  { %14481 = vmatpush.bf16.msra.mxu3 %v22736_v52  ;;  %v22792_v50 = vld [vmem:[#allocation16 + $0x240] sm:$0xff]  ;;  %v22821_v52 = vld [vmem:[#allocation14] ss:$0 sm:$0xff] }
 0x73c   :  { %v13625_v31 = vpop.f32.mrf.mxu0  ;;  %v13638_v5 = vpop.f32.mrf.mxu1 }
 0x73d   :  { %v13626_v61 = vadd.f32 %v13625_v31, %v13444_v45  ;;  %v13639_v6 = vadd.f32 %v13638_v5, %v13445_v2  ;;  %v22775_v5 = vld [vmem:[#allocation16 + $0x1b8] sm:$0xff]  ;;  %v22750_v45 = vld [vmem:[#allocation16 + $0xf0] sm:$0xff]  ;;  %v22749_v2 = vld [vmem:[#allocation16 + $0xe8] sm:$0xff] }
 0x73f   :  { %v13775_v22 = vpack.c.bf16 %v13626_v61, %v13626_v61  ;;  %v13776_v42 = vpack.c.bf16 %v13639_v6, %v13639_v6 }
 0x741   :  { %v13573_v16 = vpop.f32.mrf.mxu3  ;;  %v13586_v49 = vpop.f32.mrf.mxu2 }
 0x742   :  { %v13574_v29 = vadd.f32 %v13573_v16, %v13440_v40  ;;  %v13587_v18 = vadd.f32 %v13586_v49, %v13441_v39  ;;  %v13442_v40 = vperm.slane %v25568_v54, 2  ;;  %v22773_v49 = vld [vmem:[#allocation16 + $0x1a8] sm:$0xff] }
 0x744   :  { %v13771_v41 = vpack.c.bf16 %v13574_v29, %v13574_v29  ;;  %v13772_v51 = vpack.c.bf16 %v13587_v18, %v13587_v18  ;;  %v13627_v48 = vpop.f32.mrf.mxu0  ;;  %v13640_v38 = vpop.f32.mrf.mxu1  ;;  %v22772_v18 = vld [vmem:[#allocation16 + $0x1a0] sm:$0xff] }
 0x745   :  { %v22768_v48 = vld [vmem:[#allocation16 + $0x180] sm:$0xff] }
 0x746   :  { %14456 = vmatmul.bf16.vlgmr.msra.gmra.mxu0 %v13771_v41  ;;  %14469 = vmatmul.bf16.vlgmr.msra.gmra.mxu1 %v13772_v51  ;;  %v22769_v41 = vld [vmem:[#allocation16 + $0x188] sm:$0xff]  ;;  %v13446_v51 = vperm.slane %v25568_v54, 6 }
 0x747   :  { %14552 = vmatpush.bf16.msra.mxu0 %v22791_v35  ;;  %14565 = vmatpush.bf16.msra.mxu1 %v22799_v59  ;;  %v22771_v35 = vld [vmem:[#allocation16 + $0x198] sm:$0xff]  ;;  %v22770_v59 = vld [vmem:[#allocation16 + $0x190] sm:$0xff] }
 0x749   :  { %v13575_v4 = vpop.f32.mrf.mxu3  ;;  %v13588_v43 = vpop.f32.mrf.mxu2 }
 0x74a   :  { %v13941_v4 = vld [vmem:[#allocation17] sm:$0xff]  ;;  %v22751_v43 = vld [vmem:[#allocation16 + $0xf8] sm:$0xff] }
 0x74b   :  { %14553 = vmatpush.bf16.msra.mxu0 %v22790_v19  ;;  %14566 = vmatpush.bf16.msra.mxu1 %v22798_v23  ;;  %v13944_v19 = vld [vmem:[#allocation17 + $0x18] sm:$0xff]  ;;  %v13943_v23 = vld [vmem:[#allocation17 + $0x10] sm:$0xff] }
 0x74c   :  { %v13677_v30 = vpop.f32.mrf.mxu0  ;;  %v13690_v25 = vpop.f32.mrf.mxu1  ;;  %13960 = vmatpush.msra.mxu2 %v13944_v19 }
 0x74d   :  { %v13678_v56 = vadd.f32 %v13677_v30, %v13448_v26  ;;  %v13691_v32 = vadd.f32 %v13690_v25, %v13449_v13  ;;  %v22781_v13 = vld [vmem:[#allocation16 + $0x1e8] sm:$0xff] }
 0x74e   :  { %13961 = vmatpush.msra.mxu2 %v13943_v23 }
 0x74f   :  { %14554 = vmatpush.bf16.msra.mxu0 %v22789_v53  ;;  %14567 = vmatpush.bf16.msra.mxu1 %v22797_v1  ;;  %v13779_v33 = vpack.c.bf16 %v13678_v56, %v13678_v56  ;;  %v13780_v34 = vpack.c.bf16 %v13691_v32, %v13691_v32  ;;  %v22779_v32 = vld [vmem:[#allocation16 + $0x1d8] sm:$0xff] }
 0x750   :  { %13962 = vmatpush.msra.mxu2 %v13942_v57 }
 0x751   :  { %v13599_v24 = vpop.f32.mrf.mxu2  ;;  %v25574_v55 = vpop.f32.mrf.mxu3 }
 0x752   :  { %v13600_v16 = vadd.f32 %v13599_v24, %v13442_v40  ;;  %13963 = vmatpush.msra.mxu2 %v13941_v4 }
 0x753   :  { %14555 = vmatpush.bf16.msra.mxu0 %v22788_v10  ;;  %14568 = vmatpush.bf16.msra.mxu1 %v22796_v7  ;;  %v22747_v10 = vld [vmem:[#allocation16 + $0xd8] sm:$0xff]  ;;  %v22746_v7 = vld [vmem:[#allocation16 + $0xd0] sm:$0xff] }
 0x754   :  { %v13679_v17 = vpop.f32.mrf.mxu0  ;;  %v13692_v11 = vpop.f32.mrf.mxu1  ;;  %v13773_v29 = vpack.c.bf16 %v13600_v16, %v13600_v16  ;;  %14487 = vmatpush.bf16.msrb.mxu2 %v22751_v43 }
 0x756   :  { %14508 = vmatmul.bf16.vlgmr.msrb.gmra.mxu0 %v13775_v22  ;;  %14521 = vmatmul.bf16.vlgmr.msrb.gmra.mxu1 %v13776_v42 }
 0x757   :  { %14556 = vmatpush.bf16.msra.mxu0 %v22787_v37  ;;  %14569 = vmatpush.bf16.msra.mxu1 %v22795_v8  ;;  %v22744_v8 = vld [vmem:[#allocation16 + $0xc0] sm:$0xff] }
 0x758   :  { %14488 = vmatpush.bf16.msrb.mxu2 %v22750_v45 }
 0x759   :  { %v13601_v14 = vpop.f32.mrf.mxu2  ;;  %v13614_v3 = vpop.f32.mrf.mxu3 }
 0x75a   :  { %v13443_v14 = vperm.slane %v25568_v54, 3 }
 0x75b   :  { %14557 = vmatpush.bf16.msra.mxu0 %v22786_v9  ;;  %14570 = vmatpush.bf16.msra.mxu1 %v22794_v62 }
 0x75c   :  { %14489 = vmatpush.bf16.msrb.mxu2 %v22749_v2 }
 0x75f   :  { %14558 = vmatpush.bf16.msra.mxu0 %v22785_v15  ;;  %14571 = vmatpush.bf16.msra.mxu1 %v22793_v63  ;;  %v22782_v15 = vld [vmem:[#allocation16 + $0x1f0] sm:$0xff]  ;;  %v13613_v63 = vadd.f32 %v25574_v55, %v13443_v14 }
 0x760   :  { %14490 = vmatpush.bf16.msrb.mxu2 %v22748_v47 }
 0x761   :  { %v13651_v60 = vpop.f32.mrf.mxu2  ;;  %v25576_v12 = vpop.f32.mrf.mxu3 }
 0x762   :  { %v13652_v38 = vadd.f32 %v13651_v60, %v13446_v51  ;;  %v22778_v60 = vld [vmem:[#allocation16 + $0x1d0] sm:$0xff]  ;;  %v22822_v51 = vld [vmem:[#allocation19] ss:$0 sm:$0xff] }
 0x763   :  { %14559 = vmatpush.bf16.msra.mxu0 %v22784_v20  ;;  %14572 = vmatpush.bf16.msra.mxu1 %v22792_v50  ;;  %v13774_v20 = vpack.c.bf16 %v13613_v63, %v13613_v63  ;;  %v22780_v50 = vld [vmem:[#allocation16 + $0x1e0] sm:$0xff] }
 0x764   :  { %v13777_v21 = vpack.c.bf16 %v13652_v38, %v13652_v38  ;;  %14491 = vmatpush.bf16.msrb.mxu2 %v22747_v10 }
 0x766   :  { %14560 = vmatmul.bf16.vlgmr.msra.gmra.mxu0 %v13779_v33  ;;  %14573 = vmatmul.bf16.vlgmr.msra.gmra.mxu1 %v13780_v34  ;;  %v22777_v33 = vld [vmem:[#allocation16 + $0x1c8] sm:$0xff]  ;;  %v13447_v34 = vperm.slane %v25568_v54, 7 }
 0x768   :  { %14492 = vmatpush.bf16.msrb.mxu2 %v22746_v7  ;;  %v13665_v55 = vadd.f32 %v25576_v12, %v13447_v34 }
 0x769   :  { %v13653_v28 = vpop.f32.mrf.mxu2  ;;  %v13666_v36 = vpop.f32.mrf.mxu3 }
 0x76a   :  { %v22776_v28 = vld [vmem:[#allocation16 + $0x1c0] sm:$0xff] }
 0x76c   :  { %14493 = vmatpush.bf16.msrb.mxu2 %v22745_v46 }
 0x770   :  { %14494 = vmatpush.bf16.msrb.mxu2 %v22744_v8 }
 0x771   :  { %v13730_v58 = vpop.f32.mrf.mxu2 }
 0x772   :  { %v13731_v31 = vadd.f32 %v22820_v44, %v13730_v58  ;;  %v13778_v44 = vpack.c.bf16 %v13665_v55, %v13665_v55 }
 0x774   :  { %v13733_v39 = vmax.f32 %v13731_v31, 0.0 }
 0x776   :  { %20842 = vmatmul.msk.f32.vlgmr.msrb.gmra.mxu3 %vm13746_vm3, %v13733_v39 }
 0x777   :  { %14526 = vmatpush.bf16.msrb.mxu3 %v22775_v5 }
 0x77b   :  { %14527 = vmatpush.bf16.msrb.mxu3 %v22774_v0 }
 0x77e   :  { %14482 = vmatmul.bf16.vlgmr.msra.gmra.mxu3 %v13773_v29 }
 0x77f   :  { %14528 = vmatpush.bf16.msrb.mxu3 %v22773_v49 }
 0x783   :  { %14529 = vmatpush.bf16.msrb.mxu3 %v22772_v18 }
 0x787   :  { %14530 = vmatpush.bf16.msrb.mxu3 %v22771_v35 }
 0x78b   :  { %14531 = vmatpush.bf16.msrb.mxu3 %v22770_v59 }
 0x78f   :  { %14532 = vmatpush.bf16.msrb.mxu3 %v22769_v41 }
 0x793   :  { %14533 = vmatpush.bf16.msrb.mxu3 %v22768_v48 }
 0x796   :  { %14534 = vmatmul.bf16.vlgmr.msrb.gmra.mxu3 %v13777_v21 }
 0x7c3   :  { %v14457_v53 = vpop.f32.mrf.mxu0  ;;  %v14470_v1 = vpop.f32.mrf.mxu1 }
 0x7cb   :  { %v14459_v30 = vpop.f32.mrf.mxu0  ;;  %v14472_v25 = vpop.f32.mrf.mxu1 }
 0x7d3   :  { %v14509_v61 = vpop.f32.mrf.mxu0  ;;  %v14522_v6 = vpop.f32.mrf.mxu1 }
 0x7db   :  { %v14511_v24 = vpop.f32.mrf.mxu0  ;;  %v14524_v37 = vpop.f32.mrf.mxu1 }
 0x7e3   :  { %v14561_v22 = vpop.f32.mrf.mxu0  ;;  %v14574_v42 = vpop.f32.mrf.mxu1 }
 0x7eb   :  { %v14563_v17 = vpop.f32.mrf.mxu0  ;;  %v14576_v11 = vpop.f32.mrf.mxu1 }
 0x7f9   :  { %v13767_v9 = vpop.f32.mrf.mxu3 }
 0x7fa   :  { %v13768_v62 = vadd.f32 %v22821_v52, %v13767_v9 }
 0x7fc   :  { %v13770_v3 = vmax.f32 %v13768_v62, 0.0 }
 0x7fe   :  { %20843 = vmatmul.msk.f32.vlgmr.msra.gmra.mxu2 %vm13560_vm0, %v13770_v3 }
 0x7ff   :  { %14539 = vmatpush.bf16.msra.mxu2 %v22783_v27 }
 0x801   :  { %v14483_v26 = vpop.f32.mrf.mxu3 }
 0x803   :  { %14540 = vmatpush.bf16.msra.mxu2 %v22782_v15 }
 0x806   :  { %14495 = vmatmul.bf16.vlgmr.msrb.gmra.mxu2 %v13774_v20 }
 0x807   :  { %14541 = vmatpush.bf16.msra.mxu2 %v22781_v13 }
 0x809   :  { %v14485_v56 = vpop.f32.mrf.mxu3 }
 0x80b   :  { %14542 = vmatpush.bf16.msra.mxu2 %v22780_v50 }
 0x80f   :  { %14543 = vmatpush.bf16.msra.mxu2 %v22779_v32 }
 0x813   :  { %14544 = vmatpush.bf16.msra.mxu2 %v22778_v60 }
 0x817   :  { %14545 = vmatpush.bf16.msra.mxu2 %v22777_v33 }
 0x819   :  { %v14535_v36 = vpop.f32.mrf.mxu3 }
 0x81b   :  { %14546 = vmatpush.bf16.msra.mxu2 %v22776_v28 }
 0x81e   :  { %14547 = vmatmul.bf16.vlgmr.msra.gmra.mxu2 %v13778_v44 }
 0x821   :  { %v14537_v58 = vpop.f32.mrf.mxu3 }
 0x881   :  { %v13965_v31 = vpop.f32.mrf.mxu2 }
 0x882   :  { %v14458_v40 = vadd.f32 %v14457_v53, %v13965_v31 }
 0x884   :  { %v14471_v39 = vadd.f32 %v14470_v1, %v14458_v40 }
 0x886   :  { %v14484_v16 = vadd.f32 %v14483_v26, %v14471_v39 }
 0x889   :  { %v14496_v5 = vpop.f32.mrf.mxu2 }
 0x88a   :  { %v14497_v49 = vadd.f32 %v14496_v5, %v14484_v16 }
 0x88c   :  { %v14510_v29 = vadd.f32 %v14509_v61, %v14497_v49 }
 0x88e   :  { %v14523_v18 = vadd.f32 %v14522_v6, %v14510_v29 }
 0x890   :  { %v14536_v35 = vadd.f32 %v14535_v36, %v14523_v18 }
 0x891   :  { %v14498_v0 = vpop.f32.mrf.mxu2 }
 0x8a1   :  { %v14548_v54 = vpop.f32.mrf.mxu2 }
 0x8a2   :  { %v14549_v59 = vadd.f32 %v14548_v54, %v14536_v35 }
 0x8a4   :  { %v14562_v41 = vadd.f32 %v14561_v22, %v14549_v59 }
 0x8a6   :  { %v14575_v12 = vadd.f32 %v14574_v42, %v14562_v41 }
 0x8a8   :  { %v14582_v48 = vadd.f32 %v22822_v51, %v14575_v12 }
 0x8a9   :  { %v14550_v38 = vpop.f32.mrf.mxu2 }
 0x8aa   :  { %14583 = vst [vmem:[#allocation20] sm:$0x3] %v14582_v48 }
 0x8ab   :  { %14594 = dma.vmem_to_hbm [thread:$0]  %s14590_s16, 32, %s14592_s1, [#allocation4]  }
 0x8ac   :  { %23265 = dma.done.wait [#allocation4], 32  }
 0x8ad   :  { %23266 = vsyncadd [#allocation4], 4294967264 }
 0x8ae   :  { %14599 = vsyncpa [#allocation3], 1 }
 0x8af   :  { %14600 = vsyncpa [#allocation6], 1 }
 0x8b0   :  { %14601 = vsyncpa [#allocation9], 1 }
 0x8b1   :  { %14602 = vsyncpa [#allocation12], 1 }
 0x8b2   :  { %14603 = vsyncpa [#allocation15], 1 }
 0x8b3   :  { %14604 = vsyncpa [#allocation18], 1 }
 0x8b4   :  { %14605 = vsyncpa [#allocation4], 1 }

</bundles_post_ra>
